<compile_context>
chip_gen: v5e
topology: v5e:2x2
jax: 0.10.0
libtpu: 0.0.40
codegen_flags: <defaults>
</compile_context>

<pallas_src>
import functools
import math

import jax
import jax.numpy as jnp
from jax.experimental import pallas as pl
from jax.experimental.pallas import tpu as pltpu

DIM = 8          # "dim" of the torch module (64 originally; small synthetic size)
OUT_DIM = 3
DIM_MULTS = (1, 2)

_ACT_DTYPE = jnp.bfloat16   # HBM storage dtype for activations

_CPARAMS = pltpu.CompilerParams(
    dimension_semantics=("parallel",),
    vmem_limit_bytes=48 * 1024 * 1024,
)


# ---------------------------------------------------------------------------
# In-kernel helpers
# ---------------------------------------------------------------------------
def _mish(x):
    """Mish(x) = x * tanh(softplus(x)) with a single transcendental (exp)."""
    e = jnp.exp(-jnp.abs(x))
    e2 = e * e
    pos = x >= 0
    num = jnp.where(pos, 1.0 + 2.0 * e, 2.0 * e + e2)
    den = jnp.where(pos, 1.0 + 2.0 * e + 2.0 * e2, 2.0 + 2.0 * e + e2)
    return x * (num / den)


def _conv_taps(x, w, *, H, W, mode):
    """3x3 conv over an implicitly (C, B, H, W) tensor stored as (C, N=B*H*W).

    Builds the 9-tap stack (9*C, N) in VMEM with lane rotations + boundary masks
    (mode='reflect' == ReflectionPad2d(1), mode='zero' == zero padding=1), casts it
    to bf16 and contracts against the prepacked bf16 weight (Cout, 9*C) in ONE MXU
    dot with f32 accumulation.  Taps are built/concatenated in f32 so sublane
    concatenation stays on the well-supported 32-bit path; the dot itself is bf16.
    """
    x = x.astype(jnp.float32)
    C, N = x.shape
    HW = H * W

    lane = jax.lax.broadcasted_iota(jnp.int32, (1, N), 1)
    rowpos = jnp.bitwise_and(lane, HW - 1)          # y*W + x within each image
    col = jnp.bitwise_and(lane, W - 1)              # x within each row
    top = rowpos < W
    bot = rowpos >= (HW - W)
    left = col == 0
    right = col == (W - 1)

    zero = jnp.zeros_like(x)
    up = pltpu.roll(x, W, axis=1)                   # up[p] = x[p - W]  (row y-1)
    dn = pltpu.roll(x, N - W, axis=1)               # dn[p] = x[p + W]  (row y+1)
    if mode == "reflect":
        v = {-1: jnp.where(top, dn, up), 0: x, 1: jnp.where(bot, up, dn)}
    else:  # zero padding
        v = {-1: jnp.where(top, zero, up), 0: x, 1: jnp.where(bot, zero, dn)}

    taps = []
    for dy in (-1, 0, 1):
        vy = v[dy]
        lft = pltpu.roll(vy, 1, axis=1)             # lft[p] = vy[p - 1] (col x-1)
        rgt = pltpu.roll(vy, N - 1, axis=1)         # rgt[p] = vy[p + 1] (col x+1)
        if mode == "reflect":
            taps += [jnp.where(left, rgt, lft), vy, jnp.where(right, lft, rgt)]
        else:
            taps += [jnp.where(left, zero, lft), vy, jnp.where(right, zero, rgt)]

    stack = jnp.concatenate(taps, axis=0).astype(jnp.bfloat16)        # (9C, N)
    return jnp.dot(w.astype(jnp.bfloat16), stack,
                   preferred_element_type=jnp.float32)


# ---------------------------------------------------------------------------
# Pallas kernels
# ---------------------------------------------------------------------------
def _resblock_kernel(*refs, H, W, B, ipb, has_skip, has_res, has_add):
    """Fused ResnetBlock: conv1(reflect)+Mish (+skip conv) + temb, conv2(reflect)+Mish,
    + residual (1x1 conv or identity) + optional cond add."""
    it = iter(refs)
    x_ref = next(it)
    temb_ref = next(it)
    w1x_ref = next(it)
    b1_ref = next(it)
    w2_ref = next(it)
    b2_ref = next(it)
    skip_ref = next(it) if has_skip else None
    w1s_ref = next(it) if has_skip else None
    wrx_ref = next(it) if has_res else None
    brs_ref = next(it) if has_res else None
    wrs_ref = next(it) if (has_res and has_skip) else None
    add_ref = next(it) if has_add else None
    o_ref = next(it)

    x = x_ref[...]                                  # bf16 (Cx, LB)
    LB = x.shape[1]
    HW = H * W

    acc = _conv_taps(x, w1x_ref[...], H=H, W=W, mode="reflect") + b1_ref[...]
    if has_skip:
        acc = acc + _conv_taps(skip_ref[...], w1s_ref[...], H=H, W=W, mode="reflect")
    h = _mish(acc)                                  # (Cout, LB) f32

    # per-image time-embedding add (no HBM temb tensor, no MXU involvement)
    lane = jax.lax.broadcasted_iota(jnp.int32, (1, LB), 1)
    gi = pl.program_id(0) * ipb + jnp.right_shift(lane, int(math.log2(HW)))
    t = jnp.zeros((h.shape[0], LB), jnp.float32)
    for b in range(B):
        t = jnp.where(gi == b, temb_ref[:, b:b + 1].astype(jnp.float32), t)
    h = h + t

    out = _mish(_conv_taps(h, w2_ref[...], H=H, W=W, mode="reflect") + b2_ref[...])

    if has_res:
        res = jnp.dot(wrx_ref[...], x, preferred_element_type=jnp.float32) + brs_ref[...]
        if has_skip:
            res = res + jnp.dot(wrs_ref[...], skip_ref[...],
                                preferred_element_type=jnp.float32)
        out = out + res
    else:
        out = out + x.astype(jnp.float32)
    if has_add:
        out = out + add_ref[...].astype(jnp.float32)
    o_ref[...] = out.astype(o_ref.dtype)


def _convgen_kernel(x_ref, w_ref, b_ref, *rest, H, W, mode, act, has_proj):
    """Generic 3x3-style conv with prepacked (Cout, 9*Cin) weight
    (+ optional Mish and fused trailing 1x1 conv).  Also serves ConvTranspose2d
    (sub-pixel phase decomposition -> dense matmul, zero padding mode)."""
    if has_proj:
        wp_ref, bp_ref, o_ref = rest
    else:
        (o_ref,) = rest
    acc = _conv_taps(x_ref[...], w_ref[...], H=H, W=W, mode=mode) + b_ref[...]
    if act == "mish":
        acc = _mish(acc)
    if has_proj:
        acc = jnp.dot(wp_ref[...], acc.astype(jnp.bfloat16),
                      preferred_element_type=jnp.float32) + bp_ref[...]
    o_ref[...] = acc.astype(o_ref.dtype)


def _downsample_kernel(xp_ref, w_ref, b_ref, o_ref, *, Hd, Wd, C):
    """Conv2d(C, C, 3, stride=2, padding=1) computed DIRECTLY at H/2 x W/2.

    Input is the sub-pixel phase split of x: (4*C, B*Hd*Wd) with phase q = ay*2+ax in
    channel block q.  Taps x[2*oy+dy, 2*ox+dx] come from phase (ay(dy), ax(dx)) with a
    {-1,0} roll and zero masking on the top/left boundaries only.
    """
    xp = xp_ref[...].astype(jnp.float32)            # (4C, LB)
    LB = xp.shape[1]
    HWd = Hd * Wd

    lane = jax.lax.broadcasted_iota(jnp.int32, (1, LB), 1)
    rowpos = jnp.bitwise_and(lane, HWd - 1)
    col = jnp.bitwise_and(lane, Wd - 1)
    top = rowpos < Wd
    left = col == 0

    taps = []
    for dy in (-1, 0, 1):
        ay, sy = (1, True) if dy == -1 else ((0, False) if dy == 0 else (1, False))
        for dx in (-1, 0, 1):
            ax, sx = (1, True) if dx == -1 else ((0, False) if dx == 0 else (1, False))
            q = ay * 2 + ax
            v = xp[q * C:(q + 1) * C, :]
            if sy:
                v = jnp.where(top, 0.0, pltpu.roll(v, Wd, axis=1))
            if sx:
                v = jnp.where(left, 0.0, pltpu.roll(v, 1, axis=1))
            taps.append(v)
    stack = jnp.concatenate(taps, axis=0).astype(jnp.bfloat16)        # (9C, LB)
    acc = jnp.dot(w_ref[...], stack, preferred_element_type=jnp.float32) + b_ref[...]
    o_ref[...] = acc.astype(o_ref.dtype)


def _time_kernel(pos_ref, w1_ref, b1_ref, w2_ref, b2_ref, wp_ref, bp_ref, o_ref):
    """Time MLP (Linear-Mish-Linear), the shared Mish, and every ResnetBlock's
    time projection fused into one tiny call."""
    t = jnp.dot(pos_ref[...], w1_ref[...], preferred_element_type=jnp.float32) + b1_ref[...]
    t = _mish(t)
    t = jnp.dot(t, w2_ref[...], preferred_element_type=jnp.float32) + b2_ref[...]
    t = _mish(t)   # Mish() at the head of every ResnetBlock.mlp (shared)
    o_ref[...] = (jnp.dot(t, wp_ref[...], preferred_element_type=jnp.float32)
                  + bp_ref[...]).astype(o_ref.dtype)


# ---------------------------------------------------------------------------
# Grid / spec helpers
# ---------------------------------------------------------------------------
def _img_blocks(HW, B):
    """Images per block: smallest whole-image tile whose lane width is a multiple of
    128 (falls back to the whole batch = full array, always legal)."""
    for c in range(1, B):
        if B % c == 0 and (c * HW) % 128 == 0:
            return c
    return B


def _pad_rows(x, rows):
    if x.shape[0] < rows:
        x = jnp.pad(x, ((0, rows - x.shape[0]), (0, 0)))
    return x


def _lane_spec(C, LB):
    return pl.BlockSpec((C, LB), lambda i: (0, i))


def _full_spec(a):
    return pl.BlockSpec(a.shape, lambda i: (0, 0))


# ---------------------------------------------------------------------------
# Layer wrappers (one pallas_call each; all weight packing done in prepack)
# ---------------------------------------------------------------------------
def resnet_block(x, rp, temb, H, W, B, skip=None, add=None):
    assert H & (H - 1) == 0 and W & (W - 1) == 0
    HW = H * W
    Cout = rp["c2"]["w"].shape[0]
    has_skip = skip is not None
    has_res = "rx" in rp
    has_add = add is not None
    assert has_res or not has_skip

    cin_x = rp["c1x"]["w"].shape[1] // 9
    x = _pad_rows(x, cin_x)
    Cx = x.shape[0]
    N = x.shape[1]

    ipb = _img_blocks(HW, B)
    LB = ipb * HW
    grid = (N // LB,)

    args = [x, temb, rp["c1x"]["w"], rp["c1x"]["b"], rp["c2"]["w"], rp["c2"]["b"]]
    specs = [_lane_spec(Cx, LB), _full_spec(temb), _full_spec(rp["c1x"]["w"]),
             _full_spec(rp["c1x"]["b"]), _full_spec(rp["c2"]["w"]),
             _full_spec(rp["c2"]["b"])]
    if has_skip:
        cin_s = rp["c1s"]["w"].shape[1] // 9
        skip = _pad_rows(skip, cin_s)
        args += [skip, rp["c1s"]["w"]]
        specs += [_lane_spec(skip.shape[0], LB), _full_spec(rp["c1s"]["w"])]
    if has_res:
        args += [rp["rx"]["w"], rp["rx"]["b"]]
        specs += [_full_spec(rp["rx"]["w"]), _full_spec(rp["rx"]["b"])]
        if has_skip:
            args += [rp["rs"]["w"]]
            specs += [_full_spec(rp["rs"]["w"])]
    if has_add:
        args += [add]
        specs += [_lane_spec(Cout, LB)]

    kernel = functools.partial(_resblock_kernel, H=H, W=W, B=B, ipb=ipb,
                               has_skip=has_skip, has_res=has_res, has_add=has_add)
    return pl.pallas_call(
        kernel,
        grid=grid,
        in_specs=specs,
        out_specs=_lane_spec(Cout, LB),
        out_shape=jax.ShapeDtypeStruct((Cout, N), _ACT_DTYPE),
        compiler_params=_CPARAMS,
    )(*args)


def downsample(x, dp, H, W, B):
    """Conv2d(C, C, 3, stride=2, padding=1), phase-decomposed: computed at H/2 x W/2."""
    assert H & (H - 1) == 0 and W & (W - 1) == 0
    C, N = x.shape
    Hd, Wd = H // 2, W // 2
    Cout = dp["w"].shape[0]
    assert dp["w"].shape[1] == 9 * C
    Nd = B * Hd * Wd

    # sub-pixel phase split: (C, B, H, W) -> rows grouped by phase (ay, ax)
    xp = x.reshape(C, B, Hd, 2, Wd, 2)
    xp = jnp.transpose(xp, (3, 5, 0, 1, 2, 4)).reshape(4 * C, Nd)

    ipb = _img_blocks(Hd * Wd, B)
    LB = ipb * Hd * Wd
    grid = (Nd // LB,)
    return pl.pallas_call(
        functools.partial(_downsample_kernel, Hd=Hd, Wd=Wd, C=C),
        grid=grid,
        in_specs=[_lane_spec(4 * C, LB), _full_spec(dp["w"]), _full_spec(dp["b"])],
        out_specs=_lane_spec(Cout, LB),
        out_shape=jax.ShapeDtypeStruct((Cout, Nd), _ACT_DTYPE),
        compiler_params=_CPARAMS,
    )(xp, dp["w"], dp["b"])


def conv_transpose(x, cp, H, W, B, stride):
    """ConvTranspose2d via sub-pixel phases; taps built IN-KERNEL (no HBM im2col)."""
    assert H & (H - 1) == 0 and W & (W - 1) == 0
    s = stride
    rows = cp["w"].shape[0]                 # s*s*Cout
    Cout = rows // (s * s)
    cin = cp["w"].shape[1] // 9
    x = _pad_rows(x, cin)
    N = x.shape[1]
    assert N == B * H * W

    ipb = _img_blocks(H * W, B)
    LB = ipb * H * W
    grid = (N // LB,)
    out = pl.pallas_call(
        functools.partial(_convgen_kernel, H=H, W=W, mode="zero",
                          act="none", has_proj=False),
        grid=grid,
        in_specs=[_lane_spec(cin, LB), _full_spec(cp["w"]), _full_spec(cp["b"])],
        out_specs=_lane_spec(rows, LB),
        out_shape=jax.ShapeDtypeStruct((rows, N), _ACT_DTYPE),
        compiler_params=_CPARAMS,
    )(x, cp["w"], cp["b"])

    # TODO(synk): phase interleave is an XLA relayout; could be fused into the
    # consumer or expressed via an output index_map in a later revision.
    o = out.reshape(s, s, Cout, B, H, W)
    o = jnp.transpose(o, (2, 3, 4, 0, 5, 1))
    return o.reshape(Cout, B * H * s * W * s)


def final_conv(x, bp, p1, H, W, B):
    """final_conv = Block(dim, dim) (reflect 3x3 + Mish) fused with Conv2d(dim, out_dim, 1)."""
    assert H & (H - 1) == 0 and W & (W - 1) == 0
    C, N = x.shape
    Cout = p1["w"].shape[0]
    ipb = _img_blocks(H * W, B)
    LB = ipb * H * W
    grid = (N // LB,)
    return pl.pallas_call(
        functools.partial(_convgen_kernel, H=H, W=W, mode="reflect",
                          act="mish", has_proj=True),
        grid=grid,
        in_specs=[_lane_spec(C, LB), _full_spec(bp["w"]), _full_spec(bp["b"]),
                  _full_spec(p1["w"]), _full_spec(p1["b"])],
        out_specs=_lane_spec(Cout, LB),
        out_shape=jax.ShapeDtypeStruct((Cout, N), jnp.float32),
        compiler_params=_CPARAMS,
    )(x, bp["w"], bp["b"], p1["w"], p1["b"])


def _packed_resblocks_in_order(pp):
    rbs = []
    for st in pp["downs"]:
        rbs += [st["res1"], st["res2"]]
    rbs += [pp["mid1"], pp["mid2"]]
    for st in pp["ups"]:
        rbs += [st["res1"], st["res2"]]
    return rbs


def compute_time_embeddings(pp, time, B):
    """One Pallas call for the whole time path; returns per-resblock (Cout_i, B) slices."""
    tp = pp["time"]
    dim = tp["mlp1_w"].shape[0]
    half = dim // 2
    freqs = jnp.exp(jnp.arange(half, dtype=jnp.float32) * -(math.log(10000.0) / (half - 1)))
    ang = time.astype(jnp.float32)[:, None] * freqs[None, :]
    pos = jnp.concatenate([jnp.sin(ang), jnp.cos(ang)], axis=-1)       # (B, dim)

    temb_all = pl.pallas_call(
        _time_kernel,
        out_shape=jax.ShapeDtypeStruct((B, tp["proj_w"].shape[1]), jnp.float32),
    )(pos, tp["mlp1_w"], tp["mlp1_b"], tp["mlp2_w"], tp["mlp2_b"],
      tp["proj_w"], tp["proj_b"])

    temb_t = temb_all.T                                                # (totC, B)
    out, off = [], 0
    for rb in _packed_resblocks_in_order(pp):
        c = rb["c2"]["w"].shape[0]
        out.append(temb_t[off:off + c])
        off += c
    return out


# ---------------------------------------------------------------------------
# One-time parameter prepacking (torch layouts -> kernel-ready bf16 layouts)
# ---------------------------------------------------------------------------
def prepack_params(params):
    bf, f32 = jnp.bfloat16, jnp.float32

    def pack3x3_w(w):                       # w: (cout, cin, 3, 3)
        cout, cin = w.shape[0], w.shape[1]
        pad = (-cin) % 8
        if pad:
            w = jnp.pad(w, ((0, 0), (0, pad), (0, 0), (0, 0)))
            cin += pad
        wp = jnp.transpose(w.reshape(cout, cin, 9), (0, 2, 1)).reshape(cout, 9 * cin)
        return wp.astype(bf)

    def pack3x3(conv):
        return {"w": pack3x3_w(conv["w"]),
                "b": conv["b"].reshape(-1, 1).astype(f32)}

    def pack_res(rb, split=0):
        cout = rb["conv1"]["w"].shape[0]
        out = {"c2": pack3x3(rb["conv2"])}
        w1, b1 = rb["conv1"]["w"], rb["conv1"]["b"]
        if split:
            out["c1x"] = {"w": pack3x3_w(w1[:, :split]),
                          "b": b1.reshape(-1, 1).astype(f32)}
            out["c1s"] = {"w": pack3x3_w(w1[:, split:])}
        else:
            out["c1x"] = pack3x3(rb["conv1"])
        if rb["res"] is not None:
            wr = rb["res"]["w"].reshape(cout, -1)
            br = rb["res"]["b"].reshape(-1, 1).astype(f32)
            if split:
                out["rx"] = {"w": wr[:, :split].astype(bf), "b": br}
                out["rs"] = {"w": wr[:, split:].astype(bf)}
            else:
                pad = (-wr.shape[1]) % 8
                if pad:
                    wr = jnp.pad(wr, ((0, 0), (0, pad)))
                out["rx"] = {"w": wr.astype(bf), "b": br}
        return out

    def pack_convT(ct, stride, padding):    # torch weight: (cin, cout, k, k)
        w, b = ct["w"], ct["b"]
        cin, cout, k = w.shape[0], w.shape[1], w.shape[2]
        pad = (-cin) % 8
        if pad:
            w = jnp.pad(w, ((0, pad), (0, 0), (0, 0), (0, 0)))
            cin += pad
        s, p = stride, padding
        blocks = []
        for py in range(s):
            for px in range(s):
                row = []
                for dy in (-1, 0, 1):
                    for dx in (-1, 0, 1):
                        ky, kx = py + p - s * dy, px + p - s * dx
                        if 0 <= ky < k and 0 <= kx < k:
                            row.append(jnp.transpose(w[:, :, ky, kx]))   # (cout, cin)
                        else:
                            row.append(jnp.zeros((cout, cin), w.dtype))
                blocks.append(jnp.concatenate(row, axis=1))
        wbig = jnp.concatenate(blocks, axis=0).astype(bf)                # (s*s*cout, 9*cin)
        bbig = jnp.tile(b, (s * s,)).reshape(s * s * cout, 1).astype(f32)
        return {"w": wbig, "b": bbig}

    pp = {"cond_proj": pack_convT(params["cond_proj"], 4, 2), "downs": [], "ups": []}
    for st in params["downs"]:
        d = {"res1": pack_res(st["res1"]), "res2": pack_res(st["res2"])}
        if st["down"] is not None:
            d["down"] = pack3x3(st["down"])
        pp["downs"].append(d)
    pp["mid1"] = pack_res(params["mid1"])
    pp["mid2"] = pack_res(params["mid2"])
    for st in params["ups"]:
        cin_total = st["res1"]["conv1"]["w"].shape[1]       # = 2 * skip channels
        u = {"res1": pack_res(st["res1"], split=cin_total // 2),
             "res2": pack_res(st["res2"])}
        if st["up"] is not None:
            u["up"] = pack_convT(st["up"], 2, 1)
        pp["ups"].append(u)
    pp["final_block"] = pack3x3(params["final_block"])
    pp["final_1x1"] = {
        "w": params["final_conv"]["w"].reshape(params["final_conv"]["w"].shape[0], -1).astype(bf),
        "b": params["final_conv"]["b"].reshape(-1, 1).astype(f32)}

    rbs_torch = []
    for st in params["downs"]:
        rbs_torch += [st["res1"], st["res2"]]
    rbs_torch += [params["mid1"], params["mid2"]]
    for st in params["ups"]:
        rbs_torch += [st["res1"], st["res2"]]
    proj_w = jnp.concatenate([rb["mlp"]["w"] for rb in rbs_torch], axis=1).astype(f32)
    proj_b = jnp.concatenate([rb["mlp"]["b"] for rb in rbs_torch]).reshape(1, -1).astype(f32)
    pp["time"] = {"mlp1_w": params["mlp1"]["w"].astype(f32),
                  "mlp1_b": params["mlp1"]["b"].reshape(1, -1).astype(f32),
                  "mlp2_w": params["mlp2"]["w"].astype(f32),
                  "mlp2_b": params["mlp2"]["b"].reshape(1, -1).astype(f32),
                  "proj_w": proj_w, "proj_b": proj_b}
    return pp


# ---------------------------------------------------------------------------
# Deterministic synthetic parameter initialization (matches torch module shapes)
# ---------------------------------------------------------------------------
def _init(key, shape, fan_in):
    return jax.random.normal(key, shape, jnp.float32) * (1.0 / math.sqrt(fan_in))


def init_unet_params(key, dim=DIM, out_dim=OUT_DIM, dim_mults=DIM_MULTS):
    dims = [3] + [dim * m for m in dim_mults]
    in_out = list(zip(dims[:-1], dims[1:]))
    keys = iter(jax.random.split(key, 256))

    def nk():
        return next(keys)

    def conv_p(cin, cout, k):
        return {"w": _init(nk(), (cout, cin, k, k), cin * k * k),
                "b": _init(nk(), (cout,), cin * k * k)}

    def convT_p(cin, cout, k):
        return {"w": _init(nk(), (cin, cout, k, k), cin * k * k),
                "b": _init(nk(), (cout,), cin * k * k)}

    def lin_p(fin, fout):
        return {"w": _init(nk(), (fin, fout), fin),
                "b": _init(nk(), (fout,), fin)}

    def resblock_p(cin, cout, tdim):
        return {"mlp": lin_p(tdim, cout),
                "conv1": conv_p(cin, cout, 3),
                "conv2": conv_p(cout, cout, 3),
                "res": conv_p(cin, cout, 1) if cin != cout else None}

    n = len(in_out)
    params = {
        "cond_proj": convT_p(3, dim, 8),           # ConvTranspose2d(3, dim, 8, 4, 2)
        "mlp1": lin_p(dim, dim * 4),
        "mlp2": lin_p(dim * 4, dim),
        "downs": [],
        "ups": [],
    }
    for ind, (ci, co) in enumerate(in_out):
        is_last = ind >= n - 1
        params["downs"].append({
            "res1": resblock_p(ci, co, dim),
            "res2": resblock_p(co, co, dim),
            "down": conv_p(co, co, 3) if not is_last else None,   # Conv2d(.,.,3,stride=2,pad=1)
        })
    mid = dims[-1]
    params["mid1"] = resblock_p(mid, mid, dim)
    params["mid2"] = resblock_p(mid, mid, dim)
    for ind, (ci, co) in enumerate(reversed(in_out[1:])):
        is_last = ind >= n - 1
        params["ups"].append({
            "res1": resblock_p(co * 2, ci, dim),
            "res2": resblock_p(ci, ci, dim),
            "up": convT_p(ci, ci, 4) if not is_last else None,    # ConvTranspose2d(.,.,4,2,1)
        })
    params["final_block"] = conv_p(dim, dim, 3)
    params["final_conv"] = conv_p(dim, out_dim, 1)
    return params


# ---------------------------------------------------------------------------
# Full Unet forward (consumes prepacked params)
# ---------------------------------------------------------------------------
def unet_forward(pp, x_nchw, time, cond_nchw):
    B, Cx0, H, W = x_nchw.shape
    Cc, Hc, Wc = cond_nchw.shape[1], cond_nchw.shape[2], cond_nchw.shape[3]

    # channels-major layout: (C, B*H*W) with batch+spatial on the lane axis
    x = jnp.transpose(x_nchw, (1, 0, 2, 3)).reshape(Cx0, B * H * W).astype(_ACT_DTYPE)
    cond = jnp.transpose(cond_nchw, (1, 0, 2, 3)).reshape(Cc, B * Hc * Wc).astype(_ACT_DTYPE)

    tembs = iter(compute_time_embeddings(pp, time, B))

    # cond_proj: ConvTranspose2d(3, dim, 8, stride=4, padding=2)
    cond_up = conv_transpose(cond, pp["cond_proj"], Hc, Wc, B, stride=4)

    h_stack = []
    for i, st in enumerate(pp["downs"]):
        x = resnet_block(x, st["res1"], next(tembs), H, W, B)
        add = cond_up if i == 0 else None          # x + cond fused into res2's kernel
        x = resnet_block(x, st["res2"], next(tembs), H, W, B, add=add)
        h_stack.append(x)
        if "down" in st:
            x = downsample(x, st["down"], H, W, B)
            H, W = H // 2, W // 2

    x = resnet_block(x, pp["mid1"], next(tembs), H, W, B)
    x = resnet_block(x, pp["mid2"], next(tembs), H, W, B)

    for st in pp["ups"]:
        skip = h_stack.pop()                       # channel concat -> split-weight dual input
        x = resnet_block(x, st["res1"], next(tembs), H, W, B, skip=skip)
        x = resnet_block(x, st["res2"], next(tembs), H, W, B)
        if "up" in st:
            x = conv_transpose(x, st["up"], H, W, B, stride=2)
            H, W = H * 2, W * 2

    out = final_conv(x, pp["final_block"], pp["final_1x1"], H, W, B)   # (out_dim, B*H*W) f32
    out_dim = out.shape[0]
    return jnp.transpose(out.reshape(out_dim, B, H, W), (1, 0, 2, 3))  # back to NCHW


# ---------------------------------------------------------------------------
if __name__ == "__main__":
    key = jax.random.PRNGKey(0)
    kp, kx, kt, kc = jax.random.split(key, 4)

    params = init_unet_params(kp)
    packed = prepack_params(params)        # one-time weight repacking (outside forward)

    x = jax.random.normal(kx, (2, 3, 16, 16), jnp.float32)          # NCHW, like torch
    time = jax.random.uniform(kt, (2,), jnp.float32, 0.0, 100.0)
    cond = jax.random.normal(kc, (2, 3, 4, 4), jnp.float32)         # upsampled 4x by cond_proj

    fwd = jax.jit(unet_forward)
    out = fwd(packed, x, time, cond)
    out = jax.block_until_ready(out)
    assert out.shape == (2, OUT_DIM, 16, 16), out.shape
    assert jnp.all(jnp.isfinite(out))
    print("KERNEL_OK")
</pallas_src>

<mosaic_0001>
module attributes {stable_mosaic.version = 11 : i64} {
  func.func @_time_kernel(%arg0: memref<2x8xf32, #tpu.memory_space<vmem>>, %arg1: memref<8x32xf32, #tpu.memory_space<vmem>>, %arg2: memref<1x32xf32, #tpu.memory_space<vmem>>, %arg3: memref<32x8xf32, #tpu.memory_space<vmem>>, %arg4: memref<1x8xf32, #tpu.memory_space<vmem>>, %arg5: memref<8x96xf32, #tpu.memory_space<vmem>>, %arg6: memref<1x96xf32, #tpu.memory_space<vmem>>, %arg7: memref<2x96xf32, #tpu.memory_space<vmem>>) attributes {dimension_semantics = [], scalar_prefetch = 0 : i64, scratch_operands = 0 : i64, tpu.core_type = #tpu.core_type<tc>} {
    %c0 = arith.constant 0 : index
    %c0_0 = arith.constant 0 : index
    %0 = vector.load %arg0[%c0, %c0_0] : memref<2x8xf32, #tpu.memory_space<vmem>>, vector<2x8xf32>
    %c0_1 = arith.constant 0 : index
    %c0_2 = arith.constant 0 : index
    %1 = vector.load %arg1[%c0_1, %c0_2] : memref<8x32xf32, #tpu.memory_space<vmem>>, vector<8x32xf32>
    %cst = arith.constant dense<0.000000e+00> : vector<2x32xf32>
    %2 = tpu.matmul %0, %1, %cst {dimension_numbers = #tpu.dot_dimension_numbers<[1], [0], [0], [1], [0, 0, 1, 1], [], []>} : vector<2x8xf32>, vector<8x32xf32>, vector<2x32xf32> -> vector<2x32xf32>
    %c0_3 = arith.constant 0 : index
    %c0_4 = arith.constant 0 : index
    %3 = vector.load %arg2[%c0_3, %c0_4] : memref<1x32xf32, #tpu.memory_space<vmem>>, vector<1x32xf32>
    %4 = vector.broadcast %3 : vector<1x32xf32> to vector<2x32xf32>
    %5 = arith.addf %2, %4 : vector<2x32xf32>
    %6 = math.absf %5 : vector<2x32xf32>
    %cst_5 = arith.constant 0.000000e+00 : f32
    %7 = vector.broadcast %cst_5 : f32 to vector<2x32xf32>
    %8 = arith.subf %7, %6 : vector<2x32xf32>
    %9 = math.exp %8 : vector<2x32xf32>
    %10 = arith.mulf %9, %9 : vector<2x32xf32>
    %cst_6 = arith.constant 0.000000e+00 : f32
    %11 = vector.broadcast %cst_6 : f32 to vector<2x32xf32>
    %12 = arith.cmpf oge, %5, %11 : vector<2x32xf32>
    %cst_7 = arith.constant 2.000000e+00 : f32
    %13 = vector.broadcast %cst_7 : f32 to vector<2x32xf32>
    %14 = arith.mulf %13, %9 : vector<2x32xf32>
    %cst_8 = arith.constant 1.000000e+00 : f32
    %15 = vector.broadcast %cst_8 : f32 to vector<2x32xf32>
    %16 = arith.addf %15, %14 : vector<2x32xf32>
    %cst_9 = arith.constant 2.000000e+00 : f32
    %17 = vector.broadcast %cst_9 : f32 to vector<2x32xf32>
    %18 = arith.mulf %17, %9 : vector<2x32xf32>
    %19 = arith.addf %18, %10 : vector<2x32xf32>
    %20 = arith.select %12, %16, %19 : vector<2x32xi1>, vector<2x32xf32>
    %cst_10 = arith.constant 2.000000e+00 : f32
    %21 = vector.broadcast %cst_10 : f32 to vector<2x32xf32>
    %22 = arith.mulf %21, %9 : vector<2x32xf32>
    %cst_11 = arith.constant 1.000000e+00 : f32
    %23 = vector.broadcast %cst_11 : f32 to vector<2x32xf32>
    %24 = arith.addf %23, %22 : vector<2x32xf32>
    %cst_12 = arith.constant 2.000000e+00 : f32
    %25 = vector.broadcast %cst_12 : f32 to vector<2x32xf32>
    %26 = arith.mulf %25, %10 : vector<2x32xf32>
    %27 = arith.addf %24, %26 : vector<2x32xf32>
    %cst_13 = arith.constant 2.000000e+00 : f32
    %28 = vector.broadcast %cst_13 : f32 to vector<2x32xf32>
    %29 = arith.mulf %28, %9 : vector<2x32xf32>
    %cst_14 = arith.constant 2.000000e+00 : f32
    %30 = vector.broadcast %cst_14 : f32 to vector<2x32xf32>
    %31 = arith.addf %30, %29 : vector<2x32xf32>
    %32 = arith.addf %31, %10 : vector<2x32xf32>
    %33 = arith.select %12, %27, %32 : vector<2x32xi1>, vector<2x32xf32>
    %34 = arith.divf %20, %33 : vector<2x32xf32>
    %35 = arith.mulf %5, %34 : vector<2x32xf32>
    %c0_15 = arith.constant 0 : index
    %c0_16 = arith.constant 0 : index
    %36 = vector.load %arg3[%c0_15, %c0_16] : memref<32x8xf32, #tpu.memory_space<vmem>>, vector<32x8xf32>
    %cst_17 = arith.constant dense<0.000000e+00> : vector<2x8xf32>
    %37 = tpu.matmul %35, %36, %cst_17 {dimension_numbers = #tpu.dot_dimension_numbers<[1], [0], [0], [1], [0, 0, 1, 1], [], []>} : vector<2x32xf32>, vector<32x8xf32>, vector<2x8xf32> -> vector<2x8xf32>
    %c0_18 = arith.constant 0 : index
    %c0_19 = arith.constant 0 : index
    %38 = vector.load %arg4[%c0_18, %c0_19] : memref<1x8xf32, #tpu.memory_space<vmem>>, vector<1x8xf32>
    %39 = vector.broadcast %38 : vector<1x8xf32> to vector<2x8xf32>
    %40 = arith.addf %37, %39 : vector<2x8xf32>
    %41 = math.absf %40 : vector<2x8xf32>
    %cst_20 = arith.constant 0.000000e+00 : f32
    %42 = vector.broadcast %cst_20 : f32 to vector<2x8xf32>
    %43 = arith.subf %42, %41 : vector<2x8xf32>
    %44 = math.exp %43 : vector<2x8xf32>
    %45 = arith.mulf %44, %44 : vector<2x8xf32>
    %cst_21 = arith.constant 0.000000e+00 : f32
    %46 = vector.broadcast %cst_21 : f32 to vector<2x8xf32>
    %47 = arith.cmpf oge, %40, %46 : vector<2x8xf32>
    %cst_22 = arith.constant 2.000000e+00 : f32
    %48 = vector.broadcast %cst_22 : f32 to vector<2x8xf32>
    %49 = arith.mulf %48, %44 : vector<2x8xf32>
    %cst_23 = arith.constant 1.000000e+00 : f32
    %50 = vector.broadcast %cst_23 : f32 to vector<2x8xf32>
    %51 = arith.addf %50, %49 : vector<2x8xf32>
    %cst_24 = arith.constant 2.000000e+00 : f32
    %52 = vector.broadcast %cst_24 : f32 to vector<2x8xf32>
    %53 = arith.mulf %52, %44 : vector<2x8xf32>
    %54 = arith.addf %53, %45 : vector<2x8xf32>
    %55 = arith.select %47, %51, %54 : vector<2x8xi1>, vector<2x8xf32>
    %cst_25 = arith.constant 2.000000e+00 : f32
    %56 = vector.broadcast %cst_25 : f32 to vector<2x8xf32>
    %57 = arith.mulf %56, %44 : vector<2x8xf32>
    %cst_26 = arith.constant 1.000000e+00 : f32
    %58 = vector.broadcast %cst_26 : f32 to vector<2x8xf32>
    %59 = arith.addf %58, %57 : vector<2x8xf32>
    %cst_27 = arith.constant 2.000000e+00 : f32
    %60 = vector.broadcast %cst_27 : f32 to vector<2x8xf32>
    %61 = arith.mulf %60, %45 : vector<2x8xf32>
    %62 = arith.addf %59, %61 : vector<2x8xf32>
    %cst_28 = arith.constant 2.000000e+00 : f32
    %63 = vector.broadcast %cst_28 : f32 to vector<2x8xf32>
    %64 = arith.mulf %63, %44 : vector<2x8xf32>
    %cst_29 = arith.constant 2.000000e+00 : f32
    %65 = vector.broadcast %cst_29 : f32 to vector<2x8xf32>
    %66 = arith.addf %65, %64 : vector<2x8xf32>
    %67 = arith.addf %66, %45 : vector<2x8xf32>
    %68 = arith.select %47, %62, %67 : vector<2x8xi1>, vector<2x8xf32>
    %69 = arith.divf %55, %68 : vector<2x8xf32>
    %70 = arith.mulf %40, %69 : vector<2x8xf32>
    %c0_30 = arith.constant 0 : index
    %c0_31 = arith.constant 0 : index
    %71 = vector.load %arg5[%c0_30, %c0_31] : memref<8x96xf32, #tpu.memory_space<vmem>>, vector<8x96xf32>
    %cst_32 = arith.constant dense<0.000000e+00> : vector<2x96xf32>
    %72 = tpu.matmul %70, %71, %cst_32 {dimension_numbers = #tpu.dot_dimension_numbers<[1], [0], [0], [1], [0, 0, 1, 1], [], []>} : vector<2x8xf32>, vector<8x96xf32>, vector<2x96xf32> -> vector<2x96xf32>
    %c0_33 = arith.constant 0 : index
    %c0_34 = arith.constant 0 : index
    %73 = vector.load %arg6[%c0_33, %c0_34] : memref<1x96xf32, #tpu.memory_space<vmem>>, vector<1x96xf32>
    %74 = vector.broadcast %73 : vector<1x96xf32> to vector<2x96xf32>
    %75 = arith.addf %72, %74 : vector<2x96xf32>
    %c0_35 = arith.constant 0 : index
    %c0_36 = arith.constant 0 : index
    %76 = vector.load %arg7[%c0_35, %c0_36] : memref<2x96xf32, #tpu.memory_space<vmem>>, vector<2x96xf32>
    tpu.vector_store %arg7[%c0_35, %c0_36], %75 {strides = array<i32>} : memref<2x96xf32, #tpu.memory_space<vmem>>, vector<2x96xf32>,
    return
  }
}

module attributes {stable_mosaic.version = 11 : i64} {
  func.func @_resblock_kernel(%arg0: i32, %arg1: memref<8x256xbf16, #tpu.memory_space<vmem>>, %arg2: memref<8x2xf32, #tpu.memory_space<vmem>>, %arg3: memref<8x72xbf16, #tpu.memory_space<vmem>>, %arg4: memref<8x1xf32, #tpu.memory_space<vmem>>, %arg5: memref<8x72xbf16, #tpu.memory_space<vmem>>, %arg6: memref<8x1xf32, #tpu.memory_space<vmem>>, %arg7: memref<8x8xbf16, #tpu.memory_space<vmem>>, %arg8: memref<8x1xf32, #tpu.memory_space<vmem>>, %arg9: memref<8x256xbf16, #tpu.memory_space<vmem>>) attributes {dimension_semantics = [#tpu.dimension_semantics<parallel>], iteration_bounds = array<i64: 2>, scalar_prefetch = 0 : i64, scratch_operands = 0 : i64, tpu.core_type = #tpu.core_type<tc>, window_params = [{transform_indices = @transform_0, window_bounds = array<i64: 8, 256>}, {pipeline_mode = #tpu.pipeline_mode<synchronous>, transform_indices = @transform_1, window_bounds = array<i64: 8, 2>}, {pipeline_mode = #tpu.pipeline_mode<synchronous>, transform_indices = @transform_2, window_bounds = array<i64: 8, 72>}, {pipeline_mode = #tpu.pipeline_mode<synchronous>, transform_indices = @transform_3, window_bounds = array<i64: 8, 1>}, {pipeline_mode = #tpu.pipeline_mode<synchronous>, transform_indices = @transform_4, window_bounds = array<i64: 8, 72>}, {pipeline_mode = #tpu.pipeline_mode<synchronous>, transform_indices = @transform_5, window_bounds = array<i64: 8, 1>}, {pipeline_mode = #tpu.pipeline_mode<synchronous>, transform_indices = @transform_6, window_bounds = array<i64: 8, 8>}, {pipeline_mode = #tpu.pipeline_mode<synchronous>, transform_indices = @transform_7, window_bounds = array<i64: 8, 1>}, {transform_indices = @transform_8, window_bounds = array<i64: 8, 256>}]} {
    %c0 = arith.constant 0 : index
    %c0_0 = arith.constant 0 : index
    %0 = vector.load %arg1[%c0, %c0_0] : memref<8x256xbf16, #tpu.memory_space<vmem>>, vector<8x256xbf16>
    %c0_1 = arith.constant 0 : index
    %c0_2 = arith.constant 0 : index
    %1 = vector.load %arg3[%c0_1, %c0_2] : memref<8x72xbf16, #tpu.memory_space<vmem>>, vector<8x72xbf16>
    %2 = arith.extf %0 : vector<8x256xbf16> to vector<8x256xf32>
    %3 = tpu.iota {dimensions = array<i32: 1>} : vector<1x256xi32>
    %c255_i32 = arith.constant 255 : i32
    %4 = vector.broadcast %c255_i32 : i32 to vector<1x256xi32>
    %5 = arith.andi %3, %4 : vector<1x256xi32>
    %c15_i32 = arith.constant 15 : i32
    %6 = vector.broadcast %c15_i32 : i32 to vector<1x256xi32>
    %7 = arith.andi %3, %6 : vector<1x256xi32>
    %c16_i32 = arith.constant 16 : i32
    %8 = vector.broadcast %c16_i32 : i32 to vector<1x256xi32>
    %9 = arith.cmpi slt, %5, %8 : vector<1x256xi32>
    %c240_i32 = arith.constant 240 : i32
    %10 = vector.broadcast %c240_i32 : i32 to vector<1x256xi32>
    %11 = arith.cmpi sge, %5, %10 : vector<1x256xi32>
    %c0_i32 = arith.constant 0 : i32
    %12 = vector.broadcast %c0_i32 : i32 to vector<1x256xi32>
    %13 = arith.cmpi eq, %7, %12 : vector<1x256xi32>
    %c15_i32_3 = arith.constant 15 : i32
    %14 = vector.broadcast %c15_i32_3 : i32 to vector<1x256xi32>
    %15 = arith.cmpi eq, %7, %14 : vector<1x256xi32>
    %c16_i32_4 = arith.constant 16 : i32
    %16 = tpu.dynamic_rotate %2 by %c16_i32_4 dim 1 : vector<8x256xf32>, i32 -> vector<8x256xf32>
    %c240_i32_5 = arith.constant 240 : i32
    %17 = tpu.dynamic_rotate %2 by %c240_i32_5 dim 1 : vector<8x256xf32>, i32 -> vector<8x256xf32>
    %18 = vector.shape_cast %9 : vector<1x256xi1> to vector<1x256xi1>
    %19 = vector.broadcast %18 : vector<1x256xi1> to vector<8x256xi1>
    %20 = arith.select %19, %17, %16 : vector<8x256xi1>, vector<8x256xf32>
    %21 = vector.shape_cast %11 : vector<1x256xi1> to vector<1x256xi1>
    %22 = vector.broadcast %21 : vector<1x256xi1> to vector<8x256xi1>
    %23 = arith.select %22, %16, %17 : vector<8x256xi1>, vector<8x256xf32>
    %c1_i32 = arith.constant 1 : i32
    %24 = tpu.dynamic_rotate %20 by %c1_i32 dim 1 : vector<8x256xf32>, i32 -> vector<8x256xf32>
    %c255_i32_6 = arith.constant 255 : i32
    %25 = tpu.dynamic_rotate %20 by %c255_i32_6 dim 1 : vector<8x256xf32>, i32 -> vector<8x256xf32>
    %26 = vector.shape_cast %13 : vector<1x256xi1> to vector<1x256xi1>
    %27 = vector.broadcast %26 : vector<1x256xi1> to vector<8x256xi1>
    %28 = arith.select %27, %25, %24 : vector<8x256xi1>, vector<8x256xf32>
    %29 = vector.shape_cast %15 : vector<1x256xi1> to vector<1x256xi1>
    %30 = vector.broadcast %29 : vector<1x256xi1> to vector<8x256xi1>
    %31 = arith.select %30, %24, %25 : vector<8x256xi1>, vector<8x256xf32>
    %c1_i32_7 = arith.constant 1 : i32
    %32 = tpu.dynamic_rotate %2 by %c1_i32_7 dim 1 : vector<8x256xf32>, i32 -> vector<8x256xf32>
    %c255_i32_8 = arith.constant 255 : i32
    %33 = tpu.dynamic_rotate %2 by %c255_i32_8 dim 1 : vector<8x256xf32>, i32 -> vector<8x256xf32>
    %34 = vector.shape_cast %13 : vector<1x256xi1> to vector<1x256xi1>
    %35 = vector.broadcast %34 : vector<1x256xi1> to vector<8x256xi1>
    %36 = arith.select %35, %33, %32 : vector<8x256xi1>, vector<8x256xf32>
    %37 = vector.shape_cast %15 : vector<1x256xi1> to vector<1x256xi1>
    %38 = vector.broadcast %37 : vector<1x256xi1> to vector<8x256xi1>
    %39 = arith.select %38, %32, %33 : vector<8x256xi1>, vector<8x256xf32>
    %c1_i32_9 = arith.constant 1 : i32
    %40 = tpu.dynamic_rotate %23 by %c1_i32_9 dim 1 : vector<8x256xf32>, i32 -> vector<8x256xf32>
    %c255_i32_10 = arith.constant 255 : i32
    %41 = tpu.dynamic_rotate %23 by %c255_i32_10 dim 1 : vector<8x256xf32>, i32 -> vector<8x256xf32>
    %42 = vector.shape_cast %13 : vector<1x256xi1> to vector<1x256xi1>
    %43 = vector.broadcast %42 : vector<1x256xi1> to vector<8x256xi1>
    %44 = arith.select %43, %41, %40 : vector<8x256xi1>, vector<8x256xf32>
    %45 = vector.shape_cast %15 : vector<1x256xi1> to vector<1x256xi1>
    %46 = vector.broadcast %45 : vector<1x256xi1> to vector<8x256xi1>
    %47 = arith.select %46, %40, %41 : vector<8x256xi1>, vector<8x256xf32>
    %48 = tpu.concatenate %28, %20, %31, %36, %2, %39, %44, %23, %47 in 0 : vector<8x256xf32>, vector<8x256xf32>, vector<8x256xf32>, vector<8x256xf32>, vector<8x256xf32>, vector<8x256xf32>, vector<8x256xf32>, vector<8x256xf32>, vector<8x256xf32> -> vector<72x256xf32>
    %49 = arith.truncf %48 : vector<72x256xf32> to vector<72x256xbf16>
    %cst = arith.constant dense<0.000000e+00> : vector<8x256xf32>
    %50 = tpu.matmul %1, %49, %cst {dimension_numbers = #tpu.dot_dimension_numbers<[1], [0], [0], [1], [0, 0, 1, 1], [], []>} : vector<8x72xbf16>, vector<72x256xbf16>, vector<8x256xf32> -> vector<8x256xf32>
    %c0_11 = arith.constant 0 : index
    %c0_12 = arith.constant 0 : index
    %51 = vector.load %arg4[%c0_11, %c0_12] : memref<8x1xf32, #tpu.memory_space<vmem>>, vector<8x1xf32>
    %52 = vector.broadcast %51 : vector<8x1xf32> to vector<8x256xf32>
    %53 = arith.addf %50, %52 : vector<8x256xf32>
    %54 = math.absf %53 : vector<8x256xf32>
    %cst_13 = arith.constant 0.000000e+00 : f32
    %55 = vector.broadcast %cst_13 : f32 to vector<8x256xf32>
    %56 = arith.subf %55, %54 : vector<8x256xf32>
    %57 = math.exp %56 : vector<8x256xf32>
    %58 = arith.mulf %57, %57 : vector<8x256xf32>
    %cst_14 = arith.constant 0.000000e+00 : f32
    %59 = vector.broadcast %cst_14 : f32 to vector<8x256xf32>
    %60 = arith.cmpf oge, %53, %59 : vector<8x256xf32>
    %cst_15 = arith.constant 2.000000e+00 : f32
    %61 = vector.broadcast %cst_15 : f32 to vector<8x256xf32>
    %62 = arith.mulf %61, %57 : vector<8x256xf32>
    %cst_16 = arith.constant 1.000000e+00 : f32
    %63 = vector.broadcast %cst_16 : f32 to vector<8x256xf32>
    %64 = arith.addf %63, %62 : vector<8x256xf32>
    %cst_17 = arith.constant 2.000000e+00 : f32
    %65 = vector.broadcast %cst_17 : f32 to vector<8x256xf32>
    %66 = arith.mulf %65, %57 : vector<8x256xf32>
    %67 = arith.addf %66, %58 : vector<8x256xf32>
    %68 = arith.select %60, %64, %67 : vector<8x256xi1>, vector<8x256xf32>
    %cst_18 = arith.constant 2.000000e+00 : f32
    %69 = vector.broadcast %cst_18 : f32 to vector<8x256xf32>
    %70 = arith.mulf %69, %57 : vector<8x256xf32>
    %cst_19 = arith.constant 1.000000e+00 : f32
    %71 = vector.broadcast %cst_19 : f32 to vector<8x256xf32>
    %72 = arith.addf %71, %70 : vector<8x256xf32>
    %cst_20 = arith.constant 2.000000e+00 : f32
    %73 = vector.broadcast %cst_20 : f32 to vector<8x256xf32>
    %74 = arith.mulf %73, %58 : vector<8x256xf32>
    %75 = arith.addf %72, %74 : vector<8x256xf32>
    %cst_21 = arith.constant 2.000000e+00 : f32
    %76 = vector.broadcast %cst_21 : f32 to vector<8x256xf32>
    %77 = arith.mulf %76, %57 : vector<8x256xf32>
    %cst_22 = arith.constant 2.000000e+00 : f32
    %78 = vector.broadcast %cst_22 : f32 to vector<8x256xf32>
    %79 = arith.addf %78, %77 : vector<8x256xf32>
    %80 = arith.addf %79, %58 : vector<8x256xf32>
    %81 = arith.select %60, %75, %80 : vector<8x256xi1>, vector<8x256xf32>
    %82 = arith.divf %68, %81 : vector<8x256xf32>
    %83 = arith.mulf %53, %82 : vector<8x256xf32>
    %84 = tpu.iota {dimensions = array<i32: 1>} : vector<1x256xi32>
    %c1_i32_23 = arith.constant 1 : i32
    %85 = arith.muli %arg0, %c1_i32_23 : i32
    %c8_i32 = arith.constant 8 : i32
    %86 = vector.broadcast %c8_i32 : i32 to vector<1x256xi32>
    %87 = arith.shrsi %84, %86 : vector<1x256xi32>
    %88 = vector.broadcast %85 : i32 to vector<1x256xi32>
    %89 = arith.addi %88, %87 : vector<1x256xi32>
    %cst_24 = arith.constant 0.000000e+00 : f32
    %90 = vector.broadcast %cst_24 : f32 to vector<8x256xf32>
    %c0_i32_25 = arith.constant 0 : i32
    %91 = vector.broadcast %c0_i32_25 : i32 to vector<1x256xi32>
    %92 = arith.cmpi eq, %89, %91 : vector<1x256xi32>
    %c0_26 = arith.constant 0 : index
    %c0_27 = arith.constant 0 : index
    %93 = vector.load %arg2[%c0_26, %c0_27] : memref<8x2xf32, #tpu.memory_space<vmem>>, vector<8x1xf32>
    %94 = vector.shape_cast %92 : vector<1x256xi1> to vector<1x256xi1>
    %95 = vector.broadcast %94 : vector<1x256xi1> to vector<8x256xi1>
    %96 = vector.shape_cast %93 : vector<8x1xf32> to vector<8x1xf32>
    %97 = vector.broadcast %96 : vector<8x1xf32> to vector<8x256xf32>
    %98 = arith.select %95, %97, %90 : vector<8x256xi1>, vector<8x256xf32>
    %c1_i32_28 = arith.constant 1 : i32
    %99 = vector.broadcast %c1_i32_28 : i32 to vector<1x256xi32>
    %100 = arith.cmpi eq, %89, %99 : vector<1x256xi32>
    %c0_29 = arith.constant 0 : index
    %c1 = arith.constant 1 : index
    %101 = vector.load %arg2[%c0_29, %c1] : memref<8x2xf32, #tpu.memory_space<vmem>>, vector<8x1xf32>
    %102 = vector.shape_cast %100 : vector<1x256xi1> to vector<1x256xi1>
    %103 = vector.broadcast %102 : vector<1x256xi1> to vector<8x256xi1>
    %104 = vector.shape_cast %101 : vector<8x1xf32> to vector<8x1xf32>
    %105 = vector.broadcast %104 : vector<8x1xf32> to vector<8x256xf32>
    %106 = arith.select %103, %105, %98 : vector<8x256xi1>, vector<8x256xf32>
    %107 = arith.addf %83, %106 : vector<8x256xf32>
    %c0_30 = arith.constant 0 : index
    %c0_31 = arith.constant 0 : index
    %108 = vector.load %arg5[%c0_30, %c0_31] : memref<8x72xbf16, #tpu.memory_space<vmem>>, vector<8x72xbf16>
    %109 = tpu.iota {dimensions = array<i32: 1>} : vector<1x256xi32>
    %c255_i32_32 = arith.constant 255 : i32
    %110 = vector.broadcast %c255_i32_32 : i32 to vector<1x256xi32>
    %111 = arith.andi %109, %110 : vector<1x256xi32>
    %c15_i32_33 = arith.constant 15 : i32
    %112 = vector.broadcast %c15_i32_33 : i32 to vector<1x256xi32>
    %113 = arith.andi %109, %112 : vector<1x256xi32>
    %c16_i32_34 = arith.constant 16 : i32
    %114 = vector.broadcast %c16_i32_34 : i32 to vector<1x256xi32>
    %115 = arith.cmpi slt, %111, %114 : vector<1x256xi32>
    %c240_i32_35 = arith.constant 240 : i32
    %116 = vector.broadcast %c240_i32_35 : i32 to vector<1x256xi32>
    %117 = arith.cmpi sge, %111, %116 : vector<1x256xi32>
    %c0_i32_36 = arith.constant 0 : i32
    %118 = vector.broadcast %c0_i32_36 : i32 to vector<1x256xi32>
    %119 = arith.cmpi eq, %113, %118 : vector<1x256xi32>
    %c15_i32_37 = arith.constant 15 : i32
    %120 = vector.broadcast %c15_i32_37 : i32 to vector<1x256xi32>
    %121 = arith.cmpi eq, %113, %120 : vector<1x256xi32>
    %c16_i32_38 = arith.constant 16 : i32
    %122 = tpu.dynamic_rotate %107 by %c16_i32_38 dim 1 : vector<8x256xf32>, i32 -> vector<8x256xf32>
    %c240_i32_39 = arith.constant 240 : i32
    %123 = tpu.dynamic_rotate %107 by %c240_i32_39 dim 1 : vector<8x256xf32>, i32 -> vector<8x256xf32>
    %124 = vector.shape_cast %115 : vector<1x256xi1> to vector<1x256xi1>
    %125 = vector.broadcast %124 : vector<1x256xi1> to vector<8x256xi1>
    %126 = arith.select %125, %123, %122 : vector<8x256xi1>, vector<8x256xf32>
    %127 = vector.shape_cast %117 : vector<1x256xi1> to vector<1x256xi1>
    %128 = vector.broadcast %127 : vector<1x256xi1> to vector<8x256xi1>
    %129 = arith.select %128, %122, %123 : vector<8x256xi1>, vector<8x256xf32>
    %c1_i32_40 = arith.constant 1 : i32
    %130 = tpu.dynamic_rotate %126 by %c1_i32_40 dim 1 : vector<8x256xf32>, i32 -> vector<8x256xf32>
    %c255_i32_41 = arith.constant 255 : i32
    %131 = tpu.dynamic_rotate %126 by %c255_i32_41 dim 1 : vector<8x256xf32>, i32 -> vector<8x256xf32>
    %132 = vector.shape_cast %119 : vector<1x256xi1> to vector<1x256xi1>
    %133 = vector.broadcast %132 : vector<1x256xi1> to vector<8x256xi1>
    %134 = arith.select %133, %131, %130 : vector<8x256xi1>, vector<8x256xf32>
    %135 = vector.shape_cast %121 : vector<1x256xi1> to vector<1x256xi1>
    %136 = vector.broadcast %135 : vector<1x256xi1> to vector<8x256xi1>
    %137 = arith.select %136, %130, %131 : vector<8x256xi1>, vector<8x256xf32>
    %c1_i32_42 = arith.constant 1 : i32
    %138 = tpu.dynamic_rotate %107 by %c1_i32_42 dim 1 : vector<8x256xf32>, i32 -> vector<8x256xf32>
    %c255_i32_43 = arith.constant 255 : i32
    %139 = tpu.dynamic_rotate %107 by %c255_i32_43 dim 1 : vector<8x256xf32>, i32 -> vector<8x256xf32>
    %140 = vector.shape_cast %119 : vector<1x256xi1> to vector<1x256xi1>
    %141 = vector.broadcast %140 : vector<1x256xi1> to vector<8x256xi1>
    %142 = arith.select %141, %139, %138 : vector<8x256xi1>, vector<8x256xf32>
    %143 = vector.shape_cast %121 : vector<1x256xi1> to vector<1x256xi1>
    %144 = vector.broadcast %143 : vector<1x256xi1> to vector<8x256xi1>
    %145 = arith.select %144, %138, %139 : vector<8x256xi1>, vector<8x256xf32>
    %c1_i32_44 = arith.constant 1 : i32
    %146 = tpu.dynamic_rotate %129 by %c1_i32_44 dim 1 : vector<8x256xf32>, i32 -> vector<8x256xf32>
    %c255_i32_45 = arith.constant 255 : i32
    %147 = tpu.dynamic_rotate %129 by %c255_i32_45 dim 1 : vector<8x256xf32>, i32 -> vector<8x256xf32>
    %148 = vector.shape_cast %119 : vector<1x256xi1> to vector<1x256xi1>
    %149 = vector.broadcast %148 : vector<1x256xi1> to vector<8x256xi1>
    %150 = arith.select %149, %147, %146 : vector<8x256xi1>, vector<8x256xf32>
    %151 = vector.shape_cast %121 : vector<1x256xi1> to vector<1x256xi1>
    %152 = vector.broadcast %151 : vector<1x256xi1> to vector<8x256xi1>
    %153 = arith.select %152, %146, %147 : vector<8x256xi1>, vector<8x256xf32>
    %154 = tpu.concatenate %134, %126, %137, %142, %107, %145, %150, %129, %153 in 0 : vector<8x256xf32>, vector<8x256xf32>, vector<8x256xf32>, vector<8x256xf32>, vector<8x256xf32>, vector<8x256xf32>, vector<8x256xf32>, vector<8x256xf32>, vector<8x256xf32> -> vector<72x256xf32>
    %155 = arith.truncf %154 : vector<72x256xf32> to vector<72x256xbf16>
    %cst_46 = arith.constant dense<0.000000e+00> : vector<8x256xf32>
    %156 = tpu.matmul %108, %155, %cst_46 {dimension_numbers = #tpu.dot_dimension_numbers<[1], [0], [0], [1], [0, 0, 1, 1], [], []>} : vector<8x72xbf16>, vector<72x256xbf16>, vector<8x256xf32> -> vector<8x256xf32>
    %c0_47 = arith.constant 0 : index
    %c0_48 = arith.constant 0 : index
    %157 = vector.load %arg6[%c0_47, %c0_48] : memref<8x1xf32, #tpu.memory_space<vmem>>, vector<8x1xf32>
    %158 = vector.broadcast %157 : vector<8x1xf32> to vector<8x256xf32>
    %159 = arith.addf %156, %158 : vector<8x256xf32>
    %160 = math.absf %159 : vector<8x256xf32>
    %cst_49 = arith.constant 0.000000e+00 : f32
    %161 = vector.broadcast %cst_49 : f32 to vector<8x256xf32>
    %162 = arith.subf %161, %160 : vector<8x256xf32>
    %163 = math.exp %162 : vector<8x256xf32>
    %164 = arith.mulf %163, %163 : vector<8x256xf32>
    %cst_50 = arith.constant 0.000000e+00 : f32
    %165 = vector.broadcast %cst_50 : f32 to vector<8x256xf32>
    %166 = arith.cmpf oge, %159, %165 : vector<8x256xf32>
    %cst_51 = arith.constant 2.000000e+00 : f32
    %167 = vector.broadcast %cst_51 : f32 to vector<8x256xf32>
    %168 = arith.mulf %167, %163 : vector<8x256xf32>
    %cst_52 = arith.constant 1.000000e+00 : f32
    %169 = vector.broadcast %cst_52 : f32 to vector<8x256xf32>
    %170 = arith.addf %169, %168 : vector<8x256xf32>
    %cst_53 = arith.constant 2.000000e+00 : f32
    %171 = vector.broadcast %cst_53 : f32 to vector<8x256xf32>
    %172 = arith.mulf %171, %163 : vector<8x256xf32>
    %173 = arith.addf %172, %164 : vector<8x256xf32>
    %174 = arith.select %166, %170, %173 : vector<8x256xi1>, vector<8x256xf32>
    %cst_54 = arith.constant 2.000000e+00 : f32
    %175 = vector.broadcast %cst_54 : f32 to vector<8x256xf32>
    %176 = arith.mulf %175, %163 : vector<8x256xf32>
    %cst_55 = arith.constant 1.000000e+00 : f32
    %177 = vector.broadcast %cst_55 : f32 to vector<8x256xf32>
    %178 = arith.addf %177, %176 : vector<8x256xf32>
    %cst_56 = arith.constant 2.000000e+00 : f32
    %179 = vector.broadcast %cst_56 : f32 to vector<8x256xf32>
    %180 = arith.mulf %179, %164 : vector<8x256xf32>
    %181 = arith.addf %178, %180 : vector<8x256xf32>
    %cst_57 = arith.constant 2.000000e+00 : f32
    %182 = vector.broadcast %cst_57 : f32 to vector<8x256xf32>
    %183 = arith.mulf %182, %163 : vector<8x256xf32>
    %cst_58 = arith.constant 2.000000e+00 : f32
    %184 = vector.broadcast %cst_58 : f32 to vector<8x256xf32>
    %185 = arith.addf %184, %183 : vector<8x256xf32>
    %186 = arith.addf %185, %164 : vector<8x256xf32>
    %187 = arith.select %166, %181, %186 : vector<8x256xi1>, vector<8x256xf32>
    %188 = arith.divf %174, %187 : vector<8x256xf32>
    %189 = arith.mulf %159, %188 : vector<8x256xf32>
    %c0_59 = arith.constant 0 : index
    %c0_60 = arith.constant 0 : index
    %190 = vector.load %arg7[%c0_59, %c0_60] : memref<8x8xbf16, #tpu.memory_space<vmem>>, vector<8x8xbf16>
    %cst_61 = arith.constant dense<0.000000e+00> : vector<8x256xf32>
    %191 = tpu.matmul %190, %0, %cst_61 {dimension_numbers = #tpu.dot_dimension_numbers<[1], [0], [0], [1], [0, 0, 1, 1], [], []>} : vector<8x8xbf16>, vector<8x256xbf16>, vector<8x256xf32> -> vector<8x256xf32>
    %c0_62 = arith.constant 0 : index
    %c0_63 = arith.constant 0 : index
    %192 = vector.load %arg8[%c0_62, %c0_63] : memref<8x1xf32, #tpu.memory_space<vmem>>, vector<8x1xf32>
    %193 = vector.broadcast %192 : vector<8x1xf32> to vector<8x256xf32>
    %194 = arith.addf %191, %193 : vector<8x256xf32>
    %195 = arith.addf %189, %194 : vector<8x256xf32>
    %196 = arith.truncf %195 : vector<8x256xf32> to vector<8x256xbf16>
    %c0_64 = arith.constant 0 : index
    %c0_65 = arith.constant 0 : index
    %197 = vector.load %arg9[%c0_64, %c0_65] : memref<8x256xbf16, #tpu.memory_space<vmem>>, vector<8x256xbf16>
    tpu.vector_store %arg9[%c0_64, %c0_65], %196 {strides = array<i32>} : memref<8x256xbf16, #tpu.memory_space<vmem>>, vector<8x256xbf16>,
    return
  }
  func.func @transform_0(%arg0: i32) -> (i32, i32) {
    %c0_i32 = arith.constant 0 : i32
    %c0_i32_0 = arith.constant 0 : i32
    return %c0_i32, %arg0 : i32, i32
  }
  func.func @transform_1(%arg0: i32) -> (i32, i32) {
    %c0_i32 = arith.constant 0 : i32
    %c0_i32_0 = arith.constant 0 : i32
    %c0_i32_1 = arith.constant 0 : i32
    return %c0_i32, %c0_i32_0 : i32, i32
  }
  func.func @transform_2(%arg0: i32) -> (i32, i32) {
    %c0_i32 = arith.constant 0 : i32
    %c0_i32_0 = arith.constant 0 : i32
    %c0_i32_1 = arith.constant 0 : i32
    return %c0_i32, %c0_i32_0 : i32, i32
  }
  func.func @transform_3(%arg0: i32) -> (i32, i32) {
    %c0_i32 = arith.constant 0 : i32
    %c0_i32_0 = arith.constant 0 : i32
    %c0_i32_1 = arith.constant 0 : i32
    return %c0_i32, %c0_i32_0 : i32, i32
  }
  func.func @transform_4(%arg0: i32) -> (i32, i32) {
    %c0_i32 = arith.constant 0 : i32
    %c0_i32_0 = arith.constant 0 : i32
    %c0_i32_1 = arith.constant 0 : i32
    return %c0_i32, %c0_i32_0 : i32, i32
  }
  func.func @transform_5(%arg0: i32) -> (i32, i32) {
    %c0_i32 = arith.constant 0 : i32
    %c0_i32_0 = arith.constant 0 : i32
    %c0_i32_1 = arith.constant 0 : i32
    return %c0_i32, %c0_i32_0 : i32, i32
  }
  func.func @transform_6(%arg0: i32) -> (i32, i32) {
    %c0_i32 = arith.constant 0 : i32
    %c0_i32_0 = arith.constant 0 : i32
    %c0_i32_1 = arith.constant 0 : i32
    return %c0_i32, %c0_i32_0 : i32, i32
  }
  func.func @transform_7(%arg0: i32) -> (i32, i32) {
    %c0_i32 = arith.constant 0 : i32
    %c0_i32_0 = arith.constant 0 : i32
    %c0_i32_1 = arith.constant 0 : i32
    return %c0_i32, %c0_i32_0 : i32, i32
  }
  func.func @transform_8(%arg0: i32) -> (i32, i32) {
    %c0_i32 = arith.constant 0 : i32
    %c0_i32_0 = arith.constant 0 : i32
    return %c0_i32, %arg0 : i32, i32
  }
}

module attributes {stable_mosaic.version = 11 : i64} {
  func.func @_convgen_kernel(%arg0: i32, %arg1: memref<8x32xbf16, #tpu.memory_space<vmem>>, %arg2: memref<128x72xbf16, #tpu.memory_space<vmem>>, %arg3: memref<128x1xf32, #tpu.memory_space<vmem>>, %arg4: memref<128x32xbf16, #tpu.memory_space<vmem>>) attributes {dimension_semantics = [#tpu.dimension_semantics<parallel>], iteration_bounds = array<i64: 1>, scalar_prefetch = 0 : i64, scratch_operands = 0 : i64, tpu.core_type = #tpu.core_type<tc>, window_params = [{transform_indices = @transform_0, window_bounds = array<i64: 8, 32>}, {pipeline_mode = #tpu.pipeline_mode<synchronous>, transform_indices = @transform_1, window_bounds = array<i64: 128, 72>}, {pipeline_mode = #tpu.pipeline_mode<synchronous>, transform_indices = @transform_2, window_bounds = array<i64: 128, 1>}, {transform_indices = @transform_3, window_bounds = array<i64: 128, 32>}]} {
    %c0 = arith.constant 0 : index
    %c0_0 = arith.constant 0 : index
    %0 = vector.load %arg1[%c0, %c0_0] : memref<8x32xbf16, #tpu.memory_space<vmem>>, vector<8x32xbf16>
    %c0_1 = arith.constant 0 : index
    %c0_2 = arith.constant 0 : index
    %1 = vector.load %arg2[%c0_1, %c0_2] : memref<128x72xbf16, #tpu.memory_space<vmem>>, vector<128x72xbf16>
    %2 = arith.extf %0 : vector<8x32xbf16> to vector<8x32xf32>
    %3 = tpu.iota {dimensions = array<i32: 1>} : vector<1x32xi32>
    %c15_i32 = arith.constant 15 : i32
    %4 = vector.broadcast %c15_i32 : i32 to vector<1x32xi32>
    %5 = arith.andi %3, %4 : vector<1x32xi32>
    %c3_i32 = arith.constant 3 : i32
    %6 = vector.broadcast %c3_i32 : i32 to vector<1x32xi32>
    %7 = arith.andi %3, %6 : vector<1x32xi32>
    %c4_i32 = arith.constant 4 : i32
    %8 = vector.broadcast %c4_i32 : i32 to vector<1x32xi32>
    %9 = arith.cmpi slt, %5, %8 : vector<1x32xi32>
    %c12_i32 = arith.constant 12 : i32
    %10 = vector.broadcast %c12_i32 : i32 to vector<1x32xi32>
    %11 = arith.cmpi sge, %5, %10 : vector<1x32xi32>
    %c0_i32 = arith.constant 0 : i32
    %12 = vector.broadcast %c0_i32 : i32 to vector<1x32xi32>
    %13 = arith.cmpi eq, %7, %12 : vector<1x32xi32>
    %c3_i32_3 = arith.constant 3 : i32
    %14 = vector.broadcast %c3_i32_3 : i32 to vector<1x32xi32>
    %15 = arith.cmpi eq, %7, %14 : vector<1x32xi32>
    %cst = arith.constant 0.000000e+00 : f32
    %16 = vector.broadcast %cst : f32 to vector<8x32xf32>
    %c4_i32_4 = arith.constant 4 : i32
    %17 = tpu.dynamic_rotate %2 by %c4_i32_4 dim 1 : vector<8x32xf32>, i32 -> vector<8x32xf32>
    %c28_i32 = arith.constant 28 : i32
    %18 = tpu.dynamic_rotate %2 by %c28_i32 dim 1 : vector<8x32xf32>, i32 -> vector<8x32xf32>
    %19 = vector.shape_cast %9 : vector<1x32xi1> to vector<1x32xi1>
    %20 = vector.broadcast %19 : vector<1x32xi1> to vector<8x32xi1>
    %21 = arith.select %20, %16, %17 : vector<8x32xi1>, vector<8x32xf32>
    %22 = vector.shape_cast %11 : vector<1x32xi1> to vector<1x32xi1>
    %23 = vector.broadcast %22 : vector<1x32xi1> to vector<8x32xi1>
    %24 = arith.select %23, %16, %18 : vector<8x32xi1>, vector<8x32xf32>
    %c1_i32 = arith.constant 1 : i32
    %25 = tpu.dynamic_rotate %21 by %c1_i32 dim 1 : vector<8x32xf32>, i32 -> vector<8x32xf32>
    %c31_i32 = arith.constant 31 : i32
    %26 = tpu.dynamic_rotate %21 by %c31_i32 dim 1 : vector<8x32xf32>, i32 -> vector<8x32xf32>
    %27 = vector.shape_cast %13 : vector<1x32xi1> to vector<1x32xi1>
    %28 = vector.broadcast %27 : vector<1x32xi1> to vector<8x32xi1>
    %29 = arith.select %28, %16, %25 : vector<8x32xi1>, vector<8x32xf32>
    %30 = vector.shape_cast %15 : vector<1x32xi1> to vector<1x32xi1>
    %31 = vector.broadcast %30 : vector<1x32xi1> to vector<8x32xi1>
    %32 = arith.select %31, %16, %26 : vector<8x32xi1>, vector<8x32xf32>
    %c1_i32_5 = arith.constant 1 : i32
    %33 = tpu.dynamic_rotate %2 by %c1_i32_5 dim 1 : vector<8x32xf32>, i32 -> vector<8x32xf32>
    %c31_i32_6 = arith.constant 31 : i32
    %34 = tpu.dynamic_rotate %2 by %c31_i32_6 dim 1 : vector<8x32xf32>, i32 -> vector<8x32xf32>
    %35 = vector.shape_cast %13 : vector<1x32xi1> to vector<1x32xi1>
    %36 = vector.broadcast %35 : vector<1x32xi1> to vector<8x32xi1>
    %37 = arith.select %36, %16, %33 : vector<8x32xi1>, vector<8x32xf32>
    %38 = vector.shape_cast %15 : vector<1x32xi1> to vector<1x32xi1>
    %39 = vector.broadcast %38 : vector<1x32xi1> to vector<8x32xi1>
    %40 = arith.select %39, %16, %34 : vector<8x32xi1>, vector<8x32xf32>
    %c1_i32_7 = arith.constant 1 : i32
    %41 = tpu.dynamic_rotate %24 by %c1_i32_7 dim 1 : vector<8x32xf32>, i32 -> vector<8x32xf32>
    %c31_i32_8 = arith.constant 31 : i32
    %42 = tpu.dynamic_rotate %24 by %c31_i32_8 dim 1 : vector<8x32xf32>, i32 -> vector<8x32xf32>
    %43 = vector.shape_cast %13 : vector<1x32xi1> to vector<1x32xi1>
    %44 = vector.broadcast %43 : vector<1x32xi1> to vector<8x32xi1>
    %45 = arith.select %44, %16, %41 : vector<8x32xi1>, vector<8x32xf32>
    %46 = vector.shape_cast %15 : vector<1x32xi1> to vector<1x32xi1>
    %47 = vector.broadcast %46 : vector<1x32xi1> to vector<8x32xi1>
    %48 = arith.select %47, %16, %42 : vector<8x32xi1>, vector<8x32xf32>
    %49 = tpu.concatenate %29, %21, %32, %37, %2, %40, %45, %24, %48 in 0 : vector<8x32xf32>, vector<8x32xf32>, vector<8x32xf32>, vector<8x32xf32>, vector<8x32xf32>, vector<8x32xf32>, vector<8x32xf32>, vector<8x32xf32>, vector<8x32xf32> -> vector<72x32xf32>
    %50 = arith.truncf %49 : vector<72x32xf32> to vector<72x32xbf16>
    %cst_9 = arith.constant dense<0.000000e+00> : vector<128x32xf32>
    %51 = tpu.matmul %1, %50, %cst_9 {dimension_numbers = #tpu.dot_dimension_numbers<[1], [0], [0], [1], [0, 0, 1, 1], [], []>} : vector<128x72xbf16>, vector<72x32xbf16>, vector<128x32xf32> -> vector<128x32xf32>
    %c0_10 = arith.constant 0 : index
    %c0_11 = arith.constant 0 : index
    %52 = vector.load %arg3[%c0_10, %c0_11] : memref<128x1xf32, #tpu.memory_space<vmem>>, vector<128x1xf32>
    %53 = vector.broadcast %52 : vector<128x1xf32> to vector<128x32xf32>
    %54 = arith.addf %51, %53 : vector<128x32xf32>
    %55 = arith.truncf %54 : vector<128x32xf32> to vector<128x32xbf16>
    %c0_12 = arith.constant 0 : index
    %c0_13 = arith.constant 0 : index
    %56 = vector.load %arg4[%c0_12, %c0_13] : memref<128x32xbf16, #tpu.memory_space<vmem>>, vector<128x32xbf16>
    tpu.vector_store %arg4[%c0_12, %c0_13], %55 {strides = array<i32>} : memref<128x32xbf16, #tpu.memory_space<vmem>>, vector<128x32xbf16>,
    return
  }
  func.func @transform_0(%arg0: i32) -> (i32, i32) {
    %c0_i32 = arith.constant 0 : i32
    %c0_i32_0 = arith.constant 0 : i32
    return %c0_i32, %arg0 : i32, i32
  }
  func.func @transform_1(%arg0: i32) -> (i32, i32) {
    %c0_i32 = arith.constant 0 : i32
    %c0_i32_0 = arith.constant 0 : i32
    %c0_i32_1 = arith.constant 0 : i32
    return %c0_i32, %c0_i32_0 : i32, i32
  }
  func.func @transform_2(%arg0: i32) -> (i32, i32) {
    %c0_i32 = arith.constant 0 : i32
    %c0_i32_0 = arith.constant 0 : i32
    %c0_i32_1 = arith.constant 0 : i32
    return %c0_i32, %c0_i32_0 : i32, i32
  }
  func.func @transform_3(%arg0: i32) -> (i32, i32) {
    %c0_i32 = arith.constant 0 : i32
    %c0_i32_0 = arith.constant 0 : i32
    return %c0_i32, %arg0 : i32, i32
  }
}

module attributes {stable_mosaic.version = 11 : i64} {
  func.func @_resblock_kernel(%arg0: i32, %arg1: memref<8x256xbf16, #tpu.memory_space<vmem>>, %arg2: memref<8x2xf32, #tpu.memory_space<vmem>>, %arg3: memref<8x72xbf16, #tpu.memory_space<vmem>>, %arg4: memref<8x1xf32, #tpu.memory_space<vmem>>, %arg5: memref<8x72xbf16, #tpu.memory_space<vmem>>, %arg6: memref<8x1xf32, #tpu.memory_space<vmem>>, %arg7: memref<8x256xbf16, #tpu.memory_space<vmem>>, %arg8: memref<8x256xbf16, #tpu.memory_space<vmem>>) attributes {dimension_semantics = [#tpu.dimension_semantics<parallel>], iteration_bounds = array<i64: 2>, scalar_prefetch = 0 : i64, scratch_operands = 0 : i64, tpu.core_type = #tpu.core_type<tc>, window_params = [{transform_indices = @transform_0, window_bounds = array<i64: 8, 256>}, {pipeline_mode = #tpu.pipeline_mode<synchronous>, transform_indices = @transform_1, window_bounds = array<i64: 8, 2>}, {pipeline_mode = #tpu.pipeline_mode<synchronous>, transform_indices = @transform_2, window_bounds = array<i64: 8, 72>}, {pipeline_mode = #tpu.pipeline_mode<synchronous>, transform_indices = @transform_3, window_bounds = array<i64: 8, 1>}, {pipeline_mode = #tpu.pipeline_mode<synchronous>, transform_indices = @transform_4, window_bounds = array<i64: 8, 72>}, {pipeline_mode = #tpu.pipeline_mode<synchronous>, transform_indices = @transform_5, window_bounds = array<i64: 8, 1>}, {transform_indices = @transform_6, window_bounds = array<i64: 8, 256>}, {transform_indices = @transform_7, window_bounds = array<i64: 8, 256>}]} {
    %c0 = arith.constant 0 : index
    %c0_0 = arith.constant 0 : index
    %0 = vector.load %arg1[%c0, %c0_0] : memref<8x256xbf16, #tpu.memory_space<vmem>>, vector<8x256xbf16>
    %c0_1 = arith.constant 0 : index
    %c0_2 = arith.constant 0 : index
    %1 = vector.load %arg3[%c0_1, %c0_2] : memref<8x72xbf16, #tpu.memory_space<vmem>>, vector<8x72xbf16>
    %2 = arith.extf %0 : vector<8x256xbf16> to vector<8x256xf32>
    %3 = tpu.iota {dimensions = array<i32: 1>} : vector<1x256xi32>
    %c255_i32 = arith.constant 255 : i32
    %4 = vector.broadcast %c255_i32 : i32 to vector<1x256xi32>
    %5 = arith.andi %3, %4 : vector<1x256xi32>
    %c15_i32 = arith.constant 15 : i32
    %6 = vector.broadcast %c15_i32 : i32 to vector<1x256xi32>
    %7 = arith.andi %3, %6 : vector<1x256xi32>
    %c16_i32 = arith.constant 16 : i32
    %8 = vector.broadcast %c16_i32 : i32 to vector<1x256xi32>
    %9 = arith.cmpi slt, %5, %8 : vector<1x256xi32>
    %c240_i32 = arith.constant 240 : i32
    %10 = vector.broadcast %c240_i32 : i32 to vector<1x256xi32>
    %11 = arith.cmpi sge, %5, %10 : vector<1x256xi32>
    %c0_i32 = arith.constant 0 : i32
    %12 = vector.broadcast %c0_i32 : i32 to vector<1x256xi32>
    %13 = arith.cmpi eq, %7, %12 : vector<1x256xi32>
    %c15_i32_3 = arith.constant 15 : i32
    %14 = vector.broadcast %c15_i32_3 : i32 to vector<1x256xi32>
    %15 = arith.cmpi eq, %7, %14 : vector<1x256xi32>
    %c16_i32_4 = arith.constant 16 : i32
    %16 = tpu.dynamic_rotate %2 by %c16_i32_4 dim 1 : vector<8x256xf32>, i32 -> vector<8x256xf32>
    %c240_i32_5 = arith.constant 240 : i32
    %17 = tpu.dynamic_rotate %2 by %c240_i32_5 dim 1 : vector<8x256xf32>, i32 -> vector<8x256xf32>
    %18 = vector.shape_cast %9 : vector<1x256xi1> to vector<1x256xi1>
    %19 = vector.broadcast %18 : vector<1x256xi1> to vector<8x256xi1>
    %20 = arith.select %19, %17, %16 : vector<8x256xi1>, vector<8x256xf32>
    %21 = vector.shape_cast %11 : vector<1x256xi1> to vector<1x256xi1>
    %22 = vector.broadcast %21 : vector<1x256xi1> to vector<8x256xi1>
    %23 = arith.select %22, %16, %17 : vector<8x256xi1>, vector<8x256xf32>
    %c1_i32 = arith.constant 1 : i32
    %24 = tpu.dynamic_rotate %20 by %c1_i32 dim 1 : vector<8x256xf32>, i32 -> vector<8x256xf32>
    %c255_i32_6 = arith.constant 255 : i32
    %25 = tpu.dynamic_rotate %20 by %c255_i32_6 dim 1 : vector<8x256xf32>, i32 -> vector<8x256xf32>
    %26 = vector.shape_cast %13 : vector<1x256xi1> to vector<1x256xi1>
    %27 = vector.broadcast %26 : vector<1x256xi1> to vector<8x256xi1>
    %28 = arith.select %27, %25, %24 : vector<8x256xi1>, vector<8x256xf32>
    %29 = vector.shape_cast %15 : vector<1x256xi1> to vector<1x256xi1>
    %30 = vector.broadcast %29 : vector<1x256xi1> to vector<8x256xi1>
    %31 = arith.select %30, %24, %25 : vector<8x256xi1>, vector<8x256xf32>
    %c1_i32_7 = arith.constant 1 : i32
    %32 = tpu.dynamic_rotate %2 by %c1_i32_7 dim 1 : vector<8x256xf32>, i32 -> vector<8x256xf32>
    %c255_i32_8 = arith.constant 255 : i32
    %33 = tpu.dynamic_rotate %2 by %c255_i32_8 dim 1 : vector<8x256xf32>, i32 -> vector<8x256xf32>
    %34 = vector.shape_cast %13 : vector<1x256xi1> to vector<1x256xi1>
    %35 = vector.broadcast %34 : vector<1x256xi1> to vector<8x256xi1>
    %36 = arith.select %35, %33, %32 : vector<8x256xi1>, vector<8x256xf32>
    %37 = vector.shape_cast %15 : vector<1x256xi1> to vector<1x256xi1>
    %38 = vector.broadcast %37 : vector<1x256xi1> to vector<8x256xi1>
    %39 = arith.select %38, %32, %33 : vector<8x256xi1>, vector<8x256xf32>
    %c1_i32_9 = arith.constant 1 : i32
    %40 = tpu.dynamic_rotate %23 by %c1_i32_9 dim 1 : vector<8x256xf32>, i32 -> vector<8x256xf32>
    %c255_i32_10 = arith.constant 255 : i32
    %41 = tpu.dynamic_rotate %23 by %c255_i32_10 dim 1 : vector<8x256xf32>, i32 -> vector<8x256xf32>
    %42 = vector.shape_cast %13 : vector<1x256xi1> to vector<1x256xi1>
    %43 = vector.broadcast %42 : vector<1x256xi1> to vector<8x256xi1>
    %44 = arith.select %43, %41, %40 : vector<8x256xi1>, vector<8x256xf32>
    %45 = vector.shape_cast %15 : vector<1x256xi1> to vector<1x256xi1>
    %46 = vector.broadcast %45 : vector<1x256xi1> to vector<8x256xi1>
    %47 = arith.select %46, %40, %41 : vector<8x256xi1>, vector<8x256xf32>
    %48 = tpu.concatenate %28, %20, %31, %36, %2, %39, %44, %23, %47 in 0 : vector<8x256xf32>, vector<8x256xf32>, vector<8x256xf32>, vector<8x256xf32>, vector<8x256xf32>, vector<8x256xf32>, vector<8x256xf32>, vector<8x256xf32>, vector<8x256xf32> -> vector<72x256xf32>
    %49 = arith.truncf %48 : vector<72x256xf32> to vector<72x256xbf16>
    %cst = arith.constant dense<0.000000e+00> : vector<8x256xf32>
    %50 = tpu.matmul %1, %49, %cst {dimension_numbers = #tpu.dot_dimension_numbers<[1], [0], [0], [1], [0, 0, 1, 1], [], []>} : vector<8x72xbf16>, vector<72x256xbf16>, vector<8x256xf32> -> vector<8x256xf32>
    %c0_11 = arith.constant 0 : index
    %c0_12 = arith.constant 0 : index
    %51 = vector.load %arg4[%c0_11, %c0_12] : memref<8x1xf32, #tpu.memory_space<vmem>>, vector<8x1xf32>
    %52 = vector.broadcast %51 : vector<8x1xf32> to vector<8x256xf32>
    %53 = arith.addf %50, %52 : vector<8x256xf32>
    %54 = math.absf %53 : vector<8x256xf32>
    %cst_13 = arith.constant 0.000000e+00 : f32
    %55 = vector.broadcast %cst_13 : f32 to vector<8x256xf32>
    %56 = arith.subf %55, %54 : vector<8x256xf32>
    %57 = math.exp %56 : vector<8x256xf32>
    %58 = arith.mulf %57, %57 : vector<8x256xf32>
    %cst_14 = arith.constant 0.000000e+00 : f32
    %59 = vector.broadcast %cst_14 : f32 to vector<8x256xf32>
    %60 = arith.cmpf oge, %53, %59 : vector<8x256xf32>
    %cst_15 = arith.constant 2.000000e+00 : f32
    %61 = vector.broadcast %cst_15 : f32 to vector<8x256xf32>
    %62 = arith.mulf %61, %57 : vector<8x256xf32>
    %cst_16 = arith.constant 1.000000e+00 : f32
    %63 = vector.broadcast %cst_16 : f32 to vector<8x256xf32>
    %64 = arith.addf %63, %62 : vector<8x256xf32>
    %cst_17 = arith.constant 2.000000e+00 : f32
    %65 = vector.broadcast %cst_17 : f32 to vector<8x256xf32>
    %66 = arith.mulf %65, %57 : vector<8x256xf32>
    %67 = arith.addf %66, %58 : vector<8x256xf32>
    %68 = arith.select %60, %64, %67 : vector<8x256xi1>, vector<8x256xf32>
    %cst_18 = arith.constant 2.000000e+00 : f32
    %69 = vector.broadcast %cst_18 : f32 to vector<8x256xf32>
    %70 = arith.mulf %69, %57 : vector<8x256xf32>
    %cst_19 = arith.constant 1.000000e+00 : f32
    %71 = vector.broadcast %cst_19 : f32 to vector<8x256xf32>
    %72 = arith.addf %71, %70 : vector<8x256xf32>
    %cst_20 = arith.constant 2.000000e+00 : f32
    %73 = vector.broadcast %cst_20 : f32 to vector<8x256xf32>
    %74 = arith.mulf %73, %58 : vector<8x256xf32>
    %75 = arith.addf %72, %74 : vector<8x256xf32>
    %cst_21 = arith.constant 2.000000e+00 : f32
    %76 = vector.broadcast %cst_21 : f32 to vector<8x256xf32>
    %77 = arith.mulf %76, %57 : vector<8x256xf32>
    %cst_22 = arith.constant 2.000000e+00 : f32
    %78 = vector.broadcast %cst_22 : f32 to vector<8x256xf32>
    %79 = arith.addf %78, %77 : vector<8x256xf32>
    %80 = arith.addf %79, %58 : vector<8x256xf32>
    %81 = arith.select %60, %75, %80 : vector<8x256xi1>, vector<8x256xf32>
    %82 = arith.divf %68, %81 : vector<8x256xf32>
    %83 = arith.mulf %53, %82 : vector<8x256xf32>
    %84 = tpu.iota {dimensions = array<i32: 1>} : vector<1x256xi32>
    %c1_i32_23 = arith.constant 1 : i32
    %85 = arith.muli %arg0, %c1_i32_23 : i32
    %c8_i32 = arith.constant 8 : i32
    %86 = vector.broadcast %c8_i32 : i32 to vector<1x256xi32>
    %87 = arith.shrsi %84, %86 : vector<1x256xi32>
    %88 = vector.broadcast %85 : i32 to vector<1x256xi32>
    %89 = arith.addi %88, %87 : vector<1x256xi32>
    %cst_24 = arith.constant 0.000000e+00 : f32
    %90 = vector.broadcast %cst_24 : f32 to vector<8x256xf32>
    %c0_i32_25 = arith.constant 0 : i32
    %91 = vector.broadcast %c0_i32_25 : i32 to vector<1x256xi32>
    %92 = arith.cmpi eq, %89, %91 : vector<1x256xi32>
    %c0_26 = arith.constant 0 : index
    %c0_27 = arith.constant 0 : index
    %93 = vector.load %arg2[%c0_26, %c0_27] : memref<8x2xf32, #tpu.memory_space<vmem>>, vector<8x1xf32>
    %94 = vector.shape_cast %92 : vector<1x256xi1> to vector<1x256xi1>
    %95 = vector.broadcast %94 : vector<1x256xi1> to vector<8x256xi1>
    %96 = vector.shape_cast %93 : vector<8x1xf32> to vector<8x1xf32>
    %97 = vector.broadcast %96 : vector<8x1xf32> to vector<8x256xf32>
    %98 = arith.select %95, %97, %90 : vector<8x256xi1>, vector<8x256xf32>
    %c1_i32_28 = arith.constant 1 : i32
    %99 = vector.broadcast %c1_i32_28 : i32 to vector<1x256xi32>
    %100 = arith.cmpi eq, %89, %99 : vector<1x256xi32>
    %c0_29 = arith.constant 0 : index
    %c1 = arith.constant 1 : index
    %101 = vector.load %arg2[%c0_29, %c1] : memref<8x2xf32, #tpu.memory_space<vmem>>, vector<8x1xf32>
    %102 = vector.shape_cast %100 : vector<1x256xi1> to vector<1x256xi1>
    %103 = vector.broadcast %102 : vector<1x256xi1> to vector<8x256xi1>
    %104 = vector.shape_cast %101 : vector<8x1xf32> to vector<8x1xf32>
    %105 = vector.broadcast %104 : vector<8x1xf32> to vector<8x256xf32>
    %106 = arith.select %103, %105, %98 : vector<8x256xi1>, vector<8x256xf32>
    %107 = arith.addf %83, %106 : vector<8x256xf32>
    %c0_30 = arith.constant 0 : index
    %c0_31 = arith.constant 0 : index
    %108 = vector.load %arg5[%c0_30, %c0_31] : memref<8x72xbf16, #tpu.memory_space<vmem>>, vector<8x72xbf16>
    %109 = tpu.iota {dimensions = array<i32: 1>} : vector<1x256xi32>
    %c255_i32_32 = arith.constant 255 : i32
    %110 = vector.broadcast %c255_i32_32 : i32 to vector<1x256xi32>
    %111 = arith.andi %109, %110 : vector<1x256xi32>
    %c15_i32_33 = arith.constant 15 : i32
    %112 = vector.broadcast %c15_i32_33 : i32 to vector<1x256xi32>
    %113 = arith.andi %109, %112 : vector<1x256xi32>
    %c16_i32_34 = arith.constant 16 : i32
    %114 = vector.broadcast %c16_i32_34 : i32 to vector<1x256xi32>
    %115 = arith.cmpi slt, %111, %114 : vector<1x256xi32>
    %c240_i32_35 = arith.constant 240 : i32
    %116 = vector.broadcast %c240_i32_35 : i32 to vector<1x256xi32>
    %117 = arith.cmpi sge, %111, %116 : vector<1x256xi32>
    %c0_i32_36 = arith.constant 0 : i32
    %118 = vector.broadcast %c0_i32_36 : i32 to vector<1x256xi32>
    %119 = arith.cmpi eq, %113, %118 : vector<1x256xi32>
    %c15_i32_37 = arith.constant 15 : i32
    %120 = vector.broadcast %c15_i32_37 : i32 to vector<1x256xi32>
    %121 = arith.cmpi eq, %113, %120 : vector<1x256xi32>
    %c16_i32_38 = arith.constant 16 : i32
    %122 = tpu.dynamic_rotate %107 by %c16_i32_38 dim 1 : vector<8x256xf32>, i32 -> vector<8x256xf32>
    %c240_i32_39 = arith.constant 240 : i32
    %123 = tpu.dynamic_rotate %107 by %c240_i32_39 dim 1 : vector<8x256xf32>, i32 -> vector<8x256xf32>
    %124 = vector.shape_cast %115 : vector<1x256xi1> to vector<1x256xi1>
    %125 = vector.broadcast %124 : vector<1x256xi1> to vector<8x256xi1>
    %126 = arith.select %125, %123, %122 : vector<8x256xi1>, vector<8x256xf32>
    %127 = vector.shape_cast %117 : vector<1x256xi1> to vector<1x256xi1>
    %128 = vector.broadcast %127 : vector<1x256xi1> to vector<8x256xi1>
    %129 = arith.select %128, %122, %123 : vector<8x256xi1>, vector<8x256xf32>
    %c1_i32_40 = arith.constant 1 : i32
    %130 = tpu.dynamic_rotate %126 by %c1_i32_40 dim 1 : vector<8x256xf32>, i32 -> vector<8x256xf32>
    %c255_i32_41 = arith.constant 255 : i32
    %131 = tpu.dynamic_rotate %126 by %c255_i32_41 dim 1 : vector<8x256xf32>, i32 -> vector<8x256xf32>
    %132 = vector.shape_cast %119 : vector<1x256xi1> to vector<1x256xi1>
    %133 = vector.broadcast %132 : vector<1x256xi1> to vector<8x256xi1>
    %134 = arith.select %133, %131, %130 : vector<8x256xi1>, vector<8x256xf32>
    %135 = vector.shape_cast %121 : vector<1x256xi1> to vector<1x256xi1>
    %136 = vector.broadcast %135 : vector<1x256xi1> to vector<8x256xi1>
    %137 = arith.select %136, %130, %131 : vector<8x256xi1>, vector<8x256xf32>
    %c1_i32_42 = arith.constant 1 : i32
    %138 = tpu.dynamic_rotate %107 by %c1_i32_42 dim 1 : vector<8x256xf32>, i32 -> vector<8x256xf32>
    %c255_i32_43 = arith.constant 255 : i32
    %139 = tpu.dynamic_rotate %107 by %c255_i32_43 dim 1 : vector<8x256xf32>, i32 -> vector<8x256xf32>
    %140 = vector.shape_cast %119 : vector<1x256xi1> to vector<1x256xi1>
    %141 = vector.broadcast %140 : vector<1x256xi1> to vector<8x256xi1>
    %142 = arith.select %141, %139, %138 : vector<8x256xi1>, vector<8x256xf32>
    %143 = vector.shape_cast %121 : vector<1x256xi1> to vector<1x256xi1>
    %144 = vector.broadcast %143 : vector<1x256xi1> to vector<8x256xi1>
    %145 = arith.select %144, %138, %139 : vector<8x256xi1>, vector<8x256xf32>
    %c1_i32_44 = arith.constant 1 : i32
    %146 = tpu.dynamic_rotate %129 by %c1_i32_44 dim 1 : vector<8x256xf32>, i32 -> vector<8x256xf32>
    %c255_i32_45 = arith.constant 255 : i32
    %147 = tpu.dynamic_rotate %129 by %c255_i32_45 dim 1 : vector<8x256xf32>, i32 -> vector<8x256xf32>
    %148 = vector.shape_cast %119 : vector<1x256xi1> to vector<1x256xi1>
    %149 = vector.broadcast %148 : vector<1x256xi1> to vector<8x256xi1>
    %150 = arith.select %149, %147, %146 : vector<8x256xi1>, vector<8x256xf32>
    %151 = vector.shape_cast %121 : vector<1x256xi1> to vector<1x256xi1>
    %152 = vector.broadcast %151 : vector<1x256xi1> to vector<8x256xi1>
    %153 = arith.select %152, %146, %147 : vector<8x256xi1>, vector<8x256xf32>
    %154 = tpu.concatenate %134, %126, %137, %142, %107, %145, %150, %129, %153 in 0 : vector<8x256xf32>, vector<8x256xf32>, vector<8x256xf32>, vector<8x256xf32>, vector<8x256xf32>, vector<8x256xf32>, vector<8x256xf32>, vector<8x256xf32>, vector<8x256xf32> -> vector<72x256xf32>
    %155 = arith.truncf %154 : vector<72x256xf32> to vector<72x256xbf16>
    %cst_46 = arith.constant dense<0.000000e+00> : vector<8x256xf32>
    %156 = tpu.matmul %108, %155, %cst_46 {dimension_numbers = #tpu.dot_dimension_numbers<[1], [0], [0], [1], [0, 0, 1, 1], [], []>} : vector<8x72xbf16>, vector<72x256xbf16>, vector<8x256xf32> -> vector<8x256xf32>
    %c0_47 = arith.constant 0 : index
    %c0_48 = arith.constant 0 : index
    %157 = vector.load %arg6[%c0_47, %c0_48] : memref<8x1xf32, #tpu.memory_space<vmem>>, vector<8x1xf32>
    %158 = vector.broadcast %157 : vector<8x1xf32> to vector<8x256xf32>
    %159 = arith.addf %156, %158 : vector<8x256xf32>
    %160 = math.absf %159 : vector<8x256xf32>
    %cst_49 = arith.constant 0.000000e+00 : f32
    %161 = vector.broadcast %cst_49 : f32 to vector<8x256xf32>
    %162 = arith.subf %161, %160 : vector<8x256xf32>
    %163 = math.exp %162 : vector<8x256xf32>
    %164 = arith.mulf %163, %163 : vector<8x256xf32>
    %cst_50 = arith.constant 0.000000e+00 : f32
    %165 = vector.broadcast %cst_50 : f32 to vector<8x256xf32>
    %166 = arith.cmpf oge, %159, %165 : vector<8x256xf32>
    %cst_51 = arith.constant 2.000000e+00 : f32
    %167 = vector.broadcast %cst_51 : f32 to vector<8x256xf32>
    %168 = arith.mulf %167, %163 : vector<8x256xf32>
    %cst_52 = arith.constant 1.000000e+00 : f32
    %169 = vector.broadcast %cst_52 : f32 to vector<8x256xf32>
    %170 = arith.addf %169, %168 : vector<8x256xf32>
    %cst_53 = arith.constant 2.000000e+00 : f32
    %171 = vector.broadcast %cst_53 : f32 to vector<8x256xf32>
    %172 = arith.mulf %171, %163 : vector<8x256xf32>
    %173 = arith.addf %172, %164 : vector<8x256xf32>
    %174 = arith.select %166, %170, %173 : vector<8x256xi1>, vector<8x256xf32>
    %cst_54 = arith.constant 2.000000e+00 : f32
    %175 = vector.broadcast %cst_54 : f32 to vector<8x256xf32>
    %176 = arith.mulf %175, %163 : vector<8x256xf32>
    %cst_55 = arith.constant 1.000000e+00 : f32
    %177 = vector.broadcast %cst_55 : f32 to vector<8x256xf32>
    %178 = arith.addf %177, %176 : vector<8x256xf32>
    %cst_56 = arith.constant 2.000000e+00 : f32
    %179 = vector.broadcast %cst_56 : f32 to vector<8x256xf32>
    %180 = arith.mulf %179, %164 : vector<8x256xf32>
    %181 = arith.addf %178, %180 : vector<8x256xf32>
    %cst_57 = arith.constant 2.000000e+00 : f32
    %182 = vector.broadcast %cst_57 : f32 to vector<8x256xf32>
    %183 = arith.mulf %182, %163 : vector<8x256xf32>
    %cst_58 = arith.constant 2.000000e+00 : f32
    %184 = vector.broadcast %cst_58 : f32 to vector<8x256xf32>
    %185 = arith.addf %184, %183 : vector<8x256xf32>
    %186 = arith.addf %185, %164 : vector<8x256xf32>
    %187 = arith.select %166, %181, %186 : vector<8x256xi1>, vector<8x256xf32>
    %188 = arith.divf %174, %187 : vector<8x256xf32>
    %189 = arith.mulf %159, %188 : vector<8x256xf32>
    %190 = arith.extf %0 : vector<8x256xbf16> to vector<8x256xf32>
    %191 = arith.addf %189, %190 : vector<8x256xf32>
    %c0_59 = arith.constant 0 : index
    %c0_60 = arith.constant 0 : index
    %192 = vector.load %arg7[%c0_59, %c0_60] : memref<8x256xbf16, #tpu.memory_space<vmem>>, vector<8x256xbf16>
    %193 = arith.extf %192 : vector<8x256xbf16> to vector<8x256xf32>
    %194 = arith.addf %191, %193 : vector<8x256xf32>
    %195 = arith.truncf %194 : vector<8x256xf32> to vector<8x256xbf16>
    %c0_61 = arith.constant 0 : index
    %c0_62 = arith.constant 0 : index
    %196 = vector.load %arg8[%c0_61, %c0_62] : memref<8x256xbf16, #tpu.memory_space<vmem>>, vector<8x256xbf16>
    tpu.vector_store %arg8[%c0_61, %c0_62], %195 {strides = array<i32>} : memref<8x256xbf16, #tpu.memory_space<vmem>>, vector<8x256xbf16>,
    return
  }
  func.func @transform_0(%arg0: i32) -> (i32, i32) {
    %c0_i32 = arith.constant 0 : i32
    %c0_i32_0 = arith.constant 0 : i32
    return %c0_i32, %arg0 : i32, i32
  }
  func.func @transform_1(%arg0: i32) -> (i32, i32) {
    %c0_i32 = arith.constant 0 : i32
    %c0_i32_0 = arith.constant 0 : i32
    %c0_i32_1 = arith.constant 0 : i32
    return %c0_i32, %c0_i32_0 : i32, i32
  }
  func.func @transform_2(%arg0: i32) -> (i32, i32) {
    %c0_i32 = arith.constant 0 : i32
    %c0_i32_0 = arith.constant 0 : i32
    %c0_i32_1 = arith.constant 0 : i32
    return %c0_i32, %c0_i32_0 : i32, i32
  }
  func.func @transform_3(%arg0: i32) -> (i32, i32) {
    %c0_i32 = arith.constant 0 : i32
    %c0_i32_0 = arith.constant 0 : i32
    %c0_i32_1 = arith.constant 0 : i32
    return %c0_i32, %c0_i32_0 : i32, i32
  }
  func.func @transform_4(%arg0: i32) -> (i32, i32) {
    %c0_i32 = arith.constant 0 : i32
    %c0_i32_0 = arith.constant 0 : i32
    %c0_i32_1 = arith.constant 0 : i32
    return %c0_i32, %c0_i32_0 : i32, i32
  }
  func.func @transform_5(%arg0: i32) -> (i32, i32) {
    %c0_i32 = arith.constant 0 : i32
    %c0_i32_0 = arith.constant 0 : i32
    %c0_i32_1 = arith.constant 0 : i32
    return %c0_i32, %c0_i32_0 : i32, i32
  }
  func.func @transform_6(%arg0: i32) -> (i32, i32) {
    %c0_i32 = arith.constant 0 : i32
    %c0_i32_0 = arith.constant 0 : i32
    return %c0_i32, %arg0 : i32, i32
  }
  func.func @transform_7(%arg0: i32) -> (i32, i32) {
    %c0_i32 = arith.constant 0 : i32
    %c0_i32_0 = arith.constant 0 : i32
    return %c0_i32, %arg0 : i32, i32
  }
}

module attributes {stable_mosaic.version = 11 : i64} {
  func.func @_downsample_kernel(%arg0: i32, %arg1: memref<32x128xbf16, #tpu.memory_space<vmem>>, %arg2: memref<8x72xbf16, #tpu.memory_space<vmem>>, %arg3: memref<8x1xf32, #tpu.memory_space<vmem>>, %arg4: memref<8x128xbf16, #tpu.memory_space<vmem>>) attributes {dimension_semantics = [#tpu.dimension_semantics<parallel>], iteration_bounds = array<i64: 1>, scalar_prefetch = 0 : i64, scratch_operands = 0 : i64, tpu.core_type = #tpu.core_type<tc>, window_params = [{transform_indices = @transform_0, window_bounds = array<i64: 32, 128>}, {pipeline_mode = #tpu.pipeline_mode<synchronous>, transform_indices = @transform_1, window_bounds = array<i64: 8, 72>}, {pipeline_mode = #tpu.pipeline_mode<synchronous>, transform_indices = @transform_2, window_bounds = array<i64: 8, 1>}, {transform_indices = @transform_3, window_bounds = array<i64: 8, 128>}]} {
    %c0 = arith.constant 0 : index
    %c0_0 = arith.constant 0 : index
    %0 = vector.load %arg1[%c0, %c0_0] : memref<32x128xbf16, #tpu.memory_space<vmem>>, vector<32x128xbf16>
    %1 = arith.extf %0 : vector<32x128xbf16> to vector<32x128xf32>
    %2 = tpu.iota {dimensions = array<i32: 1>} : vector<1x128xi32>
    %c63_i32 = arith.constant 63 : i32
    %3 = vector.broadcast %c63_i32 : i32 to vector<1x128xi32>
    %4 = arith.andi %2, %3 : vector<1x128xi32>
    %c7_i32 = arith.constant 7 : i32
    %5 = vector.broadcast %c7_i32 : i32 to vector<1x128xi32>
    %6 = arith.andi %2, %5 : vector<1x128xi32>
    %c8_i32 = arith.constant 8 : i32
    %7 = vector.broadcast %c8_i32 : i32 to vector<1x128xi32>
    %8 = arith.cmpi slt, %4, %7 : vector<1x128xi32>
    %c0_i32 = arith.constant 0 : i32
    %9 = vector.broadcast %c0_i32 : i32 to vector<1x128xi32>
    %10 = arith.cmpi eq, %6, %9 : vector<1x128xi32>
    %11 = vector.extract_strided_slice %1 {offsets = [24, 0], sizes = [8, 128], strides = [1, 1]} : vector<32x128xf32> to vector<8x128xf32>
    %c8_i32_1 = arith.constant 8 : i32
    %12 = tpu.dynamic_rotate %11 by %c8_i32_1 dim 1 : vector<8x128xf32>, i32 -> vector<8x128xf32>
    %cst = arith.constant 0.000000e+00 : f32
    %13 = vector.shape_cast %8 : vector<1x128xi1> to vector<1x128xi1>
    %14 = vector.broadcast %13 : vector<1x128xi1> to vector<8x128xi1>
    %15 = vector.broadcast %cst : f32 to vector<8x128xf32>
    %16 = arith.select %14, %15, %12 : vector<8x128xi1>, vector<8x128xf32>
    %c1_i32 = arith.constant 1 : i32
    %17 = tpu.dynamic_rotate %16 by %c1_i32 dim 1 : vector<8x128xf32>, i32 -> vector<8x128xf32>
    %cst_2 = arith.constant 0.000000e+00 : f32
    %18 = vector.shape_cast %10 : vector<1x128xi1> to vector<1x128xi1>
    %19 = vector.broadcast %18 : vector<1x128xi1> to vector<8x128xi1>
    %20 = vector.broadcast %cst_2 : f32 to vector<8x128xf32>
    %21 = arith.select %19, %20, %17 : vector<8x128xi1>, vector<8x128xf32>
    %22 = vector.extract_strided_slice %1 {offsets = [16, 0], sizes = [8, 128], strides = [1, 1]} : vector<32x128xf32> to vector<8x128xf32>
    %c8_i32_3 = arith.constant 8 : i32
    %23 = tpu.dynamic_rotate %22 by %c8_i32_3 dim 1 : vector<8x128xf32>, i32 -> vector<8x128xf32>
    %cst_4 = arith.constant 0.000000e+00 : f32
    %24 = vector.shape_cast %8 : vector<1x128xi1> to vector<1x128xi1>
    %25 = vector.broadcast %24 : vector<1x128xi1> to vector<8x128xi1>
    %26 = vector.broadcast %cst_4 : f32 to vector<8x128xf32>
    %27 = arith.select %25, %26, %23 : vector<8x128xi1>, vector<8x128xf32>
    %28 = vector.extract_strided_slice %1 {offsets = [24, 0], sizes = [8, 128], strides = [1, 1]} : vector<32x128xf32> to vector<8x128xf32>
    %c8_i32_5 = arith.constant 8 : i32
    %29 = tpu.dynamic_rotate %28 by %c8_i32_5 dim 1 : vector<8x128xf32>, i32 -> vector<8x128xf32>
    %cst_6 = arith.constant 0.000000e+00 : f32
    %30 = vector.shape_cast %8 : vector<1x128xi1> to vector<1x128xi1>
    %31 = vector.broadcast %30 : vector<1x128xi1> to vector<8x128xi1>
    %32 = vector.broadcast %cst_6 : f32 to vector<8x128xf32>
    %33 = arith.select %31, %32, %29 : vector<8x128xi1>, vector<8x128xf32>
    %34 = vector.extract_strided_slice %1 {offsets = [8, 0], sizes = [8, 128], strides = [1, 1]} : vector<32x128xf32> to vector<8x128xf32>
    %c1_i32_7 = arith.constant 1 : i32
    %35 = tpu.dynamic_rotate %34 by %c1_i32_7 dim 1 : vector<8x128xf32>, i32 -> vector<8x128xf32>
    %cst_8 = arith.constant 0.000000e+00 : f32
    %36 = vector.shape_cast %10 : vector<1x128xi1> to vector<1x128xi1>
    %37 = vector.broadcast %36 : vector<1x128xi1> to vector<8x128xi1>
    %38 = vector.broadcast %cst_8 : f32 to vector<8x128xf32>
    %39 = arith.select %37, %38, %35 : vector<8x128xi1>, vector<8x128xf32>
    %40 = vector.extract_strided_slice %1 {offsets = [0, 0], sizes = [8, 128], strides = [1, 1]} : vector<32x128xf32> to vector<8x128xf32>
    %41 = vector.extract_strided_slice %1 {offsets = [8, 0], sizes = [8, 128], strides = [1, 1]} : vector<32x128xf32> to vector<8x128xf32>
    %42 = vector.extract_strided_slice %1 {offsets = [24, 0], sizes = [8, 128], strides = [1, 1]} : vector<32x128xf32> to vector<8x128xf32>
    %c1_i32_9 = arith.constant 1 : i32
    %43 = tpu.dynamic_rotate %42 by %c1_i32_9 dim 1 : vector<8x128xf32>, i32 -> vector<8x128xf32>
    %cst_10 = arith.constant 0.000000e+00 : f32
    %44 = vector.shape_cast %10 : vector<1x128xi1> to vector<1x128xi1>
    %45 = vector.broadcast %44 : vector<1x128xi1> to vector<8x128xi1>
    %46 = vector.broadcast %cst_10 : f32 to vector<8x128xf32>
    %47 = arith.select %45, %46, %43 : vector<8x128xi1>, vector<8x128xf32>
    %48 = vector.extract_strided_slice %1 {offsets = [16, 0], sizes = [8, 128], strides = [1, 1]} : vector<32x128xf32> to vector<8x128xf32>
    %49 = vector.extract_strided_slice %1 {offsets = [24, 0], sizes = [8, 128], strides = [1, 1]} : vector<32x128xf32> to vector<8x128xf32>
    %50 = tpu.concatenate %21, %27, %33, %39, %40, %41, %47, %48, %49 in 0 : vector<8x128xf32>, vector<8x128xf32>, vector<8x128xf32>, vector<8x128xf32>, vector<8x128xf32>, vector<8x128xf32>, vector<8x128xf32>, vector<8x128xf32>, vector<8x128xf32> -> vector<72x128xf32>
    %51 = arith.truncf %50 : vector<72x128xf32> to vector<72x128xbf16>
    %c0_11 = arith.constant 0 : index
    %c0_12 = arith.constant 0 : index
    %52 = vector.load %arg2[%c0_11, %c0_12] : memref<8x72xbf16, #tpu.memory_space<vmem>>, vector<8x72xbf16>
    %cst_13 = arith.constant dense<0.000000e+00> : vector<8x128xf32>
    %53 = tpu.matmul %52, %51, %cst_13 {dimension_numbers = #tpu.dot_dimension_numbers<[1], [0], [0], [1], [0, 0, 1, 1], [], []>} : vector<8x72xbf16>, vector<72x128xbf16>, vector<8x128xf32> -> vector<8x128xf32>
    %c0_14 = arith.constant 0 : index
    %c0_15 = arith.constant 0 : index
    %54 = vector.load %arg3[%c0_14, %c0_15] : memref<8x1xf32, #tpu.memory_space<vmem>>, vector<8x1xf32>
    %55 = vector.broadcast %54 : vector<8x1xf32> to vector<8x128xf32>
    %56 = arith.addf %53, %55 : vector<8x128xf32>
    %57 = arith.truncf %56 : vector<8x128xf32> to vector<8x128xbf16>
    %c0_16 = arith.constant 0 : index
    %c0_17 = arith.constant 0 : index
    %58 = vector.load %arg4[%c0_16, %c0_17] : memref<8x128xbf16, #tpu.memory_space<vmem>>, vector<8x128xbf16>
    tpu.vector_store %arg4[%c0_16, %c0_17], %57 {strides = array<i32>} : memref<8x128xbf16, #tpu.memory_space<vmem>>, vector<8x128xbf16>,
    return
  }
  func.func @transform_0(%arg0: i32) -> (i32, i32) {
    %c0_i32 = arith.constant 0 : i32
    %c0_i32_0 = arith.constant 0 : i32
    return %c0_i32, %arg0 : i32, i32
  }
  func.func @transform_1(%arg0: i32) -> (i32, i32) {
    %c0_i32 = arith.constant 0 : i32
    %c0_i32_0 = arith.constant 0 : i32
    %c0_i32_1 = arith.constant 0 : i32
    return %c0_i32, %c0_i32_0 : i32, i32
  }
  func.func @transform_2(%arg0: i32) -> (i32, i32) {
    %c0_i32 = arith.constant 0 : i32
    %c0_i32_0 = arith.constant 0 : i32
    %c0_i32_1 = arith.constant 0 : i32
    return %c0_i32, %c0_i32_0 : i32, i32
  }
  func.func @transform_3(%arg0: i32) -> (i32, i32) {
    %c0_i32 = arith.constant 0 : i32
    %c0_i32_0 = arith.constant 0 : i32
    return %c0_i32, %arg0 : i32, i32
  }
}

module attributes {stable_mosaic.version = 11 : i64} {
  func.func @_resblock_kernel(%arg0: i32, %arg1: memref<16x128xbf16, #tpu.memory_space<vmem>>, %arg2: memref<16x2xf32, #tpu.memory_space<vmem>>, %arg3: memref<16x144xbf16, #tpu.memory_space<vmem>>, %arg4: memref<16x1xf32, #tpu.memory_space<vmem>>, %arg5: memref<16x144xbf16, #tpu.memory_space<vmem>>, %arg6: memref<16x1xf32, #tpu.memory_space<vmem>>, %arg7: memref<16x128xbf16, #tpu.memory_space<vmem>>) attributes {dimension_semantics = [#tpu.dimension_semantics<parallel>], iteration_bounds = array<i64: 1>, scalar_prefetch = 0 : i64, scratch_operands = 0 : i64, tpu.core_type = #tpu.core_type<tc>, window_params = [{transform_indices = @transform_0, window_bounds = array<i64: 16, 128>}, {pipeline_mode = #tpu.pipeline_mode<synchronous>, transform_indices = @transform_1, window_bounds = array<i64: 16, 2>}, {pipeline_mode = #tpu.pipeline_mode<synchronous>, transform_indices = @transform_2, window_bounds = array<i64: 16, 144>}, {pipeline_mode = #tpu.pipeline_mode<synchronous>, transform_indices = @transform_3, window_bounds = array<i64: 16, 1>}, {pipeline_mode = #tpu.pipeline_mode<synchronous>, transform_indices = @transform_4, window_bounds = array<i64: 16, 144>}, {pipeline_mode = #tpu.pipeline_mode<synchronous>, transform_indices = @transform_5, window_bounds = array<i64: 16, 1>}, {transform_indices = @transform_6, window_bounds = array<i64: 16, 128>}]} {
    %c0 = arith.constant 0 : index
    %c0_0 = arith.constant 0 : index
    %0 = vector.load %arg1[%c0, %c0_0] : memref<16x128xbf16, #tpu.memory_space<vmem>>, vector<16x128xbf16>
    %c0_1 = arith.constant 0 : index
    %c0_2 = arith.constant 0 : index
    %1 = vector.load %arg3[%c0_1, %c0_2] : memref<16x144xbf16, #tpu.memory_space<vmem>>, vector<16x144xbf16>
    %2 = arith.extf %0 : vector<16x128xbf16> to vector<16x128xf32>
    %3 = tpu.iota {dimensions = array<i32: 1>} : vector<1x128xi32>
    %c63_i32 = arith.constant 63 : i32
    %4 = vector.broadcast %c63_i32 : i32 to vector<1x128xi32>
    %5 = arith.andi %3, %4 : vector<1x128xi32>
    %c7_i32 = arith.constant 7 : i32
    %6 = vector.broadcast %c7_i32 : i32 to vector<1x128xi32>
    %7 = arith.andi %3, %6 : vector<1x128xi32>
    %c8_i32 = arith.constant 8 : i32
    %8 = vector.broadcast %c8_i32 : i32 to vector<1x128xi32>
    %9 = arith.cmpi slt, %5, %8 : vector<1x128xi32>
    %c56_i32 = arith.constant 56 : i32
    %10 = vector.broadcast %c56_i32 : i32 to vector<1x128xi32>
    %11 = arith.cmpi sge, %5, %10 : vector<1x128xi32>
    %c0_i32 = arith.constant 0 : i32
    %12 = vector.broadcast %c0_i32 : i32 to vector<1x128xi32>
    %13 = arith.cmpi eq, %7, %12 : vector<1x128xi32>
    %c7_i32_3 = arith.constant 7 : i32
    %14 = vector.broadcast %c7_i32_3 : i32 to vector<1x128xi32>
    %15 = arith.cmpi eq, %7, %14 : vector<1x128xi32>
    %c8_i32_4 = arith.constant 8 : i32
    %16 = tpu.dynamic_rotate %2 by %c8_i32_4 dim 1 : vector<16x128xf32>, i32 -> vector<16x128xf32>
    %c120_i32 = arith.constant 120 : i32
    %17 = tpu.dynamic_rotate %2 by %c120_i32 dim 1 : vector<16x128xf32>, i32 -> vector<16x128xf32>
    %18 = vector.shape_cast %9 : vector<1x128xi1> to vector<1x128xi1>
    %19 = vector.broadcast %18 : vector<1x128xi1> to vector<16x128xi1>
    %20 = arith.select %19, %17, %16 : vector<16x128xi1>, vector<16x128xf32>
    %21 = vector.shape_cast %11 : vector<1x128xi1> to vector<1x128xi1>
    %22 = vector.broadcast %21 : vector<1x128xi1> to vector<16x128xi1>
    %23 = arith.select %22, %16, %17 : vector<16x128xi1>, vector<16x128xf32>
    %c1_i32 = arith.constant 1 : i32
    %24 = tpu.dynamic_rotate %20 by %c1_i32 dim 1 : vector<16x128xf32>, i32 -> vector<16x128xf32>
    %c127_i32 = arith.constant 127 : i32
    %25 = tpu.dynamic_rotate %20 by %c127_i32 dim 1 : vector<16x128xf32>, i32 -> vector<16x128xf32>
    %26 = vector.shape_cast %13 : vector<1x128xi1> to vector<1x128xi1>
    %27 = vector.broadcast %26 : vector<1x128xi1> to vector<16x128xi1>
    %28 = arith.select %27, %25, %24 : vector<16x128xi1>, vector<16x128xf32>
    %29 = vector.shape_cast %15 : vector<1x128xi1> to vector<1x128xi1>
    %30 = vector.broadcast %29 : vector<1x128xi1> to vector<16x128xi1>
    %31 = arith.select %30, %24, %25 : vector<16x128xi1>, vector<16x128xf32>
    %c1_i32_5 = arith.constant 1 : i32
    %32 = tpu.dynamic_rotate %2 by %c1_i32_5 dim 1 : vector<16x128xf32>, i32 -> vector<16x128xf32>
    %c127_i32_6 = arith.constant 127 : i32
    %33 = tpu.dynamic_rotate %2 by %c127_i32_6 dim 1 : vector<16x128xf32>, i32 -> vector<16x128xf32>
    %34 = vector.shape_cast %13 : vector<1x128xi1> to vector<1x128xi1>
    %35 = vector.broadcast %34 : vector<1x128xi1> to vector<16x128xi1>
    %36 = arith.select %35, %33, %32 : vector<16x128xi1>, vector<16x128xf32>
    %37 = vector.shape_cast %15 : vector<1x128xi1> to vector<1x128xi1>
    %38 = vector.broadcast %37 : vector<1x128xi1> to vector<16x128xi1>
    %39 = arith.select %38, %32, %33 : vector<16x128xi1>, vector<16x128xf32>
    %c1_i32_7 = arith.constant 1 : i32
    %40 = tpu.dynamic_rotate %23 by %c1_i32_7 dim 1 : vector<16x128xf32>, i32 -> vector<16x128xf32>
    %c127_i32_8 = arith.constant 127 : i32
    %41 = tpu.dynamic_rotate %23 by %c127_i32_8 dim 1 : vector<16x128xf32>, i32 -> vector<16x128xf32>
    %42 = vector.shape_cast %13 : vector<1x128xi1> to vector<1x128xi1>
    %43 = vector.broadcast %42 : vector<1x128xi1> to vector<16x128xi1>
    %44 = arith.select %43, %41, %40 : vector<16x128xi1>, vector<16x128xf32>
    %45 = vector.shape_cast %15 : vector<1x128xi1> to vector<1x128xi1>
    %46 = vector.broadcast %45 : vector<1x128xi1> to vector<16x128xi1>
    %47 = arith.select %46, %40, %41 : vector<16x128xi1>, vector<16x128xf32>
    %48 = tpu.concatenate %28, %20, %31, %36, %2, %39, %44, %23, %47 in 0 : vector<16x128xf32>, vector<16x128xf32>, vector<16x128xf32>, vector<16x128xf32>, vector<16x128xf32>, vector<16x128xf32>, vector<16x128xf32>, vector<16x128xf32>, vector<16x128xf32> -> vector<144x128xf32>
    %49 = arith.truncf %48 : vector<144x128xf32> to vector<144x128xbf16>
    %cst = arith.constant dense<0.000000e+00> : vector<16x128xf32>
    %50 = tpu.matmul %1, %49, %cst {dimension_numbers = #tpu.dot_dimension_numbers<[1], [0], [0], [1], [0, 0, 1, 1], [], []>} : vector<16x144xbf16>, vector<144x128xbf16>, vector<16x128xf32> -> vector<16x128xf32>
    %c0_9 = arith.constant 0 : index
    %c0_10 = arith.constant 0 : index
    %51 = vector.load %arg4[%c0_9, %c0_10] : memref<16x1xf32, #tpu.memory_space<vmem>>, vector<16x1xf32>
    %52 = vector.broadcast %51 : vector<16x1xf32> to vector<16x128xf32>
    %53 = arith.addf %50, %52 : vector<16x128xf32>
    %54 = math.absf %53 : vector<16x128xf32>
    %cst_11 = arith.constant 0.000000e+00 : f32
    %55 = vector.broadcast %cst_11 : f32 to vector<16x128xf32>
    %56 = arith.subf %55, %54 : vector<16x128xf32>
    %57 = math.exp %56 : vector<16x128xf32>
    %58 = arith.mulf %57, %57 : vector<16x128xf32>
    %cst_12 = arith.constant 0.000000e+00 : f32
    %59 = vector.broadcast %cst_12 : f32 to vector<16x128xf32>
    %60 = arith.cmpf oge, %53, %59 : vector<16x128xf32>
    %cst_13 = arith.constant 2.000000e+00 : f32
    %61 = vector.broadcast %cst_13 : f32 to vector<16x128xf32>
    %62 = arith.mulf %61, %57 : vector<16x128xf32>
    %cst_14 = arith.constant 1.000000e+00 : f32
    %63 = vector.broadcast %cst_14 : f32 to vector<16x128xf32>
    %64 = arith.addf %63, %62 : vector<16x128xf32>
    %cst_15 = arith.constant 2.000000e+00 : f32
    %65 = vector.broadcast %cst_15 : f32 to vector<16x128xf32>
    %66 = arith.mulf %65, %57 : vector<16x128xf32>
    %67 = arith.addf %66, %58 : vector<16x128xf32>
    %68 = arith.select %60, %64, %67 : vector<16x128xi1>, vector<16x128xf32>
    %cst_16 = arith.constant 2.000000e+00 : f32
    %69 = vector.broadcast %cst_16 : f32 to vector<16x128xf32>
    %70 = arith.mulf %69, %57 : vector<16x128xf32>
    %cst_17 = arith.constant 1.000000e+00 : f32
    %71 = vector.broadcast %cst_17 : f32 to vector<16x128xf32>
    %72 = arith.addf %71, %70 : vector<16x128xf32>
    %cst_18 = arith.constant 2.000000e+00 : f32
    %73 = vector.broadcast %cst_18 : f32 to vector<16x128xf32>
    %74 = arith.mulf %73, %58 : vector<16x128xf32>
    %75 = arith.addf %72, %74 : vector<16x128xf32>
    %cst_19 = arith.constant 2.000000e+00 : f32
    %76 = vector.broadcast %cst_19 : f32 to vector<16x128xf32>
    %77 = arith.mulf %76, %57 : vector<16x128xf32>
    %cst_20 = arith.constant 2.000000e+00 : f32
    %78 = vector.broadcast %cst_20 : f32 to vector<16x128xf32>
    %79 = arith.addf %78, %77 : vector<16x128xf32>
    %80 = arith.addf %79, %58 : vector<16x128xf32>
    %81 = arith.select %60, %75, %80 : vector<16x128xi1>, vector<16x128xf32>
    %82 = arith.divf %68, %81 : vector<16x128xf32>
    %83 = arith.mulf %53, %82 : vector<16x128xf32>
    %84 = tpu.iota {dimensions = array<i32: 1>} : vector<1x128xi32>
    %c2_i32 = arith.constant 2 : i32
    %85 = arith.muli %arg0, %c2_i32 : i32
    %c6_i32 = arith.constant 6 : i32
    %86 = vector.broadcast %c6_i32 : i32 to vector<1x128xi32>
    %87 = arith.shrsi %84, %86 : vector<1x128xi32>
    %88 = vector.broadcast %85 : i32 to vector<1x128xi32>
    %89 = arith.addi %88, %87 : vector<1x128xi32>
    %cst_21 = arith.constant 0.000000e+00 : f32
    %90 = vector.broadcast %cst_21 : f32 to vector<16x128xf32>
    %c0_i32_22 = arith.constant 0 : i32
    %91 = vector.broadcast %c0_i32_22 : i32 to vector<1x128xi32>
    %92 = arith.cmpi eq, %89, %91 : vector<1x128xi32>
    %c0_23 = arith.constant 0 : index
    %c0_24 = arith.constant 0 : index
    %93 = vector.load %arg2[%c0_23, %c0_24] : memref<16x2xf32, #tpu.memory_space<vmem>>, vector<16x1xf32>
    %94 = vector.shape_cast %92 : vector<1x128xi1> to vector<1x128xi1>
    %95 = vector.broadcast %94 : vector<1x128xi1> to vector<16x128xi1>
    %96 = vector.shape_cast %93 : vector<16x1xf32> to vector<16x1xf32>
    %97 = vector.broadcast %96 : vector<16x1xf32> to vector<16x128xf32>
    %98 = arith.select %95, %97, %90 : vector<16x128xi1>, vector<16x128xf32>
    %c1_i32_25 = arith.constant 1 : i32
    %99 = vector.broadcast %c1_i32_25 : i32 to vector<1x128xi32>
    %100 = arith.cmpi eq, %89, %99 : vector<1x128xi32>
    %c0_26 = arith.constant 0 : index
    %c1 = arith.constant 1 : index
    %101 = vector.load %arg2[%c0_26, %c1] : memref<16x2xf32, #tpu.memory_space<vmem>>, vector<16x1xf32>
    %102 = vector.shape_cast %100 : vector<1x128xi1> to vector<1x128xi1>
    %103 = vector.broadcast %102 : vector<1x128xi1> to vector<16x128xi1>
    %104 = vector.shape_cast %101 : vector<16x1xf32> to vector<16x1xf32>
    %105 = vector.broadcast %104 : vector<16x1xf32> to vector<16x128xf32>
    %106 = arith.select %103, %105, %98 : vector<16x128xi1>, vector<16x128xf32>
    %107 = arith.addf %83, %106 : vector<16x128xf32>
    %c0_27 = arith.constant 0 : index
    %c0_28 = arith.constant 0 : index
    %108 = vector.load %arg5[%c0_27, %c0_28] : memref<16x144xbf16, #tpu.memory_space<vmem>>, vector<16x144xbf16>
    %109 = tpu.iota {dimensions = array<i32: 1>} : vector<1x128xi32>
    %c63_i32_29 = arith.constant 63 : i32
    %110 = vector.broadcast %c63_i32_29 : i32 to vector<1x128xi32>
    %111 = arith.andi %109, %110 : vector<1x128xi32>
    %c7_i32_30 = arith.constant 7 : i32
    %112 = vector.broadcast %c7_i32_30 : i32 to vector<1x128xi32>
    %113 = arith.andi %109, %112 : vector<1x128xi32>
    %c8_i32_31 = arith.constant 8 : i32
    %114 = vector.broadcast %c8_i32_31 : i32 to vector<1x128xi32>
    %115 = arith.cmpi slt, %111, %114 : vector<1x128xi32>
    %c56_i32_32 = arith.constant 56 : i32
    %116 = vector.broadcast %c56_i32_32 : i32 to vector<1x128xi32>
    %117 = arith.cmpi sge, %111, %116 : vector<1x128xi32>
    %c0_i32_33 = arith.constant 0 : i32
    %118 = vector.broadcast %c0_i32_33 : i32 to vector<1x128xi32>
    %119 = arith.cmpi eq, %113, %118 : vector<1x128xi32>
    %c7_i32_34 = arith.constant 7 : i32
    %120 = vector.broadcast %c7_i32_34 : i32 to vector<1x128xi32>
    %121 = arith.cmpi eq, %113, %120 : vector<1x128xi32>
    %c8_i32_35 = arith.constant 8 : i32
    %122 = tpu.dynamic_rotate %107 by %c8_i32_35 dim 1 : vector<16x128xf32>, i32 -> vector<16x128xf32>
    %c120_i32_36 = arith.constant 120 : i32
    %123 = tpu.dynamic_rotate %107 by %c120_i32_36 dim 1 : vector<16x128xf32>, i32 -> vector<16x128xf32>
    %124 = vector.shape_cast %115 : vector<1x128xi1> to vector<1x128xi1>
    %125 = vector.broadcast %124 : vector<1x128xi1> to vector<16x128xi1>
    %126 = arith.select %125, %123, %122 : vector<16x128xi1>, vector<16x128xf32>
    %127 = vector.shape_cast %117 : vector<1x128xi1> to vector<1x128xi1>
    %128 = vector.broadcast %127 : vector<1x128xi1> to vector<16x128xi1>
    %129 = arith.select %128, %122, %123 : vector<16x128xi1>, vector<16x128xf32>
    %c1_i32_37 = arith.constant 1 : i32
    %130 = tpu.dynamic_rotate %126 by %c1_i32_37 dim 1 : vector<16x128xf32>, i32 -> vector<16x128xf32>
    %c127_i32_38 = arith.constant 127 : i32
    %131 = tpu.dynamic_rotate %126 by %c127_i32_38 dim 1 : vector<16x128xf32>, i32 -> vector<16x128xf32>
    %132 = vector.shape_cast %119 : vector<1x128xi1> to vector<1x128xi1>
    %133 = vector.broadcast %132 : vector<1x128xi1> to vector<16x128xi1>
    %134 = arith.select %133, %131, %130 : vector<16x128xi1>, vector<16x128xf32>
    %135 = vector.shape_cast %121 : vector<1x128xi1> to vector<1x128xi1>
    %136 = vector.broadcast %135 : vector<1x128xi1> to vector<16x128xi1>
    %137 = arith.select %136, %130, %131 : vector<16x128xi1>, vector<16x128xf32>
    %c1_i32_39 = arith.constant 1 : i32
    %138 = tpu.dynamic_rotate %107 by %c1_i32_39 dim 1 : vector<16x128xf32>, i32 -> vector<16x128xf32>
    %c127_i32_40 = arith.constant 127 : i32
    %139 = tpu.dynamic_rotate %107 by %c127_i32_40 dim 1 : vector<16x128xf32>, i32 -> vector<16x128xf32>
    %140 = vector.shape_cast %119 : vector<1x128xi1> to vector<1x128xi1>
    %141 = vector.broadcast %140 : vector<1x128xi1> to vector<16x128xi1>
    %142 = arith.select %141, %139, %138 : vector<16x128xi1>, vector<16x128xf32>
    %143 = vector.shape_cast %121 : vector<1x128xi1> to vector<1x128xi1>
    %144 = vector.broadcast %143 : vector<1x128xi1> to vector<16x128xi1>
    %145 = arith.select %144, %138, %139 : vector<16x128xi1>, vector<16x128xf32>
    %c1_i32_41 = arith.constant 1 : i32
    %146 = tpu.dynamic_rotate %129 by %c1_i32_41 dim 1 : vector<16x128xf32>, i32 -> vector<16x128xf32>
    %c127_i32_42 = arith.constant 127 : i32
    %147 = tpu.dynamic_rotate %129 by %c127_i32_42 dim 1 : vector<16x128xf32>, i32 -> vector<16x128xf32>
    %148 = vector.shape_cast %119 : vector<1x128xi1> to vector<1x128xi1>
    %149 = vector.broadcast %148 : vector<1x128xi1> to vector<16x128xi1>
    %150 = arith.select %149, %147, %146 : vector<16x128xi1>, vector<16x128xf32>
    %151 = vector.shape_cast %121 : vector<1x128xi1> to vector<1x128xi1>
    %152 = vector.broadcast %151 : vector<1x128xi1> to vector<16x128xi1>
    %153 = arith.select %152, %146, %147 : vector<16x128xi1>, vector<16x128xf32>
    %154 = tpu.concatenate %134, %126, %137, %142, %107, %145, %150, %129, %153 in 0 : vector<16x128xf32>, vector<16x128xf32>, vector<16x128xf32>, vector<16x128xf32>, vector<16x128xf32>, vector<16x128xf32>, vector<16x128xf32>, vector<16x128xf32>, vector<16x128xf32> -> vector<144x128xf32>
    %155 = arith.truncf %154 : vector<144x128xf32> to vector<144x128xbf16>
    %cst_43 = arith.constant dense<0.000000e+00> : vector<16x128xf32>
    %156 = tpu.matmul %108, %155, %cst_43 {dimension_numbers = #tpu.dot_dimension_numbers<[1], [0], [0], [1], [0, 0, 1, 1], [], []>} : vector<16x144xbf16>, vector<144x128xbf16>, vector<16x128xf32> -> vector<16x128xf32>
    %c0_44 = arith.constant 0 : index
    %c0_45 = arith.constant 0 : index
    %157 = vector.load %arg6[%c0_44, %c0_45] : memref<16x1xf32, #tpu.memory_space<vmem>>, vector<16x1xf32>
    %158 = vector.broadcast %157 : vector<16x1xf32> to vector<16x128xf32>
    %159 = arith.addf %156, %158 : vector<16x128xf32>
    %160 = math.absf %159 : vector<16x128xf32>
    %cst_46 = arith.constant 0.000000e+00 : f32
    %161 = vector.broadcast %cst_46 : f32 to vector<16x128xf32>
    %162 = arith.subf %161, %160 : vector<16x128xf32>
    %163 = math.exp %162 : vector<16x128xf32>
    %164 = arith.mulf %163, %163 : vector<16x128xf32>
    %cst_47 = arith.constant 0.000000e+00 : f32
    %165 = vector.broadcast %cst_47 : f32 to vector<16x128xf32>
    %166 = arith.cmpf oge, %159, %165 : vector<16x128xf32>
    %cst_48 = arith.constant 2.000000e+00 : f32
    %167 = vector.broadcast %cst_48 : f32 to vector<16x128xf32>
    %168 = arith.mulf %167, %163 : vector<16x128xf32>
    %cst_49 = arith.constant 1.000000e+00 : f32
    %169 = vector.broadcast %cst_49 : f32 to vector<16x128xf32>
    %170 = arith.addf %169, %168 : vector<16x128xf32>
    %cst_50 = arith.constant 2.000000e+00 : f32
    %171 = vector.broadcast %cst_50 : f32 to vector<16x128xf32>
    %172 = arith.mulf %171, %163 : vector<16x128xf32>
    %173 = arith.addf %172, %164 : vector<16x128xf32>
    %174 = arith.select %166, %170, %173 : vector<16x128xi1>, vector<16x128xf32>
    %cst_51 = arith.constant 2.000000e+00 : f32
    %175 = vector.broadcast %cst_51 : f32 to vector<16x128xf32>
    %176 = arith.mulf %175, %163 : vector<16x128xf32>
    %cst_52 = arith.constant 1.000000e+00 : f32
    %177 = vector.broadcast %cst_52 : f32 to vector<16x128xf32>
    %178 = arith.addf %177, %176 : vector<16x128xf32>
    %cst_53 = arith.constant 2.000000e+00 : f32
    %179 = vector.broadcast %cst_53 : f32 to vector<16x128xf32>
    %180 = arith.mulf %179, %164 : vector<16x128xf32>
    %181 = arith.addf %178, %180 : vector<16x128xf32>
    %cst_54 = arith.constant 2.000000e+00 : f32
    %182 = vector.broadcast %cst_54 : f32 to vector<16x128xf32>
    %183 = arith.mulf %182, %163 : vector<16x128xf32>
    %cst_55 = arith.constant 2.000000e+00 : f32
    %184 = vector.broadcast %cst_55 : f32 to vector<16x128xf32>
    %185 = arith.addf %184, %183 : vector<16x128xf32>
    %186 = arith.addf %185, %164 : vector<16x128xf32>
    %187 = arith.select %166, %181, %186 : vector<16x128xi1>, vector<16x128xf32>
    %188 = arith.divf %174, %187 : vector<16x128xf32>
    %189 = arith.mulf %159, %188 : vector<16x128xf32>
    %190 = arith.extf %0 : vector<16x128xbf16> to vector<16x128xf32>
    %191 = arith.addf %189, %190 : vector<16x128xf32>
    %192 = arith.truncf %191 : vector<16x128xf32> to vector<16x128xbf16>
    %c0_56 = arith.constant 0 : index
    %c0_57 = arith.constant 0 : index
    %193 = vector.load %arg7[%c0_56, %c0_57] : memref<16x128xbf16, #tpu.memory_space<vmem>>, vector<16x128xbf16>
    tpu.vector_store %arg7[%c0_56, %c0_57], %192 {strides = array<i32>} : memref<16x128xbf16, #tpu.memory_space<vmem>>, vector<16x128xbf16>,
    return
  }
  func.func @transform_0(%arg0: i32) -> (i32, i32) {
    %c0_i32 = arith.constant 0 : i32
    %c0_i32_0 = arith.constant 0 : i32
    return %c0_i32, %arg0 : i32, i32
  }
  func.func @transform_1(%arg0: i32) -> (i32, i32) {
    %c0_i32 = arith.constant 0 : i32
    %c0_i32_0 = arith.constant 0 : i32
    %c0_i32_1 = arith.constant 0 : i32
    return %c0_i32, %c0_i32_0 : i32, i32
  }
  func.func @transform_2(%arg0: i32) -> (i32, i32) {
    %c0_i32 = arith.constant 0 : i32
    %c0_i32_0 = arith.constant 0 : i32
    %c0_i32_1 = arith.constant 0 : i32
    return %c0_i32, %c0_i32_0 : i32, i32
  }
  func.func @transform_3(%arg0: i32) -> (i32, i32) {
    %c0_i32 = arith.constant 0 : i32
    %c0_i32_0 = arith.constant 0 : i32
    %c0_i32_1 = arith.constant 0 : i32
    return %c0_i32, %c0_i32_0 : i32, i32
  }
  func.func @transform_4(%arg0: i32) -> (i32, i32) {
    %c0_i32 = arith.constant 0 : i32
    %c0_i32_0 = arith.constant 0 : i32
    %c0_i32_1 = arith.constant 0 : i32
    return %c0_i32, %c0_i32_0 : i32, i32
  }
  func.func @transform_5(%arg0: i32) -> (i32, i32) {
    %c0_i32 = arith.constant 0 : i32
    %c0_i32_0 = arith.constant 0 : i32
    %c0_i32_1 = arith.constant 0 : i32
    return %c0_i32, %c0_i32_0 : i32, i32
  }
  func.func @transform_6(%arg0: i32) -> (i32, i32) {
    %c0_i32 = arith.constant 0 : i32
    %c0_i32_0 = arith.constant 0 : i32
    return %c0_i32, %arg0 : i32, i32
  }
}

module attributes {stable_mosaic.version = 11 : i64} {
  func.func @_resblock_kernel(%arg0: i32, %arg1: memref<16x128xbf16, #tpu.memory_space<vmem>>, %arg2: memref<8x2xf32, #tpu.memory_space<vmem>>, %arg3: memref<8x144xbf16, #tpu.memory_space<vmem>>, %arg4: memref<8x1xf32, #tpu.memory_space<vmem>>, %arg5: memref<8x72xbf16, #tpu.memory_space<vmem>>, %arg6: memref<8x1xf32, #tpu.memory_space<vmem>>, %arg7: memref<16x128xbf16, #tpu.memory_space<vmem>>, %arg8: memref<8x144xbf16, #tpu.memory_space<vmem>>, %arg9: memref<8x16xbf16, #tpu.memory_space<vmem>>, %arg10: memref<8x1xf32, #tpu.memory_space<vmem>>, %arg11: memref<8x16xbf16, #tpu.memory_space<vmem>>, %arg12: memref<8x128xbf16, #tpu.memory_space<vmem>>) attributes {dimension_semantics = [#tpu.dimension_semantics<parallel>], iteration_bounds = array<i64: 1>, scalar_prefetch = 0 : i64, scratch_operands = 0 : i64, tpu.core_type = #tpu.core_type<tc>, window_params = [{transform_indices = @transform_0, window_bounds = array<i64: 16, 128>}, {pipeline_mode = #tpu.pipeline_mode<synchronous>, transform_indices = @transform_1, window_bounds = array<i64: 8, 2>}, {pipeline_mode = #tpu.pipeline_mode<synchronous>, transform_indices = @transform_2, window_bounds = array<i64: 8, 144>}, {pipeline_mode = #tpu.pipeline_mode<synchronous>, transform_indices = @transform_3, window_bounds = array<i64: 8, 1>}, {pipeline_mode = #tpu.pipeline_mode<synchronous>, transform_indices = @transform_4, window_bounds = array<i64: 8, 72>}, {pipeline_mode = #tpu.pipeline_mode<synchronous>, transform_indices = @transform_5, window_bounds = array<i64: 8, 1>}, {transform_indices = @transform_6, window_bounds = array<i64: 16, 128>}, {pipeline_mode = #tpu.pipeline_mode<synchronous>, transform_indices = @transform_7, window_bounds = array<i64: 8, 144>}, {pipeline_mode = #tpu.pipeline_mode<synchronous>, transform_indices = @transform_8, window_bounds = array<i64: 8, 16>}, {pipeline_mode = #tpu.pipeline_mode<synchronous>, transform_indices = @transform_9, window_bounds = array<i64: 8, 1>}, {pipeline_mode = #tpu.pipeline_mode<synchronous>, transform_indices = @transform_10, window_bounds = array<i64: 8, 16>}, {transform_indices = @transform_11, window_bounds = array<i64: 8, 128>}]} {
    %c0 = arith.constant 0 : index
    %c0_0 = arith.constant 0 : index
    %0 = vector.load %arg1[%c0, %c0_0] : memref<16x128xbf16, #tpu.memory_space<vmem>>, vector<16x128xbf16>
    %c0_1 = arith.constant 0 : index
    %c0_2 = arith.constant 0 : index
    %1 = vector.load %arg3[%c0_1, %c0_2] : memref<8x144xbf16, #tpu.memory_space<vmem>>, vector<8x144xbf16>
    %2 = arith.extf %0 : vector<16x128xbf16> to vector<16x128xf32>
    %3 = tpu.iota {dimensions = array<i32: 1>} : vector<1x128xi32>
    %c63_i32 = arith.constant 63 : i32
    %4 = vector.broadcast %c63_i32 : i32 to vector<1x128xi32>
    %5 = arith.andi %3, %4 : vector<1x128xi32>
    %c7_i32 = arith.constant 7 : i32
    %6 = vector.broadcast %c7_i32 : i32 to vector<1x128xi32>
    %7 = arith.andi %3, %6 : vector<1x128xi32>
    %c8_i32 = arith.constant 8 : i32
    %8 = vector.broadcast %c8_i32 : i32 to vector<1x128xi32>
    %9 = arith.cmpi slt, %5, %8 : vector<1x128xi32>
    %c56_i32 = arith.constant 56 : i32
    %10 = vector.broadcast %c56_i32 : i32 to vector<1x128xi32>
    %11 = arith.cmpi sge, %5, %10 : vector<1x128xi32>
    %c0_i32 = arith.constant 0 : i32
    %12 = vector.broadcast %c0_i32 : i32 to vector<1x128xi32>
    %13 = arith.cmpi eq, %7, %12 : vector<1x128xi32>
    %c7_i32_3 = arith.constant 7 : i32
    %14 = vector.broadcast %c7_i32_3 : i32 to vector<1x128xi32>
    %15 = arith.cmpi eq, %7, %14 : vector<1x128xi32>
    %c8_i32_4 = arith.constant 8 : i32
    %16 = tpu.dynamic_rotate %2 by %c8_i32_4 dim 1 : vector<16x128xf32>, i32 -> vector<16x128xf32>
    %c120_i32 = arith.constant 120 : i32
    %17 = tpu.dynamic_rotate %2 by %c120_i32 dim 1 : vector<16x128xf32>, i32 -> vector<16x128xf32>
    %18 = vector.shape_cast %9 : vector<1x128xi1> to vector<1x128xi1>
    %19 = vector.broadcast %18 : vector<1x128xi1> to vector<16x128xi1>
    %20 = arith.select %19, %17, %16 : vector<16x128xi1>, vector<16x128xf32>
    %21 = vector.shape_cast %11 : vector<1x128xi1> to vector<1x128xi1>
    %22 = vector.broadcast %21 : vector<1x128xi1> to vector<16x128xi1>
    %23 = arith.select %22, %16, %17 : vector<16x128xi1>, vector<16x128xf32>
    %c1_i32 = arith.constant 1 : i32
    %24 = tpu.dynamic_rotate %20 by %c1_i32 dim 1 : vector<16x128xf32>, i32 -> vector<16x128xf32>
    %c127_i32 = arith.constant 127 : i32
    %25 = tpu.dynamic_rotate %20 by %c127_i32 dim 1 : vector<16x128xf32>, i32 -> vector<16x128xf32>
    %26 = vector.shape_cast %13 : vector<1x128xi1> to vector<1x128xi1>
    %27 = vector.broadcast %26 : vector<1x128xi1> to vector<16x128xi1>
    %28 = arith.select %27, %25, %24 : vector<16x128xi1>, vector<16x128xf32>
    %29 = vector.shape_cast %15 : vector<1x128xi1> to vector<1x128xi1>
    %30 = vector.broadcast %29 : vector<1x128xi1> to vector<16x128xi1>
    %31 = arith.select %30, %24, %25 : vector<16x128xi1>, vector<16x128xf32>
    %c1_i32_5 = arith.constant 1 : i32
    %32 = tpu.dynamic_rotate %2 by %c1_i32_5 dim 1 : vector<16x128xf32>, i32 -> vector<16x128xf32>
    %c127_i32_6 = arith.constant 127 : i32
    %33 = tpu.dynamic_rotate %2 by %c127_i32_6 dim 1 : vector<16x128xf32>, i32 -> vector<16x128xf32>
    %34 = vector.shape_cast %13 : vector<1x128xi1> to vector<1x128xi1>
    %35 = vector.broadcast %34 : vector<1x128xi1> to vector<16x128xi1>
    %36 = arith.select %35, %33, %32 : vector<16x128xi1>, vector<16x128xf32>
    %37 = vector.shape_cast %15 : vector<1x128xi1> to vector<1x128xi1>
    %38 = vector.broadcast %37 : vector<1x128xi1> to vector<16x128xi1>
    %39 = arith.select %38, %32, %33 : vector<16x128xi1>, vector<16x128xf32>
    %c1_i32_7 = arith.constant 1 : i32
    %40 = tpu.dynamic_rotate %23 by %c1_i32_7 dim 1 : vector<16x128xf32>, i32 -> vector<16x128xf32>
    %c127_i32_8 = arith.constant 127 : i32
    %41 = tpu.dynamic_rotate %23 by %c127_i32_8 dim 1 : vector<16x128xf32>, i32 -> vector<16x128xf32>
    %42 = vector.shape_cast %13 : vector<1x128xi1> to vector<1x128xi1>
    %43 = vector.broadcast %42 : vector<1x128xi1> to vector<16x128xi1>
    %44 = arith.select %43, %41, %40 : vector<16x128xi1>, vector<16x128xf32>
    %45 = vector.shape_cast %15 : vector<1x128xi1> to vector<1x128xi1>
    %46 = vector.broadcast %45 : vector<1x128xi1> to vector<16x128xi1>
    %47 = arith.select %46, %40, %41 : vector<16x128xi1>, vector<16x128xf32>
    %48 = tpu.concatenate %28, %20, %31, %36, %2, %39, %44, %23, %47 in 0 : vector<16x128xf32>, vector<16x128xf32>, vector<16x128xf32>, vector<16x128xf32>, vector<16x128xf32>, vector<16x128xf32>, vector<16x128xf32>, vector<16x128xf32>, vector<16x128xf32> -> vector<144x128xf32>
    %49 = arith.truncf %48 : vector<144x128xf32> to vector<144x128xbf16>
    %cst = arith.constant dense<0.000000e+00> : vector<8x128xf32>
    %50 = tpu.matmul %1, %49, %cst {dimension_numbers = #tpu.dot_dimension_numbers<[1], [0], [0], [1], [0, 0, 1, 1], [], []>} : vector<8x144xbf16>, vector<144x128xbf16>, vector<8x128xf32> -> vector<8x128xf32>
    %c0_9 = arith.constant 0 : index
    %c0_10 = arith.constant 0 : index
    %51 = vector.load %arg4[%c0_9, %c0_10] : memref<8x1xf32, #tpu.memory_space<vmem>>, vector<8x1xf32>
    %52 = vector.broadcast %51 : vector<8x1xf32> to vector<8x128xf32>
    %53 = arith.addf %50, %52 : vector<8x128xf32>
    %c0_11 = arith.constant 0 : index
    %c0_12 = arith.constant 0 : index
    %54 = vector.load %arg7[%c0_11, %c0_12] : memref<16x128xbf16, #tpu.memory_space<vmem>>, vector<16x128xbf16>
    %c0_13 = arith.constant 0 : index
    %c0_14 = arith.constant 0 : index
    %55 = vector.load %arg8[%c0_13, %c0_14] : memref<8x144xbf16, #tpu.memory_space<vmem>>, vector<8x144xbf16>
    %56 = arith.extf %54 : vector<16x128xbf16> to vector<16x128xf32>
    %57 = tpu.iota {dimensions = array<i32: 1>} : vector<1x128xi32>
    %c63_i32_15 = arith.constant 63 : i32
    %58 = vector.broadcast %c63_i32_15 : i32 to vector<1x128xi32>
    %59 = arith.andi %57, %58 : vector<1x128xi32>
    %c7_i32_16 = arith.constant 7 : i32
    %60 = vector.broadcast %c7_i32_16 : i32 to vector<1x128xi32>
    %61 = arith.andi %57, %60 : vector<1x128xi32>
    %c8_i32_17 = arith.constant 8 : i32
    %62 = vector.broadcast %c8_i32_17 : i32 to vector<1x128xi32>
    %63 = arith.cmpi slt, %59, %62 : vector<1x128xi32>
    %c56_i32_18 = arith.constant 56 : i32
    %64 = vector.broadcast %c56_i32_18 : i32 to vector<1x128xi32>
    %65 = arith.cmpi sge, %59, %64 : vector<1x128xi32>
    %c0_i32_19 = arith.constant 0 : i32
    %66 = vector.broadcast %c0_i32_19 : i32 to vector<1x128xi32>
    %67 = arith.cmpi eq, %61, %66 : vector<1x128xi32>
    %c7_i32_20 = arith.constant 7 : i32
    %68 = vector.broadcast %c7_i32_20 : i32 to vector<1x128xi32>
    %69 = arith.cmpi eq, %61, %68 : vector<1x128xi32>
    %c8_i32_21 = arith.constant 8 : i32
    %70 = tpu.dynamic_rotate %56 by %c8_i32_21 dim 1 : vector<16x128xf32>, i32 -> vector<16x128xf32>
    %c120_i32_22 = arith.constant 120 : i32
    %71 = tpu.dynamic_rotate %56 by %c120_i32_22 dim 1 : vector<16x128xf32>, i32 -> vector<16x128xf32>
    %72 = vector.shape_cast %63 : vector<1x128xi1> to vector<1x128xi1>
    %73 = vector.broadcast %72 : vector<1x128xi1> to vector<16x128xi1>
    %74 = arith.select %73, %71, %70 : vector<16x128xi1>, vector<16x128xf32>
    %75 = vector.shape_cast %65 : vector<1x128xi1> to vector<1x128xi1>
    %76 = vector.broadcast %75 : vector<1x128xi1> to vector<16x128xi1>
    %77 = arith.select %76, %70, %71 : vector<16x128xi1>, vector<16x128xf32>
    %c1_i32_23 = arith.constant 1 : i32
    %78 = tpu.dynamic_rotate %74 by %c1_i32_23 dim 1 : vector<16x128xf32>, i32 -> vector<16x128xf32>
    %c127_i32_24 = arith.constant 127 : i32
    %79 = tpu.dynamic_rotate %74 by %c127_i32_24 dim 1 : vector<16x128xf32>, i32 -> vector<16x128xf32>
    %80 = vector.shape_cast %67 : vector<1x128xi1> to vector<1x128xi1>
    %81 = vector.broadcast %80 : vector<1x128xi1> to vector<16x128xi1>
    %82 = arith.select %81, %79, %78 : vector<16x128xi1>, vector<16x128xf32>
    %83 = vector.shape_cast %69 : vector<1x128xi1> to vector<1x128xi1>
    %84 = vector.broadcast %83 : vector<1x128xi1> to vector<16x128xi1>
    %85 = arith.select %84, %78, %79 : vector<16x128xi1>, vector<16x128xf32>
    %c1_i32_25 = arith.constant 1 : i32
    %86 = tpu.dynamic_rotate %56 by %c1_i32_25 dim 1 : vector<16x128xf32>, i32 -> vector<16x128xf32>
    %c127_i32_26 = arith.constant 127 : i32
    %87 = tpu.dynamic_rotate %56 by %c127_i32_26 dim 1 : vector<16x128xf32>, i32 -> vector<16x128xf32>
    %88 = vector.shape_cast %67 : vector<1x128xi1> to vector<1x128xi1>
    %89 = vector.broadcast %88 : vector<1x128xi1> to vector<16x128xi1>
    %90 = arith.select %89, %87, %86 : vector<16x128xi1>, vector<16x128xf32>
    %91 = vector.shape_cast %69 : vector<1x128xi1> to vector<1x128xi1>
    %92 = vector.broadcast %91 : vector<1x128xi1> to vector<16x128xi1>
    %93 = arith.select %92, %86, %87 : vector<16x128xi1>, vector<16x128xf32>
    %c1_i32_27 = arith.constant 1 : i32
    %94 = tpu.dynamic_rotate %77 by %c1_i32_27 dim 1 : vector<16x128xf32>, i32 -> vector<16x128xf32>
    %c127_i32_28 = arith.constant 127 : i32
    %95 = tpu.dynamic_rotate %77 by %c127_i32_28 dim 1 : vector<16x128xf32>, i32 -> vector<16x128xf32>
    %96 = vector.shape_cast %67 : vector<1x128xi1> to vector<1x128xi1>
    %97 = vector.broadcast %96 : vector<1x128xi1> to vector<16x128xi1>
    %98 = arith.select %97, %95, %94 : vector<16x128xi1>, vector<16x128xf32>
    %99 = vector.shape_cast %69 : vector<1x128xi1> to vector<1x128xi1>
    %100 = vector.broadcast %99 : vector<1x128xi1> to vector<16x128xi1>
    %101 = arith.select %100, %94, %95 : vector<16x128xi1>, vector<16x128xf32>
    %102 = tpu.concatenate %82, %74, %85, %90, %56, %93, %98, %77, %101 in 0 : vector<16x128xf32>, vector<16x128xf32>, vector<16x128xf32>, vector<16x128xf32>, vector<16x128xf32>, vector<16x128xf32>, vector<16x128xf32>, vector<16x128xf32>, vector<16x128xf32> -> vector<144x128xf32>
    %103 = arith.truncf %102 : vector<144x128xf32> to vector<144x128xbf16>
    %cst_29 = arith.constant dense<0.000000e+00> : vector<8x128xf32>
    %104 = tpu.matmul %55, %103, %cst_29 {dimension_numbers = #tpu.dot_dimension_numbers<[1], [0], [0], [1], [0, 0, 1, 1], [], []>} : vector<8x144xbf16>, vector<144x128xbf16>, vector<8x128xf32> -> vector<8x128xf32>
    %105 = arith.addf %53, %104 : vector<8x128xf32>
    %106 = math.absf %105 : vector<8x128xf32>
    %cst_30 = arith.constant 0.000000e+00 : f32
    %107 = vector.broadcast %cst_30 : f32 to vector<8x128xf32>
    %108 = arith.subf %107, %106 : vector<8x128xf32>
    %109 = math.exp %108 : vector<8x128xf32>
    %110 = arith.mulf %109, %109 : vector<8x128xf32>
    %cst_31 = arith.constant 0.000000e+00 : f32
    %111 = vector.broadcast %cst_31 : f32 to vector<8x128xf32>
    %112 = arith.cmpf oge, %105, %111 : vector<8x128xf32>
    %cst_32 = arith.constant 2.000000e+00 : f32
    %113 = vector.broadcast %cst_32 : f32 to vector<8x128xf32>
    %114 = arith.mulf %113, %109 : vector<8x128xf32>
    %cst_33 = arith.constant 1.000000e+00 : f32
    %115 = vector.broadcast %cst_33 : f32 to vector<8x128xf32>
    %116 = arith.addf %115, %114 : vector<8x128xf32>
    %cst_34 = arith.constant 2.000000e+00 : f32
    %117 = vector.broadcast %cst_34 : f32 to vector<8x128xf32>
    %118 = arith.mulf %117, %109 : vector<8x128xf32>
    %119 = arith.addf %118, %110 : vector<8x128xf32>
    %120 = arith.select %112, %116, %119 : vector<8x128xi1>, vector<8x128xf32>
    %cst_35 = arith.constant 2.000000e+00 : f32
    %121 = vector.broadcast %cst_35 : f32 to vector<8x128xf32>
    %122 = arith.mulf %121, %109 : vector<8x128xf32>
    %cst_36 = arith.constant 1.000000e+00 : f32
    %123 = vector.broadcast %cst_36 : f32 to vector<8x128xf32>
    %124 = arith.addf %123, %122 : vector<8x128xf32>
    %cst_37 = arith.constant 2.000000e+00 : f32
    %125 = vector.broadcast %cst_37 : f32 to vector<8x128xf32>
    %126 = arith.mulf %125, %110 : vector<8x128xf32>
    %127 = arith.addf %124, %126 : vector<8x128xf32>
    %cst_38 = arith.constant 2.000000e+00 : f32
    %128 = vector.broadcast %cst_38 : f32 to vector<8x128xf32>
    %129 = arith.mulf %128, %109 : vector<8x128xf32>
    %cst_39 = arith.constant 2.000000e+00 : f32
    %130 = vector.broadcast %cst_39 : f32 to vector<8x128xf32>
    %131 = arith.addf %130, %129 : vector<8x128xf32>
    %132 = arith.addf %131, %110 : vector<8x128xf32>
    %133 = arith.select %112, %127, %132 : vector<8x128xi1>, vector<8x128xf32>
    %134 = arith.divf %120, %133 : vector<8x128xf32>
    %135 = arith.mulf %105, %134 : vector<8x128xf32>
    %136 = tpu.iota {dimensions = array<i32: 1>} : vector<1x128xi32>
    %c2_i32 = arith.constant 2 : i32
    %137 = arith.muli %arg0, %c2_i32 : i32
    %c6_i32 = arith.constant 6 : i32
    %138 = vector.broadcast %c6_i32 : i32 to vector<1x128xi32>
    %139 = arith.shrsi %136, %138 : vector<1x128xi32>
    %140 = vector.broadcast %137 : i32 to vector<1x128xi32>
    %141 = arith.addi %140, %139 : vector<1x128xi32>
    %cst_40 = arith.constant 0.000000e+00 : f32
    %142 = vector.broadcast %cst_40 : f32 to vector<8x128xf32>
    %c0_i32_41 = arith.constant 0 : i32
    %143 = vector.broadcast %c0_i32_41 : i32 to vector<1x128xi32>
    %144 = arith.cmpi eq, %141, %143 : vector<1x128xi32>
    %c0_42 = arith.constant 0 : index
    %c0_43 = arith.constant 0 : index
    %145 = vector.load %arg2[%c0_42, %c0_43] : memref<8x2xf32, #tpu.memory_space<vmem>>, vector<8x1xf32>
    %146 = vector.shape_cast %144 : vector<1x128xi1> to vector<1x128xi1>
    %147 = vector.broadcast %146 : vector<1x128xi1> to vector<8x128xi1>
    %148 = vector.shape_cast %145 : vector<8x1xf32> to vector<8x1xf32>
    %149 = vector.broadcast %148 : vector<8x1xf32> to vector<8x128xf32>
    %150 = arith.select %147, %149, %142 : vector<8x128xi1>, vector<8x128xf32>
    %c1_i32_44 = arith.constant 1 : i32
    %151 = vector.broadcast %c1_i32_44 : i32 to vector<1x128xi32>
    %152 = arith.cmpi eq, %141, %151 : vector<1x128xi32>
    %c0_45 = arith.constant 0 : index
    %c1 = arith.constant 1 : index
    %153 = vector.load %arg2[%c0_45, %c1] : memref<8x2xf32, #tpu.memory_space<vmem>>, vector<8x1xf32>
    %154 = vector.shape_cast %152 : vector<1x128xi1> to vector<1x128xi1>
    %155 = vector.broadcast %154 : vector<1x128xi1> to vector<8x128xi1>
    %156 = vector.shape_cast %153 : vector<8x1xf32> to vector<8x1xf32>
    %157 = vector.broadcast %156 : vector<8x1xf32> to vector<8x128xf32>
    %158 = arith.select %155, %157, %150 : vector<8x128xi1>, vector<8x128xf32>
    %159 = arith.addf %135, %158 : vector<8x128xf32>
    %c0_46 = arith.constant 0 : index
    %c0_47 = arith.constant 0 : index
    %160 = vector.load %arg5[%c0_46, %c0_47] : memref<8x72xbf16, #tpu.memory_space<vmem>>, vector<8x72xbf16>
    %161 = tpu.iota {dimensions = array<i32: 1>} : vector<1x128xi32>
    %c63_i32_48 = arith.constant 63 : i32
    %162 = vector.broadcast %c63_i32_48 : i32 to vector<1x128xi32>
    %163 = arith.andi %161, %162 : vector<1x128xi32>
    %c7_i32_49 = arith.constant 7 : i32
    %164 = vector.broadcast %c7_i32_49 : i32 to vector<1x128xi32>
    %165 = arith.andi %161, %164 : vector<1x128xi32>
    %c8_i32_50 = arith.constant 8 : i32
    %166 = vector.broadcast %c8_i32_50 : i32 to vector<1x128xi32>
    %167 = arith.cmpi slt, %163, %166 : vector<1x128xi32>
    %c56_i32_51 = arith.constant 56 : i32
    %168 = vector.broadcast %c56_i32_51 : i32 to vector<1x128xi32>
    %169 = arith.cmpi sge, %163, %168 : vector<1x128xi32>
    %c0_i32_52 = arith.constant 0 : i32
    %170 = vector.broadcast %c0_i32_52 : i32 to vector<1x128xi32>
    %171 = arith.cmpi eq, %165, %170 : vector<1x128xi32>
    %c7_i32_53 = arith.constant 7 : i32
    %172 = vector.broadcast %c7_i32_53 : i32 to vector<1x128xi32>
    %173 = arith.cmpi eq, %165, %172 : vector<1x128xi32>
    %c8_i32_54 = arith.constant 8 : i32
    %174 = tpu.dynamic_rotate %159 by %c8_i32_54 dim 1 : vector<8x128xf32>, i32 -> vector<8x128xf32>
    %c120_i32_55 = arith.constant 120 : i32
    %175 = tpu.dynamic_rotate %159 by %c120_i32_55 dim 1 : vector<8x128xf32>, i32 -> vector<8x128xf32>
    %176 = vector.shape_cast %167 : vector<1x128xi1> to vector<1x128xi1>
    %177 = vector.broadcast %176 : vector<1x128xi1> to vector<8x128xi1>
    %178 = arith.select %177, %175, %174 : vector<8x128xi1>, vector<8x128xf32>
    %179 = vector.shape_cast %169 : vector<1x128xi1> to vector<1x128xi1>
    %180 = vector.broadcast %179 : vector<1x128xi1> to vector<8x128xi1>
    %181 = arith.select %180, %174, %175 : vector<8x128xi1>, vector<8x128xf32>
    %c1_i32_56 = arith.constant 1 : i32
    %182 = tpu.dynamic_rotate %178 by %c1_i32_56 dim 1 : vector<8x128xf32>, i32 -> vector<8x128xf32>
    %c127_i32_57 = arith.constant 127 : i32
    %183 = tpu.dynamic_rotate %178 by %c127_i32_57 dim 1 : vector<8x128xf32>, i32 -> vector<8x128xf32>
    %184 = vector.shape_cast %171 : vector<1x128xi1> to vector<1x128xi1>
    %185 = vector.broadcast %184 : vector<1x128xi1> to vector<8x128xi1>
    %186 = arith.select %185, %183, %182 : vector<8x128xi1>, vector<8x128xf32>
    %187 = vector.shape_cast %173 : vector<1x128xi1> to vector<1x128xi1>
    %188 = vector.broadcast %187 : vector<1x128xi1> to vector<8x128xi1>
    %189 = arith.select %188, %182, %183 : vector<8x128xi1>, vector<8x128xf32>
    %c1_i32_58 = arith.constant 1 : i32
    %190 = tpu.dynamic_rotate %159 by %c1_i32_58 dim 1 : vector<8x128xf32>, i32 -> vector<8x128xf32>
    %c127_i32_59 = arith.constant 127 : i32
    %191 = tpu.dynamic_rotate %159 by %c127_i32_59 dim 1 : vector<8x128xf32>, i32 -> vector<8x128xf32>
    %192 = vector.shape_cast %171 : vector<1x128xi1> to vector<1x128xi1>
    %193 = vector.broadcast %192 : vector<1x128xi1> to vector<8x128xi1>
    %194 = arith.select %193, %191, %190 : vector<8x128xi1>, vector<8x128xf32>
    %195 = vector.shape_cast %173 : vector<1x128xi1> to vector<1x128xi1>
    %196 = vector.broadcast %195 : vector<1x128xi1> to vector<8x128xi1>
    %197 = arith.select %196, %190, %191 : vector<8x128xi1>, vector<8x128xf32>
    %c1_i32_60 = arith.constant 1 : i32
    %198 = tpu.dynamic_rotate %181 by %c1_i32_60 dim 1 : vector<8x128xf32>, i32 -> vector<8x128xf32>
    %c127_i32_61 = arith.constant 127 : i32
    %199 = tpu.dynamic_rotate %181 by %c127_i32_61 dim 1 : vector<8x128xf32>, i32 -> vector<8x128xf32>
    %200 = vector.shape_cast %171 : vector<1x128xi1> to vector<1x128xi1>
    %201 = vector.broadcast %200 : vector<1x128xi1> to vector<8x128xi1>
    %202 = arith.select %201, %199, %198 : vector<8x128xi1>, vector<8x128xf32>
    %203 = vector.shape_cast %173 : vector<1x128xi1> to vector<1x128xi1>
    %204 = vector.broadcast %203 : vector<1x128xi1> to vector<8x128xi1>
    %205 = arith.select %204, %198, %199 : vector<8x128xi1>, vector<8x128xf32>
    %206 = tpu.concatenate %186, %178, %189, %194, %159, %197, %202, %181, %205 in 0 : vector<8x128xf32>, vector<8x128xf32>, vector<8x128xf32>, vector<8x128xf32>, vector<8x128xf32>, vector<8x128xf32>, vector<8x128xf32>, vector<8x128xf32>, vector<8x128xf32> -> vector<72x128xf32>
    %207 = arith.truncf %206 : vector<72x128xf32> to vector<72x128xbf16>
    %cst_62 = arith.constant dense<0.000000e+00> : vector<8x128xf32>
    %208 = tpu.matmul %160, %207, %cst_62 {dimension_numbers = #tpu.dot_dimension_numbers<[1], [0], [0], [1], [0, 0, 1, 1], [], []>} : vector<8x72xbf16>, vector<72x128xbf16>, vector<8x128xf32> -> vector<8x128xf32>
    %c0_63 = arith.constant 0 : index
    %c0_64 = arith.constant 0 : index
    %209 = vector.load %arg6[%c0_63, %c0_64] : memref<8x1xf32, #tpu.memory_space<vmem>>, vector<8x1xf32>
    %210 = vector.broadcast %209 : vector<8x1xf32> to vector<8x128xf32>
    %211 = arith.addf %208, %210 : vector<8x128xf32>
    %212 = math.absf %211 : vector<8x128xf32>
    %cst_65 = arith.constant 0.000000e+00 : f32
    %213 = vector.broadcast %cst_65 : f32 to vector<8x128xf32>
    %214 = arith.subf %213, %212 : vector<8x128xf32>
    %215 = math.exp %214 : vector<8x128xf32>
    %216 = arith.mulf %215, %215 : vector<8x128xf32>
    %cst_66 = arith.constant 0.000000e+00 : f32
    %217 = vector.broadcast %cst_66 : f32 to vector<8x128xf32>
    %218 = arith.cmpf oge, %211, %217 : vector<8x128xf32>
    %cst_67 = arith.constant 2.000000e+00 : f32
    %219 = vector.broadcast %cst_67 : f32 to vector<8x128xf32>
    %220 = arith.mulf %219, %215 : vector<8x128xf32>
    %cst_68 = arith.constant 1.000000e+00 : f32
    %221 = vector.broadcast %cst_68 : f32 to vector<8x128xf32>
    %222 = arith.addf %221, %220 : vector<8x128xf32>
    %cst_69 = arith.constant 2.000000e+00 : f32
    %223 = vector.broadcast %cst_69 : f32 to vector<8x128xf32>
    %224 = arith.mulf %223, %215 : vector<8x128xf32>
    %225 = arith.addf %224, %216 : vector<8x128xf32>
    %226 = arith.select %218, %222, %225 : vector<8x128xi1>, vector<8x128xf32>
    %cst_70 = arith.constant 2.000000e+00 : f32
    %227 = vector.broadcast %cst_70 : f32 to vector<8x128xf32>
    %228 = arith.mulf %227, %215 : vector<8x128xf32>
    %cst_71 = arith.constant 1.000000e+00 : f32
    %229 = vector.broadcast %cst_71 : f32 to vector<8x128xf32>
    %230 = arith.addf %229, %228 : vector<8x128xf32>
    %cst_72 = arith.constant 2.000000e+00 : f32
    %231 = vector.broadcast %cst_72 : f32 to vector<8x128xf32>
    %232 = arith.mulf %231, %216 : vector<8x128xf32>
    %233 = arith.addf %230, %232 : vector<8x128xf32>
    %cst_73 = arith.constant 2.000000e+00 : f32
    %234 = vector.broadcast %cst_73 : f32 to vector<8x128xf32>
    %235 = arith.mulf %234, %215 : vector<8x128xf32>
    %cst_74 = arith.constant 2.000000e+00 : f32
    %236 = vector.broadcast %cst_74 : f32 to vector<8x128xf32>
    %237 = arith.addf %236, %235 : vector<8x128xf32>
    %238 = arith.addf %237, %216 : vector<8x128xf32>
    %239 = arith.select %218, %233, %238 : vector<8x128xi1>, vector<8x128xf32>
    %240 = arith.divf %226, %239 : vector<8x128xf32>
    %241 = arith.mulf %211, %240 : vector<8x128xf32>
    %c0_75 = arith.constant 0 : index
    %c0_76 = arith.constant 0 : index
    %242 = vector.load %arg9[%c0_75, %c0_76] : memref<8x16xbf16, #tpu.memory_space<vmem>>, vector<8x16xbf16>
    %cst_77 = arith.constant dense<0.000000e+00> : vector<8x128xf32>
    %243 = tpu.matmul %242, %0, %cst_77 {dimension_numbers = #tpu.dot_dimension_numbers<[1], [0], [0], [1], [0, 0, 1, 1], [], []>} : vector<8x16xbf16>, vector<16x128xbf16>, vector<8x128xf32> -> vector<8x128xf32>
    %c0_78 = arith.constant 0 : index
    %c0_79 = arith.constant 0 : index
    %244 = vector.load %arg10[%c0_78, %c0_79] : memref<8x1xf32, #tpu.memory_space<vmem>>, vector<8x1xf32>
    %245 = vector.broadcast %244 : vector<8x1xf32> to vector<8x128xf32>
    %246 = arith.addf %243, %245 : vector<8x128xf32>
    %c0_80 = arith.constant 0 : index
    %c0_81 = arith.constant 0 : index
    %247 = vector.load %arg11[%c0_80, %c0_81] : memref<8x16xbf16, #tpu.memory_space<vmem>>, vector<8x16xbf16>
    %c0_82 = arith.constant 0 : index
    %c0_83 = arith.constant 0 : index
    %248 = vector.load %arg7[%c0_82, %c0_83] : memref<16x128xbf16, #tpu.memory_space<vmem>>, vector<16x128xbf16>
    %cst_84 = arith.constant dense<0.000000e+00> : vector<8x128xf32>
    %249 = tpu.matmul %247, %248, %cst_84 {dimension_numbers = #tpu.dot_dimension_numbers<[1], [0], [0], [1], [0, 0, 1, 1], [], []>} : vector<8x16xbf16>, vector<16x128xbf16>, vector<8x128xf32> -> vector<8x128xf32>
    %250 = arith.addf %246, %249 : vector<8x128xf32>
    %251 = arith.addf %241, %250 : vector<8x128xf32>
    %252 = arith.truncf %251 : vector<8x128xf32> to vector<8x128xbf16>
    %c0_85 = arith.constant 0 : index
    %c0_86 = arith.constant 0 : index
    %253 = vector.load %arg12[%c0_85, %c0_86] : memref<8x128xbf16, #tpu.memory_space<vmem>>, vector<8x128xbf16>
    tpu.vector_store %arg12[%c0_85, %c0_86], %252 {strides = array<i32>} : memref<8x128xbf16, #tpu.memory_space<vmem>>, vector<8x128xbf16>,
    return
  }
  func.func @transform_0(%arg0: i32) -> (i32, i32) {
    %c0_i32 = arith.constant 0 : i32
    %c0_i32_0 = arith.constant 0 : i32
    return %c0_i32, %arg0 : i32, i32
  }
  func.func @transform_1(%arg0: i32) -> (i32, i32) {
    %c0_i32 = arith.constant 0 : i32
    %c0_i32_0 = arith.constant 0 : i32
    %c0_i32_1 = arith.constant 0 : i32
    return %c0_i32, %c0_i32_0 : i32, i32
  }
  func.func @transform_2(%arg0: i32) -> (i32, i32) {
    %c0_i32 = arith.constant 0 : i32
    %c0_i32_0 = arith.constant 0 : i32
    %c0_i32_1 = arith.constant 0 : i32
    return %c0_i32, %c0_i32_0 : i32, i32
  }
  func.func @transform_3(%arg0: i32) -> (i32, i32) {
    %c0_i32 = arith.constant 0 : i32
    %c0_i32_0 = arith.constant 0 : i32
    %c0_i32_1 = arith.constant 0 : i32
    return %c0_i32, %c0_i32_0 : i32, i32
  }
  func.func @transform_4(%arg0: i32) -> (i32, i32) {
    %c0_i32 = arith.constant 0 : i32
    %c0_i32_0 = arith.constant 0 : i32
    %c0_i32_1 = arith.constant 0 : i32
    return %c0_i32, %c0_i32_0 : i32, i32
  }
  func.func @transform_5(%arg0: i32) -> (i32, i32) {
    %c0_i32 = arith.constant 0 : i32
    %c0_i32_0 = arith.constant 0 : i32
    %c0_i32_1 = arith.constant 0 : i32
    return %c0_i32, %c0_i32_0 : i32, i32
  }
  func.func @transform_6(%arg0: i32) -> (i32, i32) {
    %c0_i32 = arith.constant 0 : i32
    %c0_i32_0 = arith.constant 0 : i32
    return %c0_i32, %arg0 : i32, i32
  }
  func.func @transform_7(%arg0: i32) -> (i32, i32) {
    %c0_i32 = arith.constant 0 : i32
    %c0_i32_0 = arith.constant 0 : i32
    %c0_i32_1 = arith.constant 0 : i32
    return %c0_i32, %c0_i32_0 : i32, i32
  }
  func.func @transform_8(%arg0: i32) -> (i32, i32) {
    %c0_i32 = arith.constant 0 : i32
    %c0_i32_0 = arith.constant 0 : i32
    %c0_i32_1 = arith.constant 0 : i32
    return %c0_i32, %c0_i32_0 : i32, i32
  }
  func.func @transform_9(%arg0: i32) -> (i32, i32) {
    %c0_i32 = arith.constant 0 : i32
    %c0_i32_0 = arith.constant 0 : i32
    %c0_i32_1 = arith.constant 0 : i32
    return %c0_i32, %c0_i32_0 : i32, i32
  }
  func.func @transform_10(%arg0: i32) -> (i32, i32) {
    %c0_i32 = arith.constant 0 : i32
    %c0_i32_0 = arith.constant 0 : i32
    %c0_i32_1 = arith.constant 0 : i32
    return %c0_i32, %c0_i32_0 : i32, i32
  }
  func.func @transform_11(%arg0: i32) -> (i32, i32) {
    %c0_i32 = arith.constant 0 : i32
    %c0_i32_0 = arith.constant 0 : i32
    return %c0_i32, %arg0 : i32, i32
  }
}

module attributes {stable_mosaic.version = 11 : i64} {
  func.func @_resblock_kernel(%arg0: i32, %arg1: memref<8x128xbf16, #tpu.memory_space<vmem>>, %arg2: memref<16x2xf32, #tpu.memory_space<vmem>>, %arg3: memref<16x72xbf16, #tpu.memory_space<vmem>>, %arg4: memref<16x1xf32, #tpu.memory_space<vmem>>, %arg5: memref<16x144xbf16, #tpu.memory_space<vmem>>, %arg6: memref<16x1xf32, #tpu.memory_space<vmem>>, %arg7: memref<16x8xbf16, #tpu.memory_space<vmem>>, %arg8: memref<16x1xf32, #tpu.memory_space<vmem>>, %arg9: memref<16x128xbf16, #tpu.memory_space<vmem>>) attributes {dimension_semantics = [#tpu.dimension_semantics<parallel>], iteration_bounds = array<i64: 1>, scalar_prefetch = 0 : i64, scratch_operands = 0 : i64, tpu.core_type = #tpu.core_type<tc>, window_params = [{transform_indices = @transform_0, window_bounds = array<i64: 8, 128>}, {pipeline_mode = #tpu.pipeline_mode<synchronous>, transform_indices = @transform_1, window_bounds = array<i64: 16, 2>}, {pipeline_mode = #tpu.pipeline_mode<synchronous>, transform_indices = @transform_2, window_bounds = array<i64: 16, 72>}, {pipeline_mode = #tpu.pipeline_mode<synchronous>, transform_indices = @transform_3, window_bounds = array<i64: 16, 1>}, {pipeline_mode = #tpu.pipeline_mode<synchronous>, transform_indices = @transform_4, window_bounds = array<i64: 16, 144>}, {pipeline_mode = #tpu.pipeline_mode<synchronous>, transform_indices = @transform_5, window_bounds = array<i64: 16, 1>}, {pipeline_mode = #tpu.pipeline_mode<synchronous>, transform_indices = @transform_6, window_bounds = array<i64: 16, 8>}, {pipeline_mode = #tpu.pipeline_mode<synchronous>, transform_indices = @transform_7, window_bounds = array<i64: 16, 1>}, {transform_indices = @transform_8, window_bounds = array<i64: 16, 128>}]} {
    %c0 = arith.constant 0 : index
    %c0_0 = arith.constant 0 : index
    %0 = vector.load %arg1[%c0, %c0_0] : memref<8x128xbf16, #tpu.memory_space<vmem>>, vector<8x128xbf16>
    %c0_1 = arith.constant 0 : index
    %c0_2 = arith.constant 0 : index
    %1 = vector.load %arg3[%c0_1, %c0_2] : memref<16x72xbf16, #tpu.memory_space<vmem>>, vector<16x72xbf16>
    %2 = arith.extf %0 : vector<8x128xbf16> to vector<8x128xf32>
    %3 = tpu.iota {dimensions = array<i32: 1>} : vector<1x128xi32>
    %c63_i32 = arith.constant 63 : i32
    %4 = vector.broadcast %c63_i32 : i32 to vector<1x128xi32>
    %5 = arith.andi %3, %4 : vector<1x128xi32>
    %c7_i32 = arith.constant 7 : i32
    %6 = vector.broadcast %c7_i32 : i32 to vector<1x128xi32>
    %7 = arith.andi %3, %6 : vector<1x128xi32>
    %c8_i32 = arith.constant 8 : i32
    %8 = vector.broadcast %c8_i32 : i32 to vector<1x128xi32>
    %9 = arith.cmpi slt, %5, %8 : vector<1x128xi32>
    %c56_i32 = arith.constant 56 : i32
    %10 = vector.broadcast %c56_i32 : i32 to vector<1x128xi32>
    %11 = arith.cmpi sge, %5, %10 : vector<1x128xi32>
    %c0_i32 = arith.constant 0 : i32
    %12 = vector.broadcast %c0_i32 : i32 to vector<1x128xi32>
    %13 = arith.cmpi eq, %7, %12 : vector<1x128xi32>
    %c7_i32_3 = arith.constant 7 : i32
    %14 = vector.broadcast %c7_i32_3 : i32 to vector<1x128xi32>
    %15 = arith.cmpi eq, %7, %14 : vector<1x128xi32>
    %c8_i32_4 = arith.constant 8 : i32
    %16 = tpu.dynamic_rotate %2 by %c8_i32_4 dim 1 : vector<8x128xf32>, i32 -> vector<8x128xf32>
    %c120_i32 = arith.constant 120 : i32
    %17 = tpu.dynamic_rotate %2 by %c120_i32 dim 1 : vector<8x128xf32>, i32 -> vector<8x128xf32>
    %18 = vector.shape_cast %9 : vector<1x128xi1> to vector<1x128xi1>
    %19 = vector.broadcast %18 : vector<1x128xi1> to vector<8x128xi1>
    %20 = arith.select %19, %17, %16 : vector<8x128xi1>, vector<8x128xf32>
    %21 = vector.shape_cast %11 : vector<1x128xi1> to vector<1x128xi1>
    %22 = vector.broadcast %21 : vector<1x128xi1> to vector<8x128xi1>
    %23 = arith.select %22, %16, %17 : vector<8x128xi1>, vector<8x128xf32>
    %c1_i32 = arith.constant 1 : i32
    %24 = tpu.dynamic_rotate %20 by %c1_i32 dim 1 : vector<8x128xf32>, i32 -> vector<8x128xf32>
    %c127_i32 = arith.constant 127 : i32
    %25 = tpu.dynamic_rotate %20 by %c127_i32 dim 1 : vector<8x128xf32>, i32 -> vector<8x128xf32>
    %26 = vector.shape_cast %13 : vector<1x128xi1> to vector<1x128xi1>
    %27 = vector.broadcast %26 : vector<1x128xi1> to vector<8x128xi1>
    %28 = arith.select %27, %25, %24 : vector<8x128xi1>, vector<8x128xf32>
    %29 = vector.shape_cast %15 : vector<1x128xi1> to vector<1x128xi1>
    %30 = vector.broadcast %29 : vector<1x128xi1> to vector<8x128xi1>
    %31 = arith.select %30, %24, %25 : vector<8x128xi1>, vector<8x128xf32>
    %c1_i32_5 = arith.constant 1 : i32
    %32 = tpu.dynamic_rotate %2 by %c1_i32_5 dim 1 : vector<8x128xf32>, i32 -> vector<8x128xf32>
    %c127_i32_6 = arith.constant 127 : i32
    %33 = tpu.dynamic_rotate %2 by %c127_i32_6 dim 1 : vector<8x128xf32>, i32 -> vector<8x128xf32>
    %34 = vector.shape_cast %13 : vector<1x128xi1> to vector<1x128xi1>
    %35 = vector.broadcast %34 : vector<1x128xi1> to vector<8x128xi1>
    %36 = arith.select %35, %33, %32 : vector<8x128xi1>, vector<8x128xf32>
    %37 = vector.shape_cast %15 : vector<1x128xi1> to vector<1x128xi1>
    %38 = vector.broadcast %37 : vector<1x128xi1> to vector<8x128xi1>
    %39 = arith.select %38, %32, %33 : vector<8x128xi1>, vector<8x128xf32>
    %c1_i32_7 = arith.constant 1 : i32
    %40 = tpu.dynamic_rotate %23 by %c1_i32_7 dim 1 : vector<8x128xf32>, i32 -> vector<8x128xf32>
    %c127_i32_8 = arith.constant 127 : i32
    %41 = tpu.dynamic_rotate %23 by %c127_i32_8 dim 1 : vector<8x128xf32>, i32 -> vector<8x128xf32>
    %42 = vector.shape_cast %13 : vector<1x128xi1> to vector<1x128xi1>
    %43 = vector.broadcast %42 : vector<1x128xi1> to vector<8x128xi1>
    %44 = arith.select %43, %41, %40 : vector<8x128xi1>, vector<8x128xf32>
    %45 = vector.shape_cast %15 : vector<1x128xi1> to vector<1x128xi1>
    %46 = vector.broadcast %45 : vector<1x128xi1> to vector<8x128xi1>
    %47 = arith.select %46, %40, %41 : vector<8x128xi1>, vector<8x128xf32>
    %48 = tpu.concatenate %28, %20, %31, %36, %2, %39, %44, %23, %47 in 0 : vector<8x128xf32>, vector<8x128xf32>, vector<8x128xf32>, vector<8x128xf32>, vector<8x128xf32>, vector<8x128xf32>, vector<8x128xf32>, vector<8x128xf32>, vector<8x128xf32> -> vector<72x128xf32>
    %49 = arith.truncf %48 : vector<72x128xf32> to vector<72x128xbf16>
    %cst = arith.constant dense<0.000000e+00> : vector<16x128xf32>
    %50 = tpu.matmul %1, %49, %cst {dimension_numbers = #tpu.dot_dimension_numbers<[1], [0], [0], [1], [0, 0, 1, 1], [], []>} : vector<16x72xbf16>, vector<72x128xbf16>, vector<16x128xf32> -> vector<16x128xf32>
    %c0_9 = arith.constant 0 : index
    %c0_10 = arith.constant 0 : index
    %51 = vector.load %arg4[%c0_9, %c0_10] : memref<16x1xf32, #tpu.memory_space<vmem>>, vector<16x1xf32>
    %52 = vector.broadcast %51 : vector<16x1xf32> to vector<16x128xf32>
    %53 = arith.addf %50, %52 : vector<16x128xf32>
    %54 = math.absf %53 : vector<16x128xf32>
    %cst_11 = arith.constant 0.000000e+00 : f32
    %55 = vector.broadcast %cst_11 : f32 to vector<16x128xf32>
    %56 = arith.subf %55, %54 : vector<16x128xf32>
    %57 = math.exp %56 : vector<16x128xf32>
    %58 = arith.mulf %57, %57 : vector<16x128xf32>
    %cst_12 = arith.constant 0.000000e+00 : f32
    %59 = vector.broadcast %cst_12 : f32 to vector<16x128xf32>
    %60 = arith.cmpf oge, %53, %59 : vector<16x128xf32>
    %cst_13 = arith.constant 2.000000e+00 : f32
    %61 = vector.broadcast %cst_13 : f32 to vector<16x128xf32>
    %62 = arith.mulf %61, %57 : vector<16x128xf32>
    %cst_14 = arith.constant 1.000000e+00 : f32
    %63 = vector.broadcast %cst_14 : f32 to vector<16x128xf32>
    %64 = arith.addf %63, %62 : vector<16x128xf32>
    %cst_15 = arith.constant 2.000000e+00 : f32
    %65 = vector.broadcast %cst_15 : f32 to vector<16x128xf32>
    %66 = arith.mulf %65, %57 : vector<16x128xf32>
    %67 = arith.addf %66, %58 : vector<16x128xf32>
    %68 = arith.select %60, %64, %67 : vector<16x128xi1>, vector<16x128xf32>
    %cst_16 = arith.constant 2.000000e+00 : f32
    %69 = vector.broadcast %cst_16 : f32 to vector<16x128xf32>
    %70 = arith.mulf %69, %57 : vector<16x128xf32>
    %cst_17 = arith.constant 1.000000e+00 : f32
    %71 = vector.broadcast %cst_17 : f32 to vector<16x128xf32>
    %72 = arith.addf %71, %70 : vector<16x128xf32>
    %cst_18 = arith.constant 2.000000e+00 : f32
    %73 = vector.broadcast %cst_18 : f32 to vector<16x128xf32>
    %74 = arith.mulf %73, %58 : vector<16x128xf32>
    %75 = arith.addf %72, %74 : vector<16x128xf32>
    %cst_19 = arith.constant 2.000000e+00 : f32
    %76 = vector.broadcast %cst_19 : f32 to vector<16x128xf32>
    %77 = arith.mulf %76, %57 : vector<16x128xf32>
    %cst_20 = arith.constant 2.000000e+00 : f32
    %78 = vector.broadcast %cst_20 : f32 to vector<16x128xf32>
    %79 = arith.addf %78, %77 : vector<16x128xf32>
    %80 = arith.addf %79, %58 : vector<16x128xf32>
    %81 = arith.select %60, %75, %80 : vector<16x128xi1>, vector<16x128xf32>
    %82 = arith.divf %68, %81 : vector<16x128xf32>
    %83 = arith.mulf %53, %82 : vector<16x128xf32>
    %84 = tpu.iota {dimensions = array<i32: 1>} : vector<1x128xi32>
    %c2_i32 = arith.constant 2 : i32
    %85 = arith.muli %arg0, %c2_i32 : i32
    %c6_i32 = arith.constant 6 : i32
    %86 = vector.broadcast %c6_i32 : i32 to vector<1x128xi32>
    %87 = arith.shrsi %84, %86 : vector<1x128xi32>
    %88 = vector.broadcast %85 : i32 to vector<1x128xi32>
    %89 = arith.addi %88, %87 : vector<1x128xi32>
    %cst_21 = arith.constant 0.000000e+00 : f32
    %90 = vector.broadcast %cst_21 : f32 to vector<16x128xf32>
    %c0_i32_22 = arith.constant 0 : i32
    %91 = vector.broadcast %c0_i32_22 : i32 to vector<1x128xi32>
    %92 = arith.cmpi eq, %89, %91 : vector<1x128xi32>
    %c0_23 = arith.constant 0 : index
    %c0_24 = arith.constant 0 : index
    %93 = vector.load %arg2[%c0_23, %c0_24] : memref<16x2xf32, #tpu.memory_space<vmem>>, vector<16x1xf32>
    %94 = vector.shape_cast %92 : vector<1x128xi1> to vector<1x128xi1>
    %95 = vector.broadcast %94 : vector<1x128xi1> to vector<16x128xi1>
    %96 = vector.shape_cast %93 : vector<16x1xf32> to vector<16x1xf32>
    %97 = vector.broadcast %96 : vector<16x1xf32> to vector<16x128xf32>
    %98 = arith.select %95, %97, %90 : vector<16x128xi1>, vector<16x128xf32>
    %c1_i32_25 = arith.constant 1 : i32
    %99 = vector.broadcast %c1_i32_25 : i32 to vector<1x128xi32>
    %100 = arith.cmpi eq, %89, %99 : vector<1x128xi32>
    %c0_26 = arith.constant 0 : index
    %c1 = arith.constant 1 : index
    %101 = vector.load %arg2[%c0_26, %c1] : memref<16x2xf32, #tpu.memory_space<vmem>>, vector<16x1xf32>
    %102 = vector.shape_cast %100 : vector<1x128xi1> to vector<1x128xi1>
    %103 = vector.broadcast %102 : vector<1x128xi1> to vector<16x128xi1>
    %104 = vector.shape_cast %101 : vector<16x1xf32> to vector<16x1xf32>
    %105 = vector.broadcast %104 : vector<16x1xf32> to vector<16x128xf32>
    %106 = arith.select %103, %105, %98 : vector<16x128xi1>, vector<16x128xf32>
    %107 = arith.addf %83, %106 : vector<16x128xf32>
    %c0_27 = arith.constant 0 : index
    %c0_28 = arith.constant 0 : index
    %108 = vector.load %arg5[%c0_27, %c0_28] : memref<16x144xbf16, #tpu.memory_space<vmem>>, vector<16x144xbf16>
    %109 = tpu.iota {dimensions = array<i32: 1>} : vector<1x128xi32>
    %c63_i32_29 = arith.constant 63 : i32
    %110 = vector.broadcast %c63_i32_29 : i32 to vector<1x128xi32>
    %111 = arith.andi %109, %110 : vector<1x128xi32>
    %c7_i32_30 = arith.constant 7 : i32
    %112 = vector.broadcast %c7_i32_30 : i32 to vector<1x128xi32>
    %113 = arith.andi %109, %112 : vector<1x128xi32>
    %c8_i32_31 = arith.constant 8 : i32
    %114 = vector.broadcast %c8_i32_31 : i32 to vector<1x128xi32>
    %115 = arith.cmpi slt, %111, %114 : vector<1x128xi32>
    %c56_i32_32 = arith.constant 56 : i32
    %116 = vector.broadcast %c56_i32_32 : i32 to vector<1x128xi32>
    %117 = arith.cmpi sge, %111, %116 : vector<1x128xi32>
    %c0_i32_33 = arith.constant 0 : i32
    %118 = vector.broadcast %c0_i32_33 : i32 to vector<1x128xi32>
    %119 = arith.cmpi eq, %113, %118 : vector<1x128xi32>
    %c7_i32_34 = arith.constant 7 : i32
    %120 = vector.broadcast %c7_i32_34 : i32 to vector<1x128xi32>
    %121 = arith.cmpi eq, %113, %120 : vector<1x128xi32>
    %c8_i32_35 = arith.constant 8 : i32
    %122 = tpu.dynamic_rotate %107 by %c8_i32_35 dim 1 : vector<16x128xf32>, i32 -> vector<16x128xf32>
    %c120_i32_36 = arith.constant 120 : i32
    %123 = tpu.dynamic_rotate %107 by %c120_i32_36 dim 1 : vector<16x128xf32>, i32 -> vector<16x128xf32>
    %124 = vector.shape_cast %115 : vector<1x128xi1> to vector<1x128xi1>
    %125 = vector.broadcast %124 : vector<1x128xi1> to vector<16x128xi1>
    %126 = arith.select %125, %123, %122 : vector<16x128xi1>, vector<16x128xf32>
    %127 = vector.shape_cast %117 : vector<1x128xi1> to vector<1x128xi1>
    %128 = vector.broadcast %127 : vector<1x128xi1> to vector<16x128xi1>
    %129 = arith.select %128, %122, %123 : vector<16x128xi1>, vector<16x128xf32>
    %c1_i32_37 = arith.constant 1 : i32
    %130 = tpu.dynamic_rotate %126 by %c1_i32_37 dim 1 : vector<16x128xf32>, i32 -> vector<16x128xf32>
    %c127_i32_38 = arith.constant 127 : i32
    %131 = tpu.dynamic_rotate %126 by %c127_i32_38 dim 1 : vector<16x128xf32>, i32 -> vector<16x128xf32>
    %132 = vector.shape_cast %119 : vector<1x128xi1> to vector<1x128xi1>
    %133 = vector.broadcast %132 : vector<1x128xi1> to vector<16x128xi1>
    %134 = arith.select %133, %131, %130 : vector<16x128xi1>, vector<16x128xf32>
    %135 = vector.shape_cast %121 : vector<1x128xi1> to vector<1x128xi1>
    %136 = vector.broadcast %135 : vector<1x128xi1> to vector<16x128xi1>
    %137 = arith.select %136, %130, %131 : vector<16x128xi1>, vector<16x128xf32>
    %c1_i32_39 = arith.constant 1 : i32
    %138 = tpu.dynamic_rotate %107 by %c1_i32_39 dim 1 : vector<16x128xf32>, i32 -> vector<16x128xf32>
    %c127_i32_40 = arith.constant 127 : i32
    %139 = tpu.dynamic_rotate %107 by %c127_i32_40 dim 1 : vector<16x128xf32>, i32 -> vector<16x128xf32>
    %140 = vector.shape_cast %119 : vector<1x128xi1> to vector<1x128xi1>
    %141 = vector.broadcast %140 : vector<1x128xi1> to vector<16x128xi1>
    %142 = arith.select %141, %139, %138 : vector<16x128xi1>, vector<16x128xf32>
    %143 = vector.shape_cast %121 : vector<1x128xi1> to vector<1x128xi1>
    %144 = vector.broadcast %143 : vector<1x128xi1> to vector<16x128xi1>
    %145 = arith.select %144, %138, %139 : vector<16x128xi1>, vector<16x128xf32>
    %c1_i32_41 = arith.constant 1 : i32
    %146 = tpu.dynamic_rotate %129 by %c1_i32_41 dim 1 : vector<16x128xf32>, i32 -> vector<16x128xf32>
    %c127_i32_42 = arith.constant 127 : i32
    %147 = tpu.dynamic_rotate %129 by %c127_i32_42 dim 1 : vector<16x128xf32>, i32 -> vector<16x128xf32>
    %148 = vector.shape_cast %119 : vector<1x128xi1> to vector<1x128xi1>
    %149 = vector.broadcast %148 : vector<1x128xi1> to vector<16x128xi1>
    %150 = arith.select %149, %147, %146 : vector<16x128xi1>, vector<16x128xf32>
    %151 = vector.shape_cast %121 : vector<1x128xi1> to vector<1x128xi1>
    %152 = vector.broadcast %151 : vector<1x128xi1> to vector<16x128xi1>
    %153 = arith.select %152, %146, %147 : vector<16x128xi1>, vector<16x128xf32>
    %154 = tpu.concatenate %134, %126, %137, %142, %107, %145, %150, %129, %153 in 0 : vector<16x128xf32>, vector<16x128xf32>, vector<16x128xf32>, vector<16x128xf32>, vector<16x128xf32>, vector<16x128xf32>, vector<16x128xf32>, vector<16x128xf32>, vector<16x128xf32> -> vector<144x128xf32>
    %155 = arith.truncf %154 : vector<144x128xf32> to vector<144x128xbf16>
    %cst_43 = arith.constant dense<0.000000e+00> : vector<16x128xf32>
    %156 = tpu.matmul %108, %155, %cst_43 {dimension_numbers = #tpu.dot_dimension_numbers<[1], [0], [0], [1], [0, 0, 1, 1], [], []>} : vector<16x144xbf16>, vector<144x128xbf16>, vector<16x128xf32> -> vector<16x128xf32>
    %c0_44 = arith.constant 0 : index
    %c0_45 = arith.constant 0 : index
    %157 = vector.load %arg6[%c0_44, %c0_45] : memref<16x1xf32, #tpu.memory_space<vmem>>, vector<16x1xf32>
    %158 = vector.broadcast %157 : vector<16x1xf32> to vector<16x128xf32>
    %159 = arith.addf %156, %158 : vector<16x128xf32>
    %160 = math.absf %159 : vector<16x128xf32>
    %cst_46 = arith.constant 0.000000e+00 : f32
    %161 = vector.broadcast %cst_46 : f32 to vector<16x128xf32>
    %162 = arith.subf %161, %160 : vector<16x128xf32>
    %163 = math.exp %162 : vector<16x128xf32>
    %164 = arith.mulf %163, %163 : vector<16x128xf32>
    %cst_47 = arith.constant 0.000000e+00 : f32
    %165 = vector.broadcast %cst_47 : f32 to vector<16x128xf32>
    %166 = arith.cmpf oge, %159, %165 : vector<16x128xf32>
    %cst_48 = arith.constant 2.000000e+00 : f32
    %167 = vector.broadcast %cst_48 : f32 to vector<16x128xf32>
    %168 = arith.mulf %167, %163 : vector<16x128xf32>
    %cst_49 = arith.constant 1.000000e+00 : f32
    %169 = vector.broadcast %cst_49 : f32 to vector<16x128xf32>
    %170 = arith.addf %169, %168 : vector<16x128xf32>
    %cst_50 = arith.constant 2.000000e+00 : f32
    %171 = vector.broadcast %cst_50 : f32 to vector<16x128xf32>
    %172 = arith.mulf %171, %163 : vector<16x128xf32>
    %173 = arith.addf %172, %164 : vector<16x128xf32>
    %174 = arith.select %166, %170, %173 : vector<16x128xi1>, vector<16x128xf32>
    %cst_51 = arith.constant 2.000000e+00 : f32
    %175 = vector.broadcast %cst_51 : f32 to vector<16x128xf32>
    %176 = arith.mulf %175, %163 : vector<16x128xf32>
    %cst_52 = arith.constant 1.000000e+00 : f32
    %177 = vector.broadcast %cst_52 : f32 to vector<16x128xf32>
    %178 = arith.addf %177, %176 : vector<16x128xf32>
    %cst_53 = arith.constant 2.000000e+00 : f32
    %179 = vector.broadcast %cst_53 : f32 to vector<16x128xf32>
    %180 = arith.mulf %179, %164 : vector<16x128xf32>
    %181 = arith.addf %178, %180 : vector<16x128xf32>
    %cst_54 = arith.constant 2.000000e+00 : f32
    %182 = vector.broadcast %cst_54 : f32 to vector<16x128xf32>
    %183 = arith.mulf %182, %163 : vector<16x128xf32>
    %cst_55 = arith.constant 2.000000e+00 : f32
    %184 = vector.broadcast %cst_55 : f32 to vector<16x128xf32>
    %185 = arith.addf %184, %183 : vector<16x128xf32>
    %186 = arith.addf %185, %164 : vector<16x128xf32>
    %187 = arith.select %166, %181, %186 : vector<16x128xi1>, vector<16x128xf32>
    %188 = arith.divf %174, %187 : vector<16x128xf32>
    %189 = arith.mulf %159, %188 : vector<16x128xf32>
    %c0_56 = arith.constant 0 : index
    %c0_57 = arith.constant 0 : index
    %190 = vector.load %arg7[%c0_56, %c0_57] : memref<16x8xbf16, #tpu.memory_space<vmem>>, vector<16x8xbf16>
    %cst_58 = arith.constant dense<0.000000e+00> : vector<16x128xf32>
    %191 = tpu.matmul %190, %0, %cst_58 {dimension_numbers = #tpu.dot_dimension_numbers<[1], [0], [0], [1], [0, 0, 1, 1], [], []>} : vector<16x8xbf16>, vector<8x128xbf16>, vector<16x128xf32> -> vector<16x128xf32>
    %c0_59 = arith.constant 0 : index
    %c0_60 = arith.constant 0 : index
    %192 = vector.load %arg8[%c0_59, %c0_60] : memref<16x1xf32, #tpu.memory_space<vmem>>, vector<16x1xf32>
    %193 = vector.broadcast %192 : vector<16x1xf32> to vector<16x128xf32>
    %194 = arith.addf %191, %193 : vector<16x128xf32>
    %195 = arith.addf %189, %194 : vector<16x128xf32>
    %196 = arith.truncf %195 : vector<16x128xf32> to vector<16x128xbf16>
    %c0_61 = arith.constant 0 : index
    %c0_62 = arith.constant 0 : index
    %197 = vector.load %arg9[%c0_61, %c0_62] : memref<16x128xbf16, #tpu.memory_space<vmem>>, vector<16x128xbf16>
    tpu.vector_store %arg9[%c0_61, %c0_62], %196 {strides = array<i32>} : memref<16x128xbf16, #tpu.memory_space<vmem>>, vector<16x128xbf16>,
    return
  }
  func.func @transform_0(%arg0: i32) -> (i32, i32) {
    %c0_i32 = arith.constant 0 : i32
    %c0_i32_0 = arith.constant 0 : i32
    return %c0_i32, %arg0 : i32, i32
  }
  func.func @transform_1(%arg0: i32) -> (i32, i32) {
    %c0_i32 = arith.constant 0 : i32
    %c0_i32_0 = arith.constant 0 : i32
    %c0_i32_1 = arith.constant 0 : i32
    return %c0_i32, %c0_i32_0 : i32, i32
  }
  func.func @transform_2(%arg0: i32) -> (i32, i32) {
    %c0_i32 = arith.constant 0 : i32
    %c0_i32_0 = arith.constant 0 : i32
    %c0_i32_1 = arith.constant 0 : i32
    return %c0_i32, %c0_i32_0 : i32, i32
  }
  func.func @transform_3(%arg0: i32) -> (i32, i32) {
    %c0_i32 = arith.constant 0 : i32
    %c0_i32_0 = arith.constant 0 : i32
    %c0_i32_1 = arith.constant 0 : i32
    return %c0_i32, %c0_i32_0 : i32, i32
  }
  func.func @transform_4(%arg0: i32) -> (i32, i32) {
    %c0_i32 = arith.constant 0 : i32
    %c0_i32_0 = arith.constant 0 : i32
    %c0_i32_1 = arith.constant 0 : i32
    return %c0_i32, %c0_i32_0 : i32, i32
  }
  func.func @transform_5(%arg0: i32) -> (i32, i32) {
    %c0_i32 = arith.constant 0 : i32
    %c0_i32_0 = arith.constant 0 : i32
    %c0_i32_1 = arith.constant 0 : i32
    return %c0_i32, %c0_i32_0 : i32, i32
  }
  func.func @transform_6(%arg0: i32) -> (i32, i32) {
    %c0_i32 = arith.constant 0 : i32
    %c0_i32_0 = arith.constant 0 : i32
    %c0_i32_1 = arith.constant 0 : i32
    return %c0_i32, %c0_i32_0 : i32, i32
  }
  func.func @transform_7(%arg0: i32) -> (i32, i32) {
    %c0_i32 = arith.constant 0 : i32
    %c0_i32_0 = arith.constant 0 : i32
    %c0_i32_1 = arith.constant 0 : i32
    return %c0_i32, %c0_i32_0 : i32, i32
  }
  func.func @transform_8(%arg0: i32) -> (i32, i32) {
    %c0_i32 = arith.constant 0 : i32
    %c0_i32_0 = arith.constant 0 : i32
    return %c0_i32, %arg0 : i32, i32
  }
}

module attributes {stable_mosaic.version = 11 : i64} {
  func.func @_resblock_kernel(%arg0: i32, %arg1: memref<8x128xbf16, #tpu.memory_space<vmem>>, %arg2: memref<8x2xf32, #tpu.memory_space<vmem>>, %arg3: memref<8x72xbf16, #tpu.memory_space<vmem>>, %arg4: memref<8x1xf32, #tpu.memory_space<vmem>>, %arg5: memref<8x72xbf16, #tpu.memory_space<vmem>>, %arg6: memref<8x1xf32, #tpu.memory_space<vmem>>, %arg7: memref<8x128xbf16, #tpu.memory_space<vmem>>) attributes {dimension_semantics = [#tpu.dimension_semantics<parallel>], iteration_bounds = array<i64: 1>, scalar_prefetch = 0 : i64, scratch_operands = 0 : i64, tpu.core_type = #tpu.core_type<tc>, window_params = [{transform_indices = @transform_0, window_bounds = array<i64: 8, 128>}, {pipeline_mode = #tpu.pipeline_mode<synchronous>, transform_indices = @transform_1, window_bounds = array<i64: 8, 2>}, {pipeline_mode = #tpu.pipeline_mode<synchronous>, transform_indices = @transform_2, window_bounds = array<i64: 8, 72>}, {pipeline_mode = #tpu.pipeline_mode<synchronous>, transform_indices = @transform_3, window_bounds = array<i64: 8, 1>}, {pipeline_mode = #tpu.pipeline_mode<synchronous>, transform_indices = @transform_4, window_bounds = array<i64: 8, 72>}, {pipeline_mode = #tpu.pipeline_mode<synchronous>, transform_indices = @transform_5, window_bounds = array<i64: 8, 1>}, {transform_indices = @transform_6, window_bounds = array<i64: 8, 128>}]} {
    %c0 = arith.constant 0 : index
    %c0_0 = arith.constant 0 : index
    %0 = vector.load %arg1[%c0, %c0_0] : memref<8x128xbf16, #tpu.memory_space<vmem>>, vector<8x128xbf16>
    %c0_1 = arith.constant 0 : index
    %c0_2 = arith.constant 0 : index
    %1 = vector.load %arg3[%c0_1, %c0_2] : memref<8x72xbf16, #tpu.memory_space<vmem>>, vector<8x72xbf16>
    %2 = arith.extf %0 : vector<8x128xbf16> to vector<8x128xf32>
    %3 = tpu.iota {dimensions = array<i32: 1>} : vector<1x128xi32>
    %c63_i32 = arith.constant 63 : i32
    %4 = vector.broadcast %c63_i32 : i32 to vector<1x128xi32>
    %5 = arith.andi %3, %4 : vector<1x128xi32>
    %c7_i32 = arith.constant 7 : i32
    %6 = vector.broadcast %c7_i32 : i32 to vector<1x128xi32>
    %7 = arith.andi %3, %6 : vector<1x128xi32>
    %c8_i32 = arith.constant 8 : i32
    %8 = vector.broadcast %c8_i32 : i32 to vector<1x128xi32>
    %9 = arith.cmpi slt, %5, %8 : vector<1x128xi32>
    %c56_i32 = arith.constant 56 : i32
    %10 = vector.broadcast %c56_i32 : i32 to vector<1x128xi32>
    %11 = arith.cmpi sge, %5, %10 : vector<1x128xi32>
    %c0_i32 = arith.constant 0 : i32
    %12 = vector.broadcast %c0_i32 : i32 to vector<1x128xi32>
    %13 = arith.cmpi eq, %7, %12 : vector<1x128xi32>
    %c7_i32_3 = arith.constant 7 : i32
    %14 = vector.broadcast %c7_i32_3 : i32 to vector<1x128xi32>
    %15 = arith.cmpi eq, %7, %14 : vector<1x128xi32>
    %c8_i32_4 = arith.constant 8 : i32
    %16 = tpu.dynamic_rotate %2 by %c8_i32_4 dim 1 : vector<8x128xf32>, i32 -> vector<8x128xf32>
    %c120_i32 = arith.constant 120 : i32
    %17 = tpu.dynamic_rotate %2 by %c120_i32 dim 1 : vector<8x128xf32>, i32 -> vector<8x128xf32>
    %18 = vector.shape_cast %9 : vector<1x128xi1> to vector<1x128xi1>
    %19 = vector.broadcast %18 : vector<1x128xi1> to vector<8x128xi1>
    %20 = arith.select %19, %17, %16 : vector<8x128xi1>, vector<8x128xf32>
    %21 = vector.shape_cast %11 : vector<1x128xi1> to vector<1x128xi1>
    %22 = vector.broadcast %21 : vector<1x128xi1> to vector<8x128xi1>
    %23 = arith.select %22, %16, %17 : vector<8x128xi1>, vector<8x128xf32>
    %c1_i32 = arith.constant 1 : i32
    %24 = tpu.dynamic_rotate %20 by %c1_i32 dim 1 : vector<8x128xf32>, i32 -> vector<8x128xf32>
    %c127_i32 = arith.constant 127 : i32
    %25 = tpu.dynamic_rotate %20 by %c127_i32 dim 1 : vector<8x128xf32>, i32 -> vector<8x128xf32>
    %26 = vector.shape_cast %13 : vector<1x128xi1> to vector<1x128xi1>
    %27 = vector.broadcast %26 : vector<1x128xi1> to vector<8x128xi1>
    %28 = arith.select %27, %25, %24 : vector<8x128xi1>, vector<8x128xf32>
    %29 = vector.shape_cast %15 : vector<1x128xi1> to vector<1x128xi1>
    %30 = vector.broadcast %29 : vector<1x128xi1> to vector<8x128xi1>
    %31 = arith.select %30, %24, %25 : vector<8x128xi1>, vector<8x128xf32>
    %c1_i32_5 = arith.constant 1 : i32
    %32 = tpu.dynamic_rotate %2 by %c1_i32_5 dim 1 : vector<8x128xf32>, i32 -> vector<8x128xf32>
    %c127_i32_6 = arith.constant 127 : i32
    %33 = tpu.dynamic_rotate %2 by %c127_i32_6 dim 1 : vector<8x128xf32>, i32 -> vector<8x128xf32>
    %34 = vector.shape_cast %13 : vector<1x128xi1> to vector<1x128xi1>
    %35 = vector.broadcast %34 : vector<1x128xi1> to vector<8x128xi1>
    %36 = arith.select %35, %33, %32 : vector<8x128xi1>, vector<8x128xf32>
    %37 = vector.shape_cast %15 : vector<1x128xi1> to vector<1x128xi1>
    %38 = vector.broadcast %37 : vector<1x128xi1> to vector<8x128xi1>
    %39 = arith.select %38, %32, %33 : vector<8x128xi1>, vector<8x128xf32>
    %c1_i32_7 = arith.constant 1 : i32
    %40 = tpu.dynamic_rotate %23 by %c1_i32_7 dim 1 : vector<8x128xf32>, i32 -> vector<8x128xf32>
    %c127_i32_8 = arith.constant 127 : i32
    %41 = tpu.dynamic_rotate %23 by %c127_i32_8 dim 1 : vector<8x128xf32>, i32 -> vector<8x128xf32>
    %42 = vector.shape_cast %13 : vector<1x128xi1> to vector<1x128xi1>
    %43 = vector.broadcast %42 : vector<1x128xi1> to vector<8x128xi1>
    %44 = arith.select %43, %41, %40 : vector<8x128xi1>, vector<8x128xf32>
    %45 = vector.shape_cast %15 : vector<1x128xi1> to vector<1x128xi1>
    %46 = vector.broadcast %45 : vector<1x128xi1> to vector<8x128xi1>
    %47 = arith.select %46, %40, %41 : vector<8x128xi1>, vector<8x128xf32>
    %48 = tpu.concatenate %28, %20, %31, %36, %2, %39, %44, %23, %47 in 0 : vector<8x128xf32>, vector<8x128xf32>, vector<8x128xf32>, vector<8x128xf32>, vector<8x128xf32>, vector<8x128xf32>, vector<8x128xf32>, vector<8x128xf32>, vector<8x128xf32> -> vector<72x128xf32>
    %49 = arith.truncf %48 : vector<72x128xf32> to vector<72x128xbf16>
    %cst = arith.constant dense<0.000000e+00> : vector<8x128xf32>
    %50 = tpu.matmul %1, %49, %cst {dimension_numbers = #tpu.dot_dimension_numbers<[1], [0], [0], [1], [0, 0, 1, 1], [], []>} : vector<8x72xbf16>, vector<72x128xbf16>, vector<8x128xf32> -> vector<8x128xf32>
    %c0_9 = arith.constant 0 : index
    %c0_10 = arith.constant 0 : index
    %51 = vector.load %arg4[%c0_9, %c0_10] : memref<8x1xf32, #tpu.memory_space<vmem>>, vector<8x1xf32>
    %52 = vector.broadcast %51 : vector<8x1xf32> to vector<8x128xf32>
    %53 = arith.addf %50, %52 : vector<8x128xf32>
    %54 = math.absf %53 : vector<8x128xf32>
    %cst_11 = arith.constant 0.000000e+00 : f32
    %55 = vector.broadcast %cst_11 : f32 to vector<8x128xf32>
    %56 = arith.subf %55, %54 : vector<8x128xf32>
    %57 = math.exp %56 : vector<8x128xf32>
    %58 = arith.mulf %57, %57 : vector<8x128xf32>
    %cst_12 = arith.constant 0.000000e+00 : f32
    %59 = vector.broadcast %cst_12 : f32 to vector<8x128xf32>
    %60 = arith.cmpf oge, %53, %59 : vector<8x128xf32>
    %cst_13 = arith.constant 2.000000e+00 : f32
    %61 = vector.broadcast %cst_13 : f32 to vector<8x128xf32>
    %62 = arith.mulf %61, %57 : vector<8x128xf32>
    %cst_14 = arith.constant 1.000000e+00 : f32
    %63 = vector.broadcast %cst_14 : f32 to vector<8x128xf32>
    %64 = arith.addf %63, %62 : vector<8x128xf32>
    %cst_15 = arith.constant 2.000000e+00 : f32
    %65 = vector.broadcast %cst_15 : f32 to vector<8x128xf32>
    %66 = arith.mulf %65, %57 : vector<8x128xf32>
    %67 = arith.addf %66, %58 : vector<8x128xf32>
    %68 = arith.select %60, %64, %67 : vector<8x128xi1>, vector<8x128xf32>
    %cst_16 = arith.constant 2.000000e+00 : f32
    %69 = vector.broadcast %cst_16 : f32 to vector<8x128xf32>
    %70 = arith.mulf %69, %57 : vector<8x128xf32>
    %cst_17 = arith.constant 1.000000e+00 : f32
    %71 = vector.broadcast %cst_17 : f32 to vector<8x128xf32>
    %72 = arith.addf %71, %70 : vector<8x128xf32>
    %cst_18 = arith.constant 2.000000e+00 : f32
    %73 = vector.broadcast %cst_18 : f32 to vector<8x128xf32>
    %74 = arith.mulf %73, %58 : vector<8x128xf32>
    %75 = arith.addf %72, %74 : vector<8x128xf32>
    %cst_19 = arith.constant 2.000000e+00 : f32
    %76 = vector.broadcast %cst_19 : f32 to vector<8x128xf32>
    %77 = arith.mulf %76, %57 : vector<8x128xf32>
    %cst_20 = arith.constant 2.000000e+00 : f32
    %78 = vector.broadcast %cst_20 : f32 to vector<8x128xf32>
    %79 = arith.addf %78, %77 : vector<8x128xf32>
    %80 = arith.addf %79, %58 : vector<8x128xf32>
    %81 = arith.select %60, %75, %80 : vector<8x128xi1>, vector<8x128xf32>
    %82 = arith.divf %68, %81 : vector<8x128xf32>
    %83 = arith.mulf %53, %82 : vector<8x128xf32>
    %84 = tpu.iota {dimensions = array<i32: 1>} : vector<1x128xi32>
    %c2_i32 = arith.constant 2 : i32
    %85 = arith.muli %arg0, %c2_i32 : i32
    %c6_i32 = arith.constant 6 : i32
    %86 = vector.broadcast %c6_i32 : i32 to vector<1x128xi32>
    %87 = arith.shrsi %84, %86 : vector<1x128xi32>
    %88 = vector.broadcast %85 : i32 to vector<1x128xi32>
    %89 = arith.addi %88, %87 : vector<1x128xi32>
    %cst_21 = arith.constant 0.000000e+00 : f32
    %90 = vector.broadcast %cst_21 : f32 to vector<8x128xf32>
    %c0_i32_22 = arith.constant 0 : i32
    %91 = vector.broadcast %c0_i32_22 : i32 to vector<1x128xi32>
    %92 = arith.cmpi eq, %89, %91 : vector<1x128xi32>
    %c0_23 = arith.constant 0 : index
    %c0_24 = arith.constant 0 : index
    %93 = vector.load %arg2[%c0_23, %c0_24] : memref<8x2xf32, #tpu.memory_space<vmem>>, vector<8x1xf32>
    %94 = vector.shape_cast %92 : vector<1x128xi1> to vector<1x128xi1>
    %95 = vector.broadcast %94 : vector<1x128xi1> to vector<8x128xi1>
    %96 = vector.shape_cast %93 : vector<8x1xf32> to vector<8x1xf32>
    %97 = vector.broadcast %96 : vector<8x1xf32> to vector<8x128xf32>
    %98 = arith.select %95, %97, %90 : vector<8x128xi1>, vector<8x128xf32>
    %c1_i32_25 = arith.constant 1 : i32
    %99 = vector.broadcast %c1_i32_25 : i32 to vector<1x128xi32>
    %100 = arith.cmpi eq, %89, %99 : vector<1x128xi32>
    %c0_26 = arith.constant 0 : index
    %c1 = arith.constant 1 : index
    %101 = vector.load %arg2[%c0_26, %c1] : memref<8x2xf32, #tpu.memory_space<vmem>>, vector<8x1xf32>
    %102 = vector.shape_cast %100 : vector<1x128xi1> to vector<1x128xi1>
    %103 = vector.broadcast %102 : vector<1x128xi1> to vector<8x128xi1>
    %104 = vector.shape_cast %101 : vector<8x1xf32> to vector<8x1xf32>
    %105 = vector.broadcast %104 : vector<8x1xf32> to vector<8x128xf32>
    %106 = arith.select %103, %105, %98 : vector<8x128xi1>, vector<8x128xf32>
    %107 = arith.addf %83, %106 : vector<8x128xf32>
    %c0_27 = arith.constant 0 : index
    %c0_28 = arith.constant 0 : index
    %108 = vector.load %arg5[%c0_27, %c0_28] : memref<8x72xbf16, #tpu.memory_space<vmem>>, vector<8x72xbf16>
    %109 = tpu.iota {dimensions = array<i32: 1>} : vector<1x128xi32>
    %c63_i32_29 = arith.constant 63 : i32
    %110 = vector.broadcast %c63_i32_29 : i32 to vector<1x128xi32>
    %111 = arith.andi %109, %110 : vector<1x128xi32>
    %c7_i32_30 = arith.constant 7 : i32
    %112 = vector.broadcast %c7_i32_30 : i32 to vector<1x128xi32>
    %113 = arith.andi %109, %112 : vector<1x128xi32>
    %c8_i32_31 = arith.constant 8 : i32
    %114 = vector.broadcast %c8_i32_31 : i32 to vector<1x128xi32>
    %115 = arith.cmpi slt, %111, %114 : vector<1x128xi32>
    %c56_i32_32 = arith.constant 56 : i32
    %116 = vector.broadcast %c56_i32_32 : i32 to vector<1x128xi32>
    %117 = arith.cmpi sge, %111, %116 : vector<1x128xi32>
    %c0_i32_33 = arith.constant 0 : i32
    %118 = vector.broadcast %c0_i32_33 : i32 to vector<1x128xi32>
    %119 = arith.cmpi eq, %113, %118 : vector<1x128xi32>
    %c7_i32_34 = arith.constant 7 : i32
    %120 = vector.broadcast %c7_i32_34 : i32 to vector<1x128xi32>
    %121 = arith.cmpi eq, %113, %120 : vector<1x128xi32>
    %c8_i32_35 = arith.constant 8 : i32
    %122 = tpu.dynamic_rotate %107 by %c8_i32_35 dim 1 : vector<8x128xf32>, i32 -> vector<8x128xf32>
    %c120_i32_36 = arith.constant 120 : i32
    %123 = tpu.dynamic_rotate %107 by %c120_i32_36 dim 1 : vector<8x128xf32>, i32 -> vector<8x128xf32>
    %124 = vector.shape_cast %115 : vector<1x128xi1> to vector<1x128xi1>
    %125 = vector.broadcast %124 : vector<1x128xi1> to vector<8x128xi1>
    %126 = arith.select %125, %123, %122 : vector<8x128xi1>, vector<8x128xf32>
    %127 = vector.shape_cast %117 : vector<1x128xi1> to vector<1x128xi1>
    %128 = vector.broadcast %127 : vector<1x128xi1> to vector<8x128xi1>
    %129 = arith.select %128, %122, %123 : vector<8x128xi1>, vector<8x128xf32>
    %c1_i32_37 = arith.constant 1 : i32
    %130 = tpu.dynamic_rotate %126 by %c1_i32_37 dim 1 : vector<8x128xf32>, i32 -> vector<8x128xf32>
    %c127_i32_38 = arith.constant 127 : i32
    %131 = tpu.dynamic_rotate %126 by %c127_i32_38 dim 1 : vector<8x128xf32>, i32 -> vector<8x128xf32>
    %132 = vector.shape_cast %119 : vector<1x128xi1> to vector<1x128xi1>
    %133 = vector.broadcast %132 : vector<1x128xi1> to vector<8x128xi1>
    %134 = arith.select %133, %131, %130 : vector<8x128xi1>, vector<8x128xf32>
    %135 = vector.shape_cast %121 : vector<1x128xi1> to vector<1x128xi1>
    %136 = vector.broadcast %135 : vector<1x128xi1> to vector<8x128xi1>
    %137 = arith.select %136, %130, %131 : vector<8x128xi1>, vector<8x128xf32>
    %c1_i32_39 = arith.constant 1 : i32
    %138 = tpu.dynamic_rotate %107 by %c1_i32_39 dim 1 : vector<8x128xf32>, i32 -> vector<8x128xf32>
    %c127_i32_40 = arith.constant 127 : i32
    %139 = tpu.dynamic_rotate %107 by %c127_i32_40 dim 1 : vector<8x128xf32>, i32 -> vector<8x128xf32>
    %140 = vector.shape_cast %119 : vector<1x128xi1> to vector<1x128xi1>
    %141 = vector.broadcast %140 : vector<1x128xi1> to vector<8x128xi1>
    %142 = arith.select %141, %139, %138 : vector<8x128xi1>, vector<8x128xf32>
    %143 = vector.shape_cast %121 : vector<1x128xi1> to vector<1x128xi1>
    %144 = vector.broadcast %143 : vector<1x128xi1> to vector<8x128xi1>
    %145 = arith.select %144, %138, %139 : vector<8x128xi1>, vector<8x128xf32>
    %c1_i32_41 = arith.constant 1 : i32
    %146 = tpu.dynamic_rotate %129 by %c1_i32_41 dim 1 : vector<8x128xf32>, i32 -> vector<8x128xf32>
    %c127_i32_42 = arith.constant 127 : i32
    %147 = tpu.dynamic_rotate %129 by %c127_i32_42 dim 1 : vector<8x128xf32>, i32 -> vector<8x128xf32>
    %148 = vector.shape_cast %119 : vector<1x128xi1> to vector<1x128xi1>
    %149 = vector.broadcast %148 : vector<1x128xi1> to vector<8x128xi1>
    %150 = arith.select %149, %147, %146 : vector<8x128xi1>, vector<8x128xf32>
    %151 = vector.shape_cast %121 : vector<1x128xi1> to vector<1x128xi1>
    %152 = vector.broadcast %151 : vector<1x128xi1> to vector<8x128xi1>
    %153 = arith.select %152, %146, %147 : vector<8x128xi1>, vector<8x128xf32>
    %154 = tpu.concatenate %134, %126, %137, %142, %107, %145, %150, %129, %153 in 0 : vector<8x128xf32>, vector<8x128xf32>, vector<8x128xf32>, vector<8x128xf32>, vector<8x128xf32>, vector<8x128xf32>, vector<8x128xf32>, vector<8x128xf32>, vector<8x128xf32> -> vector<72x128xf32>
    %155 = arith.truncf %154 : vector<72x128xf32> to vector<72x128xbf16>
    %cst_43 = arith.constant dense<0.000000e+00> : vector<8x128xf32>
    %156 = tpu.matmul %108, %155, %cst_43 {dimension_numbers = #tpu.dot_dimension_numbers<[1], [0], [0], [1], [0, 0, 1, 1], [], []>} : vector<8x72xbf16>, vector<72x128xbf16>, vector<8x128xf32> -> vector<8x128xf32>
    %c0_44 = arith.constant 0 : index
    %c0_45 = arith.constant 0 : index
    %157 = vector.load %arg6[%c0_44, %c0_45] : memref<8x1xf32, #tpu.memory_space<vmem>>, vector<8x1xf32>
    %158 = vector.broadcast %157 : vector<8x1xf32> to vector<8x128xf32>
    %159 = arith.addf %156, %158 : vector<8x128xf32>
    %160 = math.absf %159 : vector<8x128xf32>
    %cst_46 = arith.constant 0.000000e+00 : f32
    %161 = vector.broadcast %cst_46 : f32 to vector<8x128xf32>
    %162 = arith.subf %161, %160 : vector<8x128xf32>
    %163 = math.exp %162 : vector<8x128xf32>
    %164 = arith.mulf %163, %163 : vector<8x128xf32>
    %cst_47 = arith.constant 0.000000e+00 : f32
    %165 = vector.broadcast %cst_47 : f32 to vector<8x128xf32>
    %166 = arith.cmpf oge, %159, %165 : vector<8x128xf32>
    %cst_48 = arith.constant 2.000000e+00 : f32
    %167 = vector.broadcast %cst_48 : f32 to vector<8x128xf32>
    %168 = arith.mulf %167, %163 : vector<8x128xf32>
    %cst_49 = arith.constant 1.000000e+00 : f32
    %169 = vector.broadcast %cst_49 : f32 to vector<8x128xf32>
    %170 = arith.addf %169, %168 : vector<8x128xf32>
    %cst_50 = arith.constant 2.000000e+00 : f32
    %171 = vector.broadcast %cst_50 : f32 to vector<8x128xf32>
    %172 = arith.mulf %171, %163 : vector<8x128xf32>
    %173 = arith.addf %172, %164 : vector<8x128xf32>
    %174 = arith.select %166, %170, %173 : vector<8x128xi1>, vector<8x128xf32>
    %cst_51 = arith.constant 2.000000e+00 : f32
    %175 = vector.broadcast %cst_51 : f32 to vector<8x128xf32>
    %176 = arith.mulf %175, %163 : vector<8x128xf32>
    %cst_52 = arith.constant 1.000000e+00 : f32
    %177 = vector.broadcast %cst_52 : f32 to vector<8x128xf32>
    %178 = arith.addf %177, %176 : vector<8x128xf32>
    %cst_53 = arith.constant 2.000000e+00 : f32
    %179 = vector.broadcast %cst_53 : f32 to vector<8x128xf32>
    %180 = arith.mulf %179, %164 : vector<8x128xf32>
    %181 = arith.addf %178, %180 : vector<8x128xf32>
    %cst_54 = arith.constant 2.000000e+00 : f32
    %182 = vector.broadcast %cst_54 : f32 to vector<8x128xf32>
    %183 = arith.mulf %182, %163 : vector<8x128xf32>
    %cst_55 = arith.constant 2.000000e+00 : f32
    %184 = vector.broadcast %cst_55 : f32 to vector<8x128xf32>
    %185 = arith.addf %184, %183 : vector<8x128xf32>
    %186 = arith.addf %185, %164 : vector<8x128xf32>
    %187 = arith.select %166, %181, %186 : vector<8x128xi1>, vector<8x128xf32>
    %188 = arith.divf %174, %187 : vector<8x128xf32>
    %189 = arith.mulf %159, %188 : vector<8x128xf32>
    %190 = arith.extf %0 : vector<8x128xbf16> to vector<8x128xf32>
    %191 = arith.addf %189, %190 : vector<8x128xf32>
    %192 = arith.truncf %191 : vector<8x128xf32> to vector<8x128xbf16>
    %c0_56 = arith.constant 0 : index
    %c0_57 = arith.constant 0 : index
    %193 = vector.load %arg7[%c0_56, %c0_57] : memref<8x128xbf16, #tpu.memory_space<vmem>>, vector<8x128xbf16>
    tpu.vector_store %arg7[%c0_56, %c0_57], %192 {strides = array<i32>} : memref<8x128xbf16, #tpu.memory_space<vmem>>, vector<8x128xbf16>,
    return
  }
  func.func @transform_0(%arg0: i32) -> (i32, i32) {
    %c0_i32 = arith.constant 0 : i32
    %c0_i32_0 = arith.constant 0 : i32
    return %c0_i32, %arg0 : i32, i32
  }
  func.func @transform_1(%arg0: i32) -> (i32, i32) {
    %c0_i32 = arith.constant 0 : i32
    %c0_i32_0 = arith.constant 0 : i32
    %c0_i32_1 = arith.constant 0 : i32
    return %c0_i32, %c0_i32_0 : i32, i32
  }
  func.func @transform_2(%arg0: i32) -> (i32, i32) {
    %c0_i32 = arith.constant 0 : i32
    %c0_i32_0 = arith.constant 0 : i32
    %c0_i32_1 = arith.constant 0 : i32
    return %c0_i32, %c0_i32_0 : i32, i32
  }
  func.func @transform_3(%arg0: i32) -> (i32, i32) {
    %c0_i32 = arith.constant 0 : i32
    %c0_i32_0 = arith.constant 0 : i32
    %c0_i32_1 = arith.constant 0 : i32
    return %c0_i32, %c0_i32_0 : i32, i32
  }
  func.func @transform_4(%arg0: i32) -> (i32, i32) {
    %c0_i32 = arith.constant 0 : i32
    %c0_i32_0 = arith.constant 0 : i32
    %c0_i32_1 = arith.constant 0 : i32
    return %c0_i32, %c0_i32_0 : i32, i32
  }
  func.func @transform_5(%arg0: i32) -> (i32, i32) {
    %c0_i32 = arith.constant 0 : i32
    %c0_i32_0 = arith.constant 0 : i32
    %c0_i32_1 = arith.constant 0 : i32
    return %c0_i32, %c0_i32_0 : i32, i32
  }
  func.func @transform_6(%arg0: i32) -> (i32, i32) {
    %c0_i32 = arith.constant 0 : i32
    %c0_i32_0 = arith.constant 0 : i32
    return %c0_i32, %arg0 : i32, i32
  }
}

module attributes {stable_mosaic.version = 11 : i64} {
  func.func @_convgen_kernel(%arg0: i32, %arg1: memref<8x128xbf16, #tpu.memory_space<vmem>>, %arg2: memref<32x72xbf16, #tpu.memory_space<vmem>>, %arg3: memref<32x1xf32, #tpu.memory_space<vmem>>, %arg4: memref<32x128xbf16, #tpu.memory_space<vmem>>) attributes {dimension_semantics = [#tpu.dimension_semantics<parallel>], iteration_bounds = array<i64: 1>, scalar_prefetch = 0 : i64, scratch_operands = 0 : i64, tpu.core_type = #tpu.core_type<tc>, window_params = [{transform_indices = @transform_0, window_bounds = array<i64: 8, 128>}, {pipeline_mode = #tpu.pipeline_mode<synchronous>, transform_indices = @transform_1, window_bounds = array<i64: 32, 72>}, {pipeline_mode = #tpu.pipeline_mode<synchronous>, transform_indices = @transform_2, window_bounds = array<i64: 32, 1>}, {transform_indices = @transform_3, window_bounds = array<i64: 32, 128>}]} {
    %c0 = arith.constant 0 : index
    %c0_0 = arith.constant 0 : index
    %0 = vector.load %arg1[%c0, %c0_0] : memref<8x128xbf16, #tpu.memory_space<vmem>>, vector<8x128xbf16>
    %c0_1 = arith.constant 0 : index
    %c0_2 = arith.constant 0 : index
    %1 = vector.load %arg2[%c0_1, %c0_2] : memref<32x72xbf16, #tpu.memory_space<vmem>>, vector<32x72xbf16>
    %2 = arith.extf %0 : vector<8x128xbf16> to vector<8x128xf32>
    %3 = tpu.iota {dimensions = array<i32: 1>} : vector<1x128xi32>
    %c63_i32 = arith.constant 63 : i32
    %4 = vector.broadcast %c63_i32 : i32 to vector<1x128xi32>
    %5 = arith.andi %3, %4 : vector<1x128xi32>
    %c7_i32 = arith.constant 7 : i32
    %6 = vector.broadcast %c7_i32 : i32 to vector<1x128xi32>
    %7 = arith.andi %3, %6 : vector<1x128xi32>
    %c8_i32 = arith.constant 8 : i32
    %8 = vector.broadcast %c8_i32 : i32 to vector<1x128xi32>
    %9 = arith.cmpi slt, %5, %8 : vector<1x128xi32>
    %c56_i32 = arith.constant 56 : i32
    %10 = vector.broadcast %c56_i32 : i32 to vector<1x128xi32>
    %11 = arith.cmpi sge, %5, %10 : vector<1x128xi32>
    %c0_i32 = arith.constant 0 : i32
    %12 = vector.broadcast %c0_i32 : i32 to vector<1x128xi32>
    %13 = arith.cmpi eq, %7, %12 : vector<1x128xi32>
    %c7_i32_3 = arith.constant 7 : i32
    %14 = vector.broadcast %c7_i32_3 : i32 to vector<1x128xi32>
    %15 = arith.cmpi eq, %7, %14 : vector<1x128xi32>
    %cst = arith.constant 0.000000e+00 : f32
    %16 = vector.broadcast %cst : f32 to vector<8x128xf32>
    %c8_i32_4 = arith.constant 8 : i32
    %17 = tpu.dynamic_rotate %2 by %c8_i32_4 dim 1 : vector<8x128xf32>, i32 -> vector<8x128xf32>
    %c120_i32 = arith.constant 120 : i32
    %18 = tpu.dynamic_rotate %2 by %c120_i32 dim 1 : vector<8x128xf32>, i32 -> vector<8x128xf32>
    %19 = vector.shape_cast %9 : vector<1x128xi1> to vector<1x128xi1>
    %20 = vector.broadcast %19 : vector<1x128xi1> to vector<8x128xi1>
    %21 = arith.select %20, %16, %17 : vector<8x128xi1>, vector<8x128xf32>
    %22 = vector.shape_cast %11 : vector<1x128xi1> to vector<1x128xi1>
    %23 = vector.broadcast %22 : vector<1x128xi1> to vector<8x128xi1>
    %24 = arith.select %23, %16, %18 : vector<8x128xi1>, vector<8x128xf32>
    %c1_i32 = arith.constant 1 : i32
    %25 = tpu.dynamic_rotate %21 by %c1_i32 dim 1 : vector<8x128xf32>, i32 -> vector<8x128xf32>
    %c127_i32 = arith.constant 127 : i32
    %26 = tpu.dynamic_rotate %21 by %c127_i32 dim 1 : vector<8x128xf32>, i32 -> vector<8x128xf32>
    %27 = vector.shape_cast %13 : vector<1x128xi1> to vector<1x128xi1>
    %28 = vector.broadcast %27 : vector<1x128xi1> to vector<8x128xi1>
    %29 = arith.select %28, %16, %25 : vector<8x128xi1>, vector<8x128xf32>
    %30 = vector.shape_cast %15 : vector<1x128xi1> to vector<1x128xi1>
    %31 = vector.broadcast %30 : vector<1x128xi1> to vector<8x128xi1>
    %32 = arith.select %31, %16, %26 : vector<8x128xi1>, vector<8x128xf32>
    %c1_i32_5 = arith.constant 1 : i32
    %33 = tpu.dynamic_rotate %2 by %c1_i32_5 dim 1 : vector<8x128xf32>, i32 -> vector<8x128xf32>
    %c127_i32_6 = arith.constant 127 : i32
    %34 = tpu.dynamic_rotate %2 by %c127_i32_6 dim 1 : vector<8x128xf32>, i32 -> vector<8x128xf32>
    %35 = vector.shape_cast %13 : vector<1x128xi1> to vector<1x128xi1>
    %36 = vector.broadcast %35 : vector<1x128xi1> to vector<8x128xi1>
    %37 = arith.select %36, %16, %33 : vector<8x128xi1>, vector<8x128xf32>
    %38 = vector.shape_cast %15 : vector<1x128xi1> to vector<1x128xi1>
    %39 = vector.broadcast %38 : vector<1x128xi1> to vector<8x128xi1>
    %40 = arith.select %39, %16, %34 : vector<8x128xi1>, vector<8x128xf32>
    %c1_i32_7 = arith.constant 1 : i32
    %41 = tpu.dynamic_rotate %24 by %c1_i32_7 dim 1 : vector<8x128xf32>, i32 -> vector<8x128xf32>
    %c127_i32_8 = arith.constant 127 : i32
    %42 = tpu.dynamic_rotate %24 by %c127_i32_8 dim 1 : vector<8x128xf32>, i32 -> vector<8x128xf32>
    %43 = vector.shape_cast %13 : vector<1x128xi1> to vector<1x128xi1>
    %44 = vector.broadcast %43 : vector<1x128xi1> to vector<8x128xi1>
    %45 = arith.select %44, %16, %41 : vector<8x128xi1>, vector<8x128xf32>
    %46 = vector.shape_cast %15 : vector<1x128xi1> to vector<1x128xi1>
    %47 = vector.broadcast %46 : vector<1x128xi1> to vector<8x128xi1>
    %48 = arith.select %47, %16, %42 : vector<8x128xi1>, vector<8x128xf32>
    %49 = tpu.concatenate %29, %21, %32, %37, %2, %40, %45, %24, %48 in 0 : vector<8x128xf32>, vector<8x128xf32>, vector<8x128xf32>, vector<8x128xf32>, vector<8x128xf32>, vector<8x128xf32>, vector<8x128xf32>, vector<8x128xf32>, vector<8x128xf32> -> vector<72x128xf32>
    %50 = arith.truncf %49 : vector<72x128xf32> to vector<72x128xbf16>
    %cst_9 = arith.constant dense<0.000000e+00> : vector<32x128xf32>
    %51 = tpu.matmul %1, %50, %cst_9 {dimension_numbers = #tpu.dot_dimension_numbers<[1], [0], [0], [1], [0, 0, 1, 1], [], []>} : vector<32x72xbf16>, vector<72x128xbf16>, vector<32x128xf32> -> vector<32x128xf32>
    %c0_10 = arith.constant 0 : index
    %c0_11 = arith.constant 0 : index
    %52 = vector.load %arg3[%c0_10, %c0_11] : memref<32x1xf32, #tpu.memory_space<vmem>>, vector<32x1xf32>
    %53 = vector.broadcast %52 : vector<32x1xf32> to vector<32x128xf32>
    %54 = arith.addf %51, %53 : vector<32x128xf32>
    %55 = arith.truncf %54 : vector<32x128xf32> to vector<32x128xbf16>
    %c0_12 = arith.constant 0 : index
    %c0_13 = arith.constant 0 : index
    %56 = vector.load %arg4[%c0_12, %c0_13] : memref<32x128xbf16, #tpu.memory_space<vmem>>, vector<32x128xbf16>
    tpu.vector_store %arg4[%c0_12, %c0_13], %55 {strides = array<i32>} : memref<32x128xbf16, #tpu.memory_space<vmem>>, vector<32x128xbf16>,
    return
  }
  func.func @transform_0(%arg0: i32) -> (i32, i32) {
    %c0_i32 = arith.constant 0 : i32
    %c0_i32_0 = arith.constant 0 : i32
    return %c0_i32, %arg0 : i32, i32
  }
  func.func @transform_1(%arg0: i32) -> (i32, i32) {
    %c0_i32 = arith.constant 0 : i32
    %c0_i32_0 = arith.constant 0 : i32
    %c0_i32_1 = arith.constant 0 : i32
    return %c0_i32, %c0_i32_0 : i32, i32
  }
  func.func @transform_2(%arg0: i32) -> (i32, i32) {
    %c0_i32 = arith.constant 0 : i32
    %c0_i32_0 = arith.constant 0 : i32
    %c0_i32_1 = arith.constant 0 : i32
    return %c0_i32, %c0_i32_0 : i32, i32
  }
  func.func @transform_3(%arg0: i32) -> (i32, i32) {
    %c0_i32 = arith.constant 0 : i32
    %c0_i32_0 = arith.constant 0 : i32
    return %c0_i32, %arg0 : i32, i32
  }
}

module attributes {stable_mosaic.version = 11 : i64} {
  func.func @_convgen_kernel(%arg0: i32, %arg1: memref<8x256xbf16, #tpu.memory_space<vmem>>, %arg2: memref<8x72xbf16, #tpu.memory_space<vmem>>, %arg3: memref<8x1xf32, #tpu.memory_space<vmem>>, %arg4: memref<3x8xbf16, #tpu.memory_space<vmem>>, %arg5: memref<3x1xf32, #tpu.memory_space<vmem>>, %arg6: memref<3x256xf32, #tpu.memory_space<vmem>>) attributes {dimension_semantics = [#tpu.dimension_semantics<parallel>], iteration_bounds = array<i64: 2>, scalar_prefetch = 0 : i64, scratch_operands = 0 : i64, tpu.core_type = #tpu.core_type<tc>, window_params = [{transform_indices = @transform_0, window_bounds = array<i64: 8, 256>}, {pipeline_mode = #tpu.pipeline_mode<synchronous>, transform_indices = @transform_1, window_bounds = array<i64: 8, 72>}, {pipeline_mode = #tpu.pipeline_mode<synchronous>, transform_indices = @transform_2, window_bounds = array<i64: 8, 1>}, {pipeline_mode = #tpu.pipeline_mode<synchronous>, transform_indices = @transform_3, window_bounds = array<i64: 3, 8>}, {pipeline_mode = #tpu.pipeline_mode<synchronous>, transform_indices = @transform_4, window_bounds = array<i64: 3, 1>}, {transform_indices = @transform_5, window_bounds = array<i64: 3, 256>}]} {
    %c0 = arith.constant 0 : index
    %c0_0 = arith.constant 0 : index
    %0 = vector.load %arg1[%c0, %c0_0] : memref<8x256xbf16, #tpu.memory_space<vmem>>, vector<8x256xbf16>
    %c0_1 = arith.constant 0 : index
    %c0_2 = arith.constant 0 : index
    %1 = vector.load %arg2[%c0_1, %c0_2] : memref<8x72xbf16, #tpu.memory_space<vmem>>, vector<8x72xbf16>
    %2 = arith.extf %0 : vector<8x256xbf16> to vector<8x256xf32>
    %3 = tpu.iota {dimensions = array<i32: 1>} : vector<1x256xi32>
    %c255_i32 = arith.constant 255 : i32
    %4 = vector.broadcast %c255_i32 : i32 to vector<1x256xi32>
    %5 = arith.andi %3, %4 : vector<1x256xi32>
    %c15_i32 = arith.constant 15 : i32
    %6 = vector.broadcast %c15_i32 : i32 to vector<1x256xi32>
    %7 = arith.andi %3, %6 : vector<1x256xi32>
    %c16_i32 = arith.constant 16 : i32
    %8 = vector.broadcast %c16_i32 : i32 to vector<1x256xi32>
    %9 = arith.cmpi slt, %5, %8 : vector<1x256xi32>
    %c240_i32 = arith.constant 240 : i32
    %10 = vector.broadcast %c240_i32 : i32 to vector<1x256xi32>
    %11 = arith.cmpi sge, %5, %10 : vector<1x256xi32>
    %c0_i32 = arith.constant 0 : i32
    %12 = vector.broadcast %c0_i32 : i32 to vector<1x256xi32>
    %13 = arith.cmpi eq, %7, %12 : vector<1x256xi32>
    %c15_i32_3 = arith.constant 15 : i32
    %14 = vector.broadcast %c15_i32_3 : i32 to vector<1x256xi32>
    %15 = arith.cmpi eq, %7, %14 : vector<1x256xi32>
    %c16_i32_4 = arith.constant 16 : i32
    %16 = tpu.dynamic_rotate %2 by %c16_i32_4 dim 1 : vector<8x256xf32>, i32 -> vector<8x256xf32>
    %c240_i32_5 = arith.constant 240 : i32
    %17 = tpu.dynamic_rotate %2 by %c240_i32_5 dim 1 : vector<8x256xf32>, i32 -> vector<8x256xf32>
    %18 = vector.shape_cast %9 : vector<1x256xi1> to vector<1x256xi1>
    %19 = vector.broadcast %18 : vector<1x256xi1> to vector<8x256xi1>
    %20 = arith.select %19, %17, %16 : vector<8x256xi1>, vector<8x256xf32>
    %21 = vector.shape_cast %11 : vector<1x256xi1> to vector<1x256xi1>
    %22 = vector.broadcast %21 : vector<1x256xi1> to vector<8x256xi1>
    %23 = arith.select %22, %16, %17 : vector<8x256xi1>, vector<8x256xf32>
    %c1_i32 = arith.constant 1 : i32
    %24 = tpu.dynamic_rotate %20 by %c1_i32 dim 1 : vector<8x256xf32>, i32 -> vector<8x256xf32>
    %c255_i32_6 = arith.constant 255 : i32
    %25 = tpu.dynamic_rotate %20 by %c255_i32_6 dim 1 : vector<8x256xf32>, i32 -> vector<8x256xf32>
    %26 = vector.shape_cast %13 : vector<1x256xi1> to vector<1x256xi1>
    %27 = vector.broadcast %26 : vector<1x256xi1> to vector<8x256xi1>
    %28 = arith.select %27, %25, %24 : vector<8x256xi1>, vector<8x256xf32>
    %29 = vector.shape_cast %15 : vector<1x256xi1> to vector<1x256xi1>
    %30 = vector.broadcast %29 : vector<1x256xi1> to vector<8x256xi1>
    %31 = arith.select %30, %24, %25 : vector<8x256xi1>, vector<8x256xf32>
    %c1_i32_7 = arith.constant 1 : i32
    %32 = tpu.dynamic_rotate %2 by %c1_i32_7 dim 1 : vector<8x256xf32>, i32 -> vector<8x256xf32>
    %c255_i32_8 = arith.constant 255 : i32
    %33 = tpu.dynamic_rotate %2 by %c255_i32_8 dim 1 : vector<8x256xf32>, i32 -> vector<8x256xf32>
    %34 = vector.shape_cast %13 : vector<1x256xi1> to vector<1x256xi1>
    %35 = vector.broadcast %34 : vector<1x256xi1> to vector<8x256xi1>
    %36 = arith.select %35, %33, %32 : vector<8x256xi1>, vector<8x256xf32>
    %37 = vector.shape_cast %15 : vector<1x256xi1> to vector<1x256xi1>
    %38 = vector.broadcast %37 : vector<1x256xi1> to vector<8x256xi1>
    %39 = arith.select %38, %32, %33 : vector<8x256xi1>, vector<8x256xf32>
    %c1_i32_9 = arith.constant 1 : i32
    %40 = tpu.dynamic_rotate %23 by %c1_i32_9 dim 1 : vector<8x256xf32>, i32 -> vector<8x256xf32>
    %c255_i32_10 = arith.constant 255 : i32
    %41 = tpu.dynamic_rotate %23 by %c255_i32_10 dim 1 : vector<8x256xf32>, i32 -> vector<8x256xf32>
    %42 = vector.shape_cast %13 : vector<1x256xi1> to vector<1x256xi1>
    %43 = vector.broadcast %42 : vector<1x256xi1> to vector<8x256xi1>
    %44 = arith.select %43, %41, %40 : vector<8x256xi1>, vector<8x256xf32>
    %45 = vector.shape_cast %15 : vector<1x256xi1> to vector<1x256xi1>
    %46 = vector.broadcast %45 : vector<1x256xi1> to vector<8x256xi1>
    %47 = arith.select %46, %40, %41 : vector<8x256xi1>, vector<8x256xf32>
    %48 = tpu.concatenate %28, %20, %31, %36, %2, %39, %44, %23, %47 in 0 : vector<8x256xf32>, vector<8x256xf32>, vector<8x256xf32>, vector<8x256xf32>, vector<8x256xf32>, vector<8x256xf32>, vector<8x256xf32>, vector<8x256xf32>, vector<8x256xf32> -> vector<72x256xf32>
    %49 = arith.truncf %48 : vector<72x256xf32> to vector<72x256xbf16>
    %cst = arith.constant dense<0.000000e+00> : vector<8x256xf32>
    %50 = tpu.matmul %1, %49, %cst {dimension_numbers = #tpu.dot_dimension_numbers<[1], [0], [0], [1], [0, 0, 1, 1], [], []>} : vector<8x72xbf16>, vector<72x256xbf16>, vector<8x256xf32> -> vector<8x256xf32>
    %c0_11 = arith.constant 0 : index
    %c0_12 = arith.constant 0 : index
    %51 = vector.load %arg3[%c0_11, %c0_12] : memref<8x1xf32, #tpu.memory_space<vmem>>, vector<8x1xf32>
    %52 = vector.broadcast %51 : vector<8x1xf32> to vector<8x256xf32>
    %53 = arith.addf %50, %52 : vector<8x256xf32>
    %54 = math.absf %53 : vector<8x256xf32>
    %cst_13 = arith.constant 0.000000e+00 : f32
    %55 = vector.broadcast %cst_13 : f32 to vector<8x256xf32>
    %56 = arith.subf %55, %54 : vector<8x256xf32>
    %57 = math.exp %56 : vector<8x256xf32>
    %58 = arith.mulf %57, %57 : vector<8x256xf32>
    %cst_14 = arith.constant 0.000000e+00 : f32
    %59 = vector.broadcast %cst_14 : f32 to vector<8x256xf32>
    %60 = arith.cmpf oge, %53, %59 : vector<8x256xf32>
    %cst_15 = arith.constant 2.000000e+00 : f32
    %61 = vector.broadcast %cst_15 : f32 to vector<8x256xf32>
    %62 = arith.mulf %61, %57 : vector<8x256xf32>
    %cst_16 = arith.constant 1.000000e+00 : f32
    %63 = vector.broadcast %cst_16 : f32 to vector<8x256xf32>
    %64 = arith.addf %63, %62 : vector<8x256xf32>
    %cst_17 = arith.constant 2.000000e+00 : f32
    %65 = vector.broadcast %cst_17 : f32 to vector<8x256xf32>
    %66 = arith.mulf %65, %57 : vector<8x256xf32>
    %67 = arith.addf %66, %58 : vector<8x256xf32>
    %68 = arith.select %60, %64, %67 : vector<8x256xi1>, vector<8x256xf32>
    %cst_18 = arith.constant 2.000000e+00 : f32
    %69 = vector.broadcast %cst_18 : f32 to vector<8x256xf32>
    %70 = arith.mulf %69, %57 : vector<8x256xf32>
    %cst_19 = arith.constant 1.000000e+00 : f32
    %71 = vector.broadcast %cst_19 : f32 to vector<8x256xf32>
    %72 = arith.addf %71, %70 : vector<8x256xf32>
    %cst_20 = arith.constant 2.000000e+00 : f32
    %73 = vector.broadcast %cst_20 : f32 to vector<8x256xf32>
    %74 = arith.mulf %73, %58 : vector<8x256xf32>
    %75 = arith.addf %72, %74 : vector<8x256xf32>
    %cst_21 = arith.constant 2.000000e+00 : f32
    %76 = vector.broadcast %cst_21 : f32 to vector<8x256xf32>
    %77 = arith.mulf %76, %57 : vector<8x256xf32>
    %cst_22 = arith.constant 2.000000e+00 : f32
    %78 = vector.broadcast %cst_22 : f32 to vector<8x256xf32>
    %79 = arith.addf %78, %77 : vector<8x256xf32>
    %80 = arith.addf %79, %58 : vector<8x256xf32>
    %81 = arith.select %60, %75, %80 : vector<8x256xi1>, vector<8x256xf32>
    %82 = arith.divf %68, %81 : vector<8x256xf32>
    %83 = arith.mulf %53, %82 : vector<8x256xf32>
    %c0_23 = arith.constant 0 : index
    %c0_24 = arith.constant 0 : index
    %84 = vector.load %arg4[%c0_23, %c0_24] : memref<3x8xbf16, #tpu.memory_space<vmem>>, vector<3x8xbf16>
    %85 = arith.truncf %83 : vector<8x256xf32> to vector<8x256xbf16>
    %cst_25 = arith.constant dense<0.000000e+00> : vector<3x256xf32>
    %86 = tpu.matmul %84, %85, %cst_25 {dimension_numbers = #tpu.dot_dimension_numbers<[1], [0], [0], [1], [0, 0, 1, 1], [], []>} : vector<3x8xbf16>, vector<8x256xbf16>, vector<3x256xf32> -> vector<3x256xf32>
    %c0_26 = arith.constant 0 : index
    %c0_27 = arith.constant 0 : index
    %87 = vector.load %arg5[%c0_26, %c0_27] : memref<3x1xf32, #tpu.memory_space<vmem>>, vector<3x1xf32>
    %88 = vector.broadcast %87 : vector<3x1xf32> to vector<3x256xf32>
    %89 = arith.addf %86, %88 : vector<3x256xf32>
    %c0_28 = arith.constant 0 : index
    %c0_29 = arith.constant 0 : index
    %90 = vector.load %arg6[%c0_28, %c0_29] : memref<3x256xf32, #tpu.memory_space<vmem>>, vector<3x256xf32>
    tpu.vector_store %arg6[%c0_28, %c0_29], %89 {strides = array<i32>} : memref<3x256xf32, #tpu.memory_space<vmem>>, vector<3x256xf32>,
    return
  }
  func.func @transform_0(%arg0: i32) -> (i32, i32) {
    %c0_i32 = arith.constant 0 : i32
    %c0_i32_0 = arith.constant 0 : i32
    return %c0_i32, %arg0 : i32, i32
  }
  func.func @transform_1(%arg0: i32) -> (i32, i32) {
    %c0_i32 = arith.constant 0 : i32
    %c0_i32_0 = arith.constant 0 : i32
    %c0_i32_1 = arith.constant 0 : i32
    return %c0_i32, %c0_i32_0 : i32, i32
  }
  func.func @transform_2(%arg0: i32) -> (i32, i32) {
    %c0_i32 = arith.constant 0 : i32
    %c0_i32_0 = arith.constant 0 : i32
    %c0_i32_1 = arith.constant 0 : i32
    return %c0_i32, %c0_i32_0 : i32, i32
  }
  func.func @transform_3(%arg0: i32) -> (i32, i32) {
    %c0_i32 = arith.constant 0 : i32
    %c0_i32_0 = arith.constant 0 : i32
    %c0_i32_1 = arith.constant 0 : i32
    return %c0_i32, %c0_i32_0 : i32, i32
  }
  func.func @transform_4(%arg0: i32) -> (i32, i32) {
    %c0_i32 = arith.constant 0 : i32
    %c0_i32_0 = arith.constant 0 : i32
    %c0_i32_1 = arith.constant 0 : i32
    return %c0_i32, %c0_i32_0 : i32, i32
  }
  func.func @transform_5(%arg0: i32) -> (i32, i32) {
    %c0_i32 = arith.constant 0 : i32
    %c0_i32_0 = arith.constant 0 : i32
    return %c0_i32, %arg0 : i32, i32
  }
}

</mosaic_0001>

<bundles_post_ra>
// kernel: unet_forward.13
= control target key start
LH: loop header
LB: loop body
LE: loop exit
PB: predicated region body
PF: predicated region fallthrough
CT: control target
= control target key end

     0   :  { %vm32_vm0 = vcmask 64512   ;;  %vm95_vm6 = vcmask 261120   ;;  %vm178_vm12 = vcmask 779264   ;;  %s277_s1 = inlined_call_operand.vmem [shape: f32[8,32], index: 1, kind: input, shape index: {}]   ;;  %s278_s0 = inlined_call_operand.vmem [shape: f32[2,8], index: 0, kind: input, shape index: {}]   ;;  %s279_s2 = inlined_call_operand.vmem [shape: f32[1,32], index: 2, kind: input, shape index: {}]   ;;  %s280_s4 = inlined_call_operand.vmem [shape: f32[1,8], index: 4, kind: input, shape index: {}]   ;;  %s281_s3 = inlined_call_operand.vmem [shape: f32[32,8], index: 3, kind: input, shape index: {}]   ;;  %s282_s6 = inlined_call_operand.vmem [shape: f32[1,96], index: 6, kind: input, shape index: {}]   ;;  %s283_s5 = inlined_call_operand.vmem [shape: f32[8,96], index: 5, kind: input, shape index: {}]   ;;  %s284_s7 = inlined_call_operand.vmem [shape: f32[2,96], index: 7, kind: output, shape index: {}]  }
   0x1   :  { %v27_v0 = vld [vmem:[%s277_s1] sm:$0xff]  ;;  %v90_v4 = vld [vmem:[%s281_s3 + $0x18] sm:$0xff]  ;;  %v89_v5 = vld [vmem:[%s281_s3 + $0x10] sm:$0xff] }
   0x2   :  { %v26_v1 = vld [vmem:[%s278_s0] sm:$0x3]  ;;  %51 = vmatpush.msra.mxu0 %v27_v0  ;;  %111 = vmatpush.msra.mxu1 %v90_v4  ;;  %v88_v7 = vld [vmem:[%s281_s3 + $0x8] sm:$0xff] }
   0x3   :  { %184 = vmatmul.msk.f32.vlgmr.msra.gmra.mxu0 %vm32_vm0, %v26_v1  ;;  %v187_v2 = vld [vmem:[%s279_s2] ss:$0 sm:$0xff] }
   0x4   :  { %112 = vmatpush.msra.mxu1 %v89_v5  ;;  %v87_v9 = vld [vmem:[%s281_s3] sm:$0xff] }
   0x5   :  { %v188_v35 = vld [vmem:[%s280_s4] ss:$0 sm:$0xff] }
   0x6   :  { %113 = vmatpush.msra.mxu1 %v88_v7  ;;  %v150_v37 = vld [vmem:[%s283_s5] sm:$0xff] }
   0x7   :  { %173 = vmatpush.msra.mxu2 %v150_v37  ;;  %v189_v1 = vld [vmem:[%s282_s6] ss:$0 sm:$0xff] }
   0x8   :  { %114 = vmatpush.msra.mxu1 %v87_v9 }
  0x80   :  { %v53_v3 = vpop.f32.mrf.mxu0 }
  0x81   :  { %v54_v6 = vadd.f32 %v187_v2, %v53_v3 }
  0x83   :  { %v56_v8 = vand.u32 2147483647, %v54_v6  ;;  %vm61_vm1 = vcmp.ge.f32.partialorder %v54_v6, 0.0 }
  0x85   :  { %v57_v10 = vsub.f32 0.0, %v56_v8 }
  0x87   :  { %v58_v11 = vmul.f32 1.442695, %v57_v10 }
  0x89   :  { %190 = vpow2.f32 %v58_v11 }
  0x8f   :  { %v191_v12 = vpop.eup %190 }
  0x90   :  { %v60_v13 = vmul.f32 %v191_v12, %v191_v12  ;;  %v62_v14 = vmul.f32 2.0, %v191_v12 }
  0x92   :  { %v63_v15 = vadd.f32 1.0, %v62_v14  ;;  %v66_v16 = vmul.f32 2.0, %v60_v13  ;;  %v68_v17 = vadd.f32 2.0, %v62_v14  ;;  %v64_v27 = vadd.f32 %v62_v14, %v60_v13 }
  0x94   :  { %v67_v18 = vadd.f32 %v66_v16, %v63_v15  ;;  %v69_v19 = vadd.f32 %v68_v17, %v60_v13  ;;  %v65_v31 = vsel %vm61_vm1, %v63_v15, %v64_v27 }
  0x96   :  { %v70_v20 = vsel %vm61_vm1, %v67_v18, %v69_v19 }
  0x97   :  { %192 = vrcp.f32 %v70_v20  ;;  %v82_v24 = vand.u32 2147483648, %v70_v20  ;;  %v80_v26 = vand.u32 2147483647, %v70_v20  ;;  %vm76_vm3 = vweird.f32 %v70_v20 }
  0x99   :  { %v83_v29 = vor.u32 1.1754944e-38, %v82_v24  ;;  %vm81_vm5 = vcmp.eq.f32.partialorder %v80_v26, 8.507059e+37 }
  0x9d   :  { %v193_v21 = vpop.eup %192 }
  0x9e   :  { %v72_v22 = vmul.f32 %v193_v21, %v70_v20  ;;  %vm77_vm2 = vweird.f32 %v193_v21 }
  0x9f   :  { %vm78_vm4 = vmor %vm76_vm3, %vm77_vm2 }
  0xa0   :  { %v73_v23 = vsub.f32 1.0, %v72_v22 }
  0xa2   :  { %v74_v25 = vmul.f32 %v193_v21, %v73_v23 }
  0xa4   :  { %v75_v28 = vadd.f32 %v193_v21, %v74_v25 }
  0xa6   :  { %v79_v30 = vsel %vm78_vm4, %v193_v21, %v75_v28 }
  0xa7   :  { %v84_v32 = vsel %vm81_vm5, %v83_v29, %v79_v30 }
  0xa8   :  { %v85_v33 = vmul.f32 %v84_v32, %v65_v31 }
  0xaa   :  { %v86_v34 = vmul.f32 %v85_v33, %v54_v6 }
  0xac   :  { %185 = vmatmul.msk.f32.vlgmr.msra.gmra.mxu1 %vm95_vm6, %v86_v34 }
 0x129   :  { %v116_v36 = vpop.f32.mrf.mxu1 }
 0x12a   :  { %v117_v38 = vadd.f32 %v188_v35, %v116_v36 }
 0x12c   :  { %v119_v39 = vand.u32 2147483647, %v117_v38  ;;  %vm124_vm7 = vcmp.ge.f32.partialorder %v117_v38, 0.0 }
 0x12e   :  { %v120_v40 = vsub.f32 0.0, %v119_v39 }
 0x130   :  { %v121_v41 = vmul.f32 1.442695, %v120_v40 }
 0x132   :  { %194 = vpow2.f32 %v121_v41 }
 0x138   :  { %v195_v42 = vpop.eup %194 }
 0x139   :  { %v123_v43 = vmul.f32 %v195_v42, %v195_v42  ;;  %v125_v44 = vmul.f32 2.0, %v195_v42 }
 0x13b   :  { %v126_v45 = vadd.f32 1.0, %v125_v44  ;;  %v129_v46 = vmul.f32 2.0, %v123_v43  ;;  %v131_v47 = vadd.f32 2.0, %v125_v44  ;;  %v127_v57 = vadd.f32 %v125_v44, %v123_v43 }
 0x13d   :  { %v130_v48 = vadd.f32 %v129_v46, %v126_v45  ;;  %v132_v49 = vadd.f32 %v131_v47, %v123_v43  ;;  %v128_v61 = vsel %vm124_vm7, %v126_v45, %v127_v57 }
 0x13f   :  { %v133_v50 = vsel %vm124_vm7, %v130_v48, %v132_v49 }
 0x140   :  { %196 = vrcp.f32 %v133_v50  ;;  %v145_v54 = vand.u32 2147483648, %v133_v50  ;;  %v143_v56 = vand.u32 2147483647, %v133_v50  ;;  %vm139_vm9 = vweird.f32 %v133_v50 }
 0x142   :  { %v146_v59 = vor.u32 1.1754944e-38, %v145_v54  ;;  %vm144_vm11 = vcmp.eq.f32.partialorder %v143_v56, 8.507059e+37 }
 0x146   :  { %v197_v51 = vpop.eup %196 }
 0x147   :  { %v135_v52 = vmul.f32 %v197_v51, %v133_v50  ;;  %vm140_vm8 = vweird.f32 %v197_v51 }
 0x148   :  { %vm141_vm10 = vmor %vm139_vm9, %vm140_vm8 }
 0x149   :  { %v136_v53 = vsub.f32 1.0, %v135_v52 }
 0x14b   :  { %v137_v55 = vmul.f32 %v197_v51, %v136_v53 }
 0x14d   :  { %v138_v58 = vadd.f32 %v197_v51, %v137_v55 }
 0x14f   :  { %v142_v60 = vsel %vm141_vm10, %v197_v51, %v138_v58 }
 0x150   :  { %v147_v62 = vsel %vm144_vm11, %v146_v59, %v142_v60 }
 0x151   :  { %v148_v63 = vmul.f32 %v147_v62, %v128_v61 }
 0x153   :  { %v149_v0 = vmul.f32 %v148_v63, %v117_v38 }
 0x155   :  { %186 = vmatmul.msk.f32.vlgmr.msra.gmra.mxu2 %vm32_vm0, %v149_v0 }
 0x1d8   :  { %v175_v2 = vpop.f32.mrf.mxu2 }
 0x1d9   :  { %v176_v3 = vadd.f32 %v189_v1, %v175_v2 }
 0x1db   :  { %179 = vst.msk [vmem:[%s284_s7] sm:$0x3] %vm178_vm12, %v176_v3 }

// kernel: unet_forward.15
= control target key start
LH: loop header
LB: loop body
LE: loop exit
PB: predicated region body
PF: predicated region fallthrough
CT: control target
= control target key end

     0   :  { %s1036_s27 = smov 0   ;;  %s1366_s0 = inlined_call_operand.vmem [shape: bf16[8,512], index: 0, kind: input, shape index: {}]   ;;  %s1367_s1 = inlined_call_operand.vmem [shape: f32[8,2], index: 1, kind: input, shape index: {}]   ;;  %s1368_s2 = inlined_call_operand.vmem [shape: bf16[8,72], index: 2, kind: input, shape index: {}]   ;;  %s1369_s3 = inlined_call_operand.vmem [shape: f32[8,1], index: 3, kind: input, shape index: {}]   ;;  %s1370_s4 = inlined_call_operand.vmem [shape: bf16[8,72], index: 4, kind: input, shape index: {}]   ;;  %s1371_s5 = inlined_call_operand.vmem [shape: f32[8,1], index: 5, kind: input, shape index: {}]   ;;  %s1372_s6 = inlined_call_operand.vmem [shape: bf16[8,8], index: 6, kind: input, shape index: {}]   ;;  %s1373_s7 = inlined_call_operand.vmem [shape: f32[8,1], index: 7, kind: input, shape index: {}]   ;;  %s1374_s8 = inlined_call_operand.vmem [shape: bf16[8,512], index: 8, kind: output, shape index: {}]  }
   0x1 LB: > { %s847_s28 = sadd.s32 4294967295, %s983_s27   ;;  %p851_p0 = scmp.ge.s32.totalorder %s983_s27, 1  ;;  %s983_s27 = sphi %s1036_s27, %s18_s27  }
   0x2   : > { %p263_p1 = scmp.lt.s32.totalorder %s983_s27, 3 }
   0x4   : > { %p264_p2 = pnand %p851_p0, %p263_p1 }
   0x5   : > { %s852_s29 = sshll.u32 (!%p264_p2), %s847_s28, 1  ;;  %s985_s12 = smov (!%p264_p2), 16  }
   0x6   : > { %267 = sbr.rel (%p264_p2) target bundleno = 914 (0x392), region = 52  ;;  %p298_p3 = scmp.lt.s32.totalorder (!%p264_p2), %s852_s29, 3 }
   0x7   : > { %s986_s13 = smov (!%p264_p2), 112   ;;  %s987_s14 = smov (!%p264_p2), 1  }
   0x8   : > { %s988_s15 = smov (!%p264_p2), 127  }
   0xb   : > { %s1425_s29 = smov (!%p298_p3, %s852_s29), 3  ;;  %v314_v4 = vlaneseq  ;;  %v423_v27 = vld [vmem:[%s1369_s3] sm:$0xff]  ;;  %v989_v31 = vmov 0   ;;  %v990_v32 = vmov 1   ;;  %vm1380_vm9 = vcmask 1043456  }
   0xc   : > { %s853_s30 = sshll.u32 %s1425_s29, 2  ;;  %v535_v28 = vld [vmem:[%s1367_s1] sm:$0xff]  ;;  %918 = vset.pattern.permute.xlu2 %v989_v31  ;;  %919 = vset.pattern.permute.xlu0 %v989_v31  ;;  %v1395_v52 = vmov 0  ;;  %vm1375_vm11 = vcmask 588800  }
   0xd   : > { %s301_s11 = scalar_lea.vmem %s1366_s0, %s853_s30  ;;  %v1064_v5 = vand.u32 127, %v314_v4  ;;  %920 = vset.pattern.permute.xlu1 %v990_v32  ;;  %v311_v32 = vld [vmem:[%s1368_s2] sm:$0xf] }
   0xe   : > { %v1054_v0 = vld [vmem:[%s301_s11] sm:$0xff] }
   0xf   : > { %v312_v1 = vunpack.c.l.bf16 %v1054_v0  ;;  %v313_v2 = vunpack.c.h.bf16 %v1054_v0  ;;  %v1067_v7 = vadd.s32 128, %v1064_v5  ;;  %v317_v8 = vand.u32 255, %v1064_v5  ;;  %v740_v15 = vld [vmem:[%s1373_s7] sm:$0xff] }
  0x10   : > { %vm1379_vm0 = vcmp.lt.s32.totalorder %v1064_v5, 16  ;;  %vm1378_vm1 = vcmp.lt.s32.totalorder %v1064_v5, 112  ;;  %v319_v29 = vand.u32 15, %v1064_v5  ;;  %vm1377_vm4 = vcmp.lt.s32.totalorder %v1064_v5, 1  ;;  %v636_v16 = vld [vmem:[%s1371_s5] sm:$0xff] }
  0x11   : > { %v878_v3 = vpack.i.bf16 %v313_v2, %v312_v1  ;;  %v318_v9 = vand.u32 255, %v1067_v7  ;;  %vm1074_vm2 = vcmp.lt.s32.totalorder %v317_v8, 16  ;;  %v320_v30 = vand.u32 15, %v1067_v7 }
  0x12   : > { %vm1376_vm5 = vcmp.lt.s32.totalorder %v1064_v5, 127  ;;  %vm1123_vm6 = vcmp.eq.s32.totalorder %v319_v29, 15  ;;  %vm1131_vm8 = vcmp.eq.s32.totalorder %v319_v29, 0 }
  0x13   : > { %879 = vrot.lane.b32.xlu0 %v878_v3, %s985_s12  ;;  %899 = vrot.lane.b32.xlu2 %v878_v3, %s987_s14  ;;  %vm1078_vm3 = vcmp.ge.s32.totalorder %v318_v9, 240  ;;  %vm1127_vm7 = vcmp.eq.s32.totalorder %v320_v30, 15  ;;  %vm1147_vm10 = vcmp.eq.s32.totalorder %v320_v30, 0 }
  0x14   : > { %v1396_v52 = vsel %vm1147_vm10, 4294967295, %v1395_v52 }
  0x1b   : > { %884 = vrot.lane.b32.xlu0 %v878_v3, %s986_s13  ;;  %904 = vrot.lane.b32.xlu2 %v878_v3, %s988_s15 }
  0x23   : > { %426 = vperm.xlu2 %918, %v423_v27  }
  0x6d   : > { %v900_v25 = vpop.permute.xlu2 %899 }
  0x6e   : > { %v902_v36 = vunpack.i.h.bf16 %v900_v25  ;;  %v901_v42 = vunpack.i.l.bf16 %v900_v25 }
  0x70   : > { %v386_v55 = vsel %vm1377_vm4, %v902_v36, %v901_v42  ;;  %v385_v63 = vsel %vm1377_vm4, %v901_v42, %v902_v36 }
  0x75   : > { %v905_v35 = vpop.permute.xlu2 %904 }
  0x76   : > { %v907_v43 = vunpack.i.h.bf16 %v905_v35  ;;  %v906_v44 = vunpack.i.l.bf16 %v905_v35 }
  0x78   : > { %v391_v62 = vsel %vm1376_vm5, %v906_v44, %v907_v43  ;;  %v392_v3 = vsel %vm1376_vm5, %v907_v43, %v906_v44 }
  0x85   : > { %v880_v6 = vpop.permute.xlu0 %879 }
  0x86   : > { %v882_v10 = vunpack.i.h.bf16 %v880_v6  ;;  %v881_v11 = vunpack.i.l.bf16 %v880_v6 }
  0x88   : > { %v1085_v17 = vsel %vm1379_vm0, %v881_v11, %v882_v10  ;;  %v335_v18 = vsel %vm1379_vm0, %v882_v10, %v881_v11 }
  0x8d   : > { %v885_v12 = vpop.permute.xlu0 %884 }
  0x8e   : > { %v887_v13 = vunpack.i.h.bf16 %v885_v12  ;;  %v886_v14 = vunpack.i.l.bf16 %v885_v12  ;;  %v395_v12 = vsel %vm1123_vm6, %v386_v55, %v391_v62 }
  0x90   : > { %v1091_v19 = vsel %vm1378_vm1, %v886_v14, %v887_v13  ;;  %v342_v20 = vsel %vm1378_vm1, %v887_v13, %v886_v14  ;;  %v396_v13 = vsel %vm1127_vm7, %v385_v63, %v392_v3 }
  0x91   : > { %v1098_v21 = vsel %vm1074_vm2, %v1091_v19, %v335_v18  ;;  %v1103_v22 = vsel %vm1078_vm3, %v1085_v17, %v342_v20  ;;  %v417_v20 = vpack.c.bf16 %v395_v12, %v312_v1  ;;  %v393_v1 = vsel %vm1131_vm8, %v391_v62, %v386_v55 }
  0x92   : > { %v908_v23 = vpack.i.bf16 %v1085_v17, %v1098_v21  ;;  %v888_v24 = vpack.i.bf16 %v1103_v22, %v1091_v19 }
  0x94   : > { %909 = vrot.lane.b32.xlu0 %v908_v23, %s987_s14  ;;  %889 = vrot.lane.b32.xlu1 %v888_v24, %s987_s14 }
  0x9c   : > { %894 = vrot.lane.b32.xlu1 %v888_v24, %s988_s15  ;;  %542 = vperm.xlu0 %919, %v535_v28  }
  0xa4   : > { %914 = vrot.lane.b32.xlu1 %v908_v23, %s988_s15 }
  0xac   : > { %554 = vperm.xlu1 %920, %v535_v28  }
 0x106   : > { %v890_v26 = vpop.permute.xlu1 %889  ;;  %v910_v56 = vpop.permute.xlu0 %909 }
 0x107   : > { %v892_v33 = vunpack.i.h.bf16 %v890_v26  ;;  %v891_v34 = vunpack.i.l.bf16 %v890_v26  ;;  %v912_v8 = vunpack.i.h.bf16 %v910_v56  ;;  %v911_v9 = vunpack.i.l.bf16 %v910_v56 }
 0x109   : > { %v402_v46 = vsel %vm1377_vm4, %v892_v33, %v891_v34  ;;  %v401_v48 = vsel %vm1377_vm4, %v891_v34, %v892_v33  ;;  %v360_v23 = vsel %vm1377_vm4, %v911_v9, %v912_v8  ;;  %v427_v33 = vpop.permute.xlu2 %426 }
 0x10e   : > { %v895_v37 = vpop.permute.xlu1 %894 }
 0x10f   : > { %v897_v38 = vunpack.i.h.bf16 %v895_v37  ;;  %v896_v39 = vunpack.i.l.bf16 %v895_v37 }
 0x111   : > { %v407_v47 = vsel %vm1376_vm5, %v896_v39, %v897_v38  ;;  %v408_v49 = vsel %vm1376_vm5, %v897_v38, %v896_v39 }
 0x112   : > { %v411_v50 = vsel %vm1123_vm6, %v402_v46, %v407_v47  ;;  %v412_v51 = vsel %vm1127_vm7, %v401_v48, %v408_v49  ;;  %v409_v59 = vsel %vm1131_vm8, %v407_v47, %v402_v46  ;;  %v410_v60 = vsel %vm1147_vm10, %v408_v49, %v401_v48 }
 0x113   : > { %v421_v53 = vpack.c.bf16 %v411_v50, %v411_v50  ;;  %v422_v54 = vpack.c.bf16 %v412_v51, %v412_v51  ;;  %v419_v10 = vpack.c.bf16 %v1091_v19, %v409_v59  ;;  %v420_v11 = vpack.c.bf16 %v1103_v22, %v410_v60 }
 0x114   : > { %v418_v19 = vpack.c.bf16 %v396_v13, %v313_v2  ;;  %v361_v22 = vsel %vm1377_vm4, %v912_v8, %v911_v9  ;;  %v394_v2 = vsel %vm1147_vm10, %v392_v3, %v385_v63  ;;  %v529_v8 = vshra.s32 %v1067_v7, 8 }
 0x115   : > { %v435_v57 = vsel %vm1380_vm9, %v421_v53, 0  ;;  %v438_v58 = vsel %vm1380_vm9, %v422_v54, 0  ;;  %v530_v9 = vstv %s847_s28 }
 0x116   : > { %v915_v61 = vpop.permute.xlu1 %914  ;;  %443 = vmatpush.bf16.msra.mxu0 %v435_v57  ;;  %456 = vmatpush.bf16.msra.mxu1 %v438_v58  ;;  %v532_v12 = vadd.s32 %v530_v9, %v529_v8 }
 0x117   : > { %v917_v4 = vunpack.i.h.bf16 %v915_v61  ;;  %v916_v6 = vunpack.i.l.bf16 %v915_v61 }
 0x118   : > { %vm534_vm15 = vcmp.eq.s32.totalorder %v532_v12, 0 }
 0x119   : > { %v367_v14 = vsel %vm1376_vm5, %v916_v6, %v917_v4  ;;  %v368_v18 = vsel %vm1376_vm5, %v917_v4, %v916_v6  ;;  %v528_v6 = vshra.s32 %v1064_v5, 8 }
 0x11a   : > { %444 = vmatpush.bf16.msra.mxu0 %v419_v10  ;;  %457 = vmatpush.bf16.msra.mxu1 %v420_v11  ;;  %v379_v24 = vsel %vm1123_vm6, %v361_v22, %v367_v14  ;;  %v380_v25 = vsel %vm1127_vm7, %v360_v23, %v368_v18  ;;  %v373_v28 = vsel %vm1131_vm8, %v367_v14, %v361_v22 }
 0x11b   : > { %v415_v26 = vpack.c.bf16 %v393_v1, %v379_v24  ;;  %v416_v27 = vpack.c.bf16 %v394_v2, %v380_v25  ;;  %v374_v29 = vsel %vm1147_vm10, %v368_v18, %v360_v23  ;;  %v413_v30 = vpack.c.bf16 %v1098_v21, %v373_v28  ;;  %v543_v24 = vpop.permute.xlu0 %542 }
 0x11c   : > { %v414_v31 = vpack.c.bf16 %v1085_v17, %v374_v29  ;;  %v531_v10 = vadd.s32 %v530_v9, %v528_v6 }
 0x11e   : > { %445 = vmatpush.bf16.msra.mxu0 %v417_v20  ;;  %458 = vmatpush.bf16.msra.mxu1 %v418_v19  ;;  %vm533_vm14 = vcmp.eq.s32.totalorder %v531_v10, 0 }
 0x11f   : > { %v545_v29 = vsel %vm533_vm14, %v543_v24, 0.0 }
 0x122   : > { %446 = vmatpush.bf16.msra.mxu0 %v415_v26  ;;  %459 = vmatpush.bf16.msra.mxu1 %v416_v27 }
 0x126   : > { %447 = vmatpush.bf16.msra.mxu0 %v413_v30  ;;  %460 = vmatpush.bf16.msra.mxu1 %v414_v31 }
 0x129   : > { %856 = vmatmul.msk.bf16.vlgmr.msra.gmra.mxu0 %vm1375_vm11, %v311_v32  ;;  %857 = vmatmul.msk.bf16.vlgmr.msra.gmra.mxu1 %vm1375_vm11, %v311_v32  ;;  %v546_v32 = vsel %vm534_vm15, %v543_v24, 0.0 }
 0x1a6   : > { %v449_v34 = vpop.f32.mrf.mxu0  ;;  %v462_v35 = vpop.f32.mrf.mxu1 }
 0x1a7   : > { %v1202_v36 = vadd.f32 %v449_v34, %v427_v33  ;;  %v1204_v37 = vadd.f32 %v462_v35, %v427_v33  ;;  %v555_v33 = vpop.permute.xlu1 %554 }
 0x1a9   : > { %v466_v17 = vand.u32 2147483647, %v1202_v36  ;;  %v467_v21 = vand.u32 2147483647, %v1204_v37  ;;  %vm1382_vm12 = vcmp.ge.f32.partialorder %v1202_v36, 0.0  ;;  %vm1381_vm13 = vcmp.ge.f32.partialorder %v1204_v37, 0.0 }
 0x1aa   : > { %vm1397_vm10 = vcmp.ge.f32.partialorder %v1202_v36, 0.0  ;;  %vm1398_vm14 = vcmp.ge.f32.partialorder %v1204_v37, 0.0 }
 0x1ab   : > { %v468_v38 = vsub.f32 0.0, %v466_v17  ;;  %v469_v39 = vsub.f32 0.0, %v467_v21 }
 0x1ad   : > { %v470_v42 = vmul.f32 1.442695, %v468_v38  ;;  %v472_v43 = vmul.f32 1.442695, %v469_v39 }
 0x1ae   : > { %v451_v44 = vpop.f32.mrf.mxu0  ;;  %v464_v46 = vpop.f32.mrf.mxu1 }
 0x1af   : > { %961 = vpow2.f32 %v470_v42 }
 0x1b0   : > { %963 = vpow2.f32 %v472_v43 }
 0x1b5   : > { %v962_v47 = vpop.eup %961 }
 0x1b6   : > { %v964_v48 = vpop.eup %963  ;;  %v474_v49 = vmul.f32 %v962_v47, %v962_v47  ;;  %v478_v50 = vmul.f32 2.0, %v962_v47 }
 0x1b7   : > { %v475_v51 = vmul.f32 %v964_v48, %v964_v48  ;;  %v479_v53 = vmul.f32 2.0, %v964_v48 }
 0x1b8   : > { %v480_v54 = vadd.f32 1.0, %v478_v50  ;;  %v486_v55 = vmul.f32 2.0, %v474_v49  ;;  %v490_v56 = vadd.f32 2.0, %v478_v50  ;;  %v482_v7 = vadd.f32 %v478_v50, %v474_v49 }
 0x1b9   : > { %v481_v57 = vadd.f32 1.0, %v479_v53  ;;  %v487_v58 = vmul.f32 2.0, %v475_v51  ;;  %v491_v59 = vadd.f32 2.0, %v479_v53  ;;  %v483_v27 = vadd.f32 %v479_v53, %v475_v51 }
 0x1ba   : > { %v488_v60 = vadd.f32 %v486_v55, %v480_v54  ;;  %v492_v61 = vadd.f32 %v490_v56, %v474_v49  ;;  %v484_v17 = vsel %vm1397_vm10, %v480_v54, %v482_v7  ;;  %v747_v54 = vunpack.c.l.b16 %v1054_v0 }
 0x1bb   : > { %v489_v62 = vadd.f32 %v487_v58, %v481_v57  ;;  %v493_v63 = vadd.f32 %v491_v59, %v475_v51  ;;  %v485_v39 = vsel %vm1398_vm14, %v481_v57, %v483_v27  ;;  %v739_v58 = vld [vmem:[%s1372_s6] sm:$0xf]  ;;  %vm1403_vm10 = vcmp.lt.s32.totalorder %v1064_v5, 16 }
 0x1bc   : > { %v494_v3 = vsel %vm1382_vm12, %v488_v60, %v492_v61  ;;  %v749_v55 = vpack.c.b16 %v747_v54, %v747_v54 }
 0x1bd   : > { %965 = vrcp.f32 %v494_v3  ;;  %v495_v4 = vsel %vm1381_vm13, %v489_v62, %v493_v63  ;;  %v507_v22 = vand.u32 2147483648, %v494_v3  ;;  %v505_v25 = vand.u32 2147483647, %v494_v3 }
 0x1be   : > { %967 = vrcp.f32 %v495_v4  ;;  %v522_v1 = vand.u32 2147483648, %v495_v4  ;;  %v520_v26 = vand.u32 2147483647, %v495_v4  ;;  %vm501_vm0 = vweird.f32 %v494_v3 }
 0x1bf   : > { %v508_v30 = vor.u32 1.1754944e-38, %v507_v22  ;;  %vm516_vm11 = vweird.f32 %v495_v4  ;;  %vm506_vm13 = vcmp.eq.f32.partialorder %v505_v25, 8.507059e+37 }
 0x1c0   : > { %v523_v35 = vor.u32 1.1754944e-38, %v522_v1  ;;  %vm521_vm1 = vcmp.eq.f32.partialorder %v520_v26, 8.507059e+37 }
 0x1c3   : > { %v966_v11 = vpop.eup %965 }
 0x1c4   : > { %v968_v13 = vpop.eup %967  ;;  %v497_v14 = vmul.f32 %v966_v11, %v494_v3  ;;  %vm502_vm5 = vweird.f32 %v966_v11 }
 0x1c5   : > { %v512_v18 = vmul.f32 %v968_v13, %v495_v4  ;;  %vm517_vm4 = vweird.f32 %v968_v13  ;;  %vm503_vm9 = vmor %vm501_vm0, %vm502_vm5  ;;  %vm1399_vm0 = vcmp.eq.s32.totalorder %v531_v10, 1  ;;  %vm1400_vm5 = vcmp.eq.s32.totalorder %v532_v12, 1 }
 0x1c6   : > { %v498_v20 = vsub.f32 1.0, %v497_v14  ;;  %vm518_vm12 = vmor %vm516_vm11, %vm517_vm4  ;;  %v557_v46 = vsel %vm1399_vm0, %v555_v33, %v545_v29  ;;  %v558_v48 = vsel %vm1400_vm5, %v555_v33, %v546_v32 }
 0x1c7   : > { %v513_v19 = vsub.f32 1.0, %v512_v18  ;;  %vm1404_vm11 = vmmov %vm1403_vm10 }
 0x1c8   : > { %v499_v23 = vmul.f32 %v966_v11, %v498_v20 }
 0x1c9   : > { %v514_v2 = vmul.f32 %v968_v13, %v513_v19 }
 0x1ca   : > { %v500_v28 = vadd.f32 %v966_v11, %v499_v23 }
 0x1cb   : > { %v515_v31 = vadd.f32 %v968_v13, %v514_v2 }
 0x1cc   : > { %v504_v34 = vsel %vm503_vm9, %v966_v11, %v500_v28  ;;  %vm751_vm9 = vcmask 64512  }
 0x1cd   : > { %v509_v21 = vsel %vm506_vm13, %v508_v30, %v504_v34  ;;  %v519_v38 = vsel %vm518_vm12, %v968_v13, %v515_v31  ;;  %vm1405_vm12 = vcmp.lt.s32.totalorder %v1064_v5, 112 }
 0x1ce   : > { %v510_v42 = vmul.f32 %v509_v21, %v484_v17  ;;  %v524_v43 = vsel %vm521_vm1, %v523_v35, %v519_v38  ;;  %vm1401_vm1 = vcmask 1043456   ;;  %vm1406_vm13 = vmmov %vm1405_vm12 }
 0x1cf   : > { %v525_v44 = vmul.f32 %v524_v43, %v485_v39  ;;  %vm1402_vm4 = vmmov %vm1401_vm1 }
 0x1d0   : > { %v526_v47 = vmul.f32 %v510_v42, %v1202_v36  ;;  %v748_v36 = vunpack.c.h.b16 %v1054_v0  ;;  %vm1411_vm0 = vmmov %vm1401_vm1 }
 0x1d1   : > { %v527_v49 = vmul.f32 %v525_v44, %v1204_v37  ;;  %v756_v37 = vsel %vm1401_vm1, %v749_v55, 0  ;;  %vm1412_vm5 = vmmov %vm1411_vm0  ;;  %vm1413_vm1 = vnez %v1396_v52 }
 0x1d2   : > { %v1229_v50 = vadd.f32 %v557_v46, %v526_v47  ;;  %v750_v56 = vpack.c.b16 %v748_v36, %v748_v36  ;;  %768 = vmatpush.bf16.msrb.mxu0 %v756_v37 }
 0x1d3   : > { %v1231_v51 = vadd.f32 %v558_v48, %v527_v49 }
 0x1d4   : > { %v759_v57 = vsel %vm1402_vm4, %v750_v56, 0 }
 0x1d5   : > { %v926_v53 = vpack.i.bf16 %v1231_v51, %v1229_v50  ;;  %781 = vmatpush.bf16.msrb.mxu1 %v759_v57  ;;  %860 = vmatmul.msk.bf16.vlgmr.msrb.gmra.mxu0 %vm751_vm9, %v739_v58 }
 0x1d7   : > { %927 = vrot.lane.b32.xlu1 %v926_v53, %s986_s13  ;;  %922 = vrot.lane.b32.xlu2 %v926_v53, %s985_s12  ;;  %s307_s13 = scalar_lea.vmem %s1374_s8, %s853_s30 }
 0x1d8   : > { %861 = vmatmul.msk.bf16.vlgmr.msrb.gmra.mxu1 %vm751_vm9, %v739_v58 }
 0x1df   : > { %942 = vrot.lane.b32.xlu1 %v926_v53, %s987_s14 }
 0x231   : > { %v923_v59 = vpop.permute.xlu2 %922 }
 0x232   : > { %v925_v60 = vunpack.i.h.bf16 %v923_v59  ;;  %v924_v61 = vunpack.i.l.bf16 %v923_v59 }
 0x234   : > { %v1247_v3 = vsel %vm1403_vm10, %v924_v61, %v925_v60  ;;  %v567_v4 = vsel %vm1404_vm11, %v925_v60, %v924_v61 }
 0x249   : > { %v928_v62 = vpop.permute.xlu1 %927 }
 0x24a   : > { %v930_v0 = vunpack.i.h.bf16 %v928_v62  ;;  %v929_v63 = vunpack.i.l.bf16 %v928_v62 }
 0x24c   : > { %v572_v6 = vsel %vm1405_vm12, %v929_v63, %v930_v0  ;;  %v573_v8 = vsel %vm1406_vm13, %v930_v0, %v929_v63 }
 0x24d   : > { %v1257_v9 = vsel %vm1074_vm2, %v572_v6, %v567_v4  ;;  %v577_v10 = vsel %vm1078_vm3, %v1247_v3, %v573_v8  ;;  %vm1407_vm2 = vcmp.lt.s32.totalorder %v1064_v5, 1  ;;  %vm1408_vm3 = vcmp.lt.s32.totalorder %v1064_v5, 127 }
 0x24e   : > { %v956_v11 = vpack.i.bf16 %v1247_v3, %v1257_v9  ;;  %v936_v12 = vpack.i.bf16 %v577_v10, %v572_v6  ;;  %vm1409_vm15 = vmmov %vm1407_vm2 }
 0x24f   : > { %vm1410_vm14 = vmmov %vm1408_vm3 }
 0x250   : > { %957 = vrot.lane.b32.xlu1 %v956_v11, %s988_s15  ;;  %937 = vrot.lane.b32.xlu0 %v936_v12, %s988_s15  ;;  %vm1414_vm4 = vmmov %vm1408_vm3 }
 0x251   : > { %932 = vrot.lane.b32.xlu2 %v936_v12, %s987_s14  ;;  %v943_v22 = vpop.permute.xlu1 %942  ;;  %vm1415_vm9 = vmmov %vm1408_vm3 }
 0x252   : > { %v1275_v13 = vpop.f32.mrf.mxu0  ;;  %v945_v34 = vunpack.i.h.bf16 %v943_v22  ;;  %v944_v35 = vunpack.i.l.bf16 %v943_v22  ;;  %vm1416_vm10 = vmmov %vm1407_vm2 }
 0x253   : > { %vm1417_vm11 = vmmov %vm1407_vm2 }
 0x254   : > { %v599_v54 = vsel %vm1416_vm10, %v945_v34, %v944_v35  ;;  %v598_v36 = vsel %vm1417_vm11, %v944_v35, %v945_v34  ;;  %vm1418_vm12 = vmmov %vm1407_vm2 }
 0x255   : > { %v1277_v14 = vpop.f32.mrf.mxu1  ;;  %vm1419_vm13 = vmmov %vm1407_vm2 }
 0x258   : > { %952 = vrot.lane.b32.xlu0 %v956_v11, %s987_s14 }
 0x259   : > { %947 = vrot.lane.b32.xlu2 %v926_v53, %s988_s15 }
 0x25a   : > { %v772_v20 = vpop.f32.mrf.mxu0 }
 0x25d   : > { %v785_v19 = vpop.f32.mrf.mxu1 }
 0x260   : > { %743 = vperm.xlu0 %919, %v740_v15   ;;  %v561_v15 = vld [vmem:[%s1370_s4] sm:$0xf] }
 0x261   : > { %639 = vperm.xlu2 %918, %v636_v16  }
 0x2ab   : > { %v933_v18 = vpop.permute.xlu2 %932 }
 0x2ac   : > { %v935_v23 = vunpack.i.h.bf16 %v933_v18  ;;  %v934_v24 = vunpack.i.l.bf16 %v933_v18 }
 0x2ae   : > { %v615_v26 = vsel %vm1407_vm2, %v935_v23, %v934_v24  ;;  %v614_v28 = vsel %vm1409_vm15, %v934_v24, %v935_v23  ;;  %vm1420_vm2 = vmmov %vm1408_vm3 }
 0x2b3   : > { %v948_v1 = vpop.permute.xlu2 %947 }
 0x2b4   : > { %v950_v30 = vunpack.i.h.bf16 %v948_v1  ;;  %v949_v31 = vunpack.i.l.bf16 %v948_v1 }
 0x2b6   : > { %v604_v47 = vsel %vm1414_vm4, %v949_v31, %v950_v30  ;;  %v605_v48 = vsel %vm1415_vm9, %v950_v30, %v949_v31 }
 0x2b7   : > { %v608_v58 = vsel %vm1123_vm6, %v599_v54, %v604_v47  ;;  %v609_v59 = vsel %vm1127_vm7, %v598_v36, %v605_v48 }
 0x2b8   : > { %v630_v62 = vpack.c.bf16 %v608_v58, %v1229_v50  ;;  %v631_v0 = vpack.c.bf16 %v609_v59, %v1231_v51  ;;  %v607_v50 = vsel %vm1413_vm1, %v605_v48, %v598_v36 }
 0x2bb   : > { %v640_v45 = vpop.permute.xlu2 %639 }
 0x2c2   : > { %v938_v25 = vpop.permute.xlu0 %937  ;;  %v958_v38 = vpop.permute.xlu1 %957 }
 0x2c3   : > { %v940_v7 = vunpack.i.h.bf16 %v938_v25  ;;  %v939_v2 = vunpack.i.l.bf16 %v938_v25  ;;  %v960_v55 = vunpack.i.h.bf16 %v958_v38  ;;  %v959_v56 = vunpack.i.l.bf16 %v958_v38 }
 0x2c5   : > { %v620_v27 = vsel %vm1408_vm3, %v939_v2, %v940_v7  ;;  %v621_v29 = vsel %vm1410_vm14, %v940_v7, %v939_v2  ;;  %v588_v63 = vsel %vm1420_vm2, %v959_v56, %v960_v55  ;;  %vm1421_vm3 = vmmov %vm1420_vm2 }
 0x2c6   : > { %v624_v32 = vsel %vm1123_vm6, %v615_v26, %v620_v27  ;;  %v625_v33 = vsel %vm1127_vm7, %v614_v28, %v621_v29  ;;  %v622_v43 = vsel %vm1131_vm8, %v620_v27, %v615_v26  ;;  %v623_v44 = vsel %vm1413_vm1, %v621_v29, %v614_v28 }
 0x2c7   : > { %v634_v17 = vpack.c.bf16 %v624_v32, %v624_v32  ;;  %v635_v21 = vpack.c.bf16 %v625_v33, %v625_v33  ;;  %v632_v37 = vpack.c.bf16 %v572_v6, %v622_v43  ;;  %v633_v57 = vpack.c.bf16 %v577_v10, %v623_v44 }
 0x2c8   : > { %v589_v4 = vsel %vm1421_vm3, %v960_v55, %v959_v56  ;;  %v606_v10 = vsel %vm1131_vm8, %v604_v47, %v599_v54 }
 0x2c9   : > { %v646_v39 = vsel %vm1411_vm0, %v634_v17, 0  ;;  %v649_v42 = vsel %vm1412_vm5, %v635_v21, 0 }
 0x2ca   : > { %v953_v46 = vpop.permute.xlu0 %952  ;;  %654 = vmatpush.bf16.msra.mxu2 %v646_v39  ;;  %667 = vmatpush.bf16.msra.mxu3 %v649_v42 }
 0x2cb   : > { %v955_v49 = vunpack.i.h.bf16 %v953_v46  ;;  %v954_v53 = vunpack.i.l.bf16 %v953_v46 }
 0x2cd   : > { %v583_v60 = vsel %vm1418_vm12, %v955_v49, %v954_v53  ;;  %v582_v61 = vsel %vm1419_vm13, %v954_v53, %v955_v49 }
 0x2ce   : > { %655 = vmatpush.bf16.msra.mxu2 %v632_v37  ;;  %668 = vmatpush.bf16.msra.mxu3 %v633_v57  ;;  %v592_v6 = vsel %vm1123_vm6, %v583_v60, %v588_v63  ;;  %v593_v8 = vsel %vm1127_vm7, %v582_v61, %v589_v4  ;;  %v590_v5 = vsel %vm1131_vm8, %v588_v63, %v583_v60  ;;  %vm1422_vm6 = vcmask 588800  }
 0x2cf   : > { %v628_v51 = vpack.c.bf16 %v606_v10, %v592_v6  ;;  %v629_v11 = vpack.c.bf16 %v607_v50, %v593_v8  ;;  %v591_v40 = vsel %vm1413_vm1, %v589_v4, %v582_v61  ;;  %v626_v41 = vpack.c.bf16 %v1257_v9, %v590_v5  ;;  %vm1423_vm7 = vmmov %vm1422_vm6 }
 0x2d0   : > { %v627_v12 = vpack.c.bf16 %v1247_v3, %v591_v40 }
 0x2d2   : > { %656 = vmatpush.bf16.msra.mxu2 %v630_v62  ;;  %669 = vmatpush.bf16.msra.mxu3 %v631_v0  ;;  %v744_v63 = vpop.permute.xlu0 %743 }
 0x2d3   : > { %v771_v5 = vadd.f32 %v1275_v13, %v744_v63 }
 0x2d6   : > { %657 = vmatpush.bf16.msra.mxu2 %v628_v51  ;;  %670 = vmatpush.bf16.msra.mxu3 %v629_v11 }
 0x2da   : > { %658 = vmatpush.bf16.msra.mxu2 %v626_v41  ;;  %671 = vmatpush.bf16.msra.mxu3 %v627_v12  ;;  %v784_v12 = vadd.f32 %v1277_v14, %v744_v63 }
 0x2dd   : > { %858 = vmatmul.msk.bf16.vlgmr.msra.gmra.mxu2 %vm1422_vm6, %v561_v15  ;;  %859 = vmatmul.msk.bf16.vlgmr.msra.gmra.mxu3 %vm1423_vm7, %v561_v15 }
 0x360   : > { %v660_v16 = vpop.f32.mrf.mxu2  ;;  %v673_v52 = vpop.f32.mrf.mxu3 }
 0x361   : > { %v1338_v18 = vadd.f32 %v660_v16, %v640_v45  ;;  %v1340_v20 = vadd.f32 %v673_v52, %v640_v45 }
 0x363   : > { %v677_v9 = vand.u32 2147483647, %v1338_v18  ;;  %v678_v3 = vand.u32 2147483647, %v1340_v20  ;;  %vm687_vm8 = vcmp.ge.f32.partialorder %v1338_v18, 0.0  ;;  %vm688_vm15 = vcmp.ge.f32.partialorder %v1340_v20, 0.0 }
 0x365   : > { %v679_v19 = vsub.f32 0.0, %v677_v9  ;;  %v680_v22 = vsub.f32 0.0, %v678_v3 }
 0x367   : > { %v681_v23 = vmul.f32 1.442695, %v679_v19  ;;  %v683_v24 = vmul.f32 1.442695, %v680_v22 }
 0x368   : > { %v662_v25 = vpop.f32.mrf.mxu2  ;;  %v675_v1 = vpop.f32.mrf.mxu3 }
 0x369   : > { %969 = vpow2.f32 %v681_v23 }
 0x36a   : > { %971 = vpow2.f32 %v683_v24 }
 0x36f   : > { %v970_v7 = vpop.eup %969 }
 0x370   : > { %v972_v2 = vpop.eup %971  ;;  %v685_v26 = vmul.f32 %v970_v7, %v970_v7  ;;  %v689_v27 = vmul.f32 2.0, %v970_v7 }
 0x371   : > { %v686_v28 = vmul.f32 %v972_v2, %v972_v2  ;;  %v690_v29 = vmul.f32 2.0, %v972_v2 }
 0x372   : > { %v691_v30 = vadd.f32 1.0, %v689_v27  ;;  %v697_v31 = vmul.f32 2.0, %v685_v26  ;;  %v701_v32 = vadd.f32 2.0, %v689_v27  ;;  %v693_v56 = vadd.f32 %v689_v27, %v685_v26 }
 0x373   : > { %v692_v33 = vadd.f32 1.0, %v690_v29  ;;  %v698_v34 = vmul.f32 2.0, %v686_v28  ;;  %v702_v35 = vadd.f32 2.0, %v690_v29  ;;  %v694_v61 = vadd.f32 %v690_v29, %v686_v28 }
 0x374   : > { %v699_v17 = vadd.f32 %v697_v31, %v691_v30  ;;  %v703_v21 = vadd.f32 %v701_v32, %v685_v26  ;;  %v695_v4 = vsel %vm687_vm8, %v691_v30, %v693_v56 }
 0x375   : > { %v700_v38 = vadd.f32 %v698_v34, %v692_v33  ;;  %v704_v39 = vadd.f32 %v702_v35, %v686_v28  ;;  %v696_v51 = vsel %vm688_vm15, %v692_v33, %v694_v61 }
 0x376   : > { %v705_v42 = vsel %vm687_vm8, %v699_v17, %v703_v21 }
 0x377   : > { %973 = vrcp.f32 %v705_v42  ;;  %v706_v43 = vsel %vm688_vm15, %v700_v38, %v704_v39  ;;  %v718_v53 = vand.u32 2147483648, %v705_v42  ;;  %v716_v36 = vand.u32 2147483647, %v705_v42 }
 0x378   : > { %975 = vrcp.f32 %v706_v43  ;;  %vm712_vm0 = vweird.f32 %v705_v42  ;;  %v733_v37 = vand.u32 2147483648, %v706_v43  ;;  %v731_v59 = vand.u32 2147483647, %v706_v43 }
 0x379   : > { %v719_v60 = vor.u32 1.1754944e-38, %v718_v53  ;;  %vm717_vm4 = vcmp.eq.f32.partialorder %v716_v36, 8.507059e+37  ;;  %vm727_vm9 = vweird.f32 %v706_v43 }
 0x37a   : > { %v734_v8 = vor.u32 1.1754944e-38, %v733_v37  ;;  %vm732_vm11 = vcmp.eq.f32.partialorder %v731_v59, 8.507059e+37 }
 0x37d   : > { %v974_v44 = vpop.eup %973 }
 0x37e   : > { %v708_v46 = vmul.f32 %v974_v44, %v705_v42  ;;  %v976_v47 = vpop.eup %975  ;;  %vm713_vm14 = vweird.f32 %v974_v44 }
 0x37f   : > { %v723_v49 = vmul.f32 %v976_v47, %v706_v43  ;;  %vm728_vm5 = vweird.f32 %v976_v47  ;;  %vm714_vm1 = vmor %vm712_vm0, %vm713_vm14 }
 0x380   : > { %v709_v48 = vsub.f32 1.0, %v708_v46  ;;  %vm729_vm10 = vmor %vm727_vm9, %vm728_vm5 }
 0x381   : > { %v724_v55 = vsub.f32 1.0, %v723_v49 }
 0x382   : > { %v710_v54 = vmul.f32 %v974_v44, %v709_v48 }
 0x383   : > { %v725_v58 = vmul.f32 %v976_v47, %v724_v55 }
 0x384   : > { %v711_v57 = vadd.f32 %v974_v44, %v710_v54 }
 0x385   : > { %v726_v0 = vadd.f32 %v976_v47, %v725_v58 }
 0x386   : > { %v715_v62 = vsel %vm714_vm1, %v974_v44, %v711_v57 }
 0x387   : > { %v720_v6 = vsel %vm717_vm4, %v719_v60, %v715_v62  ;;  %v730_v50 = vsel %vm729_vm10, %v976_v47, %v726_v0 }
 0x388   : > { %v721_v10 = vmul.f32 %v720_v6, %v695_v4  ;;  %v735_v11 = vsel %vm732_vm11, %v734_v8, %v730_v50 }
 0x389   : > { %v736_v41 = vmul.f32 %v735_v11, %v696_v51 }
 0x38a   : > { %v737_v40 = vmul.f32 %v721_v10, %v1338_v18 }
 0x38b   : > { %v738_v45 = vmul.f32 %v736_v41, %v1340_v20 }
 0x38c   : > { %v787_v15 = vadd.f32 %v771_v5, %v737_v40 }
 0x38d   : > { %v788_v16 = vadd.f32 %v784_v12, %v738_v45 }
 0x38f   : > { %v789_v52 = vpack.c.bf16 %v788_v16, %v787_v15 }
 0x391   : > { %790 = vst [vmem:[%s307_s13] sm:$0xff] %v789_v52 }
 0x392 PF: > { %s18_s27 = sadd.s32 1, %s983_s27  }
 0x393   : > { %p15_p4 = scmp.ge.s32.totalorder %s18_s27, 4  }
 0x395   :  { %17 = sbr.rel (!%p15_p4) target bundleno = 1 (0x1), region = 82 }

// kernel: unet_forward.14
= control target key start
LH: loop header
LB: loop body
LE: loop exit
PB: predicated region body
PF: predicated region fallthrough
CT: control target
= control target key end

     0   :  { %s457_s14 = smov 32   ;;  %vm41_vm0 = vcmask 1047808   ;;  %s458_s15 = smov 124   ;;  %v33_v6 = vlaneseq  ;;  %v462_v25 = vmov 0   ;;  %vm269_vm4 = vcmask 1043456   ;;  %s695_s0 = inlined_call_operand.vmem [shape: bf16[8,32], index: 0, kind: input, shape index: {}]   ;;  %s696_s2 = inlined_call_operand.vmem [shape: f32[128,1], index: 2, kind: input, shape index: {}]   ;;  %s697_s1 = inlined_call_operand.vmem [shape: bf16[128,72], index: 1, kind: input, shape index: {}]   ;;  %s698_s3 = inlined_call_operand.vmem [shape: bf16[128,32], index: 3, kind: output, shape index: {}]  }
   0x1   :  { %v15_v0 = vld [vmem:[%s695_s0] sm:$0xf]  ;;  %s459_s16 = smov 100   ;;  %s460_s0 = smov 97   ;;  %454 = vset.pattern.permute.xlu1 %v462_v25  ;;  %455 = vset.pattern.permute.xlu2 %v462_v25  ;;  %v111_v26 = vld [vmem:[%s696_s2 + $0x18] sm:$0xff]  ;;  %v113_v27 = vld [vmem:[%s696_s2 + $0x28] sm:$0xff] }
   0x2   :  { %v487_v1 = vunpack.c.l.bf16 %v15_v0  ;;  %v494_v7 = vand.u32 127, %v33_v6  ;;  %s461_s17 = smov 127   ;;  %v108_v24 = vld [vmem:[%s696_s2] sm:$0xff]  ;;  %456 = vset.pattern.permute.xlu0 %v462_v25  ;;  %v109_v33 = vld [vmem:[%s696_s2 + $0x8] sm:$0xff]  ;;  %v110_v36 = vld [vmem:[%s696_s2 + $0x10] sm:$0xff]  ;;  %vm463_vm9 = vmmov 1  }
   0x3   :  { %v116_v34 = vld [vmem:[%s696_s2 + $0x40] sm:$0xff]  ;;  %v119_v38 = vld [vmem:[%s696_s2 + $0x58] sm:$0xff]  ;;  %v114_v39 = vld [vmem:[%s696_s2 + $0x30] sm:$0xff]  ;;  %vm244_vm14 = vcmask 588800   ;;  %vm338_vm15 = vcmask 257024  }
   0x4   :  { %42 = vrot.lane.b32.xlu0 %v487_v1, %s457_s14  ;;  %v35_v8 = vand.u32 15, %v494_v7  ;;  %v36_v28 = vand.u32 3, %v494_v7  ;;  %v112_v37 = vld [vmem:[%s696_s2 + $0x20] sm:$0xff]  ;;  %v115_v40 = vld [vmem:[%s696_s2 + $0x38] sm:$0xff]  ;;  %v122_v41 = vld [vmem:[%s696_s2 + $0x70] sm:$0xff] }
   0x5   :  { %v117_v45 = vld [vmem:[%s696_s2 + $0x48] sm:$0xff]  ;;  %v118_v46 = vld [vmem:[%s696_s2 + $0x50] sm:$0xff]  ;;  %v120_v49 = vld [vmem:[%s696_s2 + $0x60] sm:$0xff] }
   0x6   :  { %vm497_vm1 = vcmp.ge.s32.totalorder %v35_v8, 12  ;;  %vm506_vm2 = vcmp.lt.s32.totalorder %v35_v8, 4  ;;  %vm529_vm3 = vcmp.eq.s32.totalorder %v36_v28, 3  ;;  %vm561_vm6 = vcmp.ne.s32.totalorder %v36_v28, 0  ;;  %v121_v50 = vld [vmem:[%s696_s2 + $0x68] sm:$0xff]  ;;  %v123_v56 = vld [vmem:[%s696_s2 + $0x78] sm:$0xff] }
   0x7   :  { %vm391_vm5 = vmneg %vm497_vm1  ;;  %v418_v58 = vld [vmem:[%s697_s1] sm:$0xff]  ;;  %v420_v59 = vld [vmem:[%s697_s1 + $0x10] sm:$0xff] }
   0x8   :  { %vm393_vm7 = vmpackc.low %vm391_vm5, %vm561_vm6  ;;  %v422_v60 = vld [vmem:[%s697_s1 + $0x20] sm:$0xff]  ;;  %v424_v61 = vld [vmem:[%s697_s1 + $0x30] sm:$0xff] }
   0x9   :  { %vm396_vm8 = vmneg %vm529_vm3  ;;  %v419_v62 = vld [vmem:[%s697_s1 + $0x8] sm:$0xff]  ;;  %v421_v63 = vld [vmem:[%s697_s1 + $0x18] sm:$0xff] }
   0xa   :  { %vm397_vm10 = vmpackc.low %vm396_vm8, %vm463_vm9  ;;  %v423_v0 = vld [vmem:[%s697_s1 + $0x28] sm:$0xff] }
   0xb   :  { %vm402_vm11 = vmpackc.low %vm561_vm6, %vm396_vm8 }
   0xc   :  { %vm405_vm12 = vmneg %vm506_vm2 }
   0xd   :  { %vm407_vm13 = vmpackc.low %vm405_vm12, %vm561_vm6 }
  0x76   :  { %v43_v2 = vpop.permute.xlu0 %42 }
  0x77   :  { %v44_v3 = vsel %vm41_vm0, %v43_v2, %v487_v1 }
  0x78   :  { %45 = vrot.lane.b32.xlu0 %v44_v3, %s457_s14 }
  0xea   :  { %v46_v4 = vpop.permute.xlu0 %45 }
  0xeb   :  { %v47_v5 = vsel %vm41_vm0, %v46_v4, %v487_v1 }
  0xec   :  { %57 = vrot.lane.b32.xlu1 %v47_v5, %s458_s15 }
  0xf4   :  { %51 = vrot.lane.b32.xlu1 %v47_v5, %s459_s16 }
 0x15e   :  { %v501_v10 = vpop.permute.xlu1 %57 }
 0x15f   :  { %v60_v11 = vsel %vm497_vm1, 0.0, %v501_v10 }
 0x160   :  { %88 = vrot.lane.b32.xlu2 %v60_v11, %s457_s14 }
 0x166   :  { %v510_v13 = vpop.permute.xlu1 %51 }
 0x167   :  { %v54_v14 = vsel %vm506_vm2, 0.0, %v510_v13 }
 0x168   :  { %61 = vrot.lane.b32.xlu2 %v54_v14, %s457_s14 }
 0x1ba   :  { %v89_v15 = vpop.permute.xlu2 %88 }
 0x1bb   :  { %v90_v16 = vsel %vm41_vm0, %v89_v15, %v60_v11 }
 0x1bc   :  { %91 = vrot.lane.b32.xlu0 %v90_v16, %s457_s14 }
 0x1c2   :  { %v62_v17 = vpop.permute.xlu2 %61 }
 0x1c3   :  { %v63_v18 = vsel %vm41_vm0, %v62_v17, %v54_v14 }
 0x1c4   :  { %64 = vrot.lane.b32.xlu1 %v63_v18, %s457_s14 }
 0x22e   :  { %v92_v19 = vpop.permute.xlu0 %91 }
 0x22f   :  { %v93_v20 = vsel %vm41_vm0, %v92_v19, %v60_v11 }
 0x230   :  { %95 = vrot.lane.b32.xlu0 %v93_v20, %s460_s0  ;;  %99 = vrot.lane.b32.xlu2 %v93_v20, %s461_s17 }
 0x236   :  { %v65_v21 = vpop.permute.xlu1 %64 }
 0x237   :  { %v66_v22 = vsel %vm41_vm0, %v65_v21, %v54_v14 }
 0x238   :  { %80 = vrot.lane.b32.xlu2 %v47_v5, %s460_s0  ;;  %70 = vrot.lane.b32.xlu0 %v66_v22, %s460_s0  ;;  %v449_v23 = vpack.i.bf16 %v66_v22, %v47_v5 }
 0x23a   :  { %450 = vrot.lane.b32.xlu1 %v449_v23, %s461_s17 }
 0x240   :  { %131 = vperm.xlu2 %455, %v109_v33   ;;  %136 = vperm.xlu0 %456, %v110_v36  }
 0x242   :  { %126 = vperm.xlu1 %454, %v108_v24  }
 0x248   :  { %146 = vperm.xlu2 %455, %v112_v37   ;;  %161 = vperm.xlu0 %456, %v115_v40  }
 0x24a   :  { %141 = vperm.xlu1 %454, %v111_v26  }
 0x250   :  { %156 = vperm.xlu2 %455, %v114_v39   ;;  %176 = vperm.xlu0 %456, %v118_v46  }
 0x252   :  { %151 = vperm.xlu1 %454, %v113_v27  }
 0x258   :  { %171 = vperm.xlu2 %455, %v117_v45   ;;  %191 = vperm.xlu0 %456, %v121_v50  }
 0x25a   :  { %166 = vperm.xlu1 %454, %v116_v34  }
 0x260   :  { %186 = vperm.xlu2 %455, %v120_v49  }
 0x262   :  { %181 = vperm.xlu1 %454, %v119_v38  }
 0x268   :  { %201 = vperm.xlu2 %455, %v123_v56  }
 0x26a   :  { %196 = vperm.xlu1 %454, %v122_v41  }
 0x28a   :  { %v100_v30 = vpop.permute.xlu2 %99 }
 0x28b   :  { %v102_v31 = vsel %vm529_vm3, 0.0, %v100_v30 }
 0x28c   :  { %v107_v32 = vpack.c.bf16 %v102_v31, %v102_v31 }
 0x28e   :  { %v271_v35 = vsel %vm269_vm4, %v107_v32, 0 }
 0x28f   :  { %276 = vmatpush.bf16.msra.mxu0 %v271_v35  ;;  %427 = vmatpush.bf16.msra.mxu1 %v271_v35 }
 0x290   :  { %428 = vmatpush.bf16.msra.mxu2 %v271_v35  ;;  %429 = vmatpush.bf16.msra.mxu3 %v271_v35 }
 0x292   :  { %v81_v53 = vpop.permute.xlu2 %80 }
 0x29a   :  { %v132_v2 = vpop.permute.xlu2 %131 }
 0x2a2   :  { %v96_v43 = vpop.permute.xlu0 %95  ;;  %v147_v4 = vpop.permute.xlu2 %146 }
 0x2a3   :  { %v394_v44 = vpack.c.bf16 %v501_v10, %v96_v43 }
 0x2a5   :  { %395 = vmatpush.bf16.msk.msra.mxu0 %vm393_vm7, %v394_v44  ;;  %430 = vmatpush.bf16.msk.msra.mxu1 %vm393_vm7, %v394_v44 }
 0x2a6   :  { %431 = vmatpush.bf16.msk.msra.mxu2 %vm393_vm7, %v394_v44  ;;  %432 = vmatpush.bf16.msk.msra.mxu3 %vm393_vm7, %v394_v44 }
 0x2aa   :  { %v71_v55 = vpop.permute.xlu0 %70  ;;  %v157_v7 = vpop.permute.xlu2 %156 }
 0x2ab   :  { %v408_v57 = vpack.c.bf16 %v510_v13, %v71_v55 }
 0x2ac   :  { %v451_v47 = vpop.permute.xlu1 %450 }
 0x2ad   :  { %v452_v48 = vunpack.i.l.bf16 %v451_v47  ;;  %v453_v51 = vunpack.i.h.bf16 %v451_v47 }
 0x2af   :  { %v398_v52 = vpack.c.bf16 %v452_v48, %v487_v1  ;;  %v403_v54 = vpack.c.bf16 %v81_v53, %v453_v51  ;;  %v425_v1 = vld [vmem:[%s697_s1 + $0x38] sm:$0xff] }
 0x2b1   :  { %399 = vmatpush.bf16.msk.msra.mxu0 %vm397_vm10, %v398_v52  ;;  %433 = vmatpush.bf16.msk.msra.mxu1 %vm397_vm10, %v398_v52 }
 0x2b2   :  { %434 = vmatpush.bf16.msk.msra.mxu2 %vm397_vm10, %v398_v52  ;;  %435 = vmatpush.bf16.msk.msra.mxu3 %vm397_vm10, %v398_v52  ;;  %v137_v6 = vpop.permute.xlu0 %136  ;;  %v172_v10 = vpop.permute.xlu2 %171 }
 0x2b4   :  { %v127_v3 = vpop.permute.xlu1 %126 }
 0x2b5   :  { %404 = vmatpush.bf16.msk.msra.mxu0 %vm402_vm11, %v403_v54  ;;  %436 = vmatpush.bf16.msk.msra.mxu1 %vm402_vm11, %v403_v54 }
 0x2b6   :  { %437 = vmatpush.bf16.msk.msra.mxu2 %vm402_vm11, %v403_v54  ;;  %438 = vmatpush.bf16.msk.msra.mxu3 %vm402_vm11, %v403_v54 }
 0x2b9   :  { %409 = vmatpush.bf16.msk.msra.mxu0 %vm407_vm13, %v408_v57  ;;  %439 = vmatpush.bf16.msk.msra.mxu1 %vm407_vm13, %v408_v57 }
 0x2ba   :  { %440 = vmatpush.bf16.msk.msra.mxu2 %vm407_vm13, %v408_v57  ;;  %441 = vmatpush.bf16.msk.msra.mxu3 %vm407_vm13, %v408_v57  ;;  %v162_v9 = vpop.permute.xlu0 %161  ;;  %v187_v19 = vpop.permute.xlu2 %186 }
 0x2bc   :  { %410 = vmatmul.msk.bf16.vlgmr.msra.gmra.mxu0 %vm244_vm14, %v418_v58  ;;  %412 = vmatmul.msk.bf16.vlgmr.msra.gmra.mxu1 %vm244_vm14, %v420_v59  ;;  %v142_v5 = vpop.permute.xlu1 %141 }
 0x2bd   :  { %414 = vmatmul.msk.bf16.vlgmr.msra.gmra.mxu2 %vm244_vm14, %v422_v60  ;;  %416 = vmatmul.msk.bf16.vlgmr.msra.gmra.mxu3 %vm244_vm14, %v424_v61 }
 0x2c2   :  { %v177_v18 = vpop.permute.xlu0 %176  ;;  %v202_v59 = vpop.permute.xlu2 %201 }
 0x2c4   :  { %v152_v8 = vpop.permute.xlu1 %151 }
 0x2ca   :  { %v192_v33 = vpop.permute.xlu0 %191 }
 0x2cc   :  { %411 = vmatmul.msk.bf16.gmra.mxu0 %vm244_vm14, %v419_v62  ;;  %413 = vmatmul.msk.bf16.gmra.mxu1 %vm244_vm14, %v421_v63  ;;  %v167_v15 = vpop.permute.xlu1 %166 }
 0x2cd   :  { %415 = vmatmul.msk.bf16.gmra.mxu2 %vm244_vm14, %v423_v0  ;;  %417 = vmatmul.msk.bf16.gmra.mxu3 %vm244_vm14, %v425_v1 }
 0x2d4   :  { %v182_v32 = vpop.permute.xlu1 %181 }
 0x2dc   :  { %v197_v46 = vpop.permute.xlu1 %196 }
 0x339   :  { %v282_v11 = vpop.f32.mrf.mxu0  ;;  %v292_v12 = vpop.f32.mrf.mxu1 }
 0x33a   :  { %v283_v13 = vadd.f32 %v282_v11, %v127_v3  ;;  %v293_v14 = vadd.f32 %v292_v12, %v147_v4 }
 0x33c   :  { %v322_v16 = vpack.c.bf16 %v283_v13, %v283_v13  ;;  %v326_v17 = vpack.c.bf16 %v293_v14, %v293_v14 }
 0x33e   :  { %339 = vst.msk [vmem:[%s698_s3] sm:$0xf] %vm338_vm15, %v322_v16 }
 0x33f   :  { %343 = vst.msk [vmem:[%s698_s3 + $0x10] sm:$0xf] %vm338_vm15, %v326_v17 }
 0x340   :  { %v302_v20 = vpop.f32.mrf.mxu2  ;;  %v312_v21 = vpop.f32.mrf.mxu3 }
 0x341   :  { %v303_v22 = vadd.f32 %v302_v20, %v167_v15  ;;  %v313_v23 = vadd.f32 %v312_v21, %v187_v19  ;;  %v284_v24 = vpop.f32.mrf.mxu0  ;;  %v294_v25 = vpop.f32.mrf.mxu1 }
 0x342   :  { %v285_v26 = vadd.f32 %v284_v24, %v132_v2  ;;  %v295_v27 = vadd.f32 %v294_v25, %v152_v8 }
 0x343   :  { %v330_v28 = vpack.c.bf16 %v303_v22, %v303_v22  ;;  %v334_v29 = vpack.c.bf16 %v313_v23, %v313_v23 }
 0x344   :  { %v323_v30 = vpack.c.bf16 %v285_v26, %v285_v26  ;;  %v327_v31 = vpack.c.bf16 %v295_v27, %v295_v27 }
 0x345   :  { %347 = vst.msk [vmem:[%s698_s3 + $0x20] sm:$0xf] %vm338_vm15, %v330_v28 }
 0x346   :  { %351 = vst.msk [vmem:[%s698_s3 + $0x30] sm:$0xf] %vm338_vm15, %v334_v29 }
 0x347   :  { %340 = vst.msk [vmem:[%s698_s3 + $0x4] sm:$0xf] %vm338_vm15, %v323_v30 }
 0x348   :  { %344 = vst.msk [vmem:[%s698_s3 + $0x14] sm:$0xf] %vm338_vm15, %v327_v31  ;;  %v304_v34 = vpop.f32.mrf.mxu2  ;;  %v314_v35 = vpop.f32.mrf.mxu3 }
 0x349   :  { %v305_v36 = vadd.f32 %v304_v34, %v172_v10  ;;  %v315_v37 = vadd.f32 %v314_v35, %v192_v33  ;;  %v287_v38 = vpop.f32.mrf.mxu0  ;;  %v297_v39 = vpop.f32.mrf.mxu1 }
 0x34a   :  { %v288_v40 = vadd.f32 %v287_v38, %v137_v6  ;;  %v298_v41 = vadd.f32 %v297_v39, %v157_v7 }
 0x34b   :  { %v331_v42 = vpack.c.bf16 %v305_v36, %v305_v36  ;;  %v335_v43 = vpack.c.bf16 %v315_v37, %v315_v37 }
 0x34c   :  { %v324_v44 = vpack.c.bf16 %v288_v40, %v288_v40  ;;  %v328_v45 = vpack.c.bf16 %v298_v41, %v298_v41 }
 0x34d   :  { %348 = vst.msk [vmem:[%s698_s3 + $0x24] sm:$0xf] %vm338_vm15, %v331_v42 }
 0x34e   :  { %352 = vst.msk [vmem:[%s698_s3 + $0x34] sm:$0xf] %vm338_vm15, %v335_v43 }
 0x34f   :  { %341 = vst.msk [vmem:[%s698_s3 + $0x8] sm:$0xf] %vm338_vm15, %v324_v44 }
 0x350   :  { %345 = vst.msk [vmem:[%s698_s3 + $0x18] sm:$0xf] %vm338_vm15, %v328_v45  ;;  %v307_v47 = vpop.f32.mrf.mxu2  ;;  %v317_v48 = vpop.f32.mrf.mxu3 }
 0x351   :  { %v308_v49 = vadd.f32 %v307_v47, %v177_v18  ;;  %v318_v50 = vadd.f32 %v317_v48, %v197_v46  ;;  %v289_v51 = vpop.f32.mrf.mxu0  ;;  %v299_v52 = vpop.f32.mrf.mxu1 }
 0x352   :  { %v290_v53 = vadd.f32 %v289_v51, %v142_v5  ;;  %v300_v54 = vadd.f32 %v299_v52, %v162_v9 }
 0x353   :  { %v332_v55 = vpack.c.bf16 %v308_v49, %v308_v49  ;;  %v336_v56 = vpack.c.bf16 %v318_v50, %v318_v50 }
 0x354   :  { %v325_v57 = vpack.c.bf16 %v290_v53, %v290_v53  ;;  %v329_v58 = vpack.c.bf16 %v300_v54, %v300_v54 }
 0x355   :  { %349 = vst.msk [vmem:[%s698_s3 + $0x28] sm:$0xf] %vm338_vm15, %v332_v55 }
 0x356   :  { %353 = vst.msk [vmem:[%s698_s3 + $0x38] sm:$0xf] %vm338_vm15, %v336_v56 }
 0x357   :  { %342 = vst.msk [vmem:[%s698_s3 + $0xc] sm:$0xf] %vm338_vm15, %v325_v57 }
 0x358   :  { %346 = vst.msk [vmem:[%s698_s3 + $0x1c] sm:$0xf] %vm338_vm15, %v329_v58  ;;  %v309_v60 = vpop.f32.mrf.mxu2  ;;  %v319_v61 = vpop.f32.mrf.mxu3 }
 0x359   :  { %v310_v62 = vadd.f32 %v309_v60, %v182_v32  ;;  %v320_v63 = vadd.f32 %v319_v61, %v202_v59 }
 0x35b   :  { %v333_v0 = vpack.c.bf16 %v310_v62, %v310_v62  ;;  %v337_v1 = vpack.c.bf16 %v320_v63, %v320_v63 }
 0x35d   :  { %350 = vst.msk [vmem:[%s698_s3 + $0x2c] sm:$0xf] %vm338_vm15, %v333_v0 }
 0x35e   :  { %354 = vst.msk [vmem:[%s698_s3 + $0x3c] sm:$0xf] %vm338_vm15, %v337_v1 }

// kernel: unet_forward.17
= control target key start
LH: loop header
LB: loop body
LE: loop exit
PB: predicated region body
PF: predicated region fallthrough
CT: control target
= control target key end

     0   :  { %s123_s14 = smov 8   ;;  %s124_s15 = smov 1   ;;  %vm64_vm0 = vcmask 1043456   ;;  %v23_v4 = vlaneseq  ;;  %vm125_vm3 = vmmov 1   ;;  %v126_v19 = vmov 0   ;;  %s180_s0 = inlined_call_operand.vmem [shape: bf16[32,128], index: 0, kind: input, shape index: {}]   ;;  %s181_s2 = inlined_call_operand.vmem [shape: f32[8,1], index: 2, kind: input, shape index: {}]   ;;  %s182_s1 = inlined_call_operand.vmem [shape: bf16[8,72], index: 1, kind: input, shape index: {}]   ;;  %s183_s3 = inlined_call_operand.vmem [shape: bf16[8,128], index: 3, kind: output, shape index: {}]  }
   0x1   :  { %v110_v0 = vld [vmem:[%s180_s0 + $0x8] sm:$0xff]   ;;  %v103_v7 = vld [vmem:[%s180_s0] sm:$0xff]   ;;  %121 = vset.pattern.permute.xlu2 %v126_v19  ;;  %122 = vset.pattern.permute.xlu0 %v126_v19  ;;  %vm60_vm8 = vcmask 588800  }
   0x2   :  { %v109_v1 = vunpack.c.h.bf16 %v110_v0  ;;  %v24_v5 = vand.u32 127, %v23_v4  ;;  %v105_v9 = vunpack.c.h.bf16 %v103_v7  ;;  %v108_v15 = vunpack.c.l.bf16 %v110_v0  ;;  %v54_v18 = vld [vmem:[%s181_s2] sm:$0xff] }
   0x3   :  { %57 = vperm.xlu2 %121, %v54_v18   ;;  %v53_v26 = vld [vmem:[%s182_s1] sm:$0xf] }
   0x4   :  { %29 = vrot.lane.b32.xlu0 %v109_v1, %s123_s14  ;;  %v52_v2 = vpack.c.bf16 %v109_v1, %v109_v1  ;;  %v25_v6 = vand.u32 63, %v24_v5  ;;  %v26_v12 = vand.u32 7, %v24_v5 }
   0x6   :  { %v66_v3 = vsel %vm64_vm0, %v52_v2, 0  ;;  %vm153_vm1 = vcmp.lt.s32.totalorder %v25_v6, 8  ;;  %vm159_vm2 = vcmp.ne.s32.totalorder %v26_v12, 0 }
   0x7   :  { %71 = vmatpush.bf16.msra.mxu0 %v66_v3  ;;  %vm88_vm4 = vmpackc.low %vm125_vm3, %vm159_vm2 }
   0x8   :  { %vm92_vm5 = vmneg %vm153_vm1 }
   0x9   :  { %vm93_vm6 = vmpackc.low %vm159_vm2, %vm92_vm5 }
   0xa   :  { %vm98_vm7 = vmpackc.low %vm92_vm5, %vm159_vm2 }
   0xc   :  { %45 = vrot.lane.b32.xlu0 %v109_v1, %s124_s15 }
  0x5d   :  { %v58_v27 = vpop.permute.xlu2 %57 }
  0x76   :  { %v30_v10 = vpop.permute.xlu0 %29 }
  0x77   :  { %v33_v11 = vsel %vm153_vm1, 0.0, %v30_v10 }
  0x78   :  { %v116_v13 = vpack.i.bf16 %v33_v11, %v105_v9 }
  0x7a   :  { %117 = vrot.lane.b32.xlu1 %v116_v13, %s124_s15 }
  0x7e   :  { %v46_v16 = vpop.permute.xlu0 %45 }
  0x7f   :  { %v89_v17 = vpack.c.bf16 %v108_v15, %v46_v16 }
  0x81   :  { %90 = vmatpush.bf16.msk.msra.mxu0 %vm88_vm4, %v89_v17 }
  0x82   :  { %39 = vrot.lane.b32.xlu1 %v108_v15, %s123_s14 }
  0x85   :  { %73 = vmatpush.bf16.msra.mxu0 %v103_v7 }
  0xec   :  { %v118_v20 = vpop.permute.xlu1 %117 }
  0xed   :  { %v119_v21 = vunpack.i.l.bf16 %v118_v20  ;;  %v120_v23 = vunpack.i.h.bf16 %v118_v20 }
  0xef   :  { %v94_v22 = vpack.c.bf16 %v119_v21, %v30_v10 }
  0xf1   :  { %95 = vmatpush.bf16.msk.msra.mxu0 %vm93_vm6, %v94_v22 }
  0xf4   :  { %v40_v24 = vpop.permute.xlu1 %39 }
  0xf5   :  { %v99_v25 = vpack.c.bf16 %v40_v24, %v120_v23 }
  0xf7   :  { %100 = vmatpush.bf16.msk.msra.mxu0 %vm98_vm7, %v99_v25 }
  0xfa   :  { %101 = vmatmul.msk.bf16.vlgmr.msra.gmra.mxu0 %vm60_vm8, %v53_v26 }
 0x177   :  { %v77_v28 = vpop.f32.mrf.mxu0 }
 0x178   :  { %v78_v29 = vadd.f32 %v77_v28, %v58_v27 }
 0x17a   :  { %v81_v30 = vpack.c.bf16 %v78_v29, %v78_v29 }
 0x17c   :  { %82 = vst [vmem:[%s183_s3] sm:$0xf] %v81_v30 }
 0x17f   :  { %v79_v31 = vpop.f32.mrf.mxu0 }

// kernel: unet_forward.16
= control target key start
LH: loop header
LB: loop body
LE: loop exit
PB: predicated region body
PF: predicated region fallthrough
CT: control target
= control target key end

     0   :  { %s995_s24 = smov 0   ;;  %s1308_s0 = inlined_call_operand.vmem [shape: bf16[8,512], index: 0, kind: input, shape index: {}]   ;;  %s1309_s1 = inlined_call_operand.vmem [shape: f32[8,2], index: 1, kind: input, shape index: {}]   ;;  %s1310_s2 = inlined_call_operand.vmem [shape: bf16[8,72], index: 2, kind: input, shape index: {}]   ;;  %s1311_s3 = inlined_call_operand.vmem [shape: f32[8,1], index: 3, kind: input, shape index: {}]   ;;  %s1312_s4 = inlined_call_operand.vmem [shape: bf16[8,72], index: 4, kind: input, shape index: {}]   ;;  %s1313_s5 = inlined_call_operand.vmem [shape: f32[8,1], index: 5, kind: input, shape index: {}]   ;;  %s1314_s6 = inlined_call_operand.vmem [shape: bf16[8,512], index: 6, kind: input, shape index: {}]   ;;  %s1315_s7 = inlined_call_operand.vmem [shape: bf16[8,512], index: 7, kind: output, shape index: {}]  }
   0x1 LB: > { %s811_s25 = sadd.s32 4294967295, %s947_s24   ;;  %p815_p0 = scmp.ge.s32.totalorder %s947_s24, 1  ;;  %s947_s24 = sphi %s995_s24, %s17_s24  }
   0x2   : > { %p249_p1 = scmp.lt.s32.totalorder %s947_s24, 3 }
   0x4   : > { %p250_p2 = pnand %p815_p0, %p249_p1 }
   0x5   : > { %s816_s26 = sshll.u32 (!%p250_p2), %s811_s25, 1  ;;  %s949_s8 = smov (!%p250_p2), 16  }
   0x6   : > { %253 = sbr.rel (%p250_p2) target bundleno = 916 (0x394), region = 48  ;;  %p287_p3 = scmp.lt.s32.totalorder (!%p250_p2), %s816_s26, 3 }
   0x7   : > { %s950_s9 = smov (!%p250_p2), 112   ;;  %s951_s10 = smov (!%p250_p2), 1  }
   0x8   : > { %s952_s11 = smov (!%p250_p2), 127  }
   0xb   : > { %s1364_s26 = smov (!%p287_p3, %s816_s26), 3  ;;  %v309_v4 = vlaneseq  ;;  %v418_v27 = vld [vmem:[%s1311_s3] sm:$0xff]  ;;  %v953_v31 = vmov 0   ;;  %v954_v32 = vmov 1   ;;  %vm1317_vm9 = vcmask 1043456  }
   0xc   : > { %s1005_s27 = sshll.u32 %s1364_s26, 2  ;;  %v530_v28 = vld [vmem:[%s1309_s1] sm:$0xff]  ;;  %882 = vset.pattern.permute.xlu2 %v953_v31  ;;  %883 = vset.pattern.permute.xlu0 %v953_v31  ;;  %v1336_v52 = vmov 0  ;;  %vm1316_vm11 = vcmask 588800  }
   0xd   : > { %s290_s30 = scalar_lea.vmem %s1308_s0, %s1005_s27  ;;  %v1019_v5 = vand.u32 127, %v309_v4  ;;  %884 = vset.pattern.permute.xlu1 %v954_v32  ;;  %v631_v15 = vld [vmem:[%s1313_s5] sm:$0xff]  ;;  %s302_s29 = scalar_lea.vmem %s1315_s7, %s1005_s27 }
   0xe   : > { %v305_v0 = vld [vmem:[%s290_s30] sm:$0xff] }
   0xf   : > { %v1011_v1 = vunpack.c.l.bf16 %v305_v0  ;;  %v1013_v2 = vunpack.c.h.bf16 %v305_v0  ;;  %v1022_v7 = vadd.s32 128, %v1019_v5  ;;  %v312_v8 = vand.u32 255, %v1019_v5 }
  0x10   : > { %vm1321_vm0 = vcmp.lt.s32.totalorder %v1019_v5, 16  ;;  %vm1320_vm1 = vcmp.lt.s32.totalorder %v1019_v5, 112  ;;  %v314_v29 = vand.u32 15, %v1019_v5  ;;  %vm1319_vm4 = vcmp.lt.s32.totalorder %v1019_v5, 1 }
  0x11   : > { %v842_v3 = vpack.i.bf16 %v1013_v2, %v1011_v1  ;;  %v313_v9 = vand.u32 255, %v1022_v7  ;;  %vm1029_vm2 = vcmp.lt.s32.totalorder %v312_v8, 16  ;;  %v315_v30 = vand.u32 15, %v1022_v7 }
  0x12   : > { %vm1318_vm5 = vcmp.lt.s32.totalorder %v1019_v5, 127  ;;  %vm1078_vm6 = vcmp.eq.s32.totalorder %v314_v29, 15  ;;  %vm1086_vm8 = vcmp.eq.s32.totalorder %v314_v29, 0 }
  0x13   : > { %843 = vrot.lane.b32.xlu0 %v842_v3, %s949_s8  ;;  %863 = vrot.lane.b32.xlu2 %v842_v3, %s951_s10  ;;  %vm1033_vm3 = vcmp.ge.s32.totalorder %v313_v9, 240  ;;  %vm1082_vm7 = vcmp.eq.s32.totalorder %v315_v30, 15  ;;  %vm1102_vm10 = vcmp.eq.s32.totalorder %v315_v30, 0 }
  0x14   : > { %v1337_v52 = vsel %vm1102_vm10, 4294967295, %v1336_v52 }
  0x1b   : > { %848 = vrot.lane.b32.xlu0 %v842_v3, %s950_s9  ;;  %868 = vrot.lane.b32.xlu2 %v842_v3, %s952_s11 }
  0x23   : > { %421 = vperm.xlu2 %882, %v418_v27  }
  0x6d   : > { %v864_v25 = vpop.permute.xlu2 %863 }
  0x6e   : > { %v866_v36 = vunpack.i.h.bf16 %v864_v25  ;;  %v865_v42 = vunpack.i.l.bf16 %v864_v25 }
  0x70   : > { %v381_v55 = vsel %vm1319_vm4, %v866_v36, %v865_v42  ;;  %v380_v63 = vsel %vm1319_vm4, %v865_v42, %v866_v36 }
  0x75   : > { %v869_v35 = vpop.permute.xlu2 %868 }
  0x76   : > { %v871_v43 = vunpack.i.h.bf16 %v869_v35  ;;  %v870_v44 = vunpack.i.l.bf16 %v869_v35 }
  0x78   : > { %v386_v62 = vsel %vm1318_vm5, %v870_v44, %v871_v43  ;;  %v387_v0 = vsel %vm1318_vm5, %v871_v43, %v870_v44 }
  0x79   : > { %v388_v25 = vsel %vm1086_vm8, %v386_v62, %v381_v55 }
  0x85   : > { %v844_v6 = vpop.permute.xlu0 %843 }
  0x86   : > { %v846_v10 = vunpack.i.h.bf16 %v844_v6  ;;  %v845_v11 = vunpack.i.l.bf16 %v844_v6 }
  0x88   : > { %v1040_v17 = vsel %vm1321_vm0, %v845_v11, %v846_v10  ;;  %v330_v18 = vsel %vm1321_vm0, %v846_v10, %v845_v11  ;;  %v390_v11 = vsel %vm1078_vm6, %v381_v55, %v386_v62 }
  0x8d   : > { %v849_v12 = vpop.permute.xlu0 %848 }
  0x8e   : > { %v851_v13 = vunpack.i.h.bf16 %v849_v12  ;;  %v850_v14 = vunpack.i.l.bf16 %v849_v12  ;;  %v391_v12 = vsel %vm1082_vm7, %v380_v63, %v387_v0 }
  0x90   : > { %v1046_v19 = vsel %vm1320_vm1, %v850_v14, %v851_v13  ;;  %v337_v20 = vsel %vm1320_vm1, %v851_v13, %v850_v14 }
  0x91   : > { %v1053_v21 = vsel %vm1029_vm2, %v1046_v19, %v330_v18  ;;  %v1058_v22 = vsel %vm1033_vm3, %v1040_v17, %v337_v20  ;;  %v412_v18 = vpack.c.bf16 %v390_v11, %v1011_v1 }
  0x92   : > { %v872_v23 = vpack.i.bf16 %v1040_v17, %v1053_v21  ;;  %v852_v24 = vpack.i.bf16 %v1058_v22, %v1046_v19 }
  0x94   : > { %873 = vrot.lane.b32.xlu0 %v872_v23, %s951_s10  ;;  %853 = vrot.lane.b32.xlu1 %v852_v24, %s951_s10 }
  0x9c   : > { %858 = vrot.lane.b32.xlu1 %v852_v24, %s952_s11  ;;  %537 = vperm.xlu0 %883, %v530_v28  }
  0xa4   : > { %878 = vrot.lane.b32.xlu1 %v872_v23, %s952_s11 }
  0xac   : > { %549 = vperm.xlu1 %884, %v530_v28  }
 0x106   : > { %v854_v26 = vpop.permute.xlu1 %853  ;;  %v874_v56 = vpop.permute.xlu0 %873 }
 0x107   : > { %v856_v33 = vunpack.i.h.bf16 %v854_v26  ;;  %v855_v34 = vunpack.i.l.bf16 %v854_v26  ;;  %v876_v6 = vunpack.i.h.bf16 %v874_v56  ;;  %v875_v8 = vunpack.i.l.bf16 %v874_v56 }
 0x108   : > { %v389_v26 = vsel %vm1102_vm10, %v387_v0, %v380_v63 }
 0x109   : > { %v397_v46 = vsel %vm1319_vm4, %v856_v33, %v855_v34  ;;  %v396_v48 = vsel %vm1319_vm4, %v855_v34, %v856_v33  ;;  %v356_v20 = vsel %vm1319_vm4, %v876_v6, %v875_v8  ;;  %v306_v33 = vld [vmem:[%s1310_s2] sm:$0xf]  ;;  %v422_v34 = vpop.permute.xlu2 %421 }
 0x10e   : > { %v859_v37 = vpop.permute.xlu1 %858 }
 0x10f   : > { %v861_v38 = vunpack.i.h.bf16 %v859_v37  ;;  %v860_v39 = vunpack.i.l.bf16 %v859_v37 }
 0x111   : > { %v402_v47 = vsel %vm1318_vm5, %v860_v39, %v861_v38  ;;  %v403_v49 = vsel %vm1318_vm5, %v861_v38, %v860_v39 }
 0x112   : > { %v406_v50 = vsel %vm1078_vm6, %v397_v46, %v402_v47  ;;  %v407_v51 = vsel %vm1082_vm7, %v396_v48, %v403_v49  ;;  %v404_v59 = vsel %vm1086_vm8, %v402_v47, %v397_v46  ;;  %v405_v60 = vsel %vm1102_vm10, %v403_v49, %v396_v48 }
 0x113   : > { %v416_v53 = vpack.c.bf16 %v406_v50, %v406_v50  ;;  %v417_v54 = vpack.c.bf16 %v407_v51, %v407_v51  ;;  %v414_v9 = vpack.c.bf16 %v1046_v19, %v404_v59  ;;  %v415_v10 = vpack.c.bf16 %v1058_v22, %v405_v60 }
 0x114   : > { %v413_v19 = vpack.c.bf16 %v391_v12, %v1013_v2  ;;  %v355_v22 = vsel %vm1319_vm4, %v875_v8, %v876_v6  ;;  %v523_v6 = vshra.s32 %v1019_v5, 8  ;;  %v524_v8 = vshra.s32 %v1022_v7, 8 }
 0x115   : > { %v430_v57 = vsel %vm1317_vm9, %v416_v53, 0  ;;  %v433_v58 = vsel %vm1317_vm9, %v417_v54, 0 }
 0x116   : > { %v879_v61 = vpop.permute.xlu1 %878  ;;  %438 = vmatpush.bf16.msra.mxu0 %v430_v57  ;;  %451 = vmatpush.bf16.msra.mxu1 %v433_v58 }
 0x117   : > { %v881_v3 = vunpack.i.h.bf16 %v879_v61  ;;  %v880_v4 = vunpack.i.l.bf16 %v879_v61 }
 0x119   : > { %v362_v13 = vsel %vm1318_vm5, %v880_v4, %v881_v3  ;;  %v363_v14 = vsel %vm1318_vm5, %v881_v3, %v880_v4 }
 0x11a   : > { %439 = vmatpush.bf16.msra.mxu0 %v414_v9  ;;  %452 = vmatpush.bf16.msra.mxu1 %v415_v10  ;;  %v374_v23 = vsel %vm1078_vm6, %v356_v20, %v362_v13  ;;  %v375_v24 = vsel %vm1082_vm7, %v355_v22, %v363_v14  ;;  %v368_v29 = vsel %vm1086_vm8, %v362_v13, %v356_v20  ;;  %v525_v9 = vstv %s811_s25  ;;  %s296_s25 = scalar_lea.vmem %s1314_s6, %s1005_s27 }
 0x11b   : > { %v410_v27 = vpack.c.bf16 %v388_v25, %v374_v23  ;;  %v411_v28 = vpack.c.bf16 %v389_v26, %v375_v24  ;;  %v369_v30 = vsel %vm1102_vm10, %v363_v14, %v355_v22  ;;  %v408_v31 = vpack.c.bf16 %v1053_v21, %v368_v29  ;;  %v538_v24 = vpop.permute.xlu0 %537 }
 0x11c   : > { %v409_v32 = vpack.c.bf16 %v1040_v17, %v369_v30  ;;  %v526_v10 = vadd.s32 %v525_v9, %v523_v6  ;;  %v527_v12 = vadd.s32 %v525_v9, %v524_v8 }
 0x11e   : > { %440 = vmatpush.bf16.msra.mxu0 %v412_v18  ;;  %453 = vmatpush.bf16.msra.mxu1 %v413_v19  ;;  %vm528_vm14 = vcmp.eq.s32.totalorder %v526_v10, 0  ;;  %vm529_vm15 = vcmp.eq.s32.totalorder %v527_v12, 0 }
 0x122   : > { %441 = vmatpush.bf16.msra.mxu0 %v410_v27  ;;  %454 = vmatpush.bf16.msra.mxu1 %v411_v28 }
 0x126   : > { %442 = vmatpush.bf16.msra.mxu0 %v408_v31  ;;  %455 = vmatpush.bf16.msra.mxu1 %v409_v32  ;;  %v540_v31 = vsel %vm528_vm14, %v538_v24, 0.0 }
 0x129   : > { %822 = vmatmul.msk.bf16.vlgmr.msra.gmra.mxu0 %vm1316_vm11, %v306_v33  ;;  %823 = vmatmul.msk.bf16.vlgmr.msra.gmra.mxu1 %vm1316_vm11, %v306_v33 }
 0x1a6   : > { %v444_v35 = vpop.f32.mrf.mxu0  ;;  %v457_v36 = vpop.f32.mrf.mxu1 }
 0x1a7   : > { %v1155_v37 = vadd.f32 %v444_v35, %v422_v34  ;;  %v1157_v38 = vadd.f32 %v457_v36, %v422_v34  ;;  %v541_v34 = vsel %vm529_vm15, %v538_v24, 0.0  ;;  %v550_v35 = vpop.permute.xlu1 %549 }
 0x1a9   : > { %v461_v17 = vand.u32 2147483647, %v1155_v37  ;;  %v462_v21 = vand.u32 2147483647, %v1157_v38  ;;  %vm1323_vm12 = vcmp.ge.f32.partialorder %v1155_v37, 0.0  ;;  %vm1322_vm13 = vcmp.ge.f32.partialorder %v1157_v38, 0.0 }
 0x1aa   : > { %vm1338_vm10 = vcmp.ge.f32.partialorder %v1155_v37, 0.0  ;;  %vm1339_vm14 = vcmp.ge.f32.partialorder %v1157_v38, 0.0 }
 0x1ab   : > { %v463_v39 = vsub.f32 0.0, %v461_v17  ;;  %v464_v42 = vsub.f32 0.0, %v462_v21 }
 0x1ad   : > { %v465_v43 = vmul.f32 1.442695, %v463_v39  ;;  %v467_v44 = vmul.f32 1.442695, %v464_v42 }
 0x1ae   : > { %v446_v46 = vpop.f32.mrf.mxu0  ;;  %v459_v47 = vpop.f32.mrf.mxu1 }
 0x1af   : > { %925 = vpow2.f32 %v465_v43 }
 0x1b0   : > { %927 = vpow2.f32 %v467_v44 }
 0x1b5   : > { %v926_v48 = vpop.eup %925 }
 0x1b6   : > { %v928_v49 = vpop.eup %927  ;;  %v469_v50 = vmul.f32 %v926_v48, %v926_v48  ;;  %v473_v51 = vmul.f32 2.0, %v926_v48 }
 0x1b7   : > { %v470_v53 = vmul.f32 %v928_v49, %v928_v49  ;;  %v474_v54 = vmul.f32 2.0, %v928_v49 }
 0x1b8   : > { %v475_v55 = vadd.f32 1.0, %v473_v51  ;;  %v481_v56 = vmul.f32 2.0, %v469_v50  ;;  %v485_v57 = vadd.f32 2.0, %v473_v51  ;;  %v477_v7 = vadd.f32 %v473_v51, %v469_v50 }
 0x1b9   : > { %v476_v58 = vadd.f32 1.0, %v474_v54  ;;  %v482_v59 = vmul.f32 2.0, %v470_v53  ;;  %v486_v60 = vadd.f32 2.0, %v474_v54  ;;  %v478_v29 = vadd.f32 %v474_v54, %v470_v53 }
 0x1ba   : > { %v483_v61 = vadd.f32 %v481_v56, %v475_v55  ;;  %v487_v62 = vadd.f32 %v485_v57, %v469_v50  ;;  %v479_v21 = vsel %vm1338_vm10, %v475_v55, %v477_v7 }
 0x1bb   : > { %v484_v63 = vadd.f32 %v482_v59, %v476_v58  ;;  %v488_v0 = vadd.f32 %v486_v60, %v470_v53  ;;  %v480_v43 = vsel %vm1339_vm14, %v476_v58, %v478_v29  ;;  %vm1352_vm14 = vnez %v1337_v52 }
 0x1bc   : > { %v489_v3 = vsel %vm1323_vm12, %v483_v61, %v487_v62 }
 0x1bd   : > { %929 = vrcp.f32 %v489_v3  ;;  %v490_v4 = vsel %vm1322_vm13, %v484_v63, %v488_v0  ;;  %v502_v22 = vand.u32 2147483648, %v489_v3  ;;  %v500_v25 = vand.u32 2147483647, %v489_v3 }
 0x1be   : > { %931 = vrcp.f32 %v490_v4  ;;  %v517_v26 = vand.u32 2147483648, %v490_v4  ;;  %v515_v28 = vand.u32 2147483647, %v490_v4  ;;  %vm496_vm1 = vweird.f32 %v489_v3 }
 0x1bf   : > { %v503_v32 = vor.u32 1.1754944e-38, %v502_v22  ;;  %vm511_vm11 = vweird.f32 %v490_v4  ;;  %vm501_vm13 = vcmp.eq.f32.partialorder %v500_v25, 8.507059e+37 }
 0x1c0   : > { %v518_v17 = vor.u32 1.1754944e-38, %v517_v26  ;;  %vm516_vm4 = vcmp.eq.f32.partialorder %v515_v28, 8.507059e+37 }
 0x1c3   : > { %v930_v11 = vpop.eup %929 }
 0x1c4   : > { %v932_v13 = vpop.eup %931  ;;  %v492_v14 = vmul.f32 %v930_v11, %v489_v3  ;;  %vm497_vm9 = vweird.f32 %v930_v11 }
 0x1c5   : > { %v507_v18 = vmul.f32 %v932_v13, %v490_v4  ;;  %vm512_vm5 = vweird.f32 %v932_v13  ;;  %vm498_vm0 = vmor %vm496_vm1, %vm497_vm9  ;;  %vm1340_vm1 = vcmp.eq.s32.totalorder %v526_v10, 1  ;;  %vm1344_vm9 = vcmp.lt.s32.totalorder %v1019_v5, 112 }
 0x1c6   : > { %v493_v19 = vsub.f32 1.0, %v492_v14  ;;  %vm513_vm12 = vmor %vm511_vm11, %vm512_vm5  ;;  %v552_v48 = vsel %vm1340_vm1, %v550_v35, %v540_v31 }
 0x1c7   : > { %v508_v20 = vsub.f32 1.0, %v507_v18  ;;  %vm1345_vm10 = vmmov %vm1344_vm9 }
 0x1c8   : > { %v494_v23 = vmul.f32 %v930_v11, %v493_v19 }
 0x1c9   : > { %v509_v27 = vmul.f32 %v932_v13, %v508_v20 }
 0x1ca   : > { %v495_v30 = vadd.f32 %v930_v11, %v494_v23 }
 0x1cb   : > { %v510_v33 = vadd.f32 %v932_v13, %v509_v27 }
 0x1cc   : > { %v499_v36 = vsel %vm498_vm0, %v930_v11, %v495_v30  ;;  %vm1341_vm0 = vcmp.eq.s32.totalorder %v527_v12, 1 }
 0x1cd   : > { %v504_v39 = vsel %vm501_vm13, %v503_v32, %v499_v36  ;;  %v514_v42 = vsel %vm513_vm12, %v932_v13, %v510_v33  ;;  %v553_v50 = vsel %vm1341_vm0, %v550_v35, %v541_v34  ;;  %vm1350_vm13 = vcmask 1043456  }
 0x1ce   : > { %v505_v44 = vmul.f32 %v504_v39, %v479_v21  ;;  %v519_v46 = vsel %vm516_vm4, %v518_v17, %v514_v42  ;;  %vm1342_vm4 = vcmp.lt.s32.totalorder %v1019_v5, 16  ;;  %vm1351_vm15 = vmmov %vm1350_vm13 }
 0x1cf   : > { %v520_v47 = vmul.f32 %v519_v46, %v480_v43  ;;  %vm1343_vm5 = vmmov %vm1342_vm4 }
 0x1d0   : > { %v521_v49 = vmul.f32 %v505_v44, %v1155_v37 }
 0x1d1   : > { %v522_v51 = vmul.f32 %v520_v47, %v1157_v38 }
 0x1d2   : > { %v1182_v53 = vadd.f32 %v552_v48, %v521_v49 }
 0x1d3   : > { %v1184_v54 = vadd.f32 %v553_v50, %v522_v51 }
 0x1d5   : > { %v890_v55 = vpack.i.bf16 %v1184_v54, %v1182_v53 }
 0x1d7   : > { %891 = vrot.lane.b32.xlu1 %v890_v55, %s950_s9  ;;  %886 = vrot.lane.b32.xlu2 %v890_v55, %s949_s8 }
 0x1df   : > { %906 = vrot.lane.b32.xlu1 %v890_v55, %s951_s10 }
 0x231   : > { %v887_v56 = vpop.permute.xlu2 %886 }
 0x232   : > { %v889_v57 = vunpack.i.h.bf16 %v887_v56  ;;  %v888_v37 = vunpack.i.l.bf16 %v887_v56 }
 0x234   : > { %v1193_v38 = vsel %vm1342_vm4, %v888_v37, %v889_v57  ;;  %v562_v61 = vsel %vm1343_vm5, %v889_v57, %v888_v37 }
 0x249   : > { %v892_v58 = vpop.permute.xlu1 %891 }
 0x24a   : > { %v894_v59 = vunpack.i.h.bf16 %v892_v58  ;;  %v893_v60 = vunpack.i.l.bf16 %v892_v58 }
 0x24c   : > { %v567_v62 = vsel %vm1344_vm9, %v893_v60, %v894_v59  ;;  %v568_v63 = vsel %vm1345_vm10, %v894_v59, %v893_v60 }
 0x24d   : > { %v1203_v0 = vsel %vm1029_vm2, %v567_v62, %v562_v61  ;;  %v572_v3 = vsel %vm1033_vm3, %v1193_v38, %v568_v63  ;;  %vm1346_vm2 = vcmp.lt.s32.totalorder %v1019_v5, 1  ;;  %vm1347_vm3 = vcmp.lt.s32.totalorder %v1019_v5, 127 }
 0x24e   : > { %v920_v4 = vpack.i.bf16 %v1193_v38, %v1203_v0  ;;  %v900_v6 = vpack.i.bf16 %v572_v3, %v567_v62  ;;  %vm1348_vm11 = vmmov %vm1346_vm2 }
 0x24f   : > { %vm1349_vm12 = vmmov %vm1347_vm3 }
 0x250   : > { %921 = vrot.lane.b32.xlu1 %v920_v4, %s952_s11  ;;  %901 = vrot.lane.b32.xlu0 %v900_v6, %s952_s11  ;;  %vm1353_vm1 = vmmov %vm1347_vm3 }
 0x251   : > { %896 = vrot.lane.b32.xlu2 %v900_v6, %s951_s10  ;;  %v907_v8 = vpop.permute.xlu1 %906  ;;  %vm1354_vm0 = vmmov %vm1353_vm1 }
 0x252   : > { %v909_v7 = vunpack.i.h.bf16 %v907_v8  ;;  %v908_v27 = vunpack.i.l.bf16 %v907_v8  ;;  %vm1355_vm4 = vmmov %vm1346_vm2 }
 0x253   : > { %vm1356_vm5 = vmmov %vm1346_vm2 }
 0x254   : > { %v594_v42 = vsel %vm1355_vm4, %v909_v7, %v908_v27  ;;  %v593_v43 = vsel %vm1356_vm5, %v908_v27, %v909_v7  ;;  %vm1357_vm9 = vmmov %vm1346_vm2 }
 0x255   : > { %vm1358_vm10 = vmmov %vm1346_vm2 }
 0x258   : > { %916 = vrot.lane.b32.xlu0 %v920_v4, %s951_s10 }
 0x259   : > { %911 = vrot.lane.b32.xlu2 %v890_v55, %s952_s11 }
 0x261   : > { %634 = vperm.xlu2 %882, %v631_v15  }
 0x2ab   : > { %v897_v16 = vpop.permute.xlu2 %896 }
 0x2ac   : > { %v899_v9 = vunpack.i.h.bf16 %v897_v16  ;;  %v898_v10 = vunpack.i.l.bf16 %v897_v16 }
 0x2ae   : > { %v610_v18 = vsel %vm1346_vm2, %v899_v9, %v898_v10  ;;  %v609_v20 = vsel %vm1348_vm11, %v898_v10, %v899_v9  ;;  %vm1359_vm2 = vmmov %vm1354_vm0 }
 0x2b3   : > { %v912_v12 = vpop.permute.xlu2 %911 }
 0x2b4   : > { %v914_v23 = vunpack.i.h.bf16 %v912_v12  ;;  %v913_v24 = vunpack.i.l.bf16 %v912_v12 }
 0x2b6   : > { %v599_v36 = vsel %vm1353_vm1, %v913_v24, %v914_v23  ;;  %v600_v17 = vsel %vm1354_vm0, %v914_v23, %v913_v24 }
 0x2b7   : > { %v603_v49 = vsel %vm1078_vm6, %v594_v42, %v599_v36  ;;  %v604_v50 = vsel %vm1082_vm7, %v593_v43, %v600_v17  ;;  %v601_v61 = vsel %vm1086_vm8, %v599_v36, %v594_v42 }
 0x2b8   : > { %v625_v56 = vpack.c.bf16 %v603_v49, %v1182_v53  ;;  %v626_v57 = vpack.c.bf16 %v604_v50, %v1184_v54  ;;  %v602_v53 = vsel %vm1352_vm14, %v600_v17, %v593_v43 }
 0x2bb   : > { %v635_v45 = vpop.permute.xlu2 %634 }
 0x2c2   : > { %v902_v11 = vpop.permute.xlu0 %901  ;;  %v922_v30 = vpop.permute.xlu1 %921 }
 0x2c3   : > { %v904_v13 = vunpack.i.h.bf16 %v902_v11  ;;  %v903_v14 = vunpack.i.l.bf16 %v902_v11  ;;  %v924_v44 = vunpack.i.h.bf16 %v922_v30  ;;  %v923_v46 = vunpack.i.l.bf16 %v922_v30 }
 0x2c5   : > { %v615_v19 = vsel %vm1347_vm3, %v903_v14, %v904_v13  ;;  %v616_v22 = vsel %vm1349_vm12, %v904_v13, %v903_v14  ;;  %v583_v37 = vsel %vm1359_vm2, %v923_v46, %v924_v44  ;;  %vm1360_vm3 = vmmov %vm1354_vm0 }
 0x2c6   : > { %v619_v25 = vsel %vm1078_vm6, %v610_v18, %v615_v19  ;;  %v620_v26 = vsel %vm1082_vm7, %v609_v20, %v616_v22  ;;  %v617_v33 = vsel %vm1086_vm8, %v615_v19, %v610_v18  ;;  %v618_v34 = vsel %vm1352_vm14, %v616_v22, %v609_v20 }
 0x2c7   : > { %v629_v28 = vpack.c.bf16 %v619_v25, %v619_v25  ;;  %v630_v29 = vpack.c.bf16 %v620_v26, %v620_v26  ;;  %v627_v47 = vpack.c.bf16 %v567_v62, %v617_v33  ;;  %v628_v48 = vpack.c.bf16 %v572_v3, %v618_v34  ;;  %v556_v3 = vld [vmem:[%s1312_s4] sm:$0xf] }
 0x2c8   : > { %v584_v58 = vsel %vm1360_vm3, %v924_v44, %v923_v46 }
 0x2c9   : > { %v641_v31 = vsel %vm1350_vm13, %v629_v28, 0  ;;  %v644_v32 = vsel %vm1351_vm15, %v630_v29, 0 }
 0x2ca   : > { %v917_v35 = vpop.permute.xlu0 %916  ;;  %649 = vmatpush.bf16.msra.mxu2 %v641_v31  ;;  %662 = vmatpush.bf16.msra.mxu3 %v644_v32 }
 0x2cb   : > { %v919_v21 = vunpack.i.h.bf16 %v917_v35  ;;  %v918_v39 = vunpack.i.l.bf16 %v917_v35 }
 0x2cd   : > { %v578_v51 = vsel %vm1357_vm9, %v919_v21, %v918_v39  ;;  %v577_v55 = vsel %vm1358_vm10, %v918_v39, %v919_v21 }
 0x2ce   : > { %650 = vmatpush.bf16.msra.mxu2 %v627_v47  ;;  %663 = vmatpush.bf16.msra.mxu3 %v628_v48  ;;  %v587_v59 = vsel %vm1078_vm6, %v578_v51, %v583_v37  ;;  %v588_v60 = vsel %vm1082_vm7, %v577_v55, %v584_v58  ;;  %v585_v5 = vsel %vm1086_vm8, %v583_v37, %v578_v51  ;;  %vm1361_vm6 = vcmask 588800  }
 0x2cf   : > { %v623_v54 = vpack.c.bf16 %v601_v61, %v587_v59  ;;  %v624_v62 = vpack.c.bf16 %v602_v53, %v588_v60  ;;  %v586_v40 = vsel %vm1352_vm14, %v584_v58, %v577_v55  ;;  %v621_v41 = vpack.c.bf16 %v1203_v0, %v585_v5  ;;  %vm1362_vm7 = vmmov %vm1361_vm6  ;;  %v736_v59 = vld [vmem:[%s296_s25] sm:$0xff] }
 0x2d0   : > { %v622_v63 = vpack.c.bf16 %v1193_v38, %v586_v40  ;;  %v737_v40 = vunpack.c.l.bf16 %v736_v59 }
 0x2d2   : > { %651 = vmatpush.bf16.msra.mxu2 %v625_v56  ;;  %664 = vmatpush.bf16.msra.mxu3 %v626_v57 }
 0x2d6   : > { %652 = vmatpush.bf16.msra.mxu2 %v623_v54  ;;  %665 = vmatpush.bf16.msra.mxu3 %v624_v62 }
 0x2da   : > { %653 = vmatpush.bf16.msra.mxu2 %v621_v41  ;;  %666 = vmatpush.bf16.msra.mxu3 %v622_v63 }
 0x2dd   : > { %824 = vmatmul.msk.bf16.vlgmr.msra.gmra.mxu2 %vm1361_vm6, %v556_v3  ;;  %825 = vmatmul.msk.bf16.vlgmr.msra.gmra.mxu3 %vm1362_vm7, %v556_v3 }
 0x360   : > { %v655_v4 = vpop.f32.mrf.mxu2  ;;  %v668_v52 = vpop.f32.mrf.mxu3 }
 0x361   : > { %v1277_v6 = vadd.f32 %v655_v4, %v635_v45  ;;  %v1279_v15 = vadd.f32 %v668_v52, %v635_v45  ;;  %v738_v45 = vunpack.c.h.bf16 %v736_v59 }
 0x363   : > { %v672_v0 = vand.u32 2147483647, %v1277_v6  ;;  %v673_v38 = vand.u32 2147483647, %v1279_v15  ;;  %vm682_vm8 = vcmp.ge.f32.partialorder %v1277_v6, 0.0  ;;  %vm683_vm11 = vcmp.ge.f32.partialorder %v1279_v15, 0.0 }
 0x365   : > { %v674_v16 = vsub.f32 0.0, %v672_v0  ;;  %v675_v8 = vsub.f32 0.0, %v673_v38 }
 0x367   : > { %v676_v9 = vmul.f32 1.442695, %v674_v16  ;;  %v678_v10 = vmul.f32 1.442695, %v675_v8 }
 0x368   : > { %v657_v11 = vpop.f32.mrf.mxu2  ;;  %v670_v12 = vpop.f32.mrf.mxu3 }
 0x369   : > { %933 = vpow2.f32 %v676_v9 }
 0x36a   : > { %935 = vpow2.f32 %v678_v10 }
 0x36f   : > { %v934_v13 = vpop.eup %933 }
 0x370   : > { %v936_v14 = vpop.eup %935  ;;  %v680_v18 = vmul.f32 %v934_v13, %v934_v13  ;;  %v684_v19 = vmul.f32 2.0, %v934_v13 }
 0x371   : > { %v681_v20 = vmul.f32 %v936_v14, %v936_v14  ;;  %v685_v22 = vmul.f32 2.0, %v936_v14 }
 0x372   : > { %v686_v23 = vadd.f32 1.0, %v684_v19  ;;  %v692_v24 = vmul.f32 2.0, %v680_v18  ;;  %v696_v25 = vadd.f32 2.0, %v684_v19  ;;  %v688_v46 = vadd.f32 %v684_v19, %v680_v18 }
 0x373   : > { %v687_v26 = vadd.f32 1.0, %v685_v22  ;;  %v693_v7 = vmul.f32 2.0, %v681_v20  ;;  %v697_v27 = vadd.f32 2.0, %v685_v22  ;;  %v689_v55 = vadd.f32 %v685_v22, %v681_v20 }
 0x374   : > { %v694_v28 = vadd.f32 %v692_v24, %v686_v23  ;;  %v698_v29 = vadd.f32 %v696_v25, %v680_v18  ;;  %v690_v37 = vsel %vm682_vm8, %v686_v23, %v688_v46 }
 0x375   : > { %v695_v30 = vadd.f32 %v693_v7, %v687_v26  ;;  %v699_v31 = vadd.f32 %v697_v27, %v681_v20  ;;  %v691_v54 = vsel %vm683_vm11, %v687_v26, %v689_v55 }
 0x376   : > { %v700_v32 = vsel %vm682_vm8, %v694_v28, %v698_v29 }
 0x377   : > { %937 = vrcp.f32 %v700_v32  ;;  %v701_v33 = vsel %vm683_vm11, %v695_v30, %v699_v31  ;;  %v713_v39 = vand.u32 2147483648, %v700_v32  ;;  %v711_v43 = vand.u32 2147483647, %v700_v32 }
 0x378   : > { %939 = vrcp.f32 %v701_v33  ;;  %vm707_vm13 = vweird.f32 %v700_v32  ;;  %v728_v47 = vand.u32 2147483648, %v701_v33  ;;  %v726_v50 = vand.u32 2147483647, %v701_v33 }
 0x379   : > { %v714_v51 = vor.u32 1.1754944e-38, %v713_v39  ;;  %vm712_vm1 = vcmp.eq.f32.partialorder %v711_v43, 8.507059e+37  ;;  %vm722_vm0 = vweird.f32 %v701_v33 }
 0x37a   : > { %v729_v60 = vor.u32 1.1754944e-38, %v728_v47  ;;  %vm727_vm5 = vcmp.eq.f32.partialorder %v726_v50, 8.507059e+37 }
 0x37d   : > { %v938_v34 = vpop.eup %937 }
 0x37e   : > { %v703_v35 = vmul.f32 %v938_v34, %v700_v32  ;;  %v940_v36 = vpop.eup %939  ;;  %vm708_vm12 = vweird.f32 %v938_v34 }
 0x37f   : > { %v718_v21 = vmul.f32 %v940_v36, %v701_v33  ;;  %vm723_vm15 = vweird.f32 %v940_v36  ;;  %vm709_vm14 = vmor %vm707_vm13, %vm708_vm12 }
 0x380   : > { %v704_v17 = vsub.f32 1.0, %v703_v35  ;;  %vm724_vm4 = vmor %vm722_vm0, %vm723_vm15 }
 0x381   : > { %v719_v44 = vsub.f32 1.0, %v718_v21 }
 0x382   : > { %v705_v42 = vmul.f32 %v938_v34, %v704_v17 }
 0x383   : > { %v720_v49 = vmul.f32 %v940_v36, %v719_v44 }
 0x384   : > { %v706_v48 = vadd.f32 %v938_v34, %v705_v42 }
 0x385   : > { %v721_v57 = vadd.f32 %v940_v36, %v720_v49 }
 0x386   : > { %v710_v56 = vsel %vm709_vm14, %v938_v34, %v706_v48 }
 0x387   : > { %v715_v58 = vsel %vm712_vm1, %v714_v51, %v710_v56  ;;  %v725_v53 = vsel %vm724_vm4, %v940_v36, %v721_v57 }
 0x388   : > { %v716_v61 = vmul.f32 %v715_v58, %v690_v37  ;;  %v730_v62 = vsel %vm727_vm5, %v729_v60, %v725_v53 }
 0x389   : > { %v731_v41 = vmul.f32 %v730_v62, %v691_v54 }
 0x38a   : > { %v732_v5 = vmul.f32 %v716_v61, %v1277_v6 }
 0x38b   : > { %v733_v3 = vmul.f32 %v731_v41, %v1279_v15 }
 0x38c   : > { %v734_v63 = vadd.f32 %v732_v5, %v1011_v1 }
 0x38d   : > { %v735_v52 = vadd.f32 %v733_v3, %v1013_v2 }
 0x38e   : > { %v739_v4 = vadd.f32 %v737_v40, %v734_v63 }
 0x38f   : > { %v740_v0 = vadd.f32 %v738_v45, %v735_v52 }
 0x391   : > { %v741_v38 = vpack.c.bf16 %v740_v0, %v739_v4 }
 0x393   : > { %742 = vst [vmem:[%s302_s29] sm:$0xff] %v741_v38 }
 0x394 PF: > { %s17_s24 = sadd.s32 1, %s947_s24  }
 0x395   : > { %p14_p4 = scmp.ge.s32.totalorder %s17_s24, 4  }
 0x397   :  { %16 = sbr.rel (!%p14_p4) target bundleno = 1 (0x1), region = 81 }

// kernel: unet_forward.19
= control target key start
LH: loop header
LB: loop body
LE: loop exit
PB: predicated region body
PF: predicated region fallthrough
CT: control target
= control target key end

     0   :  { %s576_s23 = smov 8   ;;  %s577_s24 = smov 120   ;;  %v30_v4 = vlaneseq  ;;  %v580_v42 = vmov 0   ;;  %vm124_vm4 = vcmask 130048   ;;  %v581_v61 = vmov 1   ;;  %s848_s0 = inlined_call_operand.vmem [shape: bf16[16,128], index: 0, kind: input, shape index: {}]   ;;  %s849_s3 = inlined_call_operand.vmem [shape: f32[16,1], index: 3, kind: input, shape index: {}]   ;;  %s850_s2 = inlined_call_operand.vmem [shape: bf16[16,144], index: 2, kind: input, shape index: {}]   ;;  %s851_s1 = inlined_call_operand.vmem [shape: f32[16,2], index: 1, kind: input, shape index: {}]   ;;  %s852_s5 = inlined_call_operand.vmem [shape: f32[16,1], index: 5, kind: input, shape index: {}]   ;;  %s853_s4 = inlined_call_operand.vmem [shape: bf16[16,144], index: 4, kind: input, shape index: {}]   ;;  %s854_s6 = inlined_call_operand.vmem [shape: bf16[16,128], index: 6, kind: output, shape index: {}]  }
   0x1   :  { %v620_v0 = vld [vmem:[%s848_s0] sm:$0xff]   ;;  %s578_s0 = smov 1   ;;  %s579_s25 = smov 127   ;;  %v104_v37 = vld [vmem:[%s849_s3 + $0x8] sm:$0xff]  ;;  %515 = vset.pattern.permute.xlu0 %v580_v42  ;;  %514 = vset.pattern.permute.xlu2 %v580_v42 }
   0x2   :  { %v461_v1 = vunpack.c.l.bf16 %v620_v0  ;;  %v462_v2 = vunpack.c.h.bf16 %v620_v0  ;;  %v630_v6 = vand.u32 127, %v30_v4  ;;  %v103_v38 = vld [vmem:[%s849_s3] sm:$0xff]  ;;  %v441_v41 = vld [vmem:[%s850_s2 + $0x8] sm:$0xf0]  ;;  %516 = vset.pattern.permute.xlu1 %v580_v42 }
   0x3   :  { %v455_v40 = vld [vmem:[%s850_s2 + $0x4] sm:$0xf]  ;;  %v224_v54 = vld [vmem:[%s851_s1 + $0x8] sm:$0xff] }
   0x4   :  { %v474_v3 = vpack.i.bf16 %v462_v2, %v461_v1  ;;  %v32_v7 = vand.u32 63, %v630_v6  ;;  %v33_v25 = vand.u32 7, %v630_v6  ;;  %v223_v43 = vld [vmem:[%s851_s1] sm:$0xff]  ;;  %v444_v52 = vor.u32 %v455_v40, %v441_v41  ;;  %v314_v9 = vld [vmem:[%s852_s5 + $0x8] sm:$0xff] }
   0x6   :  { %475 = vrot.lane.b32.xlu0 %v474_v3, %s576_s23  ;;  %495 = vrot.lane.b32.xlu2 %v474_v3, %s578_s0  ;;  %vm634_vm0 = vcmp.ge.s32.totalorder %v32_v7, 56  ;;  %vm638_vm1 = vcmp.lt.s32.totalorder %v32_v7, 8  ;;  %vm664_vm2 = vcmp.eq.s32.totalorder %v33_v25, 0  ;;  %vm674_vm3 = vcmp.eq.s32.totalorder %v33_v25, 7 }
   0xe   :  { %480 = vrot.lane.b32.xlu0 %v474_v3, %s577_s24  ;;  %500 = vrot.lane.b32.xlu2 %v474_v3, %s579_s25 }
  0x16   :  { %107 = vperm.xlu2 %514, %v103_v38  }
  0x1e   :  { %234 = vperm.xlu2 %514, %v224_v54  }
  0x26   :  { %518 = vset.pattern.permute.xlu2 %v581_v61 }
  0x27   :  { %247 = vperm.xlu2 %518, %v224_v54  }
  0x2f   :  { %559 = vset.pattern.permute.xlu2 %v580_v42 }
  0x60   :  { %v496_v23 = vpop.permute.xlu2 %495 }
  0x61   :  { %v498_v28 = vunpack.i.h.bf16 %v496_v23  ;;  %v497_v29 = vunpack.i.l.bf16 %v496_v23 }
  0x68   :  { %v501_v26 = vpop.permute.xlu2 %500 }
  0x69   :  { %v503_v31 = vunpack.i.h.bf16 %v501_v26  ;;  %v502_v32 = vunpack.i.l.bf16 %v501_v26 }
  0x6b   :  { %v80_v50 = vsel %vm674_vm3, %v497_v29, %v502_v32  ;;  %v81_v51 = vsel %vm674_vm3, %v498_v28, %v503_v31  ;;  %v78_v59 = vsel %vm664_vm2, %v502_v32, %v497_v29  ;;  %v79_v60 = vsel %vm664_vm2, %v503_v31, %v498_v28 }
  0x6c   :  { %v99_v53 = vpack.c.bf16 %v81_v51, %v80_v50  ;;  %v97_v3 = vpack.c.bf16 %v79_v60, %v78_v59 }
  0x78   :  { %v476_v5 = vpop.permute.xlu0 %475 }
  0x79   :  { %v478_v11 = vunpack.i.h.bf16 %v476_v5  ;;  %v477_v12 = vunpack.i.l.bf16 %v476_v5 }
  0x80   :  { %v481_v8 = vpop.permute.xlu0 %480 }
  0x81   :  { %v483_v13 = vunpack.i.h.bf16 %v481_v8  ;;  %v482_v14 = vunpack.i.l.bf16 %v481_v8 }
  0x83   :  { %v52_v15 = vsel %vm634_vm0, %v477_v12, %v482_v14  ;;  %v53_v16 = vsel %vm634_vm0, %v478_v11, %v483_v13  ;;  %v649_v17 = vsel %vm638_vm1, %v482_v14, %v477_v12  ;;  %v653_v18 = vsel %vm638_vm1, %v483_v13, %v478_v11  ;;  %v439_v12 = vld [vmem:[%s850_s2] sm:$0xf]  ;;  %v456_v13 = vld [vmem:[%s850_s2 + $0x4] sm:$0xf0] }
  0x84   :  { %v484_v19 = vpack.i.bf16 %v53_v16, %v52_v15  ;;  %v101_v20 = vpack.c.bf16 %v53_v16, %v52_v15  ;;  %v504_v21 = vpack.i.bf16 %v653_v18, %v649_v17  ;;  %v95_v22 = vpack.c.bf16 %v653_v18, %v649_v17  ;;  %v108_v16 = vpop.permute.xlu2 %107 }
  0x85   :  { %v440_v15 = vor.u32 %v456_v13, %v439_v12 }
  0x86   :  { %485 = vrot.lane.b32.xlu1 %v484_v19, %s578_s0  ;;  %128 = vmatpush.bf16.msra.mxu0 %v101_v20 }
  0x87   :  { %505 = vrot.lane.b32.xlu0 %v504_v21, %s578_s0 }
  0x8e   :  { %490 = vrot.lane.b32.xlu1 %v484_v19, %s579_s25 }
  0x8f   :  { %112 = vperm.xlu0 %515, %v104_v37  }
  0x96   :  { %510 = vrot.lane.b32.xlu1 %v504_v21, %s579_s25 }
  0x9e   :  { %229 = vperm.xlu1 %516, %v223_v43  }
  0xa6   :  { %517 = vset.pattern.permute.xlu1 %v581_v61  ;;  %v235_v61 = vpop.permute.xlu2 %234 }
  0xa7   :  { %243 = vperm.xlu1 %517, %v223_v43  }
  0xf8   :  { %v486_v24 = vpop.permute.xlu1 %485 }
  0xf9   :  { %v488_v30 = vunpack.i.h.bf16 %v486_v24  ;;  %v487_v34 = vunpack.i.l.bf16 %v486_v24  ;;  %v506_v56 = vpop.permute.xlu0 %505 }
  0xfa   :  { %v508_v62 = vunpack.i.h.bf16 %v506_v56  ;;  %v507_v63 = vunpack.i.l.bf16 %v506_v56 }
 0x100   :  { %v491_v33 = vpop.permute.xlu1 %490 }
 0x101   :  { %v493_v35 = vunpack.i.h.bf16 %v491_v33  ;;  %v492_v36 = vunpack.i.l.bf16 %v491_v33  ;;  %v113_v18 = vpop.permute.xlu0 %112 }
 0x103   :  { %v90_v44 = vsel %vm664_vm2, %v492_v36, %v487_v34  ;;  %v91_v45 = vsel %vm664_vm2, %v493_v35, %v488_v30  ;;  %v92_v46 = vsel %vm674_vm3, %v487_v34, %v492_v36  ;;  %v93_v47 = vsel %vm674_vm3, %v488_v30, %v493_v35 }
 0x104   :  { %v100_v48 = vpack.c.bf16 %v91_v45, %v90_v44  ;;  %v102_v49 = vpack.c.bf16 %v93_v47, %v92_v46 }
 0x106   :  { %129 = vmatpush.bf16.msra.mxu0 %v100_v48  ;;  %149 = vmatpush.bf16.msra.mxu1 %v102_v49 }
 0x108   :  { %v511_v55 = vpop.permute.xlu1 %510 }
 0x109   :  { %445 = vmatmul.msk.bf16.vlgmr.msra.gmra.mxu1 %vm124_vm4, %v444_v52  ;;  %v513_v57 = vunpack.i.h.bf16 %v511_v55  ;;  %v512_v58 = vunpack.i.l.bf16 %v511_v55 }
 0x10a   :  { %130 = vmatpush.bf16.msra.mxu0 %v99_v53 }
 0x10b   :  { %v68_v4 = vsel %vm674_vm3, %v507_v63, %v512_v58  ;;  %v69_v5 = vsel %vm674_vm3, %v508_v62, %v513_v57  ;;  %v64_v8 = vsel %vm664_vm2, %v512_v58, %v507_v63  ;;  %v65_v11 = vsel %vm664_vm2, %v513_v57, %v508_v62 }
 0x10c   :  { %v96_v7 = vpack.c.bf16 %v69_v5, %v68_v4  ;;  %v94_v14 = vpack.c.bf16 %v65_v11, %v64_v8 }
 0x10e   :  { %131 = vmatpush.bf16.msra.mxu0 %v620_v0 }
 0x110   :  { %v230_v57 = vpop.permute.xlu1 %229 }
 0x112   :  { %132 = vmatpush.bf16.msra.mxu0 %v97_v3 }
 0x116   :  { %133 = vmatpush.bf16.msra.mxu0 %v96_v7  ;;  %v219_v7 = vshra.s32 %v630_v6, 6 }
 0x118   :  { %vm740_vm13 = vcmp.eq.s32.totalorder %v219_v7, 0 }
 0x119   :  { %v237_v6 = vsel %vm740_vm13, %v230_v57, 0.0 }
 0x11a   :  { %134 = vmatpush.bf16.msra.mxu0 %v95_v22 }
 0x11e   :  { %135 = vmatpush.bf16.msra.mxu0 %v94_v14 }
 0x121   :  { %136 = vmatmul.bf16.vlgmr.msra.gmra.mxu0 %v440_v15 }
 0x186   :  { %v151_v19 = vpop.f32.mrf.mxu1 }
 0x18e   :  { %v153_v28 = vpop.f32.mrf.mxu1 }
 0x19e   :  { %v137_v20 = vpop.f32.mrf.mxu0 }
 0x19f   :  { %v138_v21 = vadd.f32 %v137_v20, %v108_v16 }
 0x1a1   :  { %v725_v23 = vadd.f32 %v151_v19, %v138_v21 }
 0x1a3   :  { %v156_v17 = vand.u32 2147483647, %v725_v23  ;;  %vm166_vm5 = vcmp.ge.f32.partialorder %v725_v23, 0.0 }
 0x1a5   :  { %v158_v22 = vsub.f32 0.0, %v156_v17 }
 0x1a6   :  { %v139_v24 = vpop.f32.mrf.mxu0 }
 0x1a7   :  { %v160_v25 = vmul.f32 1.442695, %v158_v22  ;;  %v140_v26 = vadd.f32 %v139_v24, %v113_v18  ;;  %v244_v18 = vpop.permute.xlu1 %243 }
 0x1a9   :  { %560 = vpow2.f32 %v160_v25  ;;  %v728_v29 = vadd.f32 %v153_v28, %v140_v26  ;;  %v238_v25 = vsel %vm740_vm13, %v235_v61, 0.0  ;;  %v248_v26 = vpop.permute.xlu2 %247 }
 0x1ab   :  { %v157_v30 = vand.u32 2147483647, %v728_v29  ;;  %vm167_vm6 = vcmp.ge.f32.partialorder %v728_v29, 0.0 }
 0x1ad   :  { %v159_v31 = vsub.f32 0.0, %v157_v30 }
 0x1af   :  { %v561_v32 = vpop.eup %560  ;;  %v162_v33 = vmul.f32 1.442695, %v159_v31 }
 0x1b0   :  { %v164_v34 = vmul.f32 %v561_v32, %v561_v32  ;;  %v168_v35 = vmul.f32 2.0, %v561_v32 }
 0x1b1   :  { %562 = vpow2.f32 %v162_v33 }
 0x1b2   :  { %v170_v36 = vadd.f32 1.0, %v168_v35  ;;  %v176_v37 = vmul.f32 2.0, %v164_v34  ;;  %v180_v38 = vadd.f32 2.0, %v168_v35  ;;  %v172_v3 = vadd.f32 %v168_v35, %v164_v34 }
 0x1b4   :  { %v178_v40 = vadd.f32 %v176_v37, %v170_v36  ;;  %v182_v41 = vadd.f32 %v180_v38, %v164_v34  ;;  %v174_v15 = vsel %vm166_vm5, %v170_v36, %v172_v3  ;;  %v450_v3 = vld [vmem:[%s853_s4 + $0x8] sm:$0xf0] }
 0x1b6   :  { %v184_v42 = vsel %vm166_vm5, %v178_v40, %v182_v41  ;;  %vm239_vm5 = vcmp.eq.s32.totalorder %v219_v7, 1 }
 0x1b7   :  { %v563_v43 = vpop.eup %562  ;;  %564 = vrcp.f32 %v184_v42  ;;  %v197_v56 = vand.u32 2147483648, %v184_v42  ;;  %vm191_vm8 = vweird.f32 %v184_v42  ;;  %v195_v59 = vand.u32 2147483647, %v184_v42 }
 0x1b8   :  { %v165_v44 = vmul.f32 %v563_v43, %v563_v43  ;;  %v169_v45 = vmul.f32 2.0, %v563_v43  ;;  %v250_v31 = vsel %vm239_vm5, %v244_v18, %v237_v6  ;;  %v251_v33 = vsel %vm239_vm5, %v248_v26, %v238_v25 }
 0x1b9   :  { %v198_v4 = vor.u32 1.1754944e-38, %v197_v56  ;;  %vm196_vm10 = vcmp.eq.f32.partialorder %v195_v59, 8.507059e+37 }
 0x1ba   :  { %v171_v46 = vadd.f32 1.0, %v169_v45  ;;  %v177_v47 = vmul.f32 2.0, %v165_v44  ;;  %v181_v48 = vadd.f32 2.0, %v169_v45  ;;  %v173_v14 = vadd.f32 %v169_v45, %v165_v44 }
 0x1bc   :  { %v179_v49 = vadd.f32 %v177_v47, %v171_v46  ;;  %v183_v50 = vadd.f32 %v181_v48, %v165_v44  ;;  %v175_v22 = vsel %vm167_vm6, %v171_v46, %v173_v14 }
 0x1bd   :  { %v565_v51 = vpop.eup %564 }
 0x1be   :  { %v187_v52 = vmul.f32 %v565_v51, %v184_v42  ;;  %v185_v53 = vsel %vm167_vm6, %v179_v49, %v183_v50  ;;  %vm192_vm7 = vweird.f32 %v565_v51 }
 0x1bf   :  { %566 = vrcp.f32 %v185_v53  ;;  %vm193_vm9 = vmor %vm191_vm8, %vm192_vm7  ;;  %v212_v8 = vand.u32 2147483648, %v185_v53  ;;  %v210_v13 = vand.u32 2147483647, %v185_v53  ;;  %vm206_vm12 = vweird.f32 %v185_v53 }
 0x1c0   :  { %v188_v54 = vsub.f32 1.0, %v187_v52 }
 0x1c1   :  { %v213_v21 = vor.u32 1.1754944e-38, %v212_v8  ;;  %vm211_vm15 = vcmp.eq.f32.partialorder %v210_v13, 8.507059e+37 }
 0x1c2   :  { %v189_v55 = vmul.f32 %v565_v51, %v188_v54 }
 0x1c4   :  { %v190_v58 = vadd.f32 %v565_v51, %v189_v55 }
 0x1c5   :  { %v567_v60 = vpop.eup %566 }
 0x1c6   :  { %v202_v62 = vmul.f32 %v567_v60, %v185_v53  ;;  %v194_v63 = vsel %vm193_vm9, %v565_v51, %v190_v58  ;;  %vm207_vm11 = vweird.f32 %v567_v60 }
 0x1c7   :  { %v199_v11 = vsel %vm196_vm10, %v198_v4, %v194_v63  ;;  %vm208_vm14 = vmor %vm206_vm12, %vm207_vm11  ;;  %v457_v63 = vld [vmem:[%s853_s4 + $0x4] sm:$0xf] }
 0x1c8   :  { %v203_v5 = vsub.f32 1.0, %v202_v62  ;;  %v200_v19 = vmul.f32 %v199_v11, %v174_v15  ;;  %v453_v15 = vor.u32 %v457_v63, %v450_v3 }
 0x1ca   :  { %v204_v12 = vmul.f32 %v567_v60, %v203_v5  ;;  %v216_v30 = vmul.f32 %v200_v19, %v725_v23 }
 0x1cc   :  { %v205_v16 = vadd.f32 %v567_v60, %v204_v12  ;;  %v754_v35 = vadd.f32 %v250_v31, %v216_v30 }
 0x1ce   :  { %v209_v17 = vsel %vm208_vm14, %v567_v60, %v205_v16  ;;  %v313_v60 = vld [vmem:[%s852_s5] sm:$0xff] }
 0x1cf   :  { %v214_v24 = vsel %vm211_vm15, %v213_v21, %v209_v17 }
 0x1d0   :  { %v215_v28 = vmul.f32 %v214_v24, %v175_v22 }
 0x1d2   :  { %v217_v32 = vmul.f32 %v215_v28, %v728_v29 }
 0x1d4   :  { %v752_v34 = vadd.f32 %v251_v33, %v217_v32  ;;  %v448_v33 = vld [vmem:[%s853_s4] sm:$0xf] }
 0x1d6   :  { %v524_v36 = vpack.i.bf16 %v752_v34, %v754_v35  ;;  %v308_v37 = vpack.c.bf16 %v752_v34, %v754_v35  ;;  %v458_v34 = vld [vmem:[%s853_s4 + $0x4] sm:$0xf0] }
 0x1d7   :  { %v449_v35 = vor.u32 %v458_v34, %v448_v33 }
 0x1d8   :  { %525 = vrot.lane.b32.xlu1 %v524_v36, %s577_s24  ;;  %520 = vrot.lane.b32.xlu0 %v524_v36, %s576_s23 }
 0x1e0   :  { %540 = vrot.lane.b32.xlu1 %v524_v36, %s578_s0 }
 0x24a   :  { %v526_v23 = vpop.permute.xlu1 %525  ;;  %v521_v38 = vpop.permute.xlu0 %520 }
 0x24b   :  { %v528_v29 = vunpack.i.h.bf16 %v526_v23  ;;  %v527_v40 = vunpack.i.l.bf16 %v526_v23  ;;  %v523_v41 = vunpack.i.h.bf16 %v521_v38  ;;  %v522_v42 = vunpack.i.l.bf16 %v521_v38 }
 0x24d   :  { %v266_v43 = vsel %vm634_vm0, %v522_v42, %v527_v40  ;;  %v267_v44 = vsel %vm634_vm0, %v523_v41, %v528_v29  ;;  %v769_v45 = vsel %vm638_vm1, %v527_v40, %v522_v42  ;;  %v773_v46 = vsel %vm638_vm1, %v528_v29, %v523_v41 }
 0x24e   :  { %v534_v47 = vpack.i.bf16 %v267_v44, %v266_v43  ;;  %v311_v48 = vpack.c.bf16 %v267_v44, %v266_v43  ;;  %v554_v49 = vpack.i.bf16 %v773_v46, %v769_v45  ;;  %v305_v50 = vpack.c.bf16 %v773_v46, %v769_v45 }
 0x250   :  { %535 = vrot.lane.b32.xlu0 %v534_v47, %s579_s25  ;;  %530 = vrot.lane.b32.xlu2 %v534_v47, %s578_s0 }
 0x251   :  { %337 = vmatpush.bf16.msra.mxu2 %v311_v48  ;;  %555 = vrot.lane.b32.xlu1 %v554_v49, %s579_s25 }
 0x252   :  { %v541_v52 = vpop.permute.xlu1 %540 }
 0x253   :  { %v543_v61 = vunpack.i.h.bf16 %v541_v52  ;;  %v542_v62 = vunpack.i.l.bf16 %v541_v52 }
 0x258   :  { %545 = vrot.lane.b32.xlu2 %v524_v36, %s579_s25  ;;  %550 = vrot.lane.b32.xlu0 %v554_v49, %s578_s0 }
 0x260   :  { %322 = vperm.xlu0 %515, %v314_v9   ;;  %317 = vperm.xlu2 %559, %v313_v60  }
 0x2aa   :  { %v531_v10 = vpop.permute.xlu2 %530 }
 0x2ab   :  { %v533_v53 = vunpack.i.h.bf16 %v531_v10  ;;  %v532_v54 = vunpack.i.l.bf16 %v531_v10 }
 0x2b2   :  { %v546_v51 = vpop.permute.xlu2 %545 }
 0x2b3   :  { %v548_v56 = vunpack.i.h.bf16 %v546_v51  ;;  %v547_v57 = vunpack.i.l.bf16 %v546_v51 }
 0x2b5   :  { %v290_v13 = vsel %vm674_vm3, %v542_v62, %v547_v57  ;;  %v291_v14 = vsel %vm674_vm3, %v543_v61, %v548_v56  ;;  %v288_v6 = vsel %vm664_vm2, %v547_v57, %v542_v62  ;;  %v289_v18 = vsel %vm664_vm2, %v548_v56, %v543_v61 }
 0x2b6   :  { %v309_v16 = vpack.c.bf16 %v291_v14, %v290_v13  ;;  %v307_v25 = vpack.c.bf16 %v289_v18, %v288_v6 }
 0x2ba   :  { %v318_v36 = vpop.permute.xlu2 %317 }
 0x2c2   :  { %v536_v55 = vpop.permute.xlu0 %535 }
 0x2c3   :  { %v538_v58 = vunpack.i.h.bf16 %v536_v55  ;;  %v537_v59 = vunpack.i.l.bf16 %v536_v55  ;;  %v556_v20 = vpop.permute.xlu1 %555 }
 0x2c4   :  { %v558_v22 = vunpack.i.h.bf16 %v556_v20  ;;  %v557_v24 = vunpack.i.l.bf16 %v556_v20 }
 0x2c5   :  { %v300_v4 = vsel %vm664_vm2, %v537_v59, %v532_v54  ;;  %v301_v5 = vsel %vm664_vm2, %v538_v58, %v533_v53  ;;  %v302_v7 = vsel %vm674_vm3, %v532_v54, %v537_v59  ;;  %v303_v8 = vsel %vm674_vm3, %v533_v53, %v538_v58 }
 0x2c6   :  { %v310_v11 = vpack.c.bf16 %v301_v5, %v300_v4  ;;  %v312_v12 = vpack.c.bf16 %v303_v8, %v302_v7 }
 0x2c8   :  { %338 = vmatpush.bf16.msra.mxu2 %v310_v11  ;;  %358 = vmatpush.bf16.msra.mxu3 %v312_v12 }
 0x2ca   :  { %v551_v19 = vpop.permute.xlu0 %550 }
 0x2cb   :  { %454 = vmatmul.msk.bf16.vlgmr.msra.gmra.mxu3 %vm124_vm4, %v453_v15  ;;  %v553_v21 = vunpack.i.h.bf16 %v551_v19  ;;  %v552_v17 = vunpack.i.l.bf16 %v551_v19 }
 0x2cc   :  { %339 = vmatpush.bf16.msra.mxu2 %v309_v16 }
 0x2cd   :  { %v278_v26 = vsel %vm674_vm3, %v552_v17, %v557_v24  ;;  %v279_v28 = vsel %vm674_vm3, %v553_v21, %v558_v22  ;;  %v276_v31 = vsel %vm664_vm2, %v557_v24, %v552_v17  ;;  %v277_v32 = vsel %vm664_vm2, %v558_v22, %v553_v21 }
 0x2ce   :  { %v306_v30 = vpack.c.bf16 %v279_v28, %v278_v26  ;;  %v304_v39 = vpack.c.bf16 %v277_v32, %v276_v31 }
 0x2d0   :  { %340 = vmatpush.bf16.msra.mxu2 %v308_v37 }
 0x2d2   :  { %v323_v41 = vpop.permute.xlu0 %322 }
 0x2d4   :  { %341 = vmatpush.bf16.msra.mxu2 %v307_v25 }
 0x2d8   :  { %342 = vmatpush.bf16.msra.mxu2 %v306_v30 }
 0x2dc   :  { %343 = vmatpush.bf16.msra.mxu2 %v305_v50 }
 0x2e0   :  { %344 = vmatpush.bf16.msra.mxu2 %v304_v39 }
 0x2e3   :  { %345 = vmatmul.bf16.vlgmr.msra.gmra.mxu2 %v449_v35 }
 0x34e   :  { %v360_v37 = vpop.f32.mrf.mxu3 }
 0x356   :  { %v362_v45 = vpop.f32.mrf.mxu3 }
 0x366   :  { %v346_v23 = vpop.f32.mrf.mxu2 }
 0x367   :  { %v347_v38 = vadd.f32 %v346_v23, %v318_v36 }
 0x369   :  { %v830_v29 = vadd.f32 %v360_v37, %v347_v38 }
 0x36b   :  { %v365_v27 = vand.u32 2147483647, %v830_v29  ;;  %vm375_vm0 = vcmp.ge.f32.partialorder %v830_v29, 0.0 }
 0x36d   :  { %v367_v40 = vsub.f32 0.0, %v365_v27 }
 0x36e   :  { %v348_v42 = vpop.f32.mrf.mxu2 }
 0x36f   :  { %v369_v43 = vmul.f32 1.442695, %v367_v40  ;;  %v349_v44 = vadd.f32 %v348_v42, %v323_v41 }
 0x371   :  { %568 = vpow2.f32 %v369_v43  ;;  %v363_v46 = vadd.f32 %v362_v45, %v349_v44 }
 0x373   :  { %v366_v47 = vand.u32 2147483647, %v363_v46  ;;  %vm376_vm1 = vcmp.ge.f32.partialorder %v363_v46, 0.0 }
 0x375   :  { %v368_v48 = vsub.f32 0.0, %v366_v47 }
 0x377   :  { %v569_v49 = vpop.eup %568  ;;  %v371_v50 = vmul.f32 1.442695, %v368_v48 }
 0x378   :  { %v373_v9 = vmul.f32 %v569_v49, %v569_v49  ;;  %v377_v10 = vmul.f32 2.0, %v569_v49 }
 0x379   :  { %570 = vpow2.f32 %v371_v50 }
 0x37a   :  { %v379_v51 = vadd.f32 1.0, %v377_v10  ;;  %v385_v52 = vmul.f32 2.0, %v373_v9  ;;  %v389_v53 = vadd.f32 2.0, %v377_v10  ;;  %v381_v20 = vadd.f32 %v377_v10, %v373_v9 }
 0x37c   :  { %v387_v54 = vadd.f32 %v385_v52, %v379_v51  ;;  %v391_v55 = vadd.f32 %v389_v53, %v373_v9  ;;  %v383_v25 = vsel %vm375_vm0, %v379_v51, %v381_v20 }
 0x37e   :  { %v393_v56 = vsel %vm375_vm0, %v387_v54, %v391_v55 }
 0x37f   :  { %v571_v57 = vpop.eup %570  ;;  %572 = vrcp.f32 %v393_v56  ;;  %v406_v12 = vand.u32 2147483648, %v393_v56  ;;  %vm400_vm3 = vweird.f32 %v393_v56  ;;  %v404_v14 = vand.u32 2147483647, %v393_v56 }
 0x380   :  { %v374_v58 = vmul.f32 %v571_v57, %v571_v57  ;;  %v378_v59 = vmul.f32 2.0, %v571_v57 }
 0x381   :  { %v407_v21 = vor.u32 1.1754944e-38, %v406_v12  ;;  %vm405_vm6 = vcmp.eq.f32.partialorder %v404_v14, 8.507059e+37 }
 0x382   :  { %v380_v60 = vadd.f32 1.0, %v378_v59  ;;  %v386_v61 = vmul.f32 2.0, %v374_v58  ;;  %v390_v62 = vadd.f32 2.0, %v378_v59  ;;  %v382_v26 = vadd.f32 %v378_v59, %v374_v58 }
 0x384   :  { %v388_v63 = vadd.f32 %v386_v61, %v380_v60  ;;  %v392_v3 = vadd.f32 %v390_v62, %v374_v58  ;;  %v384_v33 = vsel %vm376_vm1, %v380_v60, %v382_v26 }
 0x385   :  { %v573_v4 = vpop.eup %572 }
 0x386   :  { %v396_v5 = vmul.f32 %v573_v4, %v393_v56  ;;  %v394_v7 = vsel %vm376_vm1, %v388_v63, %v392_v3  ;;  %vm401_vm2 = vweird.f32 %v573_v4 }
 0x387   :  { %574 = vrcp.f32 %v394_v7  ;;  %vm402_vm4 = vmor %vm400_vm3, %vm401_vm2  ;;  %v421_v18 = vand.u32 2147483648, %v394_v7  ;;  %v419_v24 = vand.u32 2147483647, %v394_v7  ;;  %vm415_vm8 = vweird.f32 %v394_v7 }
 0x388   :  { %v397_v8 = vsub.f32 1.0, %v396_v5 }
 0x389   :  { %v422_v31 = vor.u32 1.1754944e-38, %v421_v18  ;;  %vm420_vm10 = vcmp.eq.f32.partialorder %v419_v24, 8.507059e+37 }
 0x38a   :  { %v398_v11 = vmul.f32 %v573_v4, %v397_v8 }
 0x38c   :  { %v399_v13 = vadd.f32 %v573_v4, %v398_v11 }
 0x38d   :  { %v575_v15 = vpop.eup %574 }
 0x38e   :  { %v403_v16 = vsel %vm402_vm4, %v573_v4, %v399_v13  ;;  %v411_v19 = vmul.f32 %v575_v15, %v394_v7  ;;  %vm416_vm7 = vweird.f32 %v575_v15 }
 0x38f   :  { %v408_v6 = vsel %vm405_vm6, %v407_v21, %v403_v16  ;;  %vm417_vm9 = vmor %vm415_vm8, %vm416_vm7 }
 0x390   :  { %v412_v17 = vsub.f32 1.0, %v411_v19  ;;  %v409_v28 = vmul.f32 %v408_v6, %v383_v25 }
 0x392   :  { %v413_v22 = vmul.f32 %v575_v15, %v412_v17  ;;  %v425_v39 = vmul.f32 %v409_v28, %v830_v29 }
 0x394   :  { %v414_v30 = vadd.f32 %v575_v15, %v413_v22  ;;  %v427_v37 = vadd.f32 %v461_v1, %v425_v39 }
 0x396   :  { %v418_v32 = vsel %vm417_vm9, %v575_v15, %v414_v30 }
 0x397   :  { %v423_v34 = vsel %vm420_vm10, %v422_v31, %v418_v32 }
 0x398   :  { %v424_v35 = vmul.f32 %v423_v34, %v384_v33 }
 0x39a   :  { %v426_v36 = vmul.f32 %v424_v35, %v363_v46 }
 0x39c   :  { %v428_v23 = vadd.f32 %v462_v2, %v426_v36 }
 0x39e   :  { %v466_v38 = vpack.c.bf16 %v428_v23, %v427_v37 }
 0x3a0   :  { %467 = vst [vmem:[%s854_s6] sm:$0xff] %v466_v38  }

// kernel: unet_forward.18
= control target key start
LH: loop header
LB: loop body
LE: loop exit
PB: predicated region body
PF: predicated region fallthrough
CT: control target
= control target key end

     0   :  { %s542_s29 = smov 8   ;;  %s543_s30 = smov 120   ;;  %v34_v2 = vlaneseq  ;;  %v546_v15 = vmov 0   ;;  %vm100_vm3 = vcmask 1043456   ;;  %v547_v24 = vmov 1   ;;  %s804_s0 = inlined_call_operand.vmem [shape: bf16[8,128], index: 0, kind: input, shape index: {}]   ;;  %s805_s3 = inlined_call_operand.vmem [shape: f32[16,1], index: 3, kind: input, shape index: {}]   ;;  %s806_s1 = inlined_call_operand.vmem [shape: f32[16,2], index: 1, kind: input, shape index: {}]   ;;  %s807_s2 = inlined_call_operand.vmem [shape: bf16[16,72], index: 2, kind: input, shape index: {}]   ;;  %s808_s6 = inlined_call_operand.vmem [shape: bf16[16,8], index: 6, kind: input, shape index: {}]   ;;  %s809_s7 = inlined_call_operand.vmem [shape: f32[16,1], index: 7, kind: input, shape index: {}]   ;;  %s810_s4 = inlined_call_operand.vmem [shape: bf16[16,144], index: 4, kind: input, shape index: {}]   ;;  %s811_s5 = inlined_call_operand.vmem [shape: f32[16,1], index: 5, kind: input, shape index: {}]   ;;  %s812_s8 = inlined_call_operand.vmem [shape: bf16[16,128], index: 8, kind: output, shape index: {}]  }
   0x1   :  { %v596_v0 = vld [vmem:[%s804_s0] sm:$0xf]  ;;  %s544_s0 = smov 1   ;;  %s545_s9 = smov 127   ;;  %v80_v14 = vld [vmem:[%s805_s3 + $0x8] sm:$0xff]  ;;  %479 = vset.pattern.permute.xlu1 %v546_v15  ;;  %480 = vset.pattern.permute.xlu2 %v546_v15  ;;  %vm96_vm5 = vcmask 588800  }
   0x2   :  { %v599_v1 = vunpack.c.l.bf16 %v596_v0  ;;  %v605_v3 = vand.u32 127, %v34_v2  ;;  %v79_v13 = vld [vmem:[%s805_s3] sm:$0xff]  ;;  %481 = vset.pattern.permute.xlu0 %v546_v15  ;;  %v186_v19 = vld [vmem:[%s806_s1 + $0x8] sm:$0xff] }
   0x3   :  { %v185_v16 = vld [vmem:[%s806_s1] sm:$0xff]  ;;  %v461_v20 = vld [vmem:[%s810_s4 + $0x4] sm:$0xf0] }
   0x4   :  { %42 = vrot.lane.b32.xlu0 %v599_v1, %s542_s29  ;;  %v36_v5 = vand.u32 63, %v605_v3  ;;  %v37_v18 = vand.u32 7, %v605_v3  ;;  %v459_v40 = vld [vmem:[%s807_s2] sm:$0xff] }
   0x5   :  { %v392_v6 = vld [vmem:[%s809_s7] sm:$0xff] }
   0x6   :  { %vm608_vm0 = vcmp.ge.s32.totalorder %v36_v5, 56  ;;  %vm612_vm1 = vcmp.lt.s32.totalorder %v36_v5, 8  ;;  %vm640_vm2 = vcmp.eq.s32.totalorder %v37_v18, 7  ;;  %vm646_vm4 = vcmp.eq.s32.totalorder %v37_v18, 0 }
   0xc   :  { %44 = vrot.lane.b32.xlu0 %v599_v1, %s543_s30 }
  0x76   :  { %v43_v4 = vpop.permute.xlu0 %42 }
  0x7e   :  { %v45_v8 = vpop.permute.xlu0 %44 }
  0x7f   :  { %v51_v9 = vsel %vm608_vm0, %v43_v4, %v45_v8  ;;  %v48_v10 = vsel %vm612_vm1, %v45_v8, %v43_v4 }
  0x80   :  { %68 = vrot.lane.b32.xlu1 %v51_v9, %s544_s0  ;;  %54 = vrot.lane.b32.xlu0 %v48_v10, %s545_s9  ;;  %v474_v11 = vpack.i.bf16 %v48_v10, %v599_v1 }
  0x82   :  { %475 = vrot.lane.b32.xlu2 %v474_v11, %s544_s0 }
  0x88   :  { %70 = vrot.lane.b32.xlu1 %v51_v9, %s545_s9  ;;  %191 = vperm.xlu0 %481, %v185_v16  }
  0x8a   :  { %64 = vrot.lane.b32.xlu2 %v599_v1, %s545_s9 }
  0x90   :  { %83 = vperm.xlu1 %479, %v79_v13  }
  0x92   :  { %88 = vperm.xlu2 %480, %v80_v14  }
  0x98   :  { %196 = vperm.xlu1 %479, %v186_v19  }
  0x9a   :  { %482 = vset.pattern.permute.xlu2 %v547_v24 }
  0x9b   :  { %205 = vperm.xlu2 %482, %v185_v16  }
  0xa0   :  { %483 = vset.pattern.permute.xlu1 %v547_v24 }
  0xa1   :  { %209 = vperm.xlu1 %483, %v186_v19  }
  0xa3   :  { %525 = vset.pattern.permute.xlu2 %v546_v15 }
  0xa9   :  { %524 = vset.pattern.permute.xlu1 %v546_v15 }
  0xdc   :  { %v476_v17 = vpop.permute.xlu2 %475 }
  0xdd   :  { %v477_v29 = vunpack.i.l.bf16 %v476_v17  ;;  %v478_v33 = vunpack.i.h.bf16 %v476_v17 }
  0xe4   :  { %v65_v28 = vpop.permute.xlu2 %64 }
  0xe5   :  { %v67_v31 = vsel %vm640_vm2, %v477_v29, %v65_v28  ;;  %v66_v36 = vsel %vm646_vm4, %v65_v28, %v477_v29 }
  0xe6   :  { %v76_v34 = vpack.c.bf16 %v67_v31, %v599_v1 }
  0xec   :  { %v89_v46 = vpop.permute.xlu2 %88 }
  0xf2   :  { %v69_v12 = vpop.permute.xlu1 %68  ;;  %v55_v32 = vpop.permute.xlu0 %54 }
  0xf3   :  { %v61_v35 = vsel %vm640_vm2, %v478_v33, %v55_v32  ;;  %v58_v38 = vsel %vm646_vm4, %v55_v32, %v478_v33 }
  0xf4   :  { %v75_v37 = vpack.c.bf16 %v66_v36, %v61_v35  ;;  %v74_v39 = vpack.c.bf16 %v48_v10, %v58_v38 }
  0xfa   :  { %v71_v21 = vpop.permute.xlu1 %70 }
  0xfb   :  { %v73_v22 = vsel %vm640_vm2, %v69_v12, %v71_v21  ;;  %v72_v26 = vsel %vm646_vm4, %v71_v21, %v69_v12 }
  0xfc   :  { %v78_v23 = vpack.c.bf16 %v73_v22, %v73_v22  ;;  %v77_v30 = vpack.c.bf16 %v51_v9, %v72_v26 }
  0xfe   :  { %v102_v27 = vsel %vm100_vm3, %v78_v23, 0 }
  0xff   :  { %107 = vmatpush.bf16.msra.mxu0 %v102_v27  ;;  %v181_v27 = vshra.s32 %v605_v3, 6 }
 0x101   :  { %vm680_vm14 = vcmp.eq.s32.totalorder %v181_v27, 0 }
 0x102   :  { %v84_v41 = vpop.permute.xlu1 %83 }
 0x103   :  { %108 = vmatpush.bf16.msra.mxu0 %v77_v30 }
 0x107   :  { %109 = vmatpush.bf16.msra.mxu0 %v76_v34  ;;  %v192_v34 = vpop.permute.xlu0 %191 }
 0x10a   :  { %v197_v19 = vpop.permute.xlu1 %196 }
 0x10b   :  { %110 = vmatpush.bf16.msra.mxu0 %v75_v37 }
 0x10f   :  { %111 = vmatpush.bf16.msra.mxu0 %v74_v39  ;;  %v199_v39 = vsel %vm680_vm14, %v192_v34, 0.0 }
 0x112   :  { %444 = vmatmul.msk.bf16.vlgmr.msra.gmra.mxu0 %vm96_vm5, %v459_v40  ;;  %v206_v40 = vpop.permute.xlu2 %205 }
 0x18f   :  { %v113_v42 = vpop.f32.mrf.mxu0 }
 0x190   :  { %v665_v43 = vadd.f32 %v113_v42, %v84_v41 }
 0x192   :  { %v118_v44 = vand.u32 2147483647, %v665_v43  ;;  %vm128_vm6 = vcmp.ge.f32.partialorder %v665_v43, 0.0 }
 0x194   :  { %v120_v45 = vsub.f32 0.0, %v118_v44  ;;  %v200_v44 = vsel %vm680_vm14, %v197_v19, 0.0 }
 0x196   :  { %v122_v47 = vmul.f32 1.442695, %v120_v45  ;;  %v210_v45 = vpop.permute.xlu1 %209 }
 0x197   :  { %v115_v48 = vpop.f32.mrf.mxu0 }
 0x198   :  { %526 = vpow2.f32 %v122_v47  ;;  %v668_v49 = vadd.f32 %v115_v48, %v89_v46 }
 0x19a   :  { %v119_v50 = vand.u32 2147483647, %v668_v49  ;;  %vm129_vm7 = vcmp.ge.f32.partialorder %v668_v49, 0.0 }
 0x19c   :  { %v121_v51 = vsub.f32 0.0, %v119_v50 }
 0x19e   :  { %v527_v52 = vpop.eup %526  ;;  %v124_v53 = vmul.f32 1.442695, %v121_v51 }
 0x19f   :  { %v126_v54 = vmul.f32 %v527_v52, %v527_v52  ;;  %v130_v55 = vmul.f32 2.0, %v527_v52 }
 0x1a0   :  { %528 = vpow2.f32 %v124_v53 }
 0x1a1   :  { %v132_v56 = vadd.f32 1.0, %v130_v55  ;;  %v138_v57 = vmul.f32 2.0, %v126_v54  ;;  %v142_v58 = vadd.f32 2.0, %v130_v55  ;;  %v134_v23 = vadd.f32 %v130_v55, %v126_v54 }
 0x1a3   :  { %v140_v59 = vadd.f32 %v138_v57, %v132_v56  ;;  %v144_v60 = vadd.f32 %v142_v58, %v126_v54  ;;  %v136_v32 = vsel %vm128_vm6, %v132_v56, %v134_v23 }
 0x1a5   :  { %v146_v61 = vsel %vm128_vm6, %v140_v59, %v144_v60  ;;  %vm201_vm6 = vcmp.eq.s32.totalorder %v181_v27, 1 }
 0x1a6   :  { %v529_v62 = vpop.eup %528  ;;  %530 = vrcp.f32 %v146_v61  ;;  %v159_v15 = vand.u32 2147483648, %v146_v61  ;;  %vm153_vm9 = vweird.f32 %v146_v61  ;;  %v157_v17 = vand.u32 2147483647, %v146_v61 }
 0x1a7   :  { %v127_v63 = vmul.f32 %v529_v62, %v529_v62  ;;  %v131_v1 = vmul.f32 2.0, %v529_v62  ;;  %v212_v48 = vsel %vm201_vm6, %v206_v40, %v199_v39  ;;  %v213_v51 = vsel %vm201_vm6, %v210_v45, %v200_v44 }
 0x1a8   :  { %v160_v24 = vor.u32 1.1754944e-38, %v159_v15  ;;  %vm158_vm11 = vcmp.eq.f32.partialorder %v157_v17, 8.507059e+37  ;;  %v449_v15 = vld [vmem:[%s810_s4 + $0x8] sm:$0xf0] }
 0x1a9   :  { %v133_v2 = vadd.f32 1.0, %v131_v1  ;;  %v139_v4 = vmul.f32 2.0, %v127_v63  ;;  %v143_v5 = vadd.f32 2.0, %v131_v1  ;;  %v135_v33 = vadd.f32 %v131_v1, %v127_v63 }
 0x1ab   :  { %v141_v8 = vadd.f32 %v139_v4, %v133_v2  ;;  %v145_v9 = vadd.f32 %v143_v5, %v127_v63  ;;  %v137_v41 = vsel %vm129_vm7, %v133_v2, %v135_v33 }
 0x1ac   :  { %v531_v10 = vpop.eup %530 }
 0x1ad   :  { %v149_v11 = vmul.f32 %v531_v10, %v146_v61  ;;  %v147_v12 = vsel %vm129_vm7, %v141_v8, %v145_v9  ;;  %vm154_vm8 = vweird.f32 %v531_v10  ;;  %vm409_vm7 = vcmask 64512  }
 0x1ae   :  { %532 = vrcp.f32 %v147_v12  ;;  %vm155_vm10 = vmor %vm153_vm9, %vm154_vm8  ;;  %v174_v28 = vand.u32 2147483648, %v147_v12  ;;  %v172_v31 = vand.u32 2147483647, %v147_v12  ;;  %vm168_vm13 = vweird.f32 %v147_v12 }
 0x1af   :  { %v150_v13 = vsub.f32 1.0, %v149_v11 }
 0x1b0   :  { %v175_v38 = vor.u32 1.1754944e-38, %v174_v28  ;;  %vm173_vm5 = vcmp.eq.f32.partialorder %v172_v31, 8.507059e+37 }
 0x1b1   :  { %v151_v14 = vmul.f32 %v531_v10, %v150_v13 }
 0x1b3   :  { %v152_v16 = vadd.f32 %v531_v10, %v151_v14  ;;  %v460_v14 = vld [vmem:[%s810_s4 + $0x4] sm:$0xf] }
 0x1b4   :  { %v533_v18 = vpop.eup %532  ;;  %v452_v23 = vor.u32 %v460_v14, %v449_v15 }
 0x1b5   :  { %v164_v21 = vmul.f32 %v533_v18, %v147_v12  ;;  %v156_v22 = vsel %vm155_vm10, %v531_v10, %v152_v16  ;;  %vm169_vm12 = vweird.f32 %v533_v18 }
 0x1b6   :  { %v161_v29 = vsel %vm158_vm11, %v160_v24, %v156_v22  ;;  %vm170_vm15 = vmor %vm168_vm13, %vm169_vm12  ;;  %v275_v24 = vld [vmem:[%s811_s5] sm:$0xff] }
 0x1b7   :  { %v165_v26 = vsub.f32 1.0, %v164_v21  ;;  %v162_v36 = vmul.f32 %v161_v29, %v136_v32 }
 0x1b9   :  { %v166_v30 = vmul.f32 %v533_v18, %v165_v26  ;;  %v178_v47 = vmul.f32 %v162_v36, %v665_v43  ;;  %v414_v43 = vsel %vm100_vm3, %v596_v0, 0  ;;  %v276_v26 = vld [vmem:[%s811_s5 + $0x8] sm:$0xff] }
 0x1ba   :  { %423 = vmatpush.bf16.msra.mxu3 %v414_v43  ;;  %v393_v36 = vld [vmem:[%s809_s7 + $0x8] sm:$0xff] }
 0x1bb   :  { %v167_v35 = vadd.f32 %v533_v18, %v166_v30  ;;  %v694_v53 = vadd.f32 %v212_v48, %v178_v47 }
 0x1bd   :  { %v171_v3 = vsel %vm170_vm15, %v533_v18, %v167_v35 }
 0x1be   :  { %v176_v42 = vsel %vm173_vm5, %v175_v38, %v171_v3 }
 0x1bf   :  { %v177_v46 = vmul.f32 %v176_v42, %v137_v41 }
 0x1c1   :  { %v179_v50 = vmul.f32 %v177_v46, %v668_v49  ;;  %v462_v49 = vld [vmem:[%s808_s6] sm:$0xff] }
 0x1c2   :  { %458 = vmatmul.msk.bf16.vlgmr.msra.gmra.mxu3 %vm409_vm7, %v462_v49 }
 0x1c3   :  { %v692_v52 = vadd.f32 %v213_v51, %v179_v50 }
 0x1c5   :  { %v489_v54 = vpack.i.bf16 %v692_v52, %v694_v53  ;;  %v270_v55 = vpack.c.bf16 %v692_v52, %v694_v53  ;;  %v447_v52 = vld [vmem:[%s810_s4] sm:$0xf] }
 0x1c7   :  { %490 = vrot.lane.b32.xlu0 %v489_v54, %s543_s30  ;;  %485 = vrot.lane.b32.xlu2 %v489_v54, %s542_s29 }
 0x1cf   :  { %505 = vrot.lane.b32.xlu0 %v489_v54, %s544_s0 }
 0x221   :  { %v486_v56 = vpop.permute.xlu2 %485 }
 0x222   :  { %v488_v58 = vunpack.i.h.bf16 %v486_v56  ;;  %v487_v59 = vunpack.i.l.bf16 %v486_v56 }
 0x239   :  { %v491_v57 = vpop.permute.xlu0 %490 }
 0x23a   :  { %v493_v60 = vunpack.i.h.bf16 %v491_v57  ;;  %v492_v61 = vunpack.i.l.bf16 %v491_v57 }
 0x23c   :  { %v228_v62 = vsel %vm608_vm0, %v487_v59, %v492_v61  ;;  %v229_v63 = vsel %vm608_vm0, %v488_v58, %v493_v60  ;;  %v714_v0 = vsel %vm612_vm1, %v492_v61, %v487_v59  ;;  %v718_v1 = vsel %vm612_vm1, %v493_v60, %v488_v58 }
 0x23d   :  { %v499_v2 = vpack.i.bf16 %v229_v63, %v228_v62  ;;  %v273_v4 = vpack.c.bf16 %v229_v63, %v228_v62  ;;  %v519_v5 = vpack.i.bf16 %v718_v1, %v714_v0  ;;  %v267_v8 = vpack.c.bf16 %v718_v1, %v714_v0 }
 0x23e   :  { %vm296_vm0 = vcmask 130048  }
 0x23f   :  { %500 = vrot.lane.b32.xlu2 %v499_v2, %s545_s9  ;;  %495 = vrot.lane.b32.xlu1 %v499_v2, %s544_s0 }
 0x240   :  { %300 = vmatpush.bf16.msra.mxu1 %v273_v4  ;;  %520 = vrot.lane.b32.xlu0 %v519_v5, %s545_s9 }
 0x241   :  { %v506_v27 = vpop.permute.xlu0 %505 }
 0x242   :  { %v508_v29 = vunpack.i.h.bf16 %v506_v27  ;;  %v507_v30 = vunpack.i.l.bf16 %v506_v27 }
 0x247   :  { %510 = vrot.lane.b32.xlu1 %v489_v54, %s545_s9  ;;  %515 = vrot.lane.b32.xlu2 %v519_v5, %s544_s0  ;;  %v448_v54 = vor.u32 %v461_v20, %v447_v52 }
 0x248   :  { %396 = vperm.xlu0 %481, %v392_v6  }
 0x24f   :  { %279 = vperm.xlu1 %524, %v275_v24   ;;  %284 = vperm.xlu2 %525, %v276_v26  }
 0x257   :  { %401 = vperm.xlu1 %524, %v393_v36  }
 0x299   :  { %v501_v7 = vpop.permute.xlu2 %500 }
 0x29a   :  { %v503_v10 = vunpack.i.h.bf16 %v501_v7  ;;  %v502_v11 = vunpack.i.l.bf16 %v501_v7 }
 0x2a1   :  { %v516_v38 = vpop.permute.xlu2 %515 }
 0x2a2   :  { %v518_v42 = vunpack.i.h.bf16 %v516_v38  ;;  %v517_v44 = vunpack.i.l.bf16 %v516_v38 }
 0x2a9   :  { %v285_v58 = vpop.permute.xlu2 %284 }
 0x2b1   :  { %v496_v9 = vpop.permute.xlu1 %495 }
 0x2b2   :  { %v498_v12 = vunpack.i.h.bf16 %v496_v9  ;;  %v497_v13 = vunpack.i.l.bf16 %v496_v9  ;;  %v521_v37 = vpop.permute.xlu0 %520 }
 0x2b3   :  { %v523_v3 = vunpack.i.h.bf16 %v521_v37  ;;  %v522_v39 = vunpack.i.l.bf16 %v521_v37 }
 0x2b4   :  { %v262_v16 = vsel %vm646_vm4, %v502_v11, %v497_v13  ;;  %v263_v17 = vsel %vm646_vm4, %v503_v10, %v498_v12  ;;  %v264_v18 = vsel %vm640_vm2, %v497_v13, %v502_v11  ;;  %v265_v19 = vsel %vm640_vm2, %v498_v12, %v503_v10 }
 0x2b5   :  { %v272_v21 = vpack.c.bf16 %v263_v17, %v262_v16  ;;  %v274_v22 = vpack.c.bf16 %v265_v19, %v264_v18  ;;  %v240_v46 = vsel %vm640_vm2, %v517_v44, %v522_v39  ;;  %v241_v47 = vsel %vm640_vm2, %v518_v42, %v523_v3 }
 0x2b6   :  { %v268_v48 = vpack.c.bf16 %v241_v47, %v240_v46  ;;  %v238_v50 = vsel %vm646_vm4, %v522_v39, %v517_v44  ;;  %v239_v51 = vsel %vm646_vm4, %v523_v3, %v518_v42 }
 0x2b7   :  { %301 = vmatpush.bf16.msra.mxu1 %v272_v21  ;;  %321 = vmatpush.bf16.msra.mxu2 %v274_v22  ;;  %v266_v53 = vpack.c.bf16 %v239_v51, %v238_v50 }
 0x2b9   :  { %v511_v28 = vpop.permute.xlu1 %510 }
 0x2ba   :  { %v513_v31 = vunpack.i.h.bf16 %v511_v28  ;;  %v512_v32 = vunpack.i.l.bf16 %v511_v28  ;;  %453 = vmatmul.msk.bf16.vlgmr.msra.gmra.mxu2 %vm296_vm0, %v452_v23 }
 0x2bc   :  { %v252_v33 = vsel %vm640_vm2, %v507_v30, %v512_v32  ;;  %v253_v34 = vsel %vm640_vm2, %v508_v29, %v513_v31  ;;  %v250_v40 = vsel %vm646_vm4, %v512_v32, %v507_v30  ;;  %v251_v41 = vsel %vm646_vm4, %v513_v31, %v508_v29 }
 0x2bd   :  { %v271_v35 = vpack.c.bf16 %v253_v34, %v252_v33  ;;  %v269_v45 = vpack.c.bf16 %v251_v41, %v250_v40 }
 0x2bf   :  { %302 = vmatpush.bf16.msra.mxu1 %v271_v35  ;;  %v425_v35 = vpop.f32.mrf.mxu3 }
 0x2c3   :  { %303 = vmatpush.bf16.msra.mxu1 %v270_v55  ;;  %v280_v55 = vpop.permute.xlu1 %279 }
 0x2c7   :  { %304 = vmatpush.bf16.msra.mxu1 %v269_v45  ;;  %v427_v51 = vpop.f32.mrf.mxu3 }
 0x2cb   :  { %305 = vmatpush.bf16.msra.mxu1 %v268_v48  ;;  %v397_v48 = vpop.permute.xlu0 %396  ;;  %v402_v52 = vpop.permute.xlu1 %401 }
 0x2cf   :  { %306 = vmatpush.bf16.msra.mxu1 %v267_v8 }
 0x2d3   :  { %307 = vmatpush.bf16.msra.mxu1 %v266_v53 }
 0x2d6   :  { %308 = vmatmul.bf16.vlgmr.msra.gmra.mxu1 %v448_v54 }
 0x33d   :  { %v323_v43 = vpop.f32.mrf.mxu2 }
 0x345   :  { %v325_v63 = vpop.f32.mrf.mxu2 }
 0x353   :  { %v309_v25 = vpop.f32.mrf.mxu1 }
 0x354   :  { %v310_v49 = vadd.f32 %v309_v25, %v280_v55  ;;  %v428_v25 = vadd.f32 %v427_v51, %v402_v52 }
 0x356   :  { %v783_v56 = vadd.f32 %v323_v43, %v310_v49  ;;  %v426_v43 = vadd.f32 %v425_v35, %v397_v48 }
 0x358   :  { %v328_v57 = vand.u32 2147483647, %v783_v56  ;;  %vm338_vm1 = vcmp.ge.f32.partialorder %v783_v56, 0.0 }
 0x35a   :  { %v330_v59 = vsub.f32 0.0, %v328_v57 }
 0x35b   :  { %v311_v60 = vpop.f32.mrf.mxu1 }
 0x35c   :  { %v332_v61 = vmul.f32 1.442695, %v330_v59  ;;  %v312_v62 = vadd.f32 %v311_v60, %v285_v58 }
 0x35e   :  { %534 = vpow2.f32 %v332_v61  ;;  %v786_v0 = vadd.f32 %v325_v63, %v312_v62 }
 0x360   :  { %v329_v1 = vand.u32 2147483647, %v786_v0  ;;  %vm339_vm2 = vcmp.ge.f32.partialorder %v786_v0, 0.0 }
 0x362   :  { %v331_v2 = vsub.f32 0.0, %v329_v1 }
 0x364   :  { %v535_v4 = vpop.eup %534  ;;  %v334_v5 = vmul.f32 1.442695, %v331_v2 }
 0x365   :  { %v336_v8 = vmul.f32 %v535_v4, %v535_v4  ;;  %v340_v6 = vmul.f32 2.0, %v535_v4 }
 0x366   :  { %536 = vpow2.f32 %v334_v5 }
 0x367   :  { %v342_v7 = vadd.f32 1.0, %v340_v6  ;;  %v348_v9 = vmul.f32 2.0, %v336_v8  ;;  %v352_v10 = vadd.f32 2.0, %v340_v6  ;;  %v344_v36 = vadd.f32 %v340_v6, %v336_v8 }
 0x369   :  { %v350_v11 = vadd.f32 %v348_v9, %v342_v7  ;;  %v354_v12 = vadd.f32 %v352_v10, %v336_v8  ;;  %v346_v42 = vsel %vm338_vm1, %v342_v7, %v344_v36 }
 0x36b   :  { %v356_v13 = vsel %vm338_vm1, %v350_v11, %v354_v12 }
 0x36c   :  { %v537_v14 = vpop.eup %536  ;;  %538 = vrcp.f32 %v356_v13  ;;  %v369_v29 = vand.u32 2147483648, %v356_v13  ;;  %vm363_vm4 = vweird.f32 %v356_v13  ;;  %v367_v31 = vand.u32 2147483647, %v356_v13 }
 0x36d   :  { %v337_v15 = vmul.f32 %v537_v14, %v537_v14  ;;  %v341_v16 = vmul.f32 2.0, %v537_v14 }
 0x36e   :  { %v370_v37 = vor.u32 1.1754944e-38, %v369_v29  ;;  %vm368_vm9 = vcmp.eq.f32.partialorder %v367_v31, 8.507059e+37 }
 0x36f   :  { %v343_v17 = vadd.f32 1.0, %v341_v16  ;;  %v349_v18 = vmul.f32 2.0, %v337_v15  ;;  %v353_v19 = vadd.f32 2.0, %v341_v16  ;;  %v345_v44 = vadd.f32 %v341_v16, %v337_v15 }
 0x371   :  { %v351_v21 = vadd.f32 %v349_v18, %v343_v17  ;;  %v355_v22 = vadd.f32 %v353_v19, %v337_v15  ;;  %v347_v20 = vsel %vm339_vm2, %v343_v17, %v345_v44 }
 0x372   :  { %v539_v23 = vpop.eup %538 }
 0x373   :  { %v359_v24 = vmul.f32 %v539_v23, %v356_v13  ;;  %v357_v26 = vsel %vm339_vm2, %v351_v21, %v355_v22  ;;  %vm364_vm3 = vweird.f32 %v539_v23 }
 0x374   :  { %540 = vrcp.f32 %v357_v26  ;;  %vm365_vm8 = vmor %vm363_vm4, %vm364_vm3  ;;  %v384_v39 = vand.u32 2147483648, %v357_v26  ;;  %v382_v41 = vand.u32 2147483647, %v357_v26  ;;  %vm378_vm11 = vweird.f32 %v357_v26 }
 0x375   :  { %v360_v27 = vsub.f32 1.0, %v359_v24 }
 0x376   :  { %v385_v47 = vor.u32 1.1754944e-38, %v384_v39  ;;  %vm383_vm13 = vcmp.eq.f32.partialorder %v382_v41, 8.507059e+37 }
 0x377   :  { %v361_v28 = vmul.f32 %v539_v23, %v360_v27 }
 0x379   :  { %v362_v30 = vadd.f32 %v539_v23, %v361_v28 }
 0x37a   :  { %v541_v32 = vpop.eup %540 }
 0x37b   :  { %v366_v33 = vsel %vm365_vm8, %v539_v23, %v362_v30  ;;  %v374_v34 = vmul.f32 %v541_v32, %v357_v26  ;;  %vm379_vm10 = vweird.f32 %v541_v32 }
 0x37c   :  { %v371_v3 = vsel %vm368_vm9, %v370_v37, %v366_v33  ;;  %vm380_vm12 = vmor %vm378_vm11, %vm379_vm10 }
 0x37d   :  { %v375_v38 = vsub.f32 1.0, %v374_v34  ;;  %v372_v45 = vmul.f32 %v371_v3, %v346_v42 }
 0x37f   :  { %v376_v40 = vmul.f32 %v541_v32, %v375_v38  ;;  %v388_v54 = vmul.f32 %v372_v45, %v783_v56 }
 0x381   :  { %v377_v46 = vadd.f32 %v541_v32, %v376_v40  ;;  %v430_v57 = vadd.f32 %v426_v43, %v388_v54 }
 0x383   :  { %v381_v50 = vsel %vm380_vm12, %v541_v32, %v377_v46 }
 0x384   :  { %v386_v53 = vsel %vm383_vm13, %v385_v47, %v381_v50 }
 0x385   :  { %v387_v55 = vmul.f32 %v386_v53, %v347_v20 }
 0x387   :  { %v389_v49 = vmul.f32 %v387_v55, %v786_v0 }
 0x389   :  { %v431_v58 = vadd.f32 %v428_v25, %v389_v49 }
 0x38b   :  { %v466_v59 = vpack.c.bf16 %v431_v58, %v430_v57 }
 0x38d   :  { %467 = vst [vmem:[%s812_s8] sm:$0xff] %v466_v59  }

// kernel: unet_forward.22
= control target key start
LH: loop header
LB: loop body
LE: loop exit
PB: predicated region body
PF: predicated region fallthrough
CT: control target
= control target key end

     0   :  { %s577_s21 = smov 8   ;;  %s578_s22 = smov 120   ;;  %v44_v8 = vlaneseq  ;;  %vm129_vm4 = vcmask 130048   ;;  %vm351_vm12 = vcmask 1043456   ;;  %vm347_vm13 = vcmask 588800   ;;  %s863_s6 = inlined_call_operand.vmem [shape: bf16[16,128], index: 6, kind: input, shape index: {}]   ;;  %s864_s0 = inlined_call_operand.vmem [shape: bf16[16,128], index: 0, kind: input, shape index: {}]   ;;  %s865_s7 = inlined_call_operand.vmem [shape: bf16[8,144], index: 7, kind: input, shape index: {}]   ;;  %s866_s2 = inlined_call_operand.vmem [shape: bf16[8,144], index: 2, kind: input, shape index: {}]   ;;  %s867_s3 = inlined_call_operand.vmem [shape: f32[8,1], index: 3, kind: input, shape index: {}]   ;;  %s868_s1 = inlined_call_operand.vmem [shape: f32[8,2], index: 1, kind: input, shape index: {}]   ;;  %s869_s8 = inlined_call_operand.vmem [shape: bf16[8,16], index: 8, kind: input, shape index: {}]   ;;  %s870_s10 = inlined_call_operand.vmem [shape: bf16[8,16], index: 10, kind: input, shape index: {}]   ;;  %s871_s9 = inlined_call_operand.vmem [shape: f32[8,1], index: 9, kind: input, shape index: {}]   ;;  %s872_s5 = inlined_call_operand.vmem [shape: f32[8,1], index: 5, kind: input, shape index: {}]   ;;  %s873_s4 = inlined_call_operand.vmem [shape: bf16[8,72], index: 4, kind: input, shape index: {}]   ;;  %s874_s11 = inlined_call_operand.vmem [shape: bf16[8,128], index: 11, kind: output, shape index: {}]  }
   0x1   :  { %v646_v0 = vld [vmem:[%s863_s6] sm:$0xff]   ;;  %s579_s23 = smov 127   ;;  %s580_s24 = smov 1  }
   0x2   :  { %v651_v1 = vld [vmem:[%s864_s0] sm:$0xff]   ;;  %v162_v2 = vunpack.c.l.bf16 %v646_v0  ;;  %v163_v3 = vunpack.c.h.bf16 %v646_v0  ;;  %v663_v11 = vand.u32 127, %v44_v8 }
   0x3   :  { %v42_v4 = vunpack.c.l.bf16 %v651_v1  ;;  %v43_v5 = vunpack.c.h.bf16 %v651_v1  ;;  %v752_v8 = vld [vmem:[%s866_s2] sm:$0xff] }
   0x4   :  { %v480_v6 = vpack.i.bf16 %v163_v3, %v162_v2  ;;  %v46_v12 = vand.u32 63, %v663_v11  ;;  %v47_v43 = vand.u32 7, %v663_v11  ;;  %v740_v2 = vld [vmem:[%s865_s7] sm:$0xff] }
   0x5   :  { %v490_v7 = vpack.i.bf16 %v43_v5, %v42_v4  ;;  %v223_v3 = vunpack.c.h.b16 %v740_v2 }
   0x6   :  { %481 = vrot.lane.b32.xlu0 %v480_v6, %s577_s21  ;;  %501 = vrot.lane.b32.xlu2 %v480_v6, %s580_s24  ;;  %vm666_vm0 = vcmp.ge.s32.totalorder %v46_v12, 56  ;;  %vm670_vm1 = vcmp.lt.s32.totalorder %v46_v12, 8  ;;  %vm717_vm2 = vcmp.eq.s32.totalorder %v47_v43, 0  ;;  %vm721_vm3 = vcmp.eq.s32.totalorder %v47_v43, 7 }
   0x7   :  { %491 = vrot.lane.b32.xlu1 %v490_v7, %s577_s21  ;;  %v225_v5 = vpack.c.b16 %v223_v3, %v223_v3 }
   0xe   :  { %486 = vrot.lane.b32.xlu0 %v480_v6, %s578_s22 }
   0xf   :  { %496 = vrot.lane.b32.xlu1 %v490_v7, %s578_s22 }
  0x16   :  { %506 = vrot.lane.b32.xlu0 %v480_v6, %s579_s23 }
  0x60   :  { %v502_v41 = vpop.permute.xlu2 %501 }
  0x61   :  { %v504_v47 = vunpack.i.h.bf16 %v502_v41  ;;  %v503_v48 = vunpack.i.l.bf16 %v502_v41 }
  0x78   :  { %v482_v9 = vpop.permute.xlu0 %481 }
  0x79   :  { %v492_v10 = vpop.permute.xlu1 %491  ;;  %v484_v13 = vunpack.i.h.bf16 %v482_v9  ;;  %v483_v14 = vunpack.i.l.bf16 %v482_v9 }
  0x7a   :  { %v494_v15 = vunpack.i.h.bf16 %v492_v10  ;;  %v493_v16 = vunpack.i.l.bf16 %v492_v10 }
  0x80   :  { %v487_v17 = vpop.permute.xlu0 %486 }
  0x81   :  { %v497_v18 = vpop.permute.xlu1 %496  ;;  %v489_v20 = vunpack.i.h.bf16 %v487_v17  ;;  %v488_v21 = vunpack.i.l.bf16 %v487_v17  ;;  %v125_v17 = vunpack.c.h.b16 %v752_v8 }
  0x82   :  { %v499_v22 = vunpack.i.h.bf16 %v497_v18  ;;  %v498_v23 = vunpack.i.l.bf16 %v497_v18 }
  0x83   :  { %v174_v25 = vsel %vm666_vm0, %v483_v14, %v488_v21  ;;  %v175_v26 = vsel %vm666_vm0, %v484_v13, %v489_v20  ;;  %v684_v33 = vsel %vm670_vm1, %v488_v21, %v483_v14  ;;  %v688_v34 = vsel %vm670_vm1, %v489_v20, %v484_v13 }
  0x84   :  { %v66_v27 = vsel %vm666_vm0, %v493_v16, %v498_v23  ;;  %v67_v28 = vsel %vm666_vm0, %v494_v15, %v499_v22  ;;  %v510_v29 = vpack.i.bf16 %v175_v26, %v174_v25  ;;  %v219_v32 = vpack.c.bf16 %v175_v26, %v174_v25  ;;  %v117_v25 = vld [vmem:[%s867_s3] sm:$0xff] }
  0x85   :  { %v525_v30 = vpack.i.bf16 %v67_v28, %v66_v27  ;;  %v115_v31 = vpack.c.bf16 %v67_v28, %v66_v27  ;;  %v694_v35 = vsel %vm670_vm1, %v498_v23, %v493_v16  ;;  %v699_v36 = vsel %vm670_vm1, %v499_v22, %v494_v15 }
  0x86   :  { %511 = vrot.lane.b32.xlu2 %v510_v29, %s580_s24  ;;  %v213_v37 = vpack.c.bf16 %v688_v34, %v684_v33  ;;  %230 = vmatpush.bf16.msra.mxu2 %v219_v32  ;;  %v109_v38 = vpack.c.bf16 %v699_v36, %v694_v35  ;;  %v540_v39 = vpack.i.bf16 %v688_v34, %v684_v33  ;;  %v581_v28 = vmov 0  }
  0x87   :  { %526 = vrot.lane.b32.xlu1 %v525_v30, %s579_s23  ;;  %521 = vrot.lane.b32.xlu0 %v525_v30, %s580_s24  ;;  %v555_v40 = vpack.i.bf16 %v699_v36, %v694_v35  ;;  %v127_v27 = vpack.c.b16 %v125_v17, %v125_v17 }
  0x88   :  { %133 = vmatpush.bf16.msra.mxu0 %v115_v31  ;;  %v507_v44 = vpop.permute.xlu0 %506  ;;  %560 = vset.pattern.permute.xlu1 %v581_v28 }
  0x89   :  { %v509_v49 = vunpack.i.h.bf16 %v507_v44  ;;  %v508_v50 = vunpack.i.l.bf16 %v507_v44  ;;  %561 = vset.pattern.permute.xlu2 %v581_v28 }
  0x8b   :  { %v198_v62 = vsel %vm721_vm3, %v503_v48, %v508_v50  ;;  %v199_v63 = vsel %vm721_vm3, %v504_v47, %v509_v49  ;;  %v196_v6 = vsel %vm717_vm2, %v508_v50, %v503_v48 }
  0x8c   :  { %v217_v4 = vpack.c.bf16 %v199_v63, %v198_v62 }
  0x8e   :  { %516 = vrot.lane.b32.xlu2 %v510_v29, %s579_s23  ;;  %v293_v29 = vld [vmem:[%s868_s1] sm:$0xff] }
  0x8f   :  { %531 = vrot.lane.b32.xlu1 %v490_v7, %s580_s24  ;;  %541 = vrot.lane.b32.xlu0 %v540_v39, %s580_s24 }
  0x96   :  { %536 = vrot.lane.b32.xlu2 %v490_v7, %s579_s23  ;;  %v197_v7 = vsel %vm717_vm2, %v509_v49, %v504_v47 }
  0x97   :  { %546 = vrot.lane.b32.xlu1 %v540_v39, %s579_s23  ;;  %556 = vrot.lane.b32.xlu0 %v555_v40, %s579_s23  ;;  %v215_v10 = vpack.c.bf16 %v197_v7, %v196_v6  ;;  %v582_v39 = vmov 1  }
  0x98   :  { %562 = vset.pattern.permute.xlu0 %v582_v39 }
  0x9e   :  { %551 = vrot.lane.b32.xlu2 %v555_v40, %s580_s24 }
  0x9f   :  { %120 = vperm.xlu1 %560, %v117_v25   ;;  %306 = vperm.xlu0 %562, %v293_v29  }
  0xa6   :  { %298 = vperm.xlu2 %561, %v293_v29  }
  0xa7   :  { %568 = vset.pattern.permute.xlu0 %v581_v28 }
  0xe0   :  { %v512_v42 = vpop.permute.xlu2 %511 }
  0xe1   :  { %v514_v52 = vunpack.i.h.bf16 %v512_v42  ;;  %v513_v53 = vunpack.i.l.bf16 %v512_v42 }
  0xe8   :  { %v517_v51 = vpop.permute.xlu2 %516 }
  0xe9   :  { %v519_v54 = vunpack.i.h.bf16 %v517_v51  ;;  %v518_v55 = vunpack.i.l.bf16 %v517_v51 }
  0xeb   :  { %v208_v56 = vsel %vm717_vm2, %v518_v55, %v513_v53  ;;  %v209_v57 = vsel %vm717_vm2, %v519_v54, %v514_v52  ;;  %v210_v58 = vsel %vm721_vm3, %v513_v53, %v518_v55  ;;  %v211_v59 = vsel %vm721_vm3, %v514_v52, %v519_v54 }
  0xec   :  { %v218_v60 = vpack.c.bf16 %v209_v57, %v208_v56  ;;  %v220_v61 = vpack.c.bf16 %v211_v59, %v210_v58 }
  0xee   :  { %231 = vmatpush.bf16.msra.mxu2 %v218_v60  ;;  %250 = vmatpush.bf16.msra.mxu3 %v220_v61 }
  0xf0   :  { %v537_v26 = vpop.permute.xlu2 %536 }
  0xf1   :  { %460 = vmatmul.msk.bf16.vlgmr.msra.gmra.mxu3 %vm129_vm4, %v225_v5  ;;  %v539_v30 = vunpack.i.h.bf16 %v537_v26  ;;  %v538_v31 = vunpack.i.l.bf16 %v537_v26 }
  0xf2   :  { %232 = vmatpush.bf16.msra.mxu2 %v217_v4 }
  0xf6   :  { %233 = vmatpush.bf16.msra.mxu2 %v646_v0 }
  0xf8   :  { %v552_v48 = vpop.permute.xlu2 %551 }
  0xf9   :  { %v527_v9 = vpop.permute.xlu1 %526  ;;  %v522_v14 = vpop.permute.xlu0 %521  ;;  %v554_v59 = vunpack.i.h.bf16 %v552_v48  ;;  %v553_v60 = vunpack.i.l.bf16 %v552_v48 }
  0xfa   :  { %v529_v12 = vunpack.i.h.bf16 %v527_v9  ;;  %v528_v13 = vunpack.i.l.bf16 %v527_v9  ;;  %v524_v15 = vunpack.i.h.bf16 %v522_v14  ;;  %v523_v16 = vunpack.i.l.bf16 %v522_v14  ;;  %234 = vmatpush.bf16.msra.mxu2 %v215_v10 }
  0xfb   :  { %v222_v9 = vunpack.c.l.b16 %v740_v2 }
  0xfc   :  { %v104_v18 = vsel %vm717_vm2, %v528_v13, %v523_v16  ;;  %v105_v0 = vsel %vm717_vm2, %v529_v12, %v524_v15  ;;  %v106_v20 = vsel %vm721_vm3, %v523_v16, %v528_v13  ;;  %v107_v21 = vsel %vm721_vm3, %v524_v15, %v529_v12 }
  0xfd   :  { %v114_v22 = vpack.c.bf16 %v105_v0, %v104_v18  ;;  %v116_v23 = vpack.c.bf16 %v107_v21, %v106_v20  ;;  %v224_v12 = vpack.c.b16 %v222_v9, %v222_v9  ;;  %v124_v15 = vunpack.c.l.b16 %v752_v8 }
  0xff   :  { %134 = vmatpush.bf16.msra.mxu0 %v114_v22  ;;  %153 = vmatpush.bf16.msra.mxu1 %v116_v23  ;;  %v126_v16 = vpack.c.b16 %v124_v15, %v124_v15  ;;  %v341_v15 = vld [vmem:[%s872_s5] sm:$0xff] }
 0x101   :  { %v532_v32 = vpop.permute.xlu1 %531  ;;  %v542_v42 = vpop.permute.xlu0 %541 }
 0x102   :  { %v534_v40 = vunpack.i.h.bf16 %v532_v32  ;;  %v533_v41 = vunpack.i.l.bf16 %v532_v32  ;;  %459 = vmatmul.msk.bf16.vlgmr.msra.gmra.mxu1 %vm129_vm4, %v127_v27  ;;  %v544_v49 = vunpack.i.h.bf16 %v542_v42  ;;  %v543_v50 = vunpack.i.l.bf16 %v542_v42 }
 0x104   :  { %v94_v43 = vsel %vm721_vm3, %v533_v41, %v538_v31  ;;  %v95_v44 = vsel %vm721_vm3, %v534_v40, %v539_v30  ;;  %v92_v55 = vsel %vm717_vm2, %v538_v31, %v533_v41  ;;  %v93_v56 = vsel %vm717_vm2, %v539_v30, %v534_v40 }
 0x105   :  { %v113_v47 = vpack.c.bf16 %v95_v44, %v94_v43  ;;  %v111_v63 = vpack.c.bf16 %v93_v56, %v92_v55  ;;  %v289_v44 = vshra.s32 %v663_v11, 6 }
 0x107   :  { %135 = vmatpush.bf16.msra.mxu0 %v113_v47  ;;  %vm805_vm7 = vcmp.eq.s32.totalorder %v289_v44, 0  ;;  %vm302_vm10 = vcmp.eq.s32.totalorder %v289_v44, 1 }
 0x109   :  { %v547_v51 = vpop.permute.xlu1 %546  ;;  %v557_v54 = vpop.permute.xlu0 %556 }
 0x10a   :  { %v549_v52 = vunpack.i.h.bf16 %v547_v51  ;;  %v548_v53 = vunpack.i.l.bf16 %v547_v51  ;;  %v559_v57 = vunpack.i.h.bf16 %v557_v54  ;;  %v558_v58 = vunpack.i.l.bf16 %v557_v54 }
 0x10b   :  { %136 = vmatpush.bf16.msra.mxu0 %v651_v1 }
 0x10c   :  { %v186_v61 = vsel %vm721_vm3, %v543_v50, %v548_v53  ;;  %v187_v62 = vsel %vm721_vm3, %v544_v49, %v549_v52  ;;  %v82_v4 = vsel %vm721_vm3, %v553_v60, %v558_v58  ;;  %v83_v5 = vsel %vm721_vm3, %v554_v59, %v559_v57 }
 0x10d   :  { %v214_v3 = vpack.c.bf16 %v187_v62, %v186_v61  ;;  %v110_v6 = vpack.c.bf16 %v83_v5, %v82_v4  ;;  %v184_v1 = vsel %vm717_vm2, %v548_v53, %v543_v50  ;;  %v185_v7 = vsel %vm717_vm2, %v549_v52, %v544_v49  ;;  %v299_v52 = vpop.permute.xlu2 %298  ;;  %v473_v4 = vld [vmem:[%s863_s6] sm:$0xff] }
 0x10e   :  { %v212_v10 = vpack.c.bf16 %v185_v7, %v184_v1  ;;  %v78_v13 = vsel %vm717_vm2, %v558_v58, %v553_v60  ;;  %v79_v14 = vsel %vm717_vm2, %v559_v57, %v554_v59  ;;  %v301_v56 = vsel %vm805_vm7, %v299_v52, 0.0  ;;  %v399_v5 = vld [vmem:[%s869_s8] sm:$0xf] }
 0x10f   :  { %137 = vmatpush.bf16.msra.mxu0 %v111_v63  ;;  %235 = vmatpush.bf16.msra.mxu2 %v214_v3  ;;  %v108_v2 = vpack.c.bf16 %v79_v14, %v78_v13  ;;  %v472_v3 = vld [vmem:[%s864_s0] sm:$0xff] }
 0x110   :  { %422 = vmatpush.bf16.msrb.mxu3 %v472_v3  ;;  %v400_v13 = vld [vmem:[%s871_s9] sm:$0xff] }
 0x111   :  { %v121_v18 = vpop.permute.xlu1 %120  ;;  %v307_v11 = vpop.permute.xlu0 %306 }
 0x112   :  { %v309_v61 = vsel %vm302_vm10, %v307_v11, %v301_v56 }
 0x113   :  { %138 = vmatpush.bf16.msra.mxu0 %v110_v6  ;;  %236 = vmatpush.bf16.msra.mxu2 %v213_v37  ;;  %v428_v6 = vld [vmem:[%s870_s10] sm:$0xf] }
 0x114   :  { %445 = vmatpush.bf16.msra.mxu3 %v473_v4 }
 0x115   :  { %466 = vmatmul.msk.bf16.vlgmr.msrb.gmra.mxu3 %vm129_vm4, %v399_v5 }
 0x117   :  { %139 = vmatpush.bf16.msra.mxu0 %v109_v38  ;;  %237 = vmatpush.bf16.msra.mxu2 %v212_v10 }
 0x11a   :  { %238 = vmatmul.bf16.vlgmr.msra.gmra.mxu2 %v224_v12 }
 0x11b   :  { %140 = vmatpush.bf16.msra.mxu0 %v108_v2 }
 0x11e   :  { %141 = vmatmul.bf16.vlgmr.msra.gmra.mxu0 %v126_v16 }
 0x125   :  { %471 = vmatmul.msk.bf16.vlgmr.msra.gmra.mxu3 %vm129_vm4, %v428_v6 }
 0x174   :  { %v252_v33 = vpop.f32.mrf.mxu3 }
 0x17c   :  { %v254_v34 = vpop.f32.mrf.mxu3 }
 0x17f   :  { %v155_v37 = vpop.f32.mrf.mxu1 }
 0x187   :  { %v157_v17 = vpop.f32.mrf.mxu1 }
 0x198   :  { %v424_v24 = vpop.f32.mrf.mxu3 }
 0x19b   :  { %v142_v0 = vpop.f32.mrf.mxu0 }
 0x19c   :  { %v143_v20 = vadd.f32 %v142_v0, %v121_v18 }
 0x19d   :  { %v239_v21 = vpop.f32.mrf.mxu2 }
 0x19e   :  { %v156_v22 = vadd.f32 %v155_v37, %v143_v20  ;;  %v253_v8 = vadd.f32 %v252_v33, %v239_v21 }
 0x1a0   :  { %v256_v23 = vadd.f32 %v253_v8, %v156_v22  ;;  %v426_v14 = vpop.f32.mrf.mxu3 }
 0x1a2   :  { %v257_v25 = vand.u32 2147483647, %v256_v23  ;;  %vm262_vm5 = vcmp.ge.f32.partialorder %v256_v23, 0.0 }
 0x1a3   :  { %v144_v35 = vpop.f32.mrf.mxu0 }
 0x1a4   :  { %v258_v36 = vsub.f32 0.0, %v257_v25 }
 0x1a5   :  { %v241_v38 = vpop.f32.mrf.mxu2 }
 0x1a6   :  { %v259_v26 = vmul.f32 1.442695, %v258_v36 }
 0x1a8   :  { %569 = vpow2.f32 %v259_v26  ;;  %v447_v19 = vpop.f32.mrf.mxu3 }
 0x1ae   :  { %v570_v27 = vpop.eup %569 }
 0x1af   :  { %v261_v28 = vmul.f32 %v570_v27, %v570_v27  ;;  %v263_v29 = vmul.f32 2.0, %v570_v27 }
 0x1b0   :  { %v449_v2 = vpop.f32.mrf.mxu3 }
 0x1b1   :  { %v264_v30 = vadd.f32 1.0, %v263_v29  ;;  %v267_v31 = vmul.f32 2.0, %v261_v28  ;;  %v269_v32 = vadd.f32 2.0, %v263_v29  ;;  %v265_v53 = vadd.f32 %v263_v29, %v261_v28 }
 0x1b3   :  { %v268_v39 = vadd.f32 %v267_v31, %v264_v30  ;;  %v270_v40 = vadd.f32 %v269_v32, %v261_v28  ;;  %v266_v58 = vsel %vm262_vm5, %v264_v30, %v265_v53  ;;  %v311_v32 = vld [vmem:[%s873_s4] sm:$0xf] }
 0x1b5   :  { %v271_v41 = vsel %vm262_vm5, %v268_v39, %v270_v40 }
 0x1b6   :  { %571 = vrcp.f32 %v271_v41  ;;  %v283_v48 = vand.u32 2147483648, %v271_v41  ;;  %v281_v50 = vand.u32 2147483647, %v271_v41  ;;  %vm277_vm8 = vweird.f32 %v271_v41 }
 0x1b8   :  { %v284_v55 = vor.u32 1.1754944e-38, %v283_v48  ;;  %vm282_vm11 = vcmp.eq.f32.partialorder %v281_v50, 8.507059e+37 }
 0x1bc   :  { %v572_v42 = vpop.eup %571 }
 0x1bd   :  { %v273_v43 = vmul.f32 %v572_v42, %v271_v41  ;;  %vm278_vm6 = vweird.f32 %v572_v42 }
 0x1be   :  { %vm279_vm9 = vmor %vm277_vm8, %vm278_vm6 }
 0x1bf   :  { %v274_v47 = vsub.f32 1.0, %v273_v43 }
 0x1c1   :  { %v275_v49 = vmul.f32 %v572_v42, %v274_v47 }
 0x1c3   :  { %v276_v54 = vadd.f32 %v572_v42, %v275_v49 }
 0x1c5   :  { %v280_v57 = vsel %vm279_vm9, %v572_v42, %v276_v54 }
 0x1c6   :  { %v285_v59 = vsel %vm282_vm11, %v284_v55, %v280_v57 }
 0x1c7   :  { %v286_v60 = vmul.f32 %v285_v59, %v266_v58 }
 0x1c9   :  { %v287_v62 = vmul.f32 %v286_v60, %v256_v23 }
 0x1cb   :  { %v310_v63 = vadd.f32 %v309_v61, %v287_v62 }
 0x1cd   :  { %314 = vrot.lane.b32.xlu2 %v310_v63, %s578_s22  ;;  %312 = vrot.lane.b32.xlu1 %v310_v63, %s577_s21 }
 0x227   :  { %v315_v1 = vpop.permute.xlu2 %314 }
 0x23f   :  { %v313_v7 = vpop.permute.xlu1 %312 }
 0x240   :  { %v316_v9 = vsel %vm670_vm1, %v315_v1, %v313_v7  ;;  %v317_v10 = vsel %vm666_vm0, %v313_v7, %v315_v1 }
 0x241   :  { %332 = vrot.lane.b32.xlu2 %v317_v10, %s579_s23  ;;  %330 = vrot.lane.b32.xlu1 %v317_v10, %s580_s24  ;;  %v563_v12 = vpack.i.bf16 %v316_v9, %v310_v63 }
 0x243   :  { %564 = vrot.lane.b32.xlu0 %v563_v12, %s580_s24 }
 0x249   :  { %326 = vrot.lane.b32.xlu1 %v310_v63, %s579_s23  ;;  %320 = vrot.lane.b32.xlu2 %v316_v9, %s579_s23 }
 0x24b   :  { %344 = vperm.xlu0 %568, %v341_v15  }
 0x251   :  { %403 = vperm.xlu1 %560, %v400_v13  }
 0x29b   :  { %v333_v16 = vpop.permute.xlu2 %332 }
 0x2a3   :  { %v321_v36 = vpop.permute.xlu2 %320 }
 0x2b3   :  { %v331_v33 = vpop.permute.xlu1 %330 }
 0x2b4   :  { %v335_v34 = vsel %vm721_vm3, %v331_v33, %v333_v16  ;;  %v334_v17 = vsel %vm717_vm2, %v333_v16, %v331_v33 }
 0x2b5   :  { %v340_v37 = vpack.c.bf16 %v335_v34, %v335_v34  ;;  %v565_v18 = vpop.permute.xlu0 %564  ;;  %v339_v21 = vpack.c.bf16 %v317_v10, %v334_v17 }
 0x2b6   :  { %v566_v20 = vunpack.i.l.bf16 %v565_v18  ;;  %v567_v23 = vunpack.i.h.bf16 %v565_v18 }
 0x2b7   :  { %v353_v0 = vsel %vm351_vm12, %v340_v37, 0 }
 0x2b8   :  { %358 = vmatpush.bf16.msrb.mxu1 %v353_v0  ;;  %v323_v38 = vsel %vm721_vm3, %v567_v23, %v321_v36  ;;  %v322_v28 = vsel %vm717_vm2, %v321_v36, %v567_v23 }
 0x2b9   :  { %v336_v31 = vpack.c.bf16 %v316_v9, %v322_v28 }
 0x2bb   :  { %v327_v22 = vpop.permute.xlu1 %326 }
 0x2bc   :  { %v329_v8 = vsel %vm721_vm3, %v566_v20, %v327_v22  ;;  %359 = vmatpush.bf16.msrb.mxu1 %v339_v21  ;;  %v328_v35 = vsel %vm717_vm2, %v327_v22, %v566_v20 }
 0x2bd   :  { %v338_v25 = vpack.c.bf16 %v329_v8, %v310_v63  ;;  %v337_v26 = vpack.c.bf16 %v328_v35, %v323_v38  ;;  %v345_v39 = vpop.permute.xlu0 %344 }
 0x2c0   :  { %360 = vmatpush.bf16.msrb.mxu1 %v338_v25 }
 0x2c3   :  { %v404_v27 = vpop.permute.xlu1 %403 }
 0x2c4   :  { %v425_v29 = vadd.f32 %v424_v24, %v404_v27  ;;  %361 = vmatpush.bf16.msrb.mxu1 %v337_v26 }
 0x2c6   :  { %v451_v30 = vadd.f32 %v447_v19, %v425_v29 }
 0x2c8   :  { %362 = vmatpush.bf16.msrb.mxu1 %v336_v31 }
 0x2cb   :  { %461 = vmatmul.msk.bf16.vlgmr.msrb.gmra.mxu1 %vm347_vm13, %v311_v32 }
 0x348   :  { %v364_v40 = vpop.f32.mrf.mxu1 }
 0x349   :  { %v365_v46 = vadd.f32 %v364_v40, %v345_v39 }
 0x34b   :  { %v368_v41 = vand.u32 2147483647, %v365_v46  ;;  %vm373_vm14 = vcmp.ge.f32.partialorder %v365_v46, 0.0 }
 0x34d   :  { %v369_v42 = vsub.f32 0.0, %v368_v41 }
 0x34f   :  { %v370_v43 = vmul.f32 1.442695, %v369_v42 }
 0x350   :  { %v366_v44 = vpop.f32.mrf.mxu1 }
 0x351   :  { %573 = vpow2.f32 %v370_v43 }
 0x357   :  { %v574_v45 = vpop.eup %573 }
 0x358   :  { %v372_v47 = vmul.f32 %v574_v45, %v574_v45  ;;  %v374_v48 = vmul.f32 2.0, %v574_v45 }
 0x35a   :  { %v375_v49 = vadd.f32 1.0, %v374_v48  ;;  %v378_v50 = vmul.f32 2.0, %v372_v47  ;;  %v380_v51 = vadd.f32 2.0, %v374_v48  ;;  %v376_v60 = vadd.f32 %v374_v48, %v372_v47 }
 0x35c   :  { %v379_v52 = vadd.f32 %v378_v50, %v375_v49  ;;  %v381_v53 = vadd.f32 %v380_v51, %v372_v47  ;;  %v377_v3 = vsel %vm373_vm14, %v375_v49, %v376_v60 }
 0x35e   :  { %v382_v54 = vsel %vm373_vm14, %v379_v52, %v381_v53 }
 0x35f   :  { %575 = vrcp.f32 %v382_v54  ;;  %v394_v57 = vand.u32 2147483648, %v382_v54  ;;  %v392_v59 = vand.u32 2147483647, %v382_v54  ;;  %vm388_vm0 = vweird.f32 %v382_v54 }
 0x361   :  { %v395_v62 = vor.u32 1.1754944e-38, %v394_v57  ;;  %vm393_vm2 = vcmp.eq.f32.partialorder %v392_v59, 8.507059e+37 }
 0x365   :  { %v576_v55 = vpop.eup %575 }
 0x366   :  { %v384_v56 = vmul.f32 %v576_v55, %v382_v54  ;;  %vm389_vm15 = vweird.f32 %v576_v55 }
 0x367   :  { %vm390_vm1 = vmor %vm388_vm0, %vm389_vm15 }
 0x368   :  { %v385_v11 = vsub.f32 1.0, %v384_v56 }
 0x36a   :  { %v386_v58 = vmul.f32 %v576_v55, %v385_v11 }
 0x36c   :  { %v387_v61 = vadd.f32 %v576_v55, %v386_v58 }
 0x36e   :  { %v391_v63 = vsel %vm390_vm1, %v576_v55, %v387_v61 }
 0x36f   :  { %v396_v4 = vsel %vm393_vm2, %v395_v62, %v391_v63 }
 0x370   :  { %v397_v5 = vmul.f32 %v396_v4, %v377_v3 }
 0x372   :  { %v398_v6 = vmul.f32 %v397_v5, %v365_v46 }
 0x374   :  { %v452_v1 = vadd.f32 %v451_v30, %v398_v6 }
 0x376   :  { %v453_v7 = vpack.c.bf16 %v452_v1, %v452_v1 }
 0x378   :  { %454 = vst [vmem:[%s874_s11] sm:$0xf] %v453_v7 }

// kernel: unet_forward.23
= control target key start
LH: loop header
LB: loop body
LE: loop exit
PB: predicated region body
PF: predicated region fallthrough
CT: control target
= control target key end

     0   :  { %s276_s23 = smov 8   ;;  %s277_s24 = smov 120   ;;  %v27_v2 = vlaneseq  ;;  %v280_v15 = vmov 0   ;;  %v281_v16 = vmov 1   ;;  %vm82_vm3 = vcmask 1043456   ;;  %s421_s0 = inlined_call_operand.vmem [shape: bf16[8,128], index: 0, kind: input, shape index: {}]   ;;  %s422_s3 = inlined_call_operand.vmem [shape: f32[8,1], index: 3, kind: input, shape index: {}]   ;;  %s423_s1 = inlined_call_operand.vmem [shape: f32[8,2], index: 1, kind: input, shape index: {}]   ;;  %s424_s2 = inlined_call_operand.vmem [shape: bf16[8,72], index: 2, kind: input, shape index: {}]   ;;  %s425_s5 = inlined_call_operand.vmem [shape: f32[8,1], index: 5, kind: input, shape index: {}]   ;;  %s426_s4 = inlined_call_operand.vmem [shape: bf16[8,72], index: 4, kind: input, shape index: {}]   ;;  %s427_s6 = inlined_call_operand.vmem [shape: bf16[8,128], index: 6, kind: output, shape index: {}]  }
   0x1   :  { %v24_v0 = vld [vmem:[%s421_s0] sm:$0xf]  ;;  %s278_s0 = smov 1   ;;  %s279_s25 = smov 127   ;;  %259 = vset.pattern.permute.xlu1 %v280_v15  ;;  %261 = vset.pattern.permute.xlu0 %v281_v16  ;;  %vm78_vm5 = vcmask 588800  }
   0x2   :  { %v320_v1 = vunpack.c.l.bf16 %v24_v0  ;;  %v326_v3 = vand.u32 127, %v27_v2  ;;  %v72_v13 = vld [vmem:[%s422_s3] sm:$0xff]  ;;  %260 = vset.pattern.permute.xlu2 %v280_v15 }
   0x3   :  { %v135_v14 = vld [vmem:[%s423_s1] sm:$0xff] }
   0x4   :  { %35 = vrot.lane.b32.xlu0 %v320_v1, %s276_s23  ;;  %v29_v5 = vand.u32 63, %v326_v3  ;;  %v30_v18 = vand.u32 7, %v326_v3  ;;  %v25_v38 = vld [vmem:[%s424_s2] sm:$0xf]  ;;  %v131_v57 = vshra.s32 %v326_v3, 6 }
   0x6   :  { %vm329_vm0 = vcmp.ge.s32.totalorder %v29_v5, 56  ;;  %vm333_vm1 = vcmp.lt.s32.totalorder %v29_v5, 8  ;;  %vm355_vm2 = vcmp.eq.s32.totalorder %v30_v18, 7  ;;  %vm361_vm4 = vcmp.eq.s32.totalorder %v30_v18, 0 }
   0x7   :  { %vm134_vm8 = vcmp.eq.s32.totalorder %v131_v57, 0  ;;  %vm144_vm11 = vcmp.eq.s32.totalorder %v131_v57, 1 }
   0xc   :  { %37 = vrot.lane.b32.xlu0 %v320_v1, %s277_s24 }
  0x76   :  { %v36_v4 = vpop.permute.xlu0 %35 }
  0x7e   :  { %v38_v8 = vpop.permute.xlu0 %37 }
  0x7f   :  { %v44_v9 = vsel %vm329_vm0, %v36_v4, %v38_v8  ;;  %v41_v10 = vsel %vm333_vm1, %v38_v8, %v36_v4 }
  0x80   :  { %61 = vrot.lane.b32.xlu1 %v44_v9, %s278_s0  ;;  %47 = vrot.lane.b32.xlu0 %v41_v10, %s279_s25  ;;  %v254_v11 = vpack.i.bf16 %v41_v10, %v320_v1 }
  0x82   :  { %255 = vrot.lane.b32.xlu2 %v254_v11, %s278_s0 }
  0x88   :  { %63 = vrot.lane.b32.xlu1 %v44_v9, %s279_s25  ;;  %148 = vperm.xlu0 %261, %v135_v14  }
  0x8a   :  { %57 = vrot.lane.b32.xlu2 %v320_v1, %s279_s25 }
  0x90   :  { %75 = vperm.xlu1 %259, %v72_v13   ;;  %267 = vset.pattern.permute.xlu0 %v280_v15 }
  0x92   :  { %140 = vperm.xlu2 %260, %v135_v14  }
  0xdc   :  { %v256_v17 = vpop.permute.xlu2 %255 }
  0xdd   :  { %v257_v27 = vunpack.i.l.bf16 %v256_v17  ;;  %v258_v31 = vunpack.i.h.bf16 %v256_v17 }
  0xe4   :  { %v58_v26 = vpop.permute.xlu2 %57 }
  0xe5   :  { %v60_v29 = vsel %vm355_vm2, %v257_v27, %v58_v26  ;;  %v59_v34 = vsel %vm361_vm4, %v58_v26, %v257_v27 }
  0xe6   :  { %v69_v32 = vpack.c.bf16 %v60_v29, %v320_v1 }
  0xec   :  { %v141_v63 = vpop.permute.xlu2 %140 }
  0xed   :  { %v143_v4 = vsel %vm134_vm8, %v141_v63, 0.0 }
  0xf2   :  { %v62_v12 = vpop.permute.xlu1 %61  ;;  %v48_v30 = vpop.permute.xlu0 %47 }
  0xf3   :  { %v54_v33 = vsel %vm355_vm2, %v258_v31, %v48_v30  ;;  %v51_v36 = vsel %vm361_vm4, %v48_v30, %v258_v31 }
  0xf4   :  { %v68_v35 = vpack.c.bf16 %v59_v34, %v54_v33  ;;  %v67_v37 = vpack.c.bf16 %v41_v10, %v51_v36 }
  0xfa   :  { %v64_v20 = vpop.permute.xlu1 %63  ;;  %v149_v5 = vpop.permute.xlu0 %148 }
  0xfb   :  { %v66_v21 = vsel %vm355_vm2, %v62_v12, %v64_v20  ;;  %v65_v24 = vsel %vm361_vm4, %v64_v20, %v62_v12  ;;  %v151_v11 = vsel %vm144_vm11, %v149_v5, %v143_v4  ;;  %v183_v20 = vld [vmem:[%s425_s5] sm:$0xff] }
  0xfc   :  { %v71_v22 = vpack.c.bf16 %v66_v21, %v66_v21  ;;  %v70_v28 = vpack.c.bf16 %v44_v9, %v65_v24 }
  0xfe   :  { %v84_v25 = vsel %vm82_vm3, %v71_v22, 0 }
  0xff   :  { %89 = vmatpush.bf16.msra.mxu0 %v84_v25 }
 0x102   :  { %v76_v39 = vpop.permute.xlu1 %75 }
 0x103   :  { %90 = vmatpush.bf16.msra.mxu0 %v70_v28 }
 0x107   :  { %91 = vmatpush.bf16.msra.mxu0 %v69_v32 }
 0x10b   :  { %92 = vmatpush.bf16.msra.mxu0 %v68_v35 }
 0x10f   :  { %93 = vmatpush.bf16.msra.mxu0 %v67_v37 }
 0x112   :  { %246 = vmatmul.msk.bf16.vlgmr.msra.gmra.mxu0 %vm78_vm5, %v25_v38 }
 0x18f   :  { %v95_v40 = vpop.f32.mrf.mxu0 }
 0x190   :  { %v96_v41 = vadd.f32 %v95_v40, %v76_v39  ;;  %v153_v39 = vld [vmem:[%s426_s4] sm:$0xf] }
 0x192   :  { %v99_v42 = vand.u32 2147483647, %v96_v41  ;;  %vm104_vm6 = vcmp.ge.f32.partialorder %v96_v41, 0.0 }
 0x194   :  { %v100_v43 = vsub.f32 0.0, %v99_v42 }
 0x196   :  { %v101_v44 = vmul.f32 1.442695, %v100_v43 }
 0x197   :  { %v97_v45 = vpop.f32.mrf.mxu0 }
 0x198   :  { %268 = vpow2.f32 %v101_v44 }
 0x19e   :  { %v269_v46 = vpop.eup %268 }
 0x19f   :  { %v103_v47 = vmul.f32 %v269_v46, %v269_v46  ;;  %v105_v48 = vmul.f32 2.0, %v269_v46 }
 0x1a1   :  { %v106_v49 = vadd.f32 1.0, %v105_v48  ;;  %v109_v50 = vmul.f32 2.0, %v103_v47  ;;  %v111_v51 = vadd.f32 2.0, %v105_v48  ;;  %v107_v62 = vadd.f32 %v105_v48, %v103_v47 }
 0x1a3   :  { %v110_v52 = vadd.f32 %v109_v50, %v106_v49  ;;  %v112_v53 = vadd.f32 %v111_v51, %v103_v47  ;;  %v108_v9 = vsel %vm104_vm6, %v106_v49, %v107_v62 }
 0x1a5   :  { %v113_v54 = vsel %vm104_vm6, %v110_v52, %v112_v53 }
 0x1a6   :  { %270 = vrcp.f32 %v113_v54  ;;  %v125_v59 = vand.u32 2147483648, %v113_v54  ;;  %v123_v61 = vand.u32 2147483647, %v113_v54  ;;  %vm119_vm9 = vweird.f32 %v113_v54 }
 0x1a8   :  { %v126_v2 = vor.u32 1.1754944e-38, %v125_v59  ;;  %vm124_vm12 = vcmp.eq.f32.partialorder %v123_v61, 8.507059e+37 }
 0x1ac   :  { %v271_v55 = vpop.eup %270 }
 0x1ad   :  { %v115_v56 = vmul.f32 %v271_v55, %v113_v54  ;;  %vm120_vm7 = vweird.f32 %v271_v55 }
 0x1ae   :  { %vm121_vm10 = vmor %vm119_vm9, %vm120_vm7 }
 0x1af   :  { %v116_v58 = vsub.f32 1.0, %v115_v56 }
 0x1b1   :  { %v117_v60 = vmul.f32 %v271_v55, %v116_v58 }
 0x1b3   :  { %v118_v0 = vadd.f32 %v271_v55, %v117_v60 }
 0x1b5   :  { %v122_v8 = vsel %vm121_vm10, %v271_v55, %v118_v0 }
 0x1b6   :  { %v127_v3 = vsel %vm124_vm12, %v126_v2, %v122_v8 }
 0x1b7   :  { %v128_v10 = vmul.f32 %v127_v3, %v108_v9 }
 0x1b9   :  { %v129_v12 = vmul.f32 %v128_v10, %v96_v41 }
 0x1bb   :  { %v152_v13 = vadd.f32 %v151_v11, %v129_v12 }
 0x1bd   :  { %156 = vrot.lane.b32.xlu2 %v152_v13, %s277_s24  ;;  %154 = vrot.lane.b32.xlu1 %v152_v13, %s276_s23 }
 0x217   :  { %v157_v14 = vpop.permute.xlu2 %156 }
 0x22f   :  { %v155_v15 = vpop.permute.xlu1 %154 }
 0x230   :  { %v158_v16 = vsel %vm333_vm1, %v157_v14, %v155_v15  ;;  %v159_v17 = vsel %vm329_vm0, %v155_v15, %v157_v14 }
 0x231   :  { %174 = vrot.lane.b32.xlu2 %v159_v17, %s279_s25  ;;  %172 = vrot.lane.b32.xlu1 %v159_v17, %s278_s0  ;;  %v262_v18 = vpack.i.bf16 %v158_v16, %v152_v13 }
 0x233   :  { %263 = vrot.lane.b32.xlu0 %v262_v18, %s278_s0 }
 0x239   :  { %168 = vrot.lane.b32.xlu1 %v152_v13, %s279_s25  ;;  %162 = vrot.lane.b32.xlu2 %v158_v16, %s279_s25 }
 0x23b   :  { %186 = vperm.xlu0 %267, %v183_v20  }
 0x28b   :  { %v175_v7 = vpop.permute.xlu2 %174 }
 0x293   :  { %v163_v34 = vpop.permute.xlu2 %162 }
 0x2a3   :  { %v173_v21 = vpop.permute.xlu1 %172 }
 0x2a4   :  { %v177_v6 = vsel %vm355_vm2, %v173_v21, %v175_v7  ;;  %v176_v24 = vsel %vm361_vm4, %v175_v7, %v173_v21 }
 0x2a5   :  { %v182_v22 = vpack.c.bf16 %v177_v6, %v177_v6  ;;  %v264_v25 = vpop.permute.xlu0 %263  ;;  %v181_v28 = vpack.c.bf16 %v159_v17, %v176_v24 }
 0x2a6   :  { %v265_v27 = vunpack.i.l.bf16 %v264_v25  ;;  %v266_v31 = vunpack.i.h.bf16 %v264_v25 }
 0x2a7   :  { %v193_v26 = vsel %vm82_vm3, %v182_v22, 0 }
 0x2a8   :  { %198 = vmatpush.bf16.msra.mxu1 %v193_v26  ;;  %v165_v35 = vsel %vm355_vm2, %v266_v31, %v163_v34  ;;  %v164_v37 = vsel %vm361_vm4, %v163_v34, %v266_v31 }
 0x2a9   :  { %v178_v38 = vpack.c.bf16 %v158_v16, %v164_v37 }
 0x2ab   :  { %v169_v29 = vpop.permute.xlu1 %168 }
 0x2ac   :  { %v171_v30 = vsel %vm355_vm2, %v265_v27, %v169_v29  ;;  %199 = vmatpush.bf16.msra.mxu1 %v181_v28  ;;  %v170_v33 = vsel %vm361_vm4, %v169_v29, %v265_v27 }
 0x2ad   :  { %v180_v32 = vpack.c.bf16 %v171_v30, %v152_v13  ;;  %v179_v36 = vpack.c.bf16 %v170_v33, %v165_v35  ;;  %v187_v40 = vpop.permute.xlu0 %186 }
 0x2b0   :  { %200 = vmatpush.bf16.msra.mxu1 %v180_v32 }
 0x2b4   :  { %201 = vmatpush.bf16.msra.mxu1 %v179_v36 }
 0x2b8   :  { %202 = vmatpush.bf16.msra.mxu1 %v178_v38 }
 0x2bb   :  { %247 = vmatmul.msk.bf16.vlgmr.msra.gmra.mxu1 %vm78_vm5, %v153_v39 }
 0x338   :  { %v204_v41 = vpop.f32.mrf.mxu1 }
 0x339   :  { %v205_v42 = vadd.f32 %v204_v41, %v187_v40 }
 0x33b   :  { %v208_v43 = vand.u32 2147483647, %v205_v42  ;;  %vm213_vm13 = vcmp.ge.f32.partialorder %v205_v42, 0.0 }
 0x33d   :  { %v209_v44 = vsub.f32 0.0, %v208_v43 }
 0x33f   :  { %v210_v19 = vmul.f32 1.442695, %v209_v44 }
 0x340   :  { %v206_v45 = vpop.f32.mrf.mxu1 }
 0x341   :  { %272 = vpow2.f32 %v210_v19 }
 0x347   :  { %v273_v46 = vpop.eup %272 }
 0x348   :  { %v212_v23 = vmul.f32 %v273_v46, %v273_v46  ;;  %v214_v47 = vmul.f32 2.0, %v273_v46 }
 0x34a   :  { %v215_v48 = vadd.f32 1.0, %v214_v47  ;;  %v218_v49 = vmul.f32 2.0, %v212_v23  ;;  %v220_v50 = vadd.f32 2.0, %v214_v47  ;;  %v216_v60 = vadd.f32 %v214_v47, %v212_v23 }
 0x34c   :  { %v219_v51 = vadd.f32 %v218_v49, %v215_v48  ;;  %v221_v52 = vadd.f32 %v220_v50, %v212_v23  ;;  %v217_v0 = vsel %vm213_vm13, %v215_v48, %v216_v60 }
 0x34e   :  { %v222_v53 = vsel %vm213_vm13, %v219_v51, %v221_v52 }
 0x34f   :  { %274 = vrcp.f32 %v222_v53  ;;  %v234_v57 = vand.u32 2147483648, %v222_v53  ;;  %v232_v59 = vand.u32 2147483647, %v222_v53  ;;  %vm228_vm15 = vweird.f32 %v222_v53 }
 0x351   :  { %v235_v62 = vor.u32 1.1754944e-38, %v234_v57  ;;  %vm233_vm1 = vcmp.eq.f32.partialorder %v232_v59, 8.507059e+37 }
 0x355   :  { %v275_v54 = vpop.eup %274 }
 0x356   :  { %v224_v55 = vmul.f32 %v275_v54, %v222_v53  ;;  %vm229_vm14 = vweird.f32 %v275_v54 }
 0x357   :  { %vm230_vm0 = vmor %vm228_vm15, %vm229_vm14 }
 0x358   :  { %v225_v56 = vsub.f32 1.0, %v224_v55 }
 0x35a   :  { %v226_v58 = vmul.f32 %v275_v54, %v225_v56 }
 0x35c   :  { %v227_v61 = vadd.f32 %v275_v54, %v226_v58 }
 0x35e   :  { %v231_v63 = vsel %vm230_vm0, %v275_v54, %v227_v61 }
 0x35f   :  { %v236_v2 = vsel %vm233_vm1, %v235_v62, %v231_v63 }
 0x360   :  { %v237_v4 = vmul.f32 %v236_v2, %v217_v0 }
 0x362   :  { %v238_v5 = vmul.f32 %v237_v4, %v205_v42 }
 0x364   :  { %v239_v8 = vadd.f32 %v238_v5, %v320_v1 }
 0x366   :  { %v240_v9 = vpack.c.bf16 %v239_v8, %v239_v8 }
 0x368   :  { %241 = vst [vmem:[%s427_s6] sm:$0xf] %v240_v9 }

// kernel: unet_forward.24
= control target key start
LH: loop header
LB: loop body
LE: loop exit
PB: predicated region body
PF: predicated region fallthrough
CT: control target
= control target key end

     0   :  { %s204_s14 = smov 120   ;;  %s205_s15 = smov 8   ;;  %v21_v2 = vlaneseq  ;;  %v208_v15 = vmov 0   ;;  %vm107_vm3 = vcmask 1043456   ;;  %vm209_vm8 = vmmov 1   ;;  %s291_s0 = inlined_call_operand.vmem [shape: bf16[8,128], index: 0, kind: input, shape index: {}]   ;;  %s292_s2 = inlined_call_operand.vmem [shape: f32[32,1], index: 2, kind: input, shape index: {}]   ;;  %s293_s1 = inlined_call_operand.vmem [shape: bf16[32,72], index: 1, kind: input, shape index: {}]   ;;  %s294_s3 = inlined_call_operand.vmem [shape: bf16[32,128], index: 3, kind: output, shape index: {}]  }
   0x1   :  { %v15_v0 = vld [vmem:[%s291_s0] sm:$0xf]  ;;  %s206_s16 = smov 127   ;;  %s207_s0 = smov 1   ;;  %v68_v14 = vld [vmem:[%s292_s2 + $0x10] sm:$0xff]  ;;  %201 = vset.pattern.permute.xlu1 %v208_v15  ;;  %203 = vset.pattern.permute.xlu0 %v208_v15  ;;  %v67_v16 = vld [vmem:[%s292_s2 + $0x8] sm:$0xff] }
   0x2   :  { %v20_v1 = vunpack.c.l.bf16 %v15_v0  ;;  %v22_v3 = vand.u32 127, %v21_v2  ;;  %v66_v13 = vld [vmem:[%s292_s2] sm:$0xff]  ;;  %202 = vset.pattern.permute.xlu2 %v208_v15  ;;  %v69_v20 = vld [vmem:[%s292_s2 + $0x18] sm:$0xff]  ;;  %v172_v35 = vld [vmem:[%s293_s1 + $0x8] sm:$0xff]  ;;  %vm100_vm13 = vcmask 588800  }
   0x3   :  { %v171_v34 = vld [vmem:[%s293_s1] sm:$0xff] }
   0x4   :  { %31 = vrot.lane.b32.xlu0 %v20_v1, %s204_s14  ;;  %v23_v4 = vand.u32 63, %v22_v3  ;;  %v24_v12 = vand.u32 7, %v22_v3 }
   0x6   :  { %vm233_vm0 = vcmp.ge.s32.totalorder %v23_v4, 56  ;;  %vm239_vm1 = vcmp.lt.s32.totalorder %v23_v4, 8  ;;  %vm254_vm2 = vcmp.eq.s32.totalorder %v24_v12, 7  ;;  %vm265_vm5 = vcmp.ne.s32.totalorder %v24_v12, 0 }
   0x7   :  { %vm150_vm4 = vmneg %vm233_vm0 }
   0x8   :  { %vm152_vm6 = vmpackc.low %vm150_vm4, %vm265_vm5 }
   0x9   :  { %vm155_vm7 = vmneg %vm254_vm2 }
   0xa   :  { %vm156_vm9 = vmpackc.low %vm155_vm7, %vm209_vm8 }
   0xb   :  { %vm161_vm10 = vmpackc.low %vm265_vm5, %vm155_vm7 }
   0xc   :  { %29 = vrot.lane.b32.xlu0 %v20_v1, %s205_s15  ;;  %vm164_vm11 = vmneg %vm239_vm1 }
   0xd   :  { %vm166_vm12 = vmpackc.low %vm164_vm11, %vm265_vm5 }
  0x76   :  { %v32_v6 = vpop.permute.xlu0 %31 }
  0x77   :  { %v38_v7 = vsel %vm233_vm0, 0.0, %v32_v6 }
  0x78   :  { %57 = vrot.lane.b32.xlu1 %v38_v7, %s206_s16 }
  0x7e   :  { %v30_v9 = vpop.permute.xlu0 %29 }
  0x7f   :  { %v35_v10 = vsel %vm239_vm1, 0.0, %v30_v9 }
  0x80   :  { %55 = vrot.lane.b32.xlu1 %v38_v7, %s207_s0  ;;  %39 = vrot.lane.b32.xlu0 %v35_v10, %s207_s0  ;;  %v196_v11 = vpack.i.bf16 %v35_v10, %v20_v1 }
  0x82   :  { %197 = vrot.lane.b32.xlu2 %v196_v11, %s206_s16 }
  0x88   :  { %72 = vperm.xlu1 %201, %v66_v13   ;;  %82 = vperm.xlu0 %203, %v68_v14  }
  0x8a   :  { %49 = vrot.lane.b32.xlu2 %v20_v1, %s207_s0 }
  0x90   :  { %87 = vperm.xlu1 %201, %v69_v20  }
  0x92   :  { %77 = vperm.xlu2 %202, %v67_v16  }
  0xdc   :  { %v198_v22 = vpop.permute.xlu2 %197 }
  0xdd   :  { %v199_v26 = vunpack.i.l.bf16 %v198_v22  ;;  %v200_v28 = vunpack.i.h.bf16 %v198_v22 }
  0xdf   :  { %v157_v29 = vpack.c.bf16 %v199_v26, %v20_v1 }
  0xe4   :  { %v50_v30 = vpop.permute.xlu2 %49 }
  0xe5   :  { %v162_v31 = vpack.c.bf16 %v50_v30, %v200_v28 }
  0xea   :  { %v58_v18 = vpop.permute.xlu1 %57 }
  0xeb   :  { %v60_v19 = vsel %vm254_vm2, 0.0, %v58_v18 }
  0xec   :  { %v65_v21 = vpack.c.bf16 %v60_v19, %v60_v19  ;;  %v78_v40 = vpop.permute.xlu2 %77 }
  0xee   :  { %v109_v23 = vsel %vm107_vm3, %v65_v21, 0 }
  0xef   :  { %114 = vmatpush.bf16.msra.mxu0 %v109_v23  ;;  %185 = vmatpush.bf16.msra.mxu1 %v109_v23 }
  0xf2   :  { %v56_v25 = vpop.permute.xlu1 %55  ;;  %v40_v32 = vpop.permute.xlu0 %39 }
  0xf3   :  { %v153_v27 = vpack.c.bf16 %v32_v6, %v56_v25  ;;  %v167_v33 = vpack.c.bf16 %v30_v9, %v40_v32 }
  0xf5   :  { %154 = vmatpush.bf16.msk.msra.mxu0 %vm152_vm6, %v153_v27  ;;  %186 = vmatpush.bf16.msk.msra.mxu1 %vm152_vm6, %v153_v27 }
  0xf9   :  { %158 = vmatpush.bf16.msk.msra.mxu0 %vm156_vm9, %v157_v29  ;;  %187 = vmatpush.bf16.msk.msra.mxu1 %vm156_vm9, %v157_v29 }
  0xfa   :  { %v73_v36 = vpop.permute.xlu1 %72  ;;  %v83_v39 = vpop.permute.xlu0 %82 }
  0xfd   :  { %163 = vmatpush.bf16.msk.msra.mxu0 %vm161_vm10, %v162_v31  ;;  %188 = vmatpush.bf16.msk.msra.mxu1 %vm161_vm10, %v162_v31 }
 0x101   :  { %168 = vmatpush.bf16.msk.msra.mxu0 %vm166_vm12, %v167_v33  ;;  %189 = vmatpush.bf16.msk.msra.mxu1 %vm166_vm12, %v167_v33 }
 0x102   :  { %v88_v41 = vpop.permute.xlu1 %87 }
 0x104   :  { %169 = vmatmul.msk.bf16.vlgmr.msra.gmra.mxu0 %vm100_vm13, %v171_v34  ;;  %170 = vmatmul.msk.bf16.vlgmr.msra.gmra.mxu1 %vm100_vm13, %v172_v35 }
 0x181   :  { %v120_v37 = vpop.f32.mrf.mxu0  ;;  %v125_v38 = vpop.f32.mrf.mxu1 }
 0x182   :  { %v121_v44 = vadd.f32 %v120_v37, %v73_v36  ;;  %v126_v45 = vadd.f32 %v125_v38, %v83_v39 }
 0x189   :  { %v122_v42 = vpop.f32.mrf.mxu0  ;;  %v127_v43 = vpop.f32.mrf.mxu1 }
 0x18a   :  { %v123_v46 = vadd.f32 %v122_v42, %v78_v40  ;;  %v128_v47 = vadd.f32 %v127_v43, %v88_v41 }
 0x18c   :  { %v176_v48 = vpack.c.bf16 %v123_v46, %v121_v44  ;;  %v181_v49 = vpack.c.bf16 %v128_v47, %v126_v45 }
 0x18e   :  { %177 = vst [vmem:[%s294_s3] sm:$0xff] %v176_v48  }
 0x18f   :  { %183 = vst [vmem:[%s294_s3 + $0x8] sm:$0xff] %v181_v49  }

// kernel: unet_forward.25
= control target key start
LH: loop header
LB: loop body
LE: loop exit
PB: predicated region body
PF: predicated region fallthrough
CT: control target
= control target key end

     0   :  { %s675_s18 = smov 0   ;;  %s828_s0 = inlined_call_operand.vmem [shape: bf16[8,512], index: 0, kind: input, shape index: {}]   ;;  %s829_s1 = inlined_call_operand.vmem [shape: bf16[8,72], index: 1, kind: input, shape index: {}]   ;;  %s830_s2 = inlined_call_operand.vmem [shape: f32[8,1], index: 2, kind: input, shape index: {}]   ;;  %s831_s3 = inlined_call_operand.vmem [shape: bf16[3,8], index: 3, kind: input, shape index: {}]   ;;  %s832_s4 = inlined_call_operand.vmem [shape: f32[3,1], index: 4, kind: input, shape index: {}]   ;;  %s833_s5 = inlined_call_operand.vmem [shape: f32[3,512], index: 5, kind: output, shape index: {}]  }
   0x1 LB: > { %s554_s19 = sadd.s32 4294967295, %s638_s18   ;;  %p558_p0 = scmp.ge.s32.totalorder %s638_s18, 1  ;;  %s638_s18 = sphi %s675_s18, %s15_s18  }
   0x2   : > { %p188_p1 = scmp.lt.s32.totalorder %s638_s18, 3 }
   0x4   : > { %p189_p2 = pnand %p558_p0, %p188_p1 }
   0x5   : > { %s559_s20 = sshll.u32 (!%p189_p2), %s554_s19, 1  ;;  %s640_s25 = smov (!%p189_p2), 16  }
   0x6   : > { %192 = sbr.rel (%p189_p2) target bundleno = 613 (0x265), region = 40  ;;  %p217_p3 = scmp.lt.s32.totalorder (!%p189_p2), %s559_s20, 3 }
   0x7   : > { %s641_s26 = smov (!%p189_p2), 112   ;;  %s642_s27 = smov (!%p189_p2), 1  }
   0x8   : > { %s643_s28 = smov (!%p189_p2), 127  }
   0xb   : > { %s843_s20 = smov (!%p217_p3, %s559_s20), 3  ;;  %v233_v4 = vlaneseq  ;;  %v342_v25 = vld [vmem:[%s830_s2] sm:$0xff]  ;;  %v644_v28 = vmov 0   ;;  %vm352_vm9 = vcmask 1043456   ;;  %vm348_vm11 = vcmask 588800  }
   0xc   : > { %s560_s21 = sshll.u32 %s843_s20, 2  ;;  %622 = vset.pattern.permute.xlu2 %v644_v28  ;;  %623 = vset.pattern.permute.xlu0 %v644_v28 }
   0xd   : > { %s220_s24 = scalar_lea.vmem %s828_s0, %s560_s21  ;;  %v699_v5 = vand.u32 127, %v233_v4  ;;  %s226_s14 = scalar_lea.vmem %s833_s5, %s560_s21 }
   0xe   : > { %v691_v0 = vld [vmem:[%s220_s24] sm:$0xff] }
   0xf   : > { %v231_v1 = vunpack.c.l.bf16 %v691_v0  ;;  %v232_v2 = vunpack.c.h.bf16 %v691_v0  ;;  %v235_v7 = vadd.s32 128, %v699_v5  ;;  %v236_v8 = vand.u32 255, %v699_v5 }
  0x10   : > { %vm252_vm0 = vcmp.lt.s32.totalorder %v699_v5, 16  ;;  %vm259_vm1 = vcmp.lt.s32.totalorder %v699_v5, 112  ;;  %v238_v26 = vand.u32 15, %v699_v5  ;;  %vm278_vm4 = vcmp.lt.s32.totalorder %v699_v5, 1 }
  0x11   : > { %v582_v3 = vpack.i.bf16 %v232_v2, %v231_v1  ;;  %v237_v9 = vand.u32 255, %v235_v7  ;;  %vm240_vm2 = vcmp.lt.s32.totalorder %v236_v8, 16  ;;  %v239_v27 = vand.u32 15, %v235_v7 }
  0x12   : > { %vm285_vm5 = vcmp.lt.s32.totalorder %v699_v5, 127  ;;  %vm718_vm6 = vcmp.eq.s32.totalorder %v238_v26, 15  ;;  %vm726_vm8 = vcmp.eq.s32.totalorder %v238_v26, 0 }
  0x13   : > { %583 = vrot.lane.b32.xlu0 %v582_v3, %s640_s25  ;;  %603 = vrot.lane.b32.xlu2 %v582_v3, %s642_s27  ;;  %vm243_vm3 = vcmp.ge.s32.totalorder %v237_v9, 240  ;;  %vm722_vm7 = vcmp.eq.s32.totalorder %v239_v27, 15  ;;  %vm742_vm10 = vcmp.eq.s32.totalorder %v239_v27, 0 }
  0x1b   : > { %588 = vrot.lane.b32.xlu0 %v582_v3, %s641_s26  ;;  %608 = vrot.lane.b32.xlu2 %v582_v3, %s643_s28 }
  0x23   : > { %345 = vperm.xlu2 %622, %v342_v25  }
  0x6d   : > { %v604_v23 = vpop.permute.xlu2 %603 }
  0x6e   : > { %v606_v32 = vunpack.i.h.bf16 %v604_v23  ;;  %v605_v38 = vunpack.i.l.bf16 %v604_v23  ;;  %v230_v23 = vld [vmem:[%s829_s1] sm:$0xf] }
  0x70   : > { %v305_v51 = vsel %vm278_vm4, %v606_v32, %v605_v38  ;;  %v304_v59 = vsel %vm278_vm4, %v605_v38, %v606_v32 }
  0x75   : > { %v609_v31 = vpop.permute.xlu2 %608 }
  0x76   : > { %v611_v39 = vunpack.i.h.bf16 %v609_v31  ;;  %v610_v40 = vunpack.i.l.bf16 %v609_v31 }
  0x78   : > { %v310_v58 = vsel %vm285_vm5, %v610_v40, %v611_v39  ;;  %v311_v60 = vsel %vm285_vm5, %v611_v39, %v610_v40 }
  0x79   : > { %v314_v7 = vsel %vm718_vm6, %v305_v51, %v310_v58  ;;  %v315_v8 = vsel %vm722_vm7, %v304_v59, %v311_v60  ;;  %v313_v0 = vsel %vm742_vm10, %v311_v60, %v304_v59 }
  0x85   : > { %v584_v6 = vpop.permute.xlu0 %583 }
  0x86   : > { %v586_v10 = vunpack.i.h.bf16 %v584_v6  ;;  %v585_v11 = vunpack.i.l.bf16 %v584_v6 }
  0x88   : > { %v705_v15 = vsel %vm252_vm0, %v585_v11, %v586_v10  ;;  %v254_v16 = vsel %vm252_vm0, %v586_v10, %v585_v11  ;;  %v336_v11 = vpack.c.bf16 %v314_v7, %v231_v1  ;;  %v312_v1 = vsel %vm726_vm8, %v310_v58, %v305_v51 }
  0x8d   : > { %v589_v12 = vpop.permute.xlu0 %588 }
  0x8e   : > { %v591_v13 = vunpack.i.h.bf16 %v589_v12  ;;  %v590_v14 = vunpack.i.l.bf16 %v589_v12  ;;  %v337_v12 = vpack.c.bf16 %v315_v8, %v232_v2 }
  0x90   : > { %v260_v17 = vsel %vm259_vm1, %v590_v14, %v591_v13  ;;  %v261_v18 = vsel %vm259_vm1, %v591_v13, %v590_v14 }
  0x91   : > { %v707_v19 = vsel %vm240_vm2, %v260_v17, %v254_v16  ;;  %v273_v20 = vsel %vm243_vm3, %v705_v15, %v261_v18 }
  0x92   : > { %v612_v21 = vpack.i.bf16 %v705_v15, %v707_v19  ;;  %v592_v22 = vpack.i.bf16 %v273_v20, %v260_v17 }
  0x94   : > { %613 = vrot.lane.b32.xlu0 %v612_v21, %s642_s27  ;;  %593 = vrot.lane.b32.xlu1 %v592_v22, %s642_s27 }
  0x9c   : > { %598 = vrot.lane.b32.xlu1 %v592_v22, %s643_s28 }
  0xa4   : > { %618 = vrot.lane.b32.xlu1 %v612_v21, %s643_s28 }
 0x106   : > { %v594_v24 = vpop.permute.xlu1 %593  ;;  %v614_v52 = vpop.permute.xlu0 %613 }
 0x107   : > { %v596_v29 = vunpack.i.h.bf16 %v594_v24  ;;  %v595_v30 = vunpack.i.l.bf16 %v594_v24  ;;  %v616_v63 = vunpack.i.h.bf16 %v614_v52  ;;  %v615_v3 = vunpack.i.l.bf16 %v614_v52  ;;  %v346_v24 = vpop.permute.xlu2 %345 }
 0x109   : > { %v321_v42 = vsel %vm278_vm4, %v596_v29, %v595_v30  ;;  %v320_v44 = vsel %vm278_vm4, %v595_v30, %v596_v29  ;;  %v280_v13 = vsel %vm278_vm4, %v616_v63, %v615_v3  ;;  %v279_v14 = vsel %vm278_vm4, %v615_v3, %v616_v63 }
 0x10e   : > { %v599_v33 = vpop.permute.xlu1 %598 }
 0x10f   : > { %v601_v34 = vunpack.i.h.bf16 %v599_v33  ;;  %v600_v35 = vunpack.i.l.bf16 %v599_v33 }
 0x111   : > { %v326_v43 = vsel %vm285_vm5, %v600_v35, %v601_v34  ;;  %v327_v45 = vsel %vm285_vm5, %v601_v34, %v600_v35 }
 0x112   : > { %v330_v46 = vsel %vm718_vm6, %v321_v42, %v326_v43  ;;  %v331_v47 = vsel %vm722_vm7, %v320_v44, %v327_v45  ;;  %v328_v55 = vsel %vm726_vm8, %v326_v43, %v321_v42  ;;  %v329_v56 = vsel %vm742_vm10, %v327_v45, %v320_v44 }
 0x113   : > { %v340_v49 = vpack.c.bf16 %v330_v46, %v330_v46  ;;  %v341_v50 = vpack.c.bf16 %v331_v47, %v331_v47  ;;  %v338_v4 = vpack.c.bf16 %v260_v17, %v328_v55  ;;  %v339_v6 = vpack.c.bf16 %v273_v20, %v329_v56  ;;  %v450_v47 = vld [vmem:[%s832_s4] sm:$0x7] }
 0x114   : > { %453 = vperm.xlu0 %623, %v450_v47  }
 0x115   : > { %v354_v53 = vsel %vm352_vm9, %v340_v49, 0  ;;  %v357_v54 = vsel %vm352_vm9, %v341_v50, 0 }
 0x116   : > { %v619_v57 = vpop.permute.xlu1 %618  ;;  %362 = vmatpush.bf16.msra.mxu0 %v354_v53  ;;  %375 = vmatpush.bf16.msra.mxu1 %v357_v54 }
 0x117   : > { %v621_v61 = vunpack.i.h.bf16 %v619_v57  ;;  %v620_v62 = vunpack.i.l.bf16 %v619_v57 }
 0x119   : > { %v286_v9 = vsel %vm285_vm5, %v620_v62, %v621_v61  ;;  %v287_v10 = vsel %vm285_vm5, %v621_v61, %v620_v62 }
 0x11a   : > { %363 = vmatpush.bf16.msra.mxu0 %v338_v4  ;;  %376 = vmatpush.bf16.msra.mxu1 %v339_v6  ;;  %v298_v16 = vsel %vm718_vm6, %v280_v13, %v286_v9  ;;  %v299_v17 = vsel %vm722_vm7, %v279_v14, %v287_v10  ;;  %v292_v5 = vsel %vm726_vm8, %v286_v9, %v280_v13  ;;  %vm456_vm6 = vcmask 64512  }
 0x11b   : > { %v334_v2 = vpack.c.bf16 %v312_v1, %v298_v16  ;;  %v335_v18 = vpack.c.bf16 %v313_v0, %v299_v17  ;;  %v293_v20 = vsel %vm742_vm10, %v287_v10, %v279_v14  ;;  %v332_v21 = vpack.c.bf16 %v707_v19, %v292_v5 }
 0x11c   : > { %v333_v22 = vpack.c.bf16 %v705_v15, %v293_v20 }
 0x11e   : > { %364 = vmatpush.bf16.msra.mxu0 %v336_v11  ;;  %377 = vmatpush.bf16.msra.mxu1 %v337_v12 }
 0x122   : > { %365 = vmatpush.bf16.msra.mxu0 %v334_v2  ;;  %378 = vmatpush.bf16.msra.mxu1 %v335_v18 }
 0x126   : > { %366 = vmatpush.bf16.msra.mxu0 %v332_v21  ;;  %379 = vmatpush.bf16.msra.mxu1 %v333_v22 }
 0x129   : > { %563 = vmatmul.msk.bf16.vlgmr.msra.gmra.mxu0 %vm348_vm11, %v230_v23  ;;  %564 = vmatmul.msk.bf16.vlgmr.msra.gmra.mxu1 %vm348_vm11, %v230_v23 }
 0x1a6   : > { %v368_v25 = vpop.f32.mrf.mxu0  ;;  %v381_v26 = vpop.f32.mrf.mxu1 }
 0x1a7   : > { %v793_v27 = vadd.f32 %v368_v25, %v346_v24  ;;  %v795_v28 = vadd.f32 %v381_v26, %v346_v24  ;;  %v447_v24 = vld [vmem:[%s831_s3] sm:$0x3]  ;;  %v454_v25 = vpop.permute.xlu0 %453 }
 0x1a9   : > { %v385_v19 = vand.u32 2147483647, %v793_v27  ;;  %v386_v15 = vand.u32 2147483647, %v795_v28  ;;  %vm395_vm12 = vcmp.ge.f32.partialorder %v793_v27, 0.0  ;;  %vm396_vm13 = vcmp.ge.f32.partialorder %v795_v28, 0.0 }
 0x1ab   : > { %v387_v29 = vsub.f32 0.0, %v385_v19  ;;  %v388_v30 = vsub.f32 0.0, %v386_v15 }
 0x1ad   : > { %v389_v31 = vmul.f32 1.442695, %v387_v29  ;;  %v391_v32 = vmul.f32 1.442695, %v388_v30 }
 0x1ae   : > { %v370_v33 = vpop.f32.mrf.mxu0  ;;  %v383_v34 = vpop.f32.mrf.mxu1 }
 0x1af   : > { %624 = vpow2.f32 %v389_v31 }
 0x1b0   : > { %626 = vpow2.f32 %v391_v32 }
 0x1b5   : > { %v625_v35 = vpop.eup %624 }
 0x1b6   : > { %v627_v36 = vpop.eup %626  ;;  %v393_v37 = vmul.f32 %v625_v35, %v625_v35  ;;  %v397_v38 = vmul.f32 2.0, %v625_v35 }
 0x1b7   : > { %v394_v39 = vmul.f32 %v627_v36, %v627_v36  ;;  %v398_v40 = vmul.f32 2.0, %v627_v36 }
 0x1b8   : > { %v399_v41 = vadd.f32 1.0, %v397_v38  ;;  %v405_v42 = vmul.f32 2.0, %v393_v37  ;;  %v409_v43 = vadd.f32 2.0, %v397_v38  ;;  %v401_v3 = vadd.f32 %v397_v38, %v393_v37 }
 0x1b9   : > { %v400_v44 = vadd.f32 1.0, %v398_v40  ;;  %v406_v45 = vmul.f32 2.0, %v394_v39  ;;  %v410_v46 = vadd.f32 2.0, %v398_v40  ;;  %v402_v8 = vadd.f32 %v398_v40, %v394_v39 }
 0x1ba   : > { %v407_v48 = vadd.f32 %v405_v42, %v399_v41  ;;  %v411_v49 = vadd.f32 %v409_v43, %v393_v37  ;;  %v403_v13 = vsel %vm395_vm12, %v399_v41, %v401_v3 }
 0x1bb   : > { %v408_v50 = vadd.f32 %v406_v45, %v400_v44  ;;  %v412_v51 = vadd.f32 %v410_v46, %v394_v39  ;;  %v404_v1 = vsel %vm396_vm13, %v400_v44, %v402_v8 }
 0x1bc   : > { %v413_v52 = vsel %vm395_vm12, %v407_v48, %v411_v49 }
 0x1bd   : > { %628 = vrcp.f32 %v413_v52  ;;  %v414_v53 = vsel %vm396_vm13, %v408_v50, %v412_v51  ;;  %v426_v60 = vand.u32 2147483648, %v413_v52  ;;  %v424_v62 = vand.u32 2147483647, %v413_v52 }
 0x1be   : > { %630 = vrcp.f32 %v414_v53  ;;  %v441_v63 = vand.u32 2147483648, %v414_v53  ;;  %v439_v6 = vand.u32 2147483647, %v414_v53  ;;  %vm420_vm0 = vweird.f32 %v413_v52 }
 0x1bf   : > { %v427_v9 = vor.u32 1.1754944e-38, %v426_v60  ;;  %vm435_vm2 = vweird.f32 %v414_v53  ;;  %vm425_vm3 = vcmp.eq.f32.partialorder %v424_v62, 8.507059e+37 }
 0x1c0   : > { %v442_v12 = vor.u32 1.1754944e-38, %v441_v63  ;;  %vm440_vm5 = vcmp.eq.f32.partialorder %v439_v6, 8.507059e+37 }
 0x1c3   : > { %v629_v54 = vpop.eup %628 }
 0x1c4   : > { %v631_v55 = vpop.eup %630  ;;  %v416_v56 = vmul.f32 %v629_v54, %v413_v52  ;;  %vm421_vm14 = vweird.f32 %v629_v54 }
 0x1c5   : > { %v431_v57 = vmul.f32 %v631_v55, %v414_v53  ;;  %vm436_vm15 = vweird.f32 %v631_v55  ;;  %vm422_vm1 = vmor %vm420_vm0, %vm421_vm14 }
 0x1c6   : > { %v417_v58 = vsub.f32 1.0, %v416_v56  ;;  %vm437_vm4 = vmor %vm435_vm2, %vm436_vm15 }
 0x1c7   : > { %v432_v59 = vsub.f32 1.0, %v431_v57 }
 0x1c8   : > { %v418_v61 = vmul.f32 %v629_v54, %v417_v58 }
 0x1c9   : > { %v433_v4 = vmul.f32 %v631_v55, %v432_v59 }
 0x1ca   : > { %v419_v7 = vadd.f32 %v629_v54, %v418_v61 }
 0x1cb   : > { %v434_v10 = vadd.f32 %v631_v55, %v433_v4 }
 0x1cc   : > { %v423_v11 = vsel %vm422_vm1, %v629_v54, %v419_v7 }
 0x1cd   : > { %v428_v14 = vsel %vm425_vm3, %v427_v9, %v423_v11  ;;  %v438_v16 = vsel %vm437_vm4, %v631_v55, %v434_v10 }
 0x1ce   : > { %v429_v17 = vmul.f32 %v428_v14, %v403_v13  ;;  %v443_v0 = vsel %vm440_vm5, %v442_v12, %v438_v16 }
 0x1cf   : > { %v444_v2 = vmul.f32 %v443_v0, %v404_v1 }
 0x1d0   : > { %v445_v18 = vmul.f32 %v429_v17, %v793_v27 }
 0x1d1   : > { %v446_v5 = vmul.f32 %v444_v2, %v795_v28 }
 0x1d2   : > { %v448_v20 = vpack.c.bf16 %v445_v18, %v445_v18 }
 0x1d3   : > { %v449_v21 = vpack.c.bf16 %v446_v5, %v446_v5 }
 0x1d4   : > { %v461_v22 = vsel %vm352_vm9, %v448_v20, 0 }
 0x1d5   : > { %473 = vmatpush.bf16.msra.mxu2 %v461_v22  ;;  %v464_v23 = vsel %vm352_vm9, %v449_v21, 0 }
 0x1d6   : > { %486 = vmatpush.bf16.msra.mxu3 %v464_v23 }
 0x1d8   : > { %565 = vmatmul.msk.bf16.vlgmr.msra.gmra.mxu2 %vm456_vm6, %v447_v24 }
 0x1d9   : > { %566 = vmatmul.msk.bf16.vlgmr.msra.gmra.mxu3 %vm456_vm6, %v447_v24 }
 0x25b   : > { %v475_v26 = vpop.f32.mrf.mxu2 }
 0x25c   : > { %v488_v27 = vpop.f32.mrf.mxu3  ;;  %v476_v19 = vadd.f32 %v475_v26, %v454_v25 }
 0x25d   : > { %v489_v28 = vadd.f32 %v488_v27, %v454_v25 }
 0x25f   : > { %v494_v15 = vrot.slane %v489_v28, 4 }
 0x261   : > { %v495_v29 = vsel %vm352_vm9, %v476_v19, %v494_v15 }
 0x262   : > { %497 = vst [vmem:[%s226_s14] sm:$0x77] %v495_v29 }
 0x263   : > { %v477_v30 = vpop.f32.mrf.mxu2 }
 0x264   : > { %v490_v31 = vpop.f32.mrf.mxu3 }
 0x265 PF: > { %s15_s18 = sadd.s32 1, %s638_s18  }
 0x266   : > { %p12_p4 = scmp.ge.s32.totalorder %s15_s18, 4  }
 0x268   :  { %14 = sbr.rel (!%p12_p4) target bundleno = 1 (0x1), region = 70 }

</bundles_post_ra>
